<compile_context>
chip_gen: v5e
topology: v5e:2x2
jax: 0.10.0
libtpu: 0.0.40
codegen_flags: <defaults>
</compile_context>

<pallas_src>
import functools
import math

import jax
import jax.numpy as jnp
from jax import lax
from jax.experimental import pallas as pl
from jax.experimental.pallas import tpu as pltpu

_LANE = 128


def _round_up(x, m):
    return ((x + m - 1) // m) * m


def _cround(c):
    return _round_up(max(int(c), 1), _LANE)


def _vmem_limit_bytes():
    # Generation-aware scoped-VMEM budget: ~70% of physical, capped at 96 MiB
    # (v5e/v6e have 128 MiB, v7x only 64 MiB per TensorCore).
    try:
        info = pltpu.get_tpu_info()
        cap = int(getattr(info, "vmem_capacity_bytes", 64 * 1024 * 1024))
    except Exception:
        cap = 64 * 1024 * 1024
    return max(16 * 1024 * 1024, min(int(cap * 0.7), 96 * 1024 * 1024))


_VMEM_LIMIT = _vmem_limit_bytes()

# Tile caps for the fused matmul (multiples of 256 where it matters, per the
# v6e/v7x 2x256x256 MXU).  Double-buffered VMEM use at max tiles is ~4.5 MiB.
_MM_TM_CAP, _MM_TN_CAP, _MM_TK_CAP = 512, 512, 512


def _tile(dim, cap, mult):
    """Pick tile t (multiple of `mult`, <= cap) minimizing round_up(dim, t).

    Ties prefer the larger tile.  Fixes the old over-padding (e.g. K=576 now
    gets tk=128 -> Kp=640 instead of tk=512 -> Kp=1024)."""
    dim = max(int(dim), 1)
    best_t, best_pad = mult, _round_up(dim, mult)
    t = mult
    while t <= cap:
        pad = _round_up(dim, t)
        if pad < best_pad or (pad == best_pad and t > best_t):
            best_t, best_pad = t, pad
        t += mult
    return best_t, best_pad


# ---------------------------------------------------------------------------
# Fused matmul kernels (1x1 convs / stem im2col):  out = relu(A@B * s + c [+ r])
# ---------------------------------------------------------------------------
def _mm_kernel(a_ref, b_ref, s_ref, c_ref, o_ref, acc_ref, *, relu):
    @pl.when(pl.program_id(2) == 0)
    def _():
        acc_ref[...] = jnp.zeros_like(acc_ref)

    acc_ref[...] += jnp.dot(a_ref[...], b_ref[...],
                            preferred_element_type=jnp.float32)

    @pl.when(pl.program_id(2) == pl.num_programs(2) - 1)
    def _():
        y = acc_ref[...] * s_ref[...] + c_ref[...]
        if relu:
            y = jnp.maximum(y, 0.0)
        o_ref[...] = y.astype(o_ref.dtype)


def _mm_res_kernel(a_ref, b_ref, s_ref, c_ref, r_ref, o_ref, acc_ref, *, relu):
    @pl.when(pl.program_id(2) == 0)
    def _():
        acc_ref[...] = jnp.zeros_like(acc_ref)

    acc_ref[...] += jnp.dot(a_ref[...], b_ref[...],
                            preferred_element_type=jnp.float32)

    @pl.when(pl.program_id(2) == pl.num_programs(2) - 1)
    def _():
        y = acc_ref[...] * s_ref[...] + c_ref[...] + r_ref[...].astype(jnp.float32)
        if relu:
            y = jnp.maximum(y, 0.0)
        o_ref[...] = y.astype(o_ref.dtype)


def matmul_affine(a, b, scale, bias, relu=False, residual=None):
    """a:(M,K) bf16, b:(K,N) bf16 (N a 128-multiple, pre-packed), scale/bias:
    (1,N) f32, residual:(M,N) bf16 | None -> (M,N) bf16."""
    M, K = a.shape
    N = b.shape[1]
    tk, Kp = _tile(K, _MM_TK_CAP, 128)
    tn, Np = _tile(N, _MM_TN_CAP, 128)
    tm, Mp = _tile(M, _MM_TM_CAP, 16)
    # v7x has 2 TensorCores: guarantee >= 2 blocks on a parallel axis.
    if (Np // tn) * (Mp // tm) == 1 and M >= 32:
        tm = _round_up((M + 1) // 2, 16)
        Mp = _round_up(M, tm)

    a_p = a if (Mp == M and Kp == K) else jnp.pad(a, ((0, Mp - M), (0, Kp - K)))
    b_p = b if (Kp == K and Np == N) else jnp.pad(b, ((0, Kp - K), (0, Np - N)))
    s_p = scale if Np == N else jnp.pad(scale, ((0, 0), (0, Np - N)))
    c_p = bias if Np == N else jnp.pad(bias, ((0, 0), (0, Np - N)))

    grid = (Np // tn, Mp // tm, Kp // tk)   # N outside M -> weights stay resident
    a_spec = pl.BlockSpec((tm, tk), lambda j, i, k: (i, k))
    b_spec = pl.BlockSpec((tk, tn), lambda j, i, k: (k, j))
    s_spec = pl.BlockSpec((1, tn), lambda j, i, k: (0, j))
    o_spec = pl.BlockSpec((tm, tn), lambda j, i, k: (i, j))

    cost = pl.CostEstimate(
        flops=2 * Mp * Np * Kp, transcendentals=0,
        bytes_accessed=int(a_p.size * 2 + b_p.size * 2 +
                           Mp * Np * 2 * (2 if residual is not None else 1)))
    cparams = pltpu.CompilerParams(
        dimension_semantics=("parallel", "parallel", "arbitrary"),
        vmem_limit_bytes=_VMEM_LIMIT)
    out_shape = jax.ShapeDtypeStruct((Mp, Np), jnp.bfloat16)
    scratch = [pltpu.VMEM((tm, tn), jnp.float32)]

    if residual is None:
        out = pl.pallas_call(
            functools.partial(_mm_kernel, relu=relu),
            out_shape=out_shape, grid=grid,
            in_specs=[a_spec, b_spec, s_spec, s_spec],
            out_specs=o_spec, scratch_shapes=scratch,
            compiler_params=cparams, cost_estimate=cost,
        )(a_p, b_p, s_p, c_p)
    else:
        # TODO(synk): late-fetch the residual (manual DMA near the last K step)
        # instead of parking it for the whole K loop; bf16 already halves it.
        r_p = (residual if (Mp == M and Np == N)
               else jnp.pad(residual, ((0, Mp - M), (0, Np - N))))
        out = pl.pallas_call(
            functools.partial(_mm_res_kernel, relu=relu),
            out_shape=out_shape, grid=grid,
            in_specs=[a_spec, b_spec, s_spec, s_spec, o_spec],
            out_specs=o_spec, scratch_shapes=scratch,
            compiler_params=cparams, cost_estimate=cost,
        )(a_p, b_p, s_p, c_p, r_p)
    return out if Mp == M else out[:M]


def conv1x1(x, w, scale, bias, stride=1, relu=False, residual=None):
    """1x1 conv + affine (+residual, +ReLU).  x NHWC bf16 (C padded to 128)."""
    if stride > 1:
        x = x[:, ::stride, ::stride, :]
    n, oh, ow, cp = x.shape
    M = n * oh * ow
    a = x.reshape(M, cp)
    r = residual.reshape(M, residual.shape[-1]) if residual is not None else None
    y = matmul_affine(a, w, scale, bias, relu=relu, residual=r)
    return y.reshape(n, oh, ow, w.shape[1])


# ---------------------------------------------------------------------------
# Direct 3x3 stride-1 conv (no im2col): per-image kernel, 9 in-kernel taps
# ---------------------------------------------------------------------------
def _conv3x3_kernel(x_ref, w_ref, s_ref, c_ref, o_ref, *, oh, ow, wp, relu):
    # x_ref: (1, Hp*Wp, Cp) spatially-padded, flattened activation (bf16)
    # w_ref: (9, Cp, OCp) bf16;  s/c: (1, OCp) f32;  o_ref: (1, oh, ow, OCp) bf16
    ocp = o_ref.shape[-1]
    rows = (oh - 1) * wp + ow            # covers all valid output positions
    acc = jnp.zeros((rows, ocp), jnp.float32)
    for ky in range(3):
        for kx in range(3):
            off = ky * wp + kx           # contiguous flat slice = shifted window
            a = x_ref[0, off:off + rows, :]
            acc = acc + jnp.dot(a, w_ref[ky * 3 + kx],
                                preferred_element_type=jnp.float32)
    y = acc * s_ref[...] + c_ref[...]
    if relu:
        y = jnp.maximum(y, 0.0)
    y = y.astype(o_ref.dtype)
    for yy in range(oh):                 # store only the ow valid columns per row
        o_ref[0, yy] = y[yy * wp:yy * wp + ow, :]


def conv3x3(x, w9, scale, bias, relu=True):
    """Direct 3x3 / stride 1 / pad 1 conv + affine + ReLU.  x NHWC bf16."""
    n, h, wd, cp = x.shape
    ocp = w9.shape[-1]
    hp, wp = h + 2, wd + 2
    # One spatial pad in XLA (vs the old 9x im2col read/write amplification).
    xp = jnp.pad(x, ((0, 0), (1, 1), (1, 1), (0, 0))).reshape(n, hp * wp, cp)
    # TODO(synk): row-tile the image (halo rows) for very large spatial extents
    # so the per-image block stays within v7x's 64 MiB VMEM.
    out = pl.pallas_call(
        functools.partial(_conv3x3_kernel, oh=h, ow=wd, wp=wp, relu=relu),
        out_shape=jax.ShapeDtypeStruct((n, h, wd, ocp), jnp.bfloat16),
        grid=(n,),
        in_specs=[pl.BlockSpec((1, hp * wp, cp), lambda b: (b, 0, 0)),
                  pl.BlockSpec((9, cp, ocp), lambda b: (0, 0, 0)),
                  pl.BlockSpec((1, ocp), lambda b: (0, 0)),
                  pl.BlockSpec((1, ocp), lambda b: (0, 0))],
        out_specs=pl.BlockSpec((1, h, wd, ocp), lambda b: (b, 0, 0, 0)),
        compiler_params=pltpu.CompilerParams(
            dimension_semantics=("parallel",),
            vmem_limit_bytes=_VMEM_LIMIT),
    )(xp, w9, scale, bias)
    return out


# ---------------------------------------------------------------------------
# Max pool 3x3 / stride 2 / pad 1  (4 stride phases, 9 in-kernel taps)
# ---------------------------------------------------------------------------
def _maxpool_kernel(p00_ref, p01_ref, p10_ref, p11_ref, o_ref, *, oh, ow):
    phases = ((p00_ref, p01_ref), (p10_ref, p11_ref))
    m = None
    for ky in range(3):
        for kx in range(3):
            ref = phases[ky % 2][kx % 2]
            v = ref[0, ky // 2:ky // 2 + oh, kx // 2:kx // 2 + ow, :]
            m = v if m is None else jnp.maximum(m, v)
    o_ref[0] = m


def max_pool2d_3x3s2(x):
    n, h, wd, cp = x.shape
    oh = (h + 2 - 3) // 2 + 1
    ow = (wd + 2 - 3) // 2 + 1
    xp = jnp.pad(x, ((0, 0), (1, 1), (1, 1), (0, 0)), constant_values=-jnp.inf)
    # 4 stride-2 phases: one read+write of x in XLA (vs 9 shifted copies).
    phases = [xp[:, a::2, b::2, :] for a in (0, 1) for b in (0, 1)]
    in_specs = [pl.BlockSpec((1,) + p.shape[1:], lambda b: (b, 0, 0, 0))
                for p in phases]
    out = pl.pallas_call(
        functools.partial(_maxpool_kernel, oh=oh, ow=ow),
        out_shape=jax.ShapeDtypeStruct((n, oh, ow, cp), x.dtype),
        grid=(n,),
        in_specs=in_specs,
        out_specs=pl.BlockSpec((1, oh, ow, cp), lambda b: (b, 0, 0, 0)),
        compiler_params=pltpu.CompilerParams(
            dimension_semantics=("parallel",),
            vmem_limit_bytes=_VMEM_LIMIT),
    )(*phases)
    return out


# ---------------------------------------------------------------------------
# GroupNorm + residual (lane-dense (hw, Cp) blocks, per-group stats in-kernel)
# ---------------------------------------------------------------------------
def _gn_res_kernel(x_ref, r_ref, g_ref, b_ref, o_ref, *, groups, c, eps):
    x = x_ref[0].astype(jnp.float32)            # (hw, Cp)
    cg = c // groups
    cp = x.shape[-1]
    parts = []
    for g in range(groups):
        xs = x[:, g * cg:(g + 1) * cg]
        mu = jnp.mean(xs)
        var = jnp.mean(jnp.square(xs - mu))     # biased variance (torch GN)
        parts.append((xs - mu) * lax.rsqrt(var + eps))
    if cp > c:
        parts.append(jnp.zeros((x.shape[0], cp - c), jnp.float32))
    xn = jnp.concatenate(parts, axis=-1)
    y = xn * g_ref[...] + b_ref[...] + r_ref[0].astype(jnp.float32)
    o_ref[0] = y.astype(o_ref.dtype)


def group_norm_residual(x, gamma, beta, residual, groups, c, eps=1e-5):
    n, h, wd, cp = x.shape
    hw = h * wd
    xf = x.reshape(n, hw, cp)
    rf = residual.reshape(n, hw, cp)
    out = pl.pallas_call(
        functools.partial(_gn_res_kernel, groups=groups, c=c, eps=eps),
        out_shape=jax.ShapeDtypeStruct((n, hw, cp), jnp.bfloat16),
        grid=(n,),
        in_specs=[pl.BlockSpec((1, hw, cp), lambda b: (b, 0, 0)),
                  pl.BlockSpec((1, hw, cp), lambda b: (b, 0, 0)),
                  pl.BlockSpec((1, cp), lambda b: (0, 0)),
                  pl.BlockSpec((1, cp), lambda b: (0, 0))],
        out_specs=pl.BlockSpec((1, hw, cp), lambda b: (b, 0, 0)),
        compiler_params=pltpu.CompilerParams(
            dimension_semantics=("parallel",),
            vmem_limit_bytes=_VMEM_LIMIT),
    )(xf, rf, gamma, beta)
    return out.reshape(n, h, wd, cp)


# ---------------------------------------------------------------------------
# SpatialCGNLx Taylor kernel (two passes, hw axis tiled)
# ---------------------------------------------------------------------------
def _cgnl_sums_kernel(p_ref, g_ref, o_ref, *, order):
    @pl.when(pl.program_id(1) == 0)
    def _():
        o_ref[...] = jnp.zeros_like(o_ref)
    p = p_ref[0].astype(jnp.float32)            # (thw, Cp)
    g = g_ref[0].astype(jnp.float32)
    p_pow = jnp.ones_like(p)
    rows = []
    for o in range(order + 1):
        if o > 0:
            p_pow = p_pow * p
        rows.append(jnp.sum(p_pow * g, axis=0, keepdims=True))   # (1, Cp)
    o_ref[0] += jnp.concatenate(rows, axis=0)


def _cgnl_apply_kernel(t_ref, s_ref, o_ref, *, alphas):
    t = t_ref[0].astype(jnp.float32)            # (thw, Cp)
    s = s_ref[0]                                # (order+1, Cp) f32
    t_pow = jnp.ones_like(t)
    acc = jnp.zeros_like(t)
    for o, alpha in enumerate(alphas):
        if o > 0:
            t_pow = t_pow * t
        acc = acc + (alpha * alpha) * s[o:o + 1, :] * t_pow
    o_ref[0] = acc.astype(o_ref.dtype)


def cgnlx_forward(p, x):
    groups, order = p['groups'], p['order']
    planes, pp = p['planes'], p['planes_p']
    n, h, wd, cp = x.shape
    hw = h * wd
    residual = x

    ones_p = jnp.ones((1, pp), jnp.float32)
    zeros_p = jnp.zeros((1, pp), jnp.float32)
    t = conv1x1(x, p['t_w'], ones_p, zeros_p)
    ph = conv1x1(x, p['p_w'], ones_p, zeros_p)
    g = conv1x1(x, p['g_w'], ones_p, zeros_p)

    if hw <= 512:
        thw, hwp = hw, hw
    else:
        thw = 512
        hwp = _round_up(hw, thw)

    def flat(z):
        zf = z.reshape(n, hw, pp)
        return zf if hwp == hw else jnp.pad(zf, ((0, 0), (0, hwp - hw), (0, 0)))

    tf, pf, gf = flat(t), flat(ph), flat(g)

    # Pass 1: per-channel Taylor sums of p^o * g, accumulated over hw tiles.
    sums = pl.pallas_call(
        functools.partial(_cgnl_sums_kernel, order=order),
        out_shape=jax.ShapeDtypeStruct((n, order + 1, pp), jnp.float32),
        grid=(n, hwp // thw),
        in_specs=[pl.BlockSpec((1, thw, pp), lambda b, l: (b, l, 0)),
                  pl.BlockSpec((1, thw, pp), lambda b, l: (b, l, 0))],
        out_specs=pl.BlockSpec((1, order + 1, pp), lambda b, l: (b, 0, 0)),
        compiler_params=pltpu.CompilerParams(
            dimension_semantics=("parallel", "arbitrary"),
            vmem_limit_bytes=_VMEM_LIMIT),
    )(pf, gf)

    # Tiny XLA glue: per-group reduce, then broadcast back per channel.
    cg = planes // groups
    gs = sums[:, :, :planes].reshape(n, order + 1, groups, cg).sum(-1)
    s_chan = jnp.repeat(gs, cg, axis=-1)
    s_chan = jnp.pad(s_chan, ((0, 0), (0, 0), (0, pp - planes)))

    gamma_c = 1e-4
    beta_c = math.exp(-2.0 * gamma_c)
    alphas = tuple(math.sqrt((2.0 * gamma_c) ** o / math.factorial(o) * beta_c)
                   for o in range(order + 1))

    # Pass 2: out_l = sum_o alpha_o^2 * s_o * t_l^o  (per hw tile).
    xk = pl.pallas_call(
        functools.partial(_cgnl_apply_kernel, alphas=alphas),
        out_shape=jax.ShapeDtypeStruct((n, hwp, pp), jnp.bfloat16),
        grid=(n, hwp // thw),
        in_specs=[pl.BlockSpec((1, thw, pp), lambda b, l: (b, l, 0)),
                  pl.BlockSpec((1, order + 1, pp), lambda b, l: (b, 0, 0))],
        out_specs=pl.BlockSpec((1, thw, pp), lambda b, l: (b, l, 0)),
        compiler_params=pltpu.CompilerParams(
            dimension_semantics=("parallel", "parallel"),
            vmem_limit_bytes=_VMEM_LIMIT),
    )(tf, s_chan)
    xk = (xk if hwp == hw else xk[:, :hw, :]).reshape(n, h, wd, pp)

    # Grouped z-conv as a block-diagonal dense 1x1 conv (weight built at init).
    ones_c = jnp.ones((1, cp), jnp.float32)
    zeros_c = jnp.zeros((1, cp), jnp.float32)
    xz = conv1x1(xk, p['z_w'], ones_c, zeros_c)
    return group_norm_residual(xz, p['gn_w'], p['gn_b'], residual, groups,
                               p['inplanes'])


# ---------------------------------------------------------------------------
# Module forwards (NHWC bf16 internally; NCHW f32 at the public interface)
# ---------------------------------------------------------------------------
def _im2col(x, kh, kw, stride, padding):
    n, h, w, c = x.shape
    xp = jnp.pad(x, ((0, 0), (padding, padding), (padding, padding), (0, 0)))
    oh = (h + 2 * padding - kh) // stride + 1
    ow = (w + 2 * padding - kw) // stride + 1
    cols = [xp[:, i:i + stride * oh:stride, j:j + stride * ow:stride, :]
            for i in range(kh) for j in range(kw)]
    a = jnp.concatenate(cols, axis=-1)
    return a.reshape(n * oh * ow, kh * kw * c), oh, ow


def stem_forward(p, x_nhwc):
    n = x_nhwc.shape[0]
    # TODO(synk): replace the one-shot 7x7 im2col with a strided direct-conv
    # kernel (4 stride phases + 49 in-kernel taps) to remove the 49x read
    # amplification on production-sized inputs; it runs once per forward here.
    a, oh, ow = _im2col(x_nhwc.astype(jnp.bfloat16), 7, 7, 2, 3)
    y = matmul_affine(a, p['conv1_w'], p['bn1_s'], p['bn1_b'], relu=True)
    y = y.reshape(n, oh, ow, y.shape[-1])
    return max_pool2d_3x3s2(y)


def bottleneck_forward(p, x):
    stride = p['stride']                       # STRIDE_IN_1X1 = True
    if 'down_w' in p:
        residual = conv1x1(x, p['down_w'], p['down_s'], p['down_b'], stride=stride)
    else:
        residual = x
    out = conv1x1(x, p['conv1_w'], p['bn1_s'], p['bn1_b'], stride=stride, relu=True)
    out = conv3x3(out, p['conv2_w'], p['bn2_s'], p['bn2_b'], relu=True)
    # conv3 + bn3 + residual + ReLU fused into the matmul epilogue.
    out = conv1x1(out, p['conv3_w'], p['bn3_s'], p['bn3_b'], relu=True,
                  residual=residual)
    return out


def resnet_forward(params, x_nchw):
    x = x_nchw.transpose(0, 2, 3, 1)           # NCHW -> NHWC once
    outputs = []
    x = stem_forward(params['stem'], x)
    for stage in params['stages']:
        for blk in stage['blocks']:
            if blk['type'] == 'bottleneck':
                x = bottleneck_forward(blk, x)
            else:
                x = cgnlx_forward(blk, x)
        if stage['return']:
            c = stage['out_channels']
            outputs.append(x[..., :c].transpose(0, 3, 1, 2).astype(jnp.float32))
    return outputs


# ---------------------------------------------------------------------------
# Parameter construction: weights are pre-packed (transposed / padded / bf16)
# at init time so the forward pass has no weight-path glue.
# ---------------------------------------------------------------------------
def _conv_w(keys, shape, std=None):
    if std is None:
        fan_in = shape[1] * shape[2] * shape[3]
        std = math.sqrt(2.0 / fan_in)
    return std * jax.random.normal(next(keys), shape, jnp.float32)


def _frozen_bn(keys, c):
    s = 0.5 + 0.5 * jax.random.uniform(next(keys), (c,), jnp.float32)
    b = 0.02 * jax.random.normal(next(keys), (c,), jnp.float32)
    return s, b


def _pack_1x1(w):                       # (OC, IC, 1, 1) -> (ICp, OCp) bf16
    oc, ic = w.shape[0], w.shape[1]
    wm = w.reshape(oc, ic).T
    return jnp.pad(wm, ((0, _cround(ic) - ic),
                        (0, _cround(oc) - oc))).astype(jnp.bfloat16)


def _pack_3x3(w):                       # (OC, IC, 3, 3) -> (9, ICp, OCp) bf16
    oc, ic = w.shape[0], w.shape[1]
    wm = w.transpose(2, 3, 1, 0).reshape(9, ic, oc)
    return jnp.pad(wm, ((0, 0), (0, _cround(ic) - ic),
                        (0, _cround(oc) - oc))).astype(jnp.bfloat16)


def _pack_kxk_im2col(w):                # (OC, IC, KH, KW) -> (KH*KW*IC, OCp)
    oc, ic, kh, kw = w.shape
    wm = w.transpose(2, 3, 1, 0).reshape(kh * kw * ic, oc)
    return jnp.pad(wm, ((0, 0), (0, _cround(oc) - oc))).astype(jnp.bfloat16)


def _pack_affine(s, b):                 # (OC,) -> (1, OCp) f32, zero padded
    oc = s.shape[0]
    padn = _cround(oc) - oc
    return (jnp.pad(s.astype(jnp.float32), (0, padn)).reshape(1, -1),
            jnp.pad(b.astype(jnp.float32), (0, padn)).reshape(1, -1))


def _pack_blockdiag_z(w, groups):       # grouped (inpl, planes/g, 1, 1) -> dense
    inp, icg = w.shape[0], w.shape[1]
    planes = icg * groups
    ocg = inp // groups
    wg = w.reshape(groups, ocg, icg)
    dense = jnp.zeros((planes, inp), jnp.float32)
    for g in range(groups):
        dense = dense.at[g * icg:(g + 1) * icg,
                         g * ocg:(g + 1) * ocg].set(wg[g].transpose(1, 0))
    return jnp.pad(dense, ((0, _cround(planes) - planes),
                           (0, _cround(inp) - inp))).astype(jnp.bfloat16)


def _init_bottleneck(keys, in_c, bneck, out_c, stride):
    p = {'type': 'bottleneck', 'stride': stride}
    w = _conv_w(keys, (bneck, in_c, 1, 1)); s, b = _frozen_bn(keys, bneck)
    p['conv1_w'] = _pack_1x1(w); p['bn1_s'], p['bn1_b'] = _pack_affine(s, b)
    w = _conv_w(keys, (bneck, bneck, 3, 3)); s, b = _frozen_bn(keys, bneck)
    p['conv2_w'] = _pack_3x3(w); p['bn2_s'], p['bn2_b'] = _pack_affine(s, b)
    w = _conv_w(keys, (out_c, bneck, 1, 1)); s, b = _frozen_bn(keys, out_c)
    p['conv3_w'] = _pack_1x1(w); p['bn3_s'], p['bn3_b'] = _pack_affine(s, b)
    if in_c != out_c:
        w = _conv_w(keys, (out_c, in_c, 1, 1)); s, b = _frozen_bn(keys, out_c)
        p['down_w'] = _pack_1x1(w); p['down_s'], p['down_b'] = _pack_affine(s, b)
    return p


def _init_cgnlx(keys, inplanes, planes, groups=8, order=3):
    # nl_nums == 1 init: convs ~ N(0, 0.01), GroupNorm weight/bias = 0
    p = {'type': 'cgnlx', 'groups': groups, 'order': order,
         'planes': planes, 'planes_p': _cround(planes), 'inplanes': inplanes}
    p['t_w'] = _pack_1x1(_conv_w(keys, (planes, inplanes, 1, 1), std=0.01))
    p['p_w'] = _pack_1x1(_conv_w(keys, (planes, inplanes, 1, 1), std=0.01))
    p['g_w'] = _pack_1x1(_conv_w(keys, (planes, inplanes, 1, 1), std=0.01))
    p['z_w'] = _pack_blockdiag_z(
        _conv_w(keys, (inplanes, planes // groups, 1, 1), std=0.01), groups)
    p['gn_w'], p['gn_b'] = _pack_affine(jnp.zeros((inplanes,), jnp.float32),
                                        jnp.zeros((inplanes,), jnp.float32))
    return p


def _init_stage(keys, in_c, bneck, out_c, block_count, first_stride):
    blocks = []
    stride = first_stride
    for idx in range(block_count):
        if idx == 5 and block_count == 6:          # nl_type == 'cgnlx' (layer3)
            blocks.append(_init_cgnlx(keys, in_c, in_c // 2, groups=8, order=3))
        blocks.append(_init_bottleneck(keys, in_c, bneck, out_c, stride))
        stride = 1
        in_c = out_c
    return blocks, in_c


def init_resnet(key):
    # cfg (scaled-down): CONV_BODY='R-50-C4', STEM_OUT_CHANNELS=8,
    # NUM_GROUPS=1, WIDTH_PER_GROUP=4, RES2_OUT_CHANNELS=16, STRIDE_IN_1X1=True
    keys = iter(jax.random.split(key, 512))
    stem_out, num_groups, width_per_group, res2_out = 8, 1, 4, 16
    params = {'stem': {}}
    w = _conv_w(keys, (stem_out, 3, 7, 7))
    s, b = _frozen_bn(keys, stem_out)
    params['stem']['conv1_w'] = _pack_kxk_im2col(w)
    params['stem']['bn1_s'], params['stem']['bn1_b'] = _pack_affine(s, b)

    stage_specs = [(1, 3, False), (2, 4, False), (3, 6, True)]    # R-50-C4
    in_c = stem_out
    params['stages'] = []
    for idx, count, ret in stage_specs:
        factor = 2 ** (idx - 1)
        bneck = num_groups * width_per_group * factor
        out_c = res2_out * factor
        first_stride = int(idx > 1) + 1
        blocks, in_c = _init_stage(keys, in_c, bneck, out_c, count, first_stride)
        params['stages'].append({'name': f'layer{idx}', 'blocks': blocks,
                                 'return': ret, 'out_channels': out_c})
    return params


if __name__ == "__main__":
    key = jax.random.PRNGKey(0)
    kx, kp = jax.random.split(key)
    x = jax.random.normal(kx, (2, 3, 32, 32), jnp.float32)   # NCHW, like PyTorch
    params = init_resnet(kp)

    fwd = jax.jit(lambda inp: resnet_forward(params, inp))
    outs = fwd(x)
    for o in outs:
        jax.block_until_ready(o)
    assert len(outs) == 1 and outs[0].shape == (2, 64, 2, 2)
    assert bool(jnp.all(jnp.isfinite(outs[0])))
    print("KERNEL_OK")
</pallas_src>

<mosaic_0001>
module attributes {stable_mosaic.version = 11 : i64} {
  func.func @_mm_kernel(%arg0: i32, %arg1: i32, %arg2: i32, %arg3: memref<256x256xbf16, #tpu.memory_space<vmem>>, %arg4: memref<256x128xbf16, #tpu.memory_space<vmem>>, %arg5: memref<1x128xf32, #tpu.memory_space<vmem>>, %arg6: memref<1x128xf32, #tpu.memory_space<vmem>>, %arg7: memref<256x128xbf16, #tpu.memory_space<vmem>>, %arg8: memref<256x128xf32, #tpu.memory_space<vmem>>) attributes {dimension_semantics = [#tpu.dimension_semantics<parallel>, #tpu.dimension_semantics<parallel>, #tpu.dimension_semantics<arbitrary>], iteration_bounds = array<i64: 1, 2, 1>, scalar_prefetch = 0 : i64, scratch_operands = 1 : i64, tpu.core_type = #tpu.core_type<tc>, window_params = [{transform_indices = @transform_0, window_bounds = array<i64: 256, 256>}, {transform_indices = @transform_1, window_bounds = array<i64: 256, 128>}, {transform_indices = @transform_2, window_bounds = array<i64: 1, 128>}, {transform_indices = @transform_3, window_bounds = array<i64: 1, 128>}, {transform_indices = @transform_4, window_bounds = array<i64: 256, 128>}]} {
    %c0_i32 = arith.constant 0 : i32
    %0 = arith.cmpi eq, %arg2, %c0_i32 : i32
    %1 = arith.extui %0 : i1 to i32
    %c0_i32_0 = arith.constant 0 : i32
    %2 = arith.cmpi ne, %1, %c0_i32_0 : i32
    scf.if %2 {
      %cst_10 = arith.constant 0.000000e+00 : f32
      %12 = vector.broadcast %cst_10 : f32 to vector<256x128xf32>
      %c0_11 = arith.constant 0 : index
      %c0_12 = arith.constant 0 : index
      %13 = vector.load %arg8[%c0_11, %c0_12] : memref<256x128xf32, #tpu.memory_space<vmem>>, vector<256x128xf32>
      tpu.vector_store %arg8[%c0_11, %c0_12], %12 {strides = array<i32>} : memref<256x128xf32, #tpu.memory_space<vmem>>, vector<256x128xf32>,
    } else {
    }
    %c0 = arith.constant 0 : index
    %c0_1 = arith.constant 0 : index
    %3 = vector.load %arg8[%c0, %c0_1] : memref<256x128xf32, #tpu.memory_space<vmem>>, vector<256x128xf32>
    %c0_2 = arith.constant 0 : index
    %c0_3 = arith.constant 0 : index
    %4 = vector.load %arg3[%c0_2, %c0_3] : memref<256x256xbf16, #tpu.memory_space<vmem>>, vector<256x256xbf16>
    %c0_4 = arith.constant 0 : index
    %c0_5 = arith.constant 0 : index
    %5 = vector.load %arg4[%c0_4, %c0_5] : memref<256x128xbf16, #tpu.memory_space<vmem>>, vector<256x128xbf16>
    %cst = arith.constant dense<0.000000e+00> : vector<256x128xf32>
    %6 = tpu.matmul %4, %5, %cst {dimension_numbers = #tpu.dot_dimension_numbers<[1], [0], [0], [1], [0, 0, 1, 1], [], []>} : vector<256x256xbf16>, vector<256x128xbf16>, vector<256x128xf32> -> vector<256x128xf32>
    %7 = arith.addf %3, %6 : vector<256x128xf32>
    %c0_6 = arith.constant 0 : index
    %c0_7 = arith.constant 0 : index
    %8 = vector.load %arg8[%c0_6, %c0_7] : memref<256x128xf32, #tpu.memory_space<vmem>>, vector<256x128xf32>
    tpu.vector_store %arg8[%c0_6, %c0_7], %7 {strides = array<i32>} : memref<256x128xf32, #tpu.memory_space<vmem>>, vector<256x128xf32>,
    %c0_i32_8 = arith.constant 0 : i32
    %9 = arith.cmpi eq, %arg2, %c0_i32_8 : i32
    %10 = arith.extui %9 : i1 to i32
    %c0_i32_9 = arith.constant 0 : i32
    %11 = arith.cmpi ne, %10, %c0_i32_9 : i32
    scf.if %11 {
      %c0_10 = arith.constant 0 : index
      %c0_11 = arith.constant 0 : index
      %12 = vector.load %arg8[%c0_10, %c0_11] : memref<256x128xf32, #tpu.memory_space<vmem>>, vector<256x128xf32>
      %c0_12 = arith.constant 0 : index
      %c0_13 = arith.constant 0 : index
      %13 = vector.load %arg5[%c0_12, %c0_13] : memref<1x128xf32, #tpu.memory_space<vmem>>, vector<1x128xf32>
      %14 = vector.broadcast %13 : vector<1x128xf32> to vector<256x128xf32>
      %15 = arith.mulf %12, %14 : vector<256x128xf32>
      %c0_14 = arith.constant 0 : index
      %c0_15 = arith.constant 0 : index
      %16 = vector.load %arg6[%c0_14, %c0_15] : memref<1x128xf32, #tpu.memory_space<vmem>>, vector<1x128xf32>
      %17 = vector.broadcast %16 : vector<1x128xf32> to vector<256x128xf32>
      %18 = arith.addf %15, %17 : vector<256x128xf32>
      %cst_16 = arith.constant 0.000000e+00 : f32
      %19 = vector.broadcast %cst_16 : f32 to vector<256x128xf32>
      %20 = arith.maximumf %18, %19 : vector<256x128xf32>
      %21 = arith.truncf %20 : vector<256x128xf32> to vector<256x128xbf16>
      %c0_17 = arith.constant 0 : index
      %c0_18 = arith.constant 0 : index
      %22 = vector.load %arg7[%c0_17, %c0_18] : memref<256x128xbf16, #tpu.memory_space<vmem>>, vector<256x128xbf16>
      tpu.vector_store %arg7[%c0_17, %c0_18], %21 {strides = array<i32>} : memref<256x128xbf16, #tpu.memory_space<vmem>>, vector<256x128xbf16>,
    } else {
    }
    return
  }
  func.func @transform_0(%arg0: i32, %arg1: i32, %arg2: i32) -> (i32, i32) {
    %c0_i32 = arith.constant 0 : i32
    return %arg1, %arg2 : i32, i32
  }
  func.func @transform_1(%arg0: i32, %arg1: i32, %arg2: i32) -> (i32, i32) {
    %c0_i32 = arith.constant 0 : i32
    return %arg2, %arg0 : i32, i32
  }
  func.func @transform_2(%arg0: i32, %arg1: i32, %arg2: i32) -> (i32, i32) {
    %c0_i32 = arith.constant 0 : i32
    %c0_i32_0 = arith.constant 0 : i32
    return %c0_i32, %arg0 : i32, i32
  }
  func.func @transform_3(%arg0: i32, %arg1: i32, %arg2: i32) -> (i32, i32) {
    %c0_i32 = arith.constant 0 : i32
    %c0_i32_0 = arith.constant 0 : i32
    return %c0_i32, %arg0 : i32, i32
  }
  func.func @transform_4(%arg0: i32, %arg1: i32, %arg2: i32) -> (i32, i32) {
    %c0_i32 = arith.constant 0 : i32
    return %arg1, %arg0 : i32, i32
  }
}

module attributes {stable_mosaic.version = 11 : i64} {
  func.func @_mm_kernel(%arg0: i32, %arg1: i32, %arg2: i32, %arg3: memref<64x128xbf16, #tpu.memory_space<vmem>>, %arg4: memref<128x128xbf16, #tpu.memory_space<vmem>>, %arg5: memref<1x128xf32, #tpu.memory_space<vmem>>, %arg6: memref<1x128xf32, #tpu.memory_space<vmem>>, %arg7: memref<64x128xbf16, #tpu.memory_space<vmem>>, %arg8: memref<64x128xf32, #tpu.memory_space<vmem>>) attributes {dimension_semantics = [#tpu.dimension_semantics<parallel>, #tpu.dimension_semantics<parallel>, #tpu.dimension_semantics<arbitrary>], iteration_bounds = array<i64: 1, 2, 1>, scalar_prefetch = 0 : i64, scratch_operands = 1 : i64, tpu.core_type = #tpu.core_type<tc>, window_params = [{transform_indices = @transform_0, window_bounds = array<i64: 64, 128>}, {transform_indices = @transform_1, window_bounds = array<i64: 128, 128>}, {transform_indices = @transform_2, window_bounds = array<i64: 1, 128>}, {transform_indices = @transform_3, window_bounds = array<i64: 1, 128>}, {transform_indices = @transform_4, window_bounds = array<i64: 64, 128>}]} {
    %c0_i32 = arith.constant 0 : i32
    %0 = arith.cmpi eq, %arg2, %c0_i32 : i32
    %1 = arith.extui %0 : i1 to i32
    %c0_i32_0 = arith.constant 0 : i32
    %2 = arith.cmpi ne, %1, %c0_i32_0 : i32
    scf.if %2 {
      %cst_10 = arith.constant 0.000000e+00 : f32
      %12 = vector.broadcast %cst_10 : f32 to vector<64x128xf32>
      %c0_11 = arith.constant 0 : index
      %c0_12 = arith.constant 0 : index
      %13 = vector.load %arg8[%c0_11, %c0_12] : memref<64x128xf32, #tpu.memory_space<vmem>>, vector<64x128xf32>
      tpu.vector_store %arg8[%c0_11, %c0_12], %12 {strides = array<i32>} : memref<64x128xf32, #tpu.memory_space<vmem>>, vector<64x128xf32>,
    } else {
    }
    %c0 = arith.constant 0 : index
    %c0_1 = arith.constant 0 : index
    %3 = vector.load %arg8[%c0, %c0_1] : memref<64x128xf32, #tpu.memory_space<vmem>>, vector<64x128xf32>
    %c0_2 = arith.constant 0 : index
    %c0_3 = arith.constant 0 : index
    %4 = vector.load %arg3[%c0_2, %c0_3] : memref<64x128xbf16, #tpu.memory_space<vmem>>, vector<64x128xbf16>
    %c0_4 = arith.constant 0 : index
    %c0_5 = arith.constant 0 : index
    %5 = vector.load %arg4[%c0_4, %c0_5] : memref<128x128xbf16, #tpu.memory_space<vmem>>, vector<128x128xbf16>
    %cst = arith.constant dense<0.000000e+00> : vector<64x128xf32>
    %6 = tpu.matmul %4, %5, %cst {dimension_numbers = #tpu.dot_dimension_numbers<[1], [0], [0], [1], [0, 0, 1, 1], [], []>} : vector<64x128xbf16>, vector<128x128xbf16>, vector<64x128xf32> -> vector<64x128xf32>
    %7 = arith.addf %3, %6 : vector<64x128xf32>
    %c0_6 = arith.constant 0 : index
    %c0_7 = arith.constant 0 : index
    %8 = vector.load %arg8[%c0_6, %c0_7] : memref<64x128xf32, #tpu.memory_space<vmem>>, vector<64x128xf32>
    tpu.vector_store %arg8[%c0_6, %c0_7], %7 {strides = array<i32>} : memref<64x128xf32, #tpu.memory_space<vmem>>, vector<64x128xf32>,
    %c0_i32_8 = arith.constant 0 : i32
    %9 = arith.cmpi eq, %arg2, %c0_i32_8 : i32
    %10 = arith.extui %9 : i1 to i32
    %c0_i32_9 = arith.constant 0 : i32
    %11 = arith.cmpi ne, %10, %c0_i32_9 : i32
    scf.if %11 {
      %c0_10 = arith.constant 0 : index
      %c0_11 = arith.constant 0 : index
      %12 = vector.load %arg8[%c0_10, %c0_11] : memref<64x128xf32, #tpu.memory_space<vmem>>, vector<64x128xf32>
      %c0_12 = arith.constant 0 : index
      %c0_13 = arith.constant 0 : index
      %13 = vector.load %arg5[%c0_12, %c0_13] : memref<1x128xf32, #tpu.memory_space<vmem>>, vector<1x128xf32>
      %14 = vector.broadcast %13 : vector<1x128xf32> to vector<64x128xf32>
      %15 = arith.mulf %12, %14 : vector<64x128xf32>
      %c0_14 = arith.constant 0 : index
      %c0_15 = arith.constant 0 : index
      %16 = vector.load %arg6[%c0_14, %c0_15] : memref<1x128xf32, #tpu.memory_space<vmem>>, vector<1x128xf32>
      %17 = vector.broadcast %16 : vector<1x128xf32> to vector<64x128xf32>
      %18 = arith.addf %15, %17 : vector<64x128xf32>
      %cst_16 = arith.constant 0.000000e+00 : f32
      %19 = vector.broadcast %cst_16 : f32 to vector<64x128xf32>
      %20 = arith.maximumf %18, %19 : vector<64x128xf32>
      %21 = arith.truncf %20 : vector<64x128xf32> to vector<64x128xbf16>
      %c0_17 = arith.constant 0 : index
      %c0_18 = arith.constant 0 : index
      %22 = vector.load %arg7[%c0_17, %c0_18] : memref<64x128xbf16, #tpu.memory_space<vmem>>, vector<64x128xbf16>
      tpu.vector_store %arg7[%c0_17, %c0_18], %21 {strides = array<i32>} : memref<64x128xbf16, #tpu.memory_space<vmem>>, vector<64x128xbf16>,
    } else {
    }
    return
  }
  func.func @transform_0(%arg0: i32, %arg1: i32, %arg2: i32) -> (i32, i32) {
    %c0_i32 = arith.constant 0 : i32
    return %arg1, %arg2 : i32, i32
  }
  func.func @transform_1(%arg0: i32, %arg1: i32, %arg2: i32) -> (i32, i32) {
    %c0_i32 = arith.constant 0 : i32
    return %arg2, %arg0 : i32, i32
  }
  func.func @transform_2(%arg0: i32, %arg1: i32, %arg2: i32) -> (i32, i32) {
    %c0_i32 = arith.constant 0 : i32
    %c0_i32_0 = arith.constant 0 : i32
    return %c0_i32, %arg0 : i32, i32
  }
  func.func @transform_3(%arg0: i32, %arg1: i32, %arg2: i32) -> (i32, i32) {
    %c0_i32 = arith.constant 0 : i32
    %c0_i32_0 = arith.constant 0 : i32
    return %c0_i32, %arg0 : i32, i32
  }
  func.func @transform_4(%arg0: i32, %arg1: i32, %arg2: i32) -> (i32, i32) {
    %c0_i32 = arith.constant 0 : i32
    return %arg1, %arg0 : i32, i32
  }
}

module attributes {stable_mosaic.version = 11 : i64} {
  func.func @_maxpool_kernel(%arg0: i32, %arg1: memref<1x9x9x128xbf16, #tpu.memory_space<vmem>>, %arg2: memref<1x9x9x128xbf16, #tpu.memory_space<vmem>>, %arg3: memref<1x9x9x128xbf16, #tpu.memory_space<vmem>>, %arg4: memref<1x9x9x128xbf16, #tpu.memory_space<vmem>>, %arg5: memref<1x8x8x128xbf16, #tpu.memory_space<vmem>>) attributes {dimension_semantics = [#tpu.dimension_semantics<parallel>], iteration_bounds = array<i64: 2>, scalar_prefetch = 0 : i64, scratch_operands = 0 : i64, tpu.core_type = #tpu.core_type<tc>, window_params = [{transform_indices = @transform_0, window_bounds = array<i64: 1, 9, 9, 128>}, {transform_indices = @transform_1, window_bounds = array<i64: 1, 9, 9, 128>}, {transform_indices = @transform_2, window_bounds = array<i64: 1, 9, 9, 128>}, {transform_indices = @transform_3, window_bounds = array<i64: 1, 9, 9, 128>}, {transform_indices = @transform_4, window_bounds = array<i64: 1, 8, 8, 128>}]} {
    %c0 = arith.constant 0 : index
    %c0_0 = arith.constant 0 : index
    %c0_1 = arith.constant 0 : index
    %c0_2 = arith.constant 0 : index
    %0 = vector.load %arg1[%c0, %c0_0, %c0_1, %c0_2] : memref<1x9x9x128xbf16, #tpu.memory_space<vmem>>, vector<1x8x8x128xbf16>
    %1 = vector.shape_cast %0 : vector<1x8x8x128xbf16> to vector<8x8x128xbf16>
    %c0_3 = arith.constant 0 : index
    %c0_4 = arith.constant 0 : index
    %c0_5 = arith.constant 0 : index
    %c0_6 = arith.constant 0 : index
    %2 = vector.load %arg2[%c0_3, %c0_4, %c0_5, %c0_6] : memref<1x9x9x128xbf16, #tpu.memory_space<vmem>>, vector<1x8x8x128xbf16>
    %3 = vector.shape_cast %2 : vector<1x8x8x128xbf16> to vector<8x8x128xbf16>
    %4 = arith.maximumf %1, %3 : vector<8x8x128xbf16>
    %c0_7 = arith.constant 0 : index
    %c0_8 = arith.constant 0 : index
    %c1 = arith.constant 1 : index
    %c0_9 = arith.constant 0 : index
    %5 = vector.load %arg1[%c0_7, %c0_8, %c1, %c0_9] : memref<1x9x9x128xbf16, #tpu.memory_space<vmem>>, vector<1x8x8x128xbf16>
    %6 = vector.shape_cast %5 : vector<1x8x8x128xbf16> to vector<8x8x128xbf16>
    %7 = arith.maximumf %4, %6 : vector<8x8x128xbf16>
    %c0_10 = arith.constant 0 : index
    %c0_11 = arith.constant 0 : index
    %c0_12 = arith.constant 0 : index
    %c0_13 = arith.constant 0 : index
    %8 = vector.load %arg3[%c0_10, %c0_11, %c0_12, %c0_13] : memref<1x9x9x128xbf16, #tpu.memory_space<vmem>>, vector<1x8x8x128xbf16>
    %9 = vector.shape_cast %8 : vector<1x8x8x128xbf16> to vector<8x8x128xbf16>
    %10 = arith.maximumf %7, %9 : vector<8x8x128xbf16>
    %c0_14 = arith.constant 0 : index
    %c0_15 = arith.constant 0 : index
    %c0_16 = arith.constant 0 : index
    %c0_17 = arith.constant 0 : index
    %11 = vector.load %arg4[%c0_14, %c0_15, %c0_16, %c0_17] : memref<1x9x9x128xbf16, #tpu.memory_space<vmem>>, vector<1x8x8x128xbf16>
    %12 = vector.shape_cast %11 : vector<1x8x8x128xbf16> to vector<8x8x128xbf16>
    %13 = arith.maximumf %10, %12 : vector<8x8x128xbf16>
    %c0_18 = arith.constant 0 : index
    %c0_19 = arith.constant 0 : index
    %c1_20 = arith.constant 1 : index
    %c0_21 = arith.constant 0 : index
    %14 = vector.load %arg3[%c0_18, %c0_19, %c1_20, %c0_21] : memref<1x9x9x128xbf16, #tpu.memory_space<vmem>>, vector<1x8x8x128xbf16>
    %15 = vector.shape_cast %14 : vector<1x8x8x128xbf16> to vector<8x8x128xbf16>
    %16 = arith.maximumf %13, %15 : vector<8x8x128xbf16>
    %c0_22 = arith.constant 0 : index
    %c1_23 = arith.constant 1 : index
    %c0_24 = arith.constant 0 : index
    %c0_25 = arith.constant 0 : index
    %17 = vector.load %arg1[%c0_22, %c1_23, %c0_24, %c0_25] : memref<1x9x9x128xbf16, #tpu.memory_space<vmem>>, vector<1x8x8x128xbf16>
    %18 = vector.shape_cast %17 : vector<1x8x8x128xbf16> to vector<8x8x128xbf16>
    %19 = arith.maximumf %16, %18 : vector<8x8x128xbf16>
    %c0_26 = arith.constant 0 : index
    %c1_27 = arith.constant 1 : index
    %c0_28 = arith.constant 0 : index
    %c0_29 = arith.constant 0 : index
    %20 = vector.load %arg2[%c0_26, %c1_27, %c0_28, %c0_29] : memref<1x9x9x128xbf16, #tpu.memory_space<vmem>>, vector<1x8x8x128xbf16>
    %21 = vector.shape_cast %20 : vector<1x8x8x128xbf16> to vector<8x8x128xbf16>
    %22 = arith.maximumf %19, %21 : vector<8x8x128xbf16>
    %c0_30 = arith.constant 0 : index
    %c1_31 = arith.constant 1 : index
    %c1_32 = arith.constant 1 : index
    %c0_33 = arith.constant 0 : index
    %23 = vector.load %arg1[%c0_30, %c1_31, %c1_32, %c0_33] : memref<1x9x9x128xbf16, #tpu.memory_space<vmem>>, vector<1x8x8x128xbf16>
    %24 = vector.shape_cast %23 : vector<1x8x8x128xbf16> to vector<8x8x128xbf16>
    %25 = arith.maximumf %22, %24 : vector<8x8x128xbf16>
    %c0_34 = arith.constant 0 : index
    %c0_35 = arith.constant 0 : index
    %c0_36 = arith.constant 0 : index
    %c0_37 = arith.constant 0 : index
    %26 = vector.load %arg5[%c0_34, %c0_35, %c0_36, %c0_37] : memref<1x8x8x128xbf16, #tpu.memory_space<vmem>>, vector<1x8x8x128xbf16>
    %27 = vector.shape_cast %26 : vector<1x8x8x128xbf16> to vector<8x8x128xbf16>
    %28 = vector.shape_cast %25 : vector<8x8x128xbf16> to vector<1x8x8x128xbf16>
    tpu.vector_store %arg5[%c0_34, %c0_35, %c0_36, %c0_37], %28 {strides = array<i32>} : memref<1x8x8x128xbf16, #tpu.memory_space<vmem>>, vector<1x8x8x128xbf16>,
    return
  }
  func.func @transform_0(%arg0: i32) -> (i32, i32, i32, i32) {
    %c0_i32 = arith.constant 0 : i32
    %c0_i32_0 = arith.constant 0 : i32
    %c0_i32_1 = arith.constant 0 : i32
    %c0_i32_2 = arith.constant 0 : i32
    return %arg0, %c0_i32, %c0_i32_0, %c0_i32_1 : i32, i32, i32, i32
  }
  func.func @transform_1(%arg0: i32) -> (i32, i32, i32, i32) {
    %c0_i32 = arith.constant 0 : i32
    %c0_i32_0 = arith.constant 0 : i32
    %c0_i32_1 = arith.constant 0 : i32
    %c0_i32_2 = arith.constant 0 : i32
    return %arg0, %c0_i32, %c0_i32_0, %c0_i32_1 : i32, i32, i32, i32
  }
  func.func @transform_2(%arg0: i32) -> (i32, i32, i32, i32) {
    %c0_i32 = arith.constant 0 : i32
    %c0_i32_0 = arith.constant 0 : i32
    %c0_i32_1 = arith.constant 0 : i32
    %c0_i32_2 = arith.constant 0 : i32
    return %arg0, %c0_i32, %c0_i32_0, %c0_i32_1 : i32, i32, i32, i32
  }
  func.func @transform_3(%arg0: i32) -> (i32, i32, i32, i32) {
    %c0_i32 = arith.constant 0 : i32
    %c0_i32_0 = arith.constant 0 : i32
    %c0_i32_1 = arith.constant 0 : i32
    %c0_i32_2 = arith.constant 0 : i32
    return %arg0, %c0_i32, %c0_i32_0, %c0_i32_1 : i32, i32, i32, i32
  }
  func.func @transform_4(%arg0: i32) -> (i32, i32, i32, i32) {
    %c0_i32 = arith.constant 0 : i32
    %c0_i32_0 = arith.constant 0 : i32
    %c0_i32_1 = arith.constant 0 : i32
    %c0_i32_2 = arith.constant 0 : i32
    return %arg0, %c0_i32, %c0_i32_0, %c0_i32_1 : i32, i32, i32, i32
  }
}

module attributes {stable_mosaic.version = 11 : i64} {
  func.func @_mm_kernel(%arg0: i32, %arg1: i32, %arg2: i32, %arg3: memref<64x128xbf16, #tpu.memory_space<vmem>>, %arg4: memref<128x128xbf16, #tpu.memory_space<vmem>>, %arg5: memref<1x128xf32, #tpu.memory_space<vmem>>, %arg6: memref<1x128xf32, #tpu.memory_space<vmem>>, %arg7: memref<64x128xbf16, #tpu.memory_space<vmem>>, %arg8: memref<64x128xf32, #tpu.memory_space<vmem>>) attributes {dimension_semantics = [#tpu.dimension_semantics<parallel>, #tpu.dimension_semantics<parallel>, #tpu.dimension_semantics<arbitrary>], iteration_bounds = array<i64: 1, 2, 1>, scalar_prefetch = 0 : i64, scratch_operands = 1 : i64, tpu.core_type = #tpu.core_type<tc>, window_params = [{transform_indices = @transform_0, window_bounds = array<i64: 64, 128>}, {transform_indices = @transform_1, window_bounds = array<i64: 128, 128>}, {transform_indices = @transform_2, window_bounds = array<i64: 1, 128>}, {transform_indices = @transform_3, window_bounds = array<i64: 1, 128>}, {transform_indices = @transform_4, window_bounds = array<i64: 64, 128>}]} {
    %c0_i32 = arith.constant 0 : i32
    %0 = arith.cmpi eq, %arg2, %c0_i32 : i32
    %1 = arith.extui %0 : i1 to i32
    %c0_i32_0 = arith.constant 0 : i32
    %2 = arith.cmpi ne, %1, %c0_i32_0 : i32
    scf.if %2 {
      %cst_10 = arith.constant 0.000000e+00 : f32
      %12 = vector.broadcast %cst_10 : f32 to vector<64x128xf32>
      %c0_11 = arith.constant 0 : index
      %c0_12 = arith.constant 0 : index
      %13 = vector.load %arg8[%c0_11, %c0_12] : memref<64x128xf32, #tpu.memory_space<vmem>>, vector<64x128xf32>
      tpu.vector_store %arg8[%c0_11, %c0_12], %12 {strides = array<i32>} : memref<64x128xf32, #tpu.memory_space<vmem>>, vector<64x128xf32>,
    } else {
    }
    %c0 = arith.constant 0 : index
    %c0_1 = arith.constant 0 : index
    %3 = vector.load %arg8[%c0, %c0_1] : memref<64x128xf32, #tpu.memory_space<vmem>>, vector<64x128xf32>
    %c0_2 = arith.constant 0 : index
    %c0_3 = arith.constant 0 : index
    %4 = vector.load %arg3[%c0_2, %c0_3] : memref<64x128xbf16, #tpu.memory_space<vmem>>, vector<64x128xbf16>
    %c0_4 = arith.constant 0 : index
    %c0_5 = arith.constant 0 : index
    %5 = vector.load %arg4[%c0_4, %c0_5] : memref<128x128xbf16, #tpu.memory_space<vmem>>, vector<128x128xbf16>
    %cst = arith.constant dense<0.000000e+00> : vector<64x128xf32>
    %6 = tpu.matmul %4, %5, %cst {dimension_numbers = #tpu.dot_dimension_numbers<[1], [0], [0], [1], [0, 0, 1, 1], [], []>} : vector<64x128xbf16>, vector<128x128xbf16>, vector<64x128xf32> -> vector<64x128xf32>
    %7 = arith.addf %3, %6 : vector<64x128xf32>
    %c0_6 = arith.constant 0 : index
    %c0_7 = arith.constant 0 : index
    %8 = vector.load %arg8[%c0_6, %c0_7] : memref<64x128xf32, #tpu.memory_space<vmem>>, vector<64x128xf32>
    tpu.vector_store %arg8[%c0_6, %c0_7], %7 {strides = array<i32>} : memref<64x128xf32, #tpu.memory_space<vmem>>, vector<64x128xf32>,
    %c0_i32_8 = arith.constant 0 : i32
    %9 = arith.cmpi eq, %arg2, %c0_i32_8 : i32
    %10 = arith.extui %9 : i1 to i32
    %c0_i32_9 = arith.constant 0 : i32
    %11 = arith.cmpi ne, %10, %c0_i32_9 : i32
    scf.if %11 {
      %c0_10 = arith.constant 0 : index
      %c0_11 = arith.constant 0 : index
      %12 = vector.load %arg8[%c0_10, %c0_11] : memref<64x128xf32, #tpu.memory_space<vmem>>, vector<64x128xf32>
      %c0_12 = arith.constant 0 : index
      %c0_13 = arith.constant 0 : index
      %13 = vector.load %arg5[%c0_12, %c0_13] : memref<1x128xf32, #tpu.memory_space<vmem>>, vector<1x128xf32>
      %14 = vector.broadcast %13 : vector<1x128xf32> to vector<64x128xf32>
      %15 = arith.mulf %12, %14 : vector<64x128xf32>
      %c0_14 = arith.constant 0 : index
      %c0_15 = arith.constant 0 : index
      %16 = vector.load %arg6[%c0_14, %c0_15] : memref<1x128xf32, #tpu.memory_space<vmem>>, vector<1x128xf32>
      %17 = vector.broadcast %16 : vector<1x128xf32> to vector<64x128xf32>
      %18 = arith.addf %15, %17 : vector<64x128xf32>
      %19 = arith.truncf %18 : vector<64x128xf32> to vector<64x128xbf16>
      %c0_16 = arith.constant 0 : index
      %c0_17 = arith.constant 0 : index
      %20 = vector.load %arg7[%c0_16, %c0_17] : memref<64x128xbf16, #tpu.memory_space<vmem>>, vector<64x128xbf16>
      tpu.vector_store %arg7[%c0_16, %c0_17], %19 {strides = array<i32>} : memref<64x128xbf16, #tpu.memory_space<vmem>>, vector<64x128xbf16>,
    } else {
    }
    return
  }
  func.func @transform_0(%arg0: i32, %arg1: i32, %arg2: i32) -> (i32, i32) {
    %c0_i32 = arith.constant 0 : i32
    return %arg1, %arg2 : i32, i32
  }
  func.func @transform_1(%arg0: i32, %arg1: i32, %arg2: i32) -> (i32, i32) {
    %c0_i32 = arith.constant 0 : i32
    return %arg2, %arg0 : i32, i32
  }
  func.func @transform_2(%arg0: i32, %arg1: i32, %arg2: i32) -> (i32, i32) {
    %c0_i32 = arith.constant 0 : i32
    %c0_i32_0 = arith.constant 0 : i32
    return %c0_i32, %arg0 : i32, i32
  }
  func.func @transform_3(%arg0: i32, %arg1: i32, %arg2: i32) -> (i32, i32) {
    %c0_i32 = arith.constant 0 : i32
    %c0_i32_0 = arith.constant 0 : i32
    return %c0_i32, %arg0 : i32, i32
  }
  func.func @transform_4(%arg0: i32, %arg1: i32, %arg2: i32) -> (i32, i32) {
    %c0_i32 = arith.constant 0 : i32
    return %arg1, %arg0 : i32, i32
  }
}

module attributes {stable_mosaic.version = 11 : i64} {
  func.func @_conv3x3_kernel(%arg0: i32, %arg1: memref<1x100x128xbf16, #tpu.memory_space<vmem>>, %arg2: memref<9x128x128xbf16, #tpu.memory_space<vmem>>, %arg3: memref<1x128xf32, #tpu.memory_space<vmem>>, %arg4: memref<1x128xf32, #tpu.memory_space<vmem>>, %arg5: memref<1x8x8x128xbf16, #tpu.memory_space<vmem>>) attributes {dimension_semantics = [#tpu.dimension_semantics<parallel>], iteration_bounds = array<i64: 2>, scalar_prefetch = 0 : i64, scratch_operands = 0 : i64, tpu.core_type = #tpu.core_type<tc>, window_params = [{transform_indices = @transform_0, window_bounds = array<i64: 1, 100, 128>}, {pipeline_mode = #tpu.pipeline_mode<synchronous>, transform_indices = @transform_1, window_bounds = array<i64: 9, 128, 128>}, {pipeline_mode = #tpu.pipeline_mode<synchronous>, transform_indices = @transform_2, window_bounds = array<i64: 1, 128>}, {pipeline_mode = #tpu.pipeline_mode<synchronous>, transform_indices = @transform_3, window_bounds = array<i64: 1, 128>}, {transform_indices = @transform_4, window_bounds = array<i64: 1, 8, 8, 128>}]} {
    %cst = arith.constant 0.000000e+00 : f32
    %0 = vector.broadcast %cst : f32 to vector<78x128xf32>
    %c0 = arith.constant 0 : index
    %c0_0 = arith.constant 0 : index
    %c0_1 = arith.constant 0 : index
    %1 = vector.load %arg1[%c0, %c0_0, %c0_1] : memref<1x100x128xbf16, #tpu.memory_space<vmem>>, vector<1x78x128xbf16>
    %2 = vector.shape_cast %1 : vector<1x78x128xbf16> to vector<78x128xbf16>
    %c0_2 = arith.constant 0 : index
    %c0_3 = arith.constant 0 : index
    %c0_4 = arith.constant 0 : index
    %3 = vector.load %arg2[%c0_2, %c0_3, %c0_4] : memref<9x128x128xbf16, #tpu.memory_space<vmem>>, vector<1x128x128xbf16>
    %4 = vector.shape_cast %3 : vector<1x128x128xbf16> to vector<128x128xbf16>
    %cst_5 = arith.constant dense<0.000000e+00> : vector<78x128xf32>
    %5 = tpu.matmul %2, %4, %cst_5 {dimension_numbers = #tpu.dot_dimension_numbers<[1], [0], [0], [1], [0, 0, 1, 1], [], []>} : vector<78x128xbf16>, vector<128x128xbf16>, vector<78x128xf32> -> vector<78x128xf32>
    %6 = arith.addf %0, %5 : vector<78x128xf32>
    %c0_6 = arith.constant 0 : index
    %c1 = arith.constant 1 : index
    %c0_7 = arith.constant 0 : index
    %7 = vector.load %arg1[%c0_6, %c1, %c0_7] : memref<1x100x128xbf16, #tpu.memory_space<vmem>>, vector<1x78x128xbf16>
    %8 = vector.shape_cast %7 : vector<1x78x128xbf16> to vector<78x128xbf16>
    %c1_8 = arith.constant 1 : index
    %c0_9 = arith.constant 0 : index
    %c0_10 = arith.constant 0 : index
    %9 = vector.load %arg2[%c1_8, %c0_9, %c0_10] : memref<9x128x128xbf16, #tpu.memory_space<vmem>>, vector<1x128x128xbf16>
    %10 = vector.shape_cast %9 : vector<1x128x128xbf16> to vector<128x128xbf16>
    %cst_11 = arith.constant dense<0.000000e+00> : vector<78x128xf32>
    %11 = tpu.matmul %8, %10, %cst_11 {dimension_numbers = #tpu.dot_dimension_numbers<[1], [0], [0], [1], [0, 0, 1, 1], [], []>} : vector<78x128xbf16>, vector<128x128xbf16>, vector<78x128xf32> -> vector<78x128xf32>
    %12 = arith.addf %6, %11 : vector<78x128xf32>
    %c0_12 = arith.constant 0 : index
    %c2 = arith.constant 2 : index
    %c0_13 = arith.constant 0 : index
    %13 = vector.load %arg1[%c0_12, %c2, %c0_13] : memref<1x100x128xbf16, #tpu.memory_space<vmem>>, vector<1x78x128xbf16>
    %14 = vector.shape_cast %13 : vector<1x78x128xbf16> to vector<78x128xbf16>
    %c2_14 = arith.constant 2 : index
    %c0_15 = arith.constant 0 : index
    %c0_16 = arith.constant 0 : index
    %15 = vector.load %arg2[%c2_14, %c0_15, %c0_16] : memref<9x128x128xbf16, #tpu.memory_space<vmem>>, vector<1x128x128xbf16>
    %16 = vector.shape_cast %15 : vector<1x128x128xbf16> to vector<128x128xbf16>
    %cst_17 = arith.constant dense<0.000000e+00> : vector<78x128xf32>
    %17 = tpu.matmul %14, %16, %cst_17 {dimension_numbers = #tpu.dot_dimension_numbers<[1], [0], [0], [1], [0, 0, 1, 1], [], []>} : vector<78x128xbf16>, vector<128x128xbf16>, vector<78x128xf32> -> vector<78x128xf32>
    %18 = arith.addf %12, %17 : vector<78x128xf32>
    %c0_18 = arith.constant 0 : index
    %c10 = arith.constant 10 : index
    %c0_19 = arith.constant 0 : index
    %19 = vector.load %arg1[%c0_18, %c10, %c0_19] : memref<1x100x128xbf16, #tpu.memory_space<vmem>>, vector<1x78x128xbf16>
    %20 = vector.shape_cast %19 : vector<1x78x128xbf16> to vector<78x128xbf16>
    %c3 = arith.constant 3 : index
    %c0_20 = arith.constant 0 : index
    %c0_21 = arith.constant 0 : index
    %21 = vector.load %arg2[%c3, %c0_20, %c0_21] : memref<9x128x128xbf16, #tpu.memory_space<vmem>>, vector<1x128x128xbf16>
    %22 = vector.shape_cast %21 : vector<1x128x128xbf16> to vector<128x128xbf16>
    %cst_22 = arith.constant dense<0.000000e+00> : vector<78x128xf32>
    %23 = tpu.matmul %20, %22, %cst_22 {dimension_numbers = #tpu.dot_dimension_numbers<[1], [0], [0], [1], [0, 0, 1, 1], [], []>} : vector<78x128xbf16>, vector<128x128xbf16>, vector<78x128xf32> -> vector<78x128xf32>
    %24 = arith.addf %18, %23 : vector<78x128xf32>
    %c0_23 = arith.constant 0 : index
    %c11 = arith.constant 11 : index
    %c0_24 = arith.constant 0 : index
    %25 = vector.load %arg1[%c0_23, %c11, %c0_24] : memref<1x100x128xbf16, #tpu.memory_space<vmem>>, vector<1x78x128xbf16>
    %26 = vector.shape_cast %25 : vector<1x78x128xbf16> to vector<78x128xbf16>
    %c4 = arith.constant 4 : index
    %c0_25 = arith.constant 0 : index
    %c0_26 = arith.constant 0 : index
    %27 = vector.load %arg2[%c4, %c0_25, %c0_26] : memref<9x128x128xbf16, #tpu.memory_space<vmem>>, vector<1x128x128xbf16>
    %28 = vector.shape_cast %27 : vector<1x128x128xbf16> to vector<128x128xbf16>
    %cst_27 = arith.constant dense<0.000000e+00> : vector<78x128xf32>
    %29 = tpu.matmul %26, %28, %cst_27 {dimension_numbers = #tpu.dot_dimension_numbers<[1], [0], [0], [1], [0, 0, 1, 1], [], []>} : vector<78x128xbf16>, vector<128x128xbf16>, vector<78x128xf32> -> vector<78x128xf32>
    %30 = arith.addf %24, %29 : vector<78x128xf32>
    %c0_28 = arith.constant 0 : index
    %c12 = arith.constant 12 : index
    %c0_29 = arith.constant 0 : index
    %31 = vector.load %arg1[%c0_28, %c12, %c0_29] : memref<1x100x128xbf16, #tpu.memory_space<vmem>>, vector<1x78x128xbf16>
    %32 = vector.shape_cast %31 : vector<1x78x128xbf16> to vector<78x128xbf16>
    %c5 = arith.constant 5 : index
    %c0_30 = arith.constant 0 : index
    %c0_31 = arith.constant 0 : index
    %33 = vector.load %arg2[%c5, %c0_30, %c0_31] : memref<9x128x128xbf16, #tpu.memory_space<vmem>>, vector<1x128x128xbf16>
    %34 = vector.shape_cast %33 : vector<1x128x128xbf16> to vector<128x128xbf16>
    %cst_32 = arith.constant dense<0.000000e+00> : vector<78x128xf32>
    %35 = tpu.matmul %32, %34, %cst_32 {dimension_numbers = #tpu.dot_dimension_numbers<[1], [0], [0], [1], [0, 0, 1, 1], [], []>} : vector<78x128xbf16>, vector<128x128xbf16>, vector<78x128xf32> -> vector<78x128xf32>
    %36 = arith.addf %30, %35 : vector<78x128xf32>
    %c0_33 = arith.constant 0 : index
    %c20 = arith.constant 20 : index
    %c0_34 = arith.constant 0 : index
    %37 = vector.load %arg1[%c0_33, %c20, %c0_34] : memref<1x100x128xbf16, #tpu.memory_space<vmem>>, vector<1x78x128xbf16>
    %38 = vector.shape_cast %37 : vector<1x78x128xbf16> to vector<78x128xbf16>
    %c6 = arith.constant 6 : index
    %c0_35 = arith.constant 0 : index
    %c0_36 = arith.constant 0 : index
    %39 = vector.load %arg2[%c6, %c0_35, %c0_36] : memref<9x128x128xbf16, #tpu.memory_space<vmem>>, vector<1x128x128xbf16>
    %40 = vector.shape_cast %39 : vector<1x128x128xbf16> to vector<128x128xbf16>
    %cst_37 = arith.constant dense<0.000000e+00> : vector<78x128xf32>
    %41 = tpu.matmul %38, %40, %cst_37 {dimension_numbers = #tpu.dot_dimension_numbers<[1], [0], [0], [1], [0, 0, 1, 1], [], []>} : vector<78x128xbf16>, vector<128x128xbf16>, vector<78x128xf32> -> vector<78x128xf32>
    %42 = arith.addf %36, %41 : vector<78x128xf32>
    %c0_38 = arith.constant 0 : index
    %c21 = arith.constant 21 : index
    %c0_39 = arith.constant 0 : index
    %43 = vector.load %arg1[%c0_38, %c21, %c0_39] : memref<1x100x128xbf16, #tpu.memory_space<vmem>>, vector<1x78x128xbf16>
    %44 = vector.shape_cast %43 : vector<1x78x128xbf16> to vector<78x128xbf16>
    %c7 = arith.constant 7 : index
    %c0_40 = arith.constant 0 : index
    %c0_41 = arith.constant 0 : index
    %45 = vector.load %arg2[%c7, %c0_40, %c0_41] : memref<9x128x128xbf16, #tpu.memory_space<vmem>>, vector<1x128x128xbf16>
    %46 = vector.shape_cast %45 : vector<1x128x128xbf16> to vector<128x128xbf16>
    %cst_42 = arith.constant dense<0.000000e+00> : vector<78x128xf32>
    %47 = tpu.matmul %44, %46, %cst_42 {dimension_numbers = #tpu.dot_dimension_numbers<[1], [0], [0], [1], [0, 0, 1, 1], [], []>} : vector<78x128xbf16>, vector<128x128xbf16>, vector<78x128xf32> -> vector<78x128xf32>
    %48 = arith.addf %42, %47 : vector<78x128xf32>
    %c0_43 = arith.constant 0 : index
    %c22 = arith.constant 22 : index
    %c0_44 = arith.constant 0 : index
    %49 = vector.load %arg1[%c0_43, %c22, %c0_44] : memref<1x100x128xbf16, #tpu.memory_space<vmem>>, vector<1x78x128xbf16>
    %50 = vector.shape_cast %49 : vector<1x78x128xbf16> to vector<78x128xbf16>
    %c8 = arith.constant 8 : index
    %c0_45 = arith.constant 0 : index
    %c0_46 = arith.constant 0 : index
    %51 = vector.load %arg2[%c8, %c0_45, %c0_46] : memref<9x128x128xbf16, #tpu.memory_space<vmem>>, vector<1x128x128xbf16>
    %52 = vector.shape_cast %51 : vector<1x128x128xbf16> to vector<128x128xbf16>
    %cst_47 = arith.constant dense<0.000000e+00> : vector<78x128xf32>
    %53 = tpu.matmul %50, %52, %cst_47 {dimension_numbers = #tpu.dot_dimension_numbers<[1], [0], [0], [1], [0, 0, 1, 1], [], []>} : vector<78x128xbf16>, vector<128x128xbf16>, vector<78x128xf32> -> vector<78x128xf32>
    %54 = arith.addf %48, %53 : vector<78x128xf32>
    %c0_48 = arith.constant 0 : index
    %c0_49 = arith.constant 0 : index
    %55 = vector.load %arg3[%c0_48, %c0_49] : memref<1x128xf32, #tpu.memory_space<vmem>>, vector<1x128xf32>
    %56 = vector.broadcast %55 : vector<1x128xf32> to vector<78x128xf32>
    %57 = arith.mulf %54, %56 : vector<78x128xf32>
    %c0_50 = arith.constant 0 : index
    %c0_51 = arith.constant 0 : index
    %58 = vector.load %arg4[%c0_50, %c0_51] : memref<1x128xf32, #tpu.memory_space<vmem>>, vector<1x128xf32>
    %59 = vector.broadcast %58 : vector<1x128xf32> to vector<78x128xf32>
    %60 = arith.addf %57, %59 : vector<78x128xf32>
    %cst_52 = arith.constant 0.000000e+00 : f32
    %61 = vector.broadcast %cst_52 : f32 to vector<78x128xf32>
    %62 = arith.maximumf %60, %61 : vector<78x128xf32>
    %63 = arith.truncf %62 : vector<78x128xf32> to vector<78x128xbf16>
    %64 = vector.extract_strided_slice %63 {offsets = [0, 0], sizes = [8, 128], strides = [1, 1]} : vector<78x128xbf16> to vector<8x128xbf16>
    %c0_53 = arith.constant 0 : index
    %c0_54 = arith.constant 0 : index
    %c0_55 = arith.constant 0 : index
    %c0_56 = arith.constant 0 : index
    %65 = vector.load %arg5[%c0_53, %c0_54, %c0_55, %c0_56] : memref<1x8x8x128xbf16, #tpu.memory_space<vmem>>, vector<1x1x8x128xbf16>
    %66 = vector.shape_cast %65 : vector<1x1x8x128xbf16> to vector<8x128xbf16>
    %67 = vector.shape_cast %64 : vector<8x128xbf16> to vector<1x1x8x128xbf16>
    tpu.vector_store %arg5[%c0_53, %c0_54, %c0_55, %c0_56], %67 {strides = array<i32>} : memref<1x8x8x128xbf16, #tpu.memory_space<vmem>>, vector<1x1x8x128xbf16>,
    %68 = vector.extract_strided_slice %63 {offsets = [10, 0], sizes = [8, 128], strides = [1, 1]} : vector<78x128xbf16> to vector<8x128xbf16>
    %c0_57 = arith.constant 0 : index
    %c1_58 = arith.constant 1 : index
    %c0_59 = arith.constant 0 : index
    %c0_60 = arith.constant 0 : index
    %69 = vector.load %arg5[%c0_57, %c1_58, %c0_59, %c0_60] : memref<1x8x8x128xbf16, #tpu.memory_space<vmem>>, vector<1x1x8x128xbf16>
    %70 = vector.shape_cast %69 : vector<1x1x8x128xbf16> to vector<8x128xbf16>
    %71 = vector.shape_cast %68 : vector<8x128xbf16> to vector<1x1x8x128xbf16>
    tpu.vector_store %arg5[%c0_57, %c1_58, %c0_59, %c0_60], %71 {strides = array<i32>} : memref<1x8x8x128xbf16, #tpu.memory_space<vmem>>, vector<1x1x8x128xbf16>,
    %72 = vector.extract_strided_slice %63 {offsets = [20, 0], sizes = [8, 128], strides = [1, 1]} : vector<78x128xbf16> to vector<8x128xbf16>
    %c0_61 = arith.constant 0 : index
    %c2_62 = arith.constant 2 : index
    %c0_63 = arith.constant 0 : index
    %c0_64 = arith.constant 0 : index
    %73 = vector.load %arg5[%c0_61, %c2_62, %c0_63, %c0_64] : memref<1x8x8x128xbf16, #tpu.memory_space<vmem>>, vector<1x1x8x128xbf16>
    %74 = vector.shape_cast %73 : vector<1x1x8x128xbf16> to vector<8x128xbf16>
    %75 = vector.shape_cast %72 : vector<8x128xbf16> to vector<1x1x8x128xbf16>
    tpu.vector_store %arg5[%c0_61, %c2_62, %c0_63, %c0_64], %75 {strides = array<i32>} : memref<1x8x8x128xbf16, #tpu.memory_space<vmem>>, vector<1x1x8x128xbf16>,
    %76 = vector.extract_strided_slice %63 {offsets = [30, 0], sizes = [8, 128], strides = [1, 1]} : vector<78x128xbf16> to vector<8x128xbf16>
    %c0_65 = arith.constant 0 : index
    %c3_66 = arith.constant 3 : index
    %c0_67 = arith.constant 0 : index
    %c0_68 = arith.constant 0 : index
    %77 = vector.load %arg5[%c0_65, %c3_66, %c0_67, %c0_68] : memref<1x8x8x128xbf16, #tpu.memory_space<vmem>>, vector<1x1x8x128xbf16>
    %78 = vector.shape_cast %77 : vector<1x1x8x128xbf16> to vector<8x128xbf16>
    %79 = vector.shape_cast %76 : vector<8x128xbf16> to vector<1x1x8x128xbf16>
    tpu.vector_store %arg5[%c0_65, %c3_66, %c0_67, %c0_68], %79 {strides = array<i32>} : memref<1x8x8x128xbf16, #tpu.memory_space<vmem>>, vector<1x1x8x128xbf16>,
    %80 = vector.extract_strided_slice %63 {offsets = [40, 0], sizes = [8, 128], strides = [1, 1]} : vector<78x128xbf16> to vector<8x128xbf16>
    %c0_69 = arith.constant 0 : index
    %c4_70 = arith.constant 4 : index
    %c0_71 = arith.constant 0 : index
    %c0_72 = arith.constant 0 : index
    %81 = vector.load %arg5[%c0_69, %c4_70, %c0_71, %c0_72] : memref<1x8x8x128xbf16, #tpu.memory_space<vmem>>, vector<1x1x8x128xbf16>
    %82 = vector.shape_cast %81 : vector<1x1x8x128xbf16> to vector<8x128xbf16>
    %83 = vector.shape_cast %80 : vector<8x128xbf16> to vector<1x1x8x128xbf16>
    tpu.vector_store %arg5[%c0_69, %c4_70, %c0_71, %c0_72], %83 {strides = array<i32>} : memref<1x8x8x128xbf16, #tpu.memory_space<vmem>>, vector<1x1x8x128xbf16>,
    %84 = vector.extract_strided_slice %63 {offsets = [50, 0], sizes = [8, 128], strides = [1, 1]} : vector<78x128xbf16> to vector<8x128xbf16>
    %c0_73 = arith.constant 0 : index
    %c5_74 = arith.constant 5 : index
    %c0_75 = arith.constant 0 : index
    %c0_76 = arith.constant 0 : index
    %85 = vector.load %arg5[%c0_73, %c5_74, %c0_75, %c0_76] : memref<1x8x8x128xbf16, #tpu.memory_space<vmem>>, vector<1x1x8x128xbf16>
    %86 = vector.shape_cast %85 : vector<1x1x8x128xbf16> to vector<8x128xbf16>
    %87 = vector.shape_cast %84 : vector<8x128xbf16> to vector<1x1x8x128xbf16>
    tpu.vector_store %arg5[%c0_73, %c5_74, %c0_75, %c0_76], %87 {strides = array<i32>} : memref<1x8x8x128xbf16, #tpu.memory_space<vmem>>, vector<1x1x8x128xbf16>,
    %88 = vector.extract_strided_slice %63 {offsets = [60, 0], sizes = [8, 128], strides = [1, 1]} : vector<78x128xbf16> to vector<8x128xbf16>
    %c0_77 = arith.constant 0 : index
    %c6_78 = arith.constant 6 : index
    %c0_79 = arith.constant 0 : index
    %c0_80 = arith.constant 0 : index
    %89 = vector.load %arg5[%c0_77, %c6_78, %c0_79, %c0_80] : memref<1x8x8x128xbf16, #tpu.memory_space<vmem>>, vector<1x1x8x128xbf16>
    %90 = vector.shape_cast %89 : vector<1x1x8x128xbf16> to vector<8x128xbf16>
    %91 = vector.shape_cast %88 : vector<8x128xbf16> to vector<1x1x8x128xbf16>
    tpu.vector_store %arg5[%c0_77, %c6_78, %c0_79, %c0_80], %91 {strides = array<i32>} : memref<1x8x8x128xbf16, #tpu.memory_space<vmem>>, vector<1x1x8x128xbf16>,
    %92 = vector.extract_strided_slice %63 {offsets = [70, 0], sizes = [8, 128], strides = [1, 1]} : vector<78x128xbf16> to vector<8x128xbf16>
    %c0_81 = arith.constant 0 : index
    %c7_82 = arith.constant 7 : index
    %c0_83 = arith.constant 0 : index
    %c0_84 = arith.constant 0 : index
    %93 = vector.load %arg5[%c0_81, %c7_82, %c0_83, %c0_84] : memref<1x8x8x128xbf16, #tpu.memory_space<vmem>>, vector<1x1x8x128xbf16>
    %94 = vector.shape_cast %93 : vector<1x1x8x128xbf16> to vector<8x128xbf16>
    %95 = vector.shape_cast %92 : vector<8x128xbf16> to vector<1x1x8x128xbf16>
    tpu.vector_store %arg5[%c0_81, %c7_82, %c0_83, %c0_84], %95 {strides = array<i32>} : memref<1x8x8x128xbf16, #tpu.memory_space<vmem>>, vector<1x1x8x128xbf16>,
    return
  }
  func.func @transform_0(%arg0: i32) -> (i32, i32, i32) {
    %c0_i32 = arith.constant 0 : i32
    %c0_i32_0 = arith.constant 0 : i32
    %c0_i32_1 = arith.constant 0 : i32
    return %arg0, %c0_i32, %c0_i32_0 : i32, i32, i32
  }
  func.func @transform_1(%arg0: i32) -> (i32, i32, i32) {
    %c0_i32 = arith.constant 0 : i32
    %c0_i32_0 = arith.constant 0 : i32
    %c0_i32_1 = arith.constant 0 : i32
    %c0_i32_2 = arith.constant 0 : i32
    return %c0_i32, %c0_i32_0, %c0_i32_1 : i32, i32, i32
  }
  func.func @transform_2(%arg0: i32) -> (i32, i32) {
    %c0_i32 = arith.constant 0 : i32
    %c0_i32_0 = arith.constant 0 : i32
    %c0_i32_1 = arith.constant 0 : i32
    return %c0_i32, %c0_i32_0 : i32, i32
  }
  func.func @transform_3(%arg0: i32) -> (i32, i32) {
    %c0_i32 = arith.constant 0 : i32
    %c0_i32_0 = arith.constant 0 : i32
    %c0_i32_1 = arith.constant 0 : i32
    return %c0_i32, %c0_i32_0 : i32, i32
  }
  func.func @transform_4(%arg0: i32) -> (i32, i32, i32, i32) {
    %c0_i32 = arith.constant 0 : i32
    %c0_i32_0 = arith.constant 0 : i32
    %c0_i32_1 = arith.constant 0 : i32
    %c0_i32_2 = arith.constant 0 : i32
    return %arg0, %c0_i32, %c0_i32_0, %c0_i32_1 : i32, i32, i32, i32
  }
}

module attributes {stable_mosaic.version = 11 : i64} {
  func.func @_mm_res_kernel(%arg0: i32, %arg1: i32, %arg2: i32, %arg3: memref<64x128xbf16, #tpu.memory_space<vmem>>, %arg4: memref<128x128xbf16, #tpu.memory_space<vmem>>, %arg5: memref<1x128xf32, #tpu.memory_space<vmem>>, %arg6: memref<1x128xf32, #tpu.memory_space<vmem>>, %arg7: memref<64x128xbf16, #tpu.memory_space<vmem>>, %arg8: memref<64x128xbf16, #tpu.memory_space<vmem>>, %arg9: memref<64x128xf32, #tpu.memory_space<vmem>>) attributes {dimension_semantics = [#tpu.dimension_semantics<parallel>, #tpu.dimension_semantics<parallel>, #tpu.dimension_semantics<arbitrary>], iteration_bounds = array<i64: 1, 2, 1>, scalar_prefetch = 0 : i64, scratch_operands = 1 : i64, tpu.core_type = #tpu.core_type<tc>, window_params = [{transform_indices = @transform_0, window_bounds = array<i64: 64, 128>}, {transform_indices = @transform_1, window_bounds = array<i64: 128, 128>}, {transform_indices = @transform_2, window_bounds = array<i64: 1, 128>}, {transform_indices = @transform_3, window_bounds = array<i64: 1, 128>}, {transform_indices = @transform_4, window_bounds = array<i64: 64, 128>}, {transform_indices = @transform_5, window_bounds = array<i64: 64, 128>}]} {
    %c0_i32 = arith.constant 0 : i32
    %0 = arith.cmpi eq, %arg2, %c0_i32 : i32
    %1 = arith.extui %0 : i1 to i32
    %c0_i32_0 = arith.constant 0 : i32
    %2 = arith.cmpi ne, %1, %c0_i32_0 : i32
    scf.if %2 {
      %cst_10 = arith.constant 0.000000e+00 : f32
      %12 = vector.broadcast %cst_10 : f32 to vector<64x128xf32>
      %c0_11 = arith.constant 0 : index
      %c0_12 = arith.constant 0 : index
      %13 = vector.load %arg9[%c0_11, %c0_12] : memref<64x128xf32, #tpu.memory_space<vmem>>, vector<64x128xf32>
      tpu.vector_store %arg9[%c0_11, %c0_12], %12 {strides = array<i32>} : memref<64x128xf32, #tpu.memory_space<vmem>>, vector<64x128xf32>,
    } else {
    }
    %c0 = arith.constant 0 : index
    %c0_1 = arith.constant 0 : index
    %3 = vector.load %arg9[%c0, %c0_1] : memref<64x128xf32, #tpu.memory_space<vmem>>, vector<64x128xf32>
    %c0_2 = arith.constant 0 : index
    %c0_3 = arith.constant 0 : index
    %4 = vector.load %arg3[%c0_2, %c0_3] : memref<64x128xbf16, #tpu.memory_space<vmem>>, vector<64x128xbf16>
    %c0_4 = arith.constant 0 : index
    %c0_5 = arith.constant 0 : index
    %5 = vector.load %arg4[%c0_4, %c0_5] : memref<128x128xbf16, #tpu.memory_space<vmem>>, vector<128x128xbf16>
    %cst = arith.constant dense<0.000000e+00> : vector<64x128xf32>
    %6 = tpu.matmul %4, %5, %cst {dimension_numbers = #tpu.dot_dimension_numbers<[1], [0], [0], [1], [0, 0, 1, 1], [], []>} : vector<64x128xbf16>, vector<128x128xbf16>, vector<64x128xf32> -> vector<64x128xf32>
    %7 = arith.addf %3, %6 : vector<64x128xf32>
    %c0_6 = arith.constant 0 : index
    %c0_7 = arith.constant 0 : index
    %8 = vector.load %arg9[%c0_6, %c0_7] : memref<64x128xf32, #tpu.memory_space<vmem>>, vector<64x128xf32>
    tpu.vector_store %arg9[%c0_6, %c0_7], %7 {strides = array<i32>} : memref<64x128xf32, #tpu.memory_space<vmem>>, vector<64x128xf32>,
    %c0_i32_8 = arith.constant 0 : i32
    %9 = arith.cmpi eq, %arg2, %c0_i32_8 : i32
    %10 = arith.extui %9 : i1 to i32
    %c0_i32_9 = arith.constant 0 : i32
    %11 = arith.cmpi ne, %10, %c0_i32_9 : i32
    scf.if %11 {
      %c0_10 = arith.constant 0 : index
      %c0_11 = arith.constant 0 : index
      %12 = vector.load %arg9[%c0_10, %c0_11] : memref<64x128xf32, #tpu.memory_space<vmem>>, vector<64x128xf32>
      %c0_12 = arith.constant 0 : index
      %c0_13 = arith.constant 0 : index
      %13 = vector.load %arg5[%c0_12, %c0_13] : memref<1x128xf32, #tpu.memory_space<vmem>>, vector<1x128xf32>
      %14 = vector.broadcast %13 : vector<1x128xf32> to vector<64x128xf32>
      %15 = arith.mulf %12, %14 : vector<64x128xf32>
      %c0_14 = arith.constant 0 : index
      %c0_15 = arith.constant 0 : index
      %16 = vector.load %arg6[%c0_14, %c0_15] : memref<1x128xf32, #tpu.memory_space<vmem>>, vector<1x128xf32>
      %17 = vector.broadcast %16 : vector<1x128xf32> to vector<64x128xf32>
      %18 = arith.addf %15, %17 : vector<64x128xf32>
      %c0_16 = arith.constant 0 : index
      %c0_17 = arith.constant 0 : index
      %19 = vector.load %arg7[%c0_16, %c0_17] : memref<64x128xbf16, #tpu.memory_space<vmem>>, vector<64x128xbf16>
      %20 = arith.extf %19 : vector<64x128xbf16> to vector<64x128xf32>
      %21 = arith.addf %18, %20 : vector<64x128xf32>
      %cst_18 = arith.constant 0.000000e+00 : f32
      %22 = vector.broadcast %cst_18 : f32 to vector<64x128xf32>
      %23 = arith.maximumf %21, %22 : vector<64x128xf32>
      %24 = arith.truncf %23 : vector<64x128xf32> to vector<64x128xbf16>
      %c0_19 = arith.constant 0 : index
      %c0_20 = arith.constant 0 : index
      %25 = vector.load %arg8[%c0_19, %c0_20] : memref<64x128xbf16, #tpu.memory_space<vmem>>, vector<64x128xbf16>
      tpu.vector_store %arg8[%c0_19, %c0_20], %24 {strides = array<i32>} : memref<64x128xbf16, #tpu.memory_space<vmem>>, vector<64x128xbf16>,
    } else {
    }
    return
  }
  func.func @transform_0(%arg0: i32, %arg1: i32, %arg2: i32) -> (i32, i32) {
    %c0_i32 = arith.constant 0 : i32
    return %arg1, %arg2 : i32, i32
  }
  func.func @transform_1(%arg0: i32, %arg1: i32, %arg2: i32) -> (i32, i32) {
    %c0_i32 = arith.constant 0 : i32
    return %arg2, %arg0 : i32, i32
  }
  func.func @transform_2(%arg0: i32, %arg1: i32, %arg2: i32) -> (i32, i32) {
    %c0_i32 = arith.constant 0 : i32
    %c0_i32_0 = arith.constant 0 : i32
    return %c0_i32, %arg0 : i32, i32
  }
  func.func @transform_3(%arg0: i32, %arg1: i32, %arg2: i32) -> (i32, i32) {
    %c0_i32 = arith.constant 0 : i32
    %c0_i32_0 = arith.constant 0 : i32
    return %c0_i32, %arg0 : i32, i32
  }
  func.func @transform_4(%arg0: i32, %arg1: i32, %arg2: i32) -> (i32, i32) {
    %c0_i32 = arith.constant 0 : i32
    return %arg1, %arg0 : i32, i32
  }
  func.func @transform_5(%arg0: i32, %arg1: i32, %arg2: i32) -> (i32, i32) {
    %c0_i32 = arith.constant 0 : i32
    return %arg1, %arg0 : i32, i32
  }
}

module attributes {stable_mosaic.version = 11 : i64} {
  func.func @_mm_kernel(%arg0: i32, %arg1: i32, %arg2: i32, %arg3: memref<16x128xbf16, #tpu.memory_space<vmem>>, %arg4: memref<128x128xbf16, #tpu.memory_space<vmem>>, %arg5: memref<1x128xf32, #tpu.memory_space<vmem>>, %arg6: memref<1x128xf32, #tpu.memory_space<vmem>>, %arg7: memref<16x128xbf16, #tpu.memory_space<vmem>>, %arg8: memref<16x128xf32, #tpu.memory_space<vmem>>) attributes {dimension_semantics = [#tpu.dimension_semantics<parallel>, #tpu.dimension_semantics<parallel>, #tpu.dimension_semantics<arbitrary>], iteration_bounds = array<i64: 1, 2, 1>, scalar_prefetch = 0 : i64, scratch_operands = 1 : i64, tpu.core_type = #tpu.core_type<tc>, window_params = [{transform_indices = @transform_0, window_bounds = array<i64: 16, 128>}, {transform_indices = @transform_1, window_bounds = array<i64: 128, 128>}, {transform_indices = @transform_2, window_bounds = array<i64: 1, 128>}, {transform_indices = @transform_3, window_bounds = array<i64: 1, 128>}, {transform_indices = @transform_4, window_bounds = array<i64: 16, 128>}]} {
    %c0_i32 = arith.constant 0 : i32
    %0 = arith.cmpi eq, %arg2, %c0_i32 : i32
    %1 = arith.extui %0 : i1 to i32
    %c0_i32_0 = arith.constant 0 : i32
    %2 = arith.cmpi ne, %1, %c0_i32_0 : i32
    scf.if %2 {
      %cst_10 = arith.constant 0.000000e+00 : f32
      %12 = vector.broadcast %cst_10 : f32 to vector<16x128xf32>
      %c0_11 = arith.constant 0 : index
      %c0_12 = arith.constant 0 : index
      %13 = vector.load %arg8[%c0_11, %c0_12] : memref<16x128xf32, #tpu.memory_space<vmem>>, vector<16x128xf32>
      tpu.vector_store %arg8[%c0_11, %c0_12], %12 {strides = array<i32>} : memref<16x128xf32, #tpu.memory_space<vmem>>, vector<16x128xf32>,
    } else {
    }
    %c0 = arith.constant 0 : index
    %c0_1 = arith.constant 0 : index
    %3 = vector.load %arg8[%c0, %c0_1] : memref<16x128xf32, #tpu.memory_space<vmem>>, vector<16x128xf32>
    %c0_2 = arith.constant 0 : index
    %c0_3 = arith.constant 0 : index
    %4 = vector.load %arg3[%c0_2, %c0_3] : memref<16x128xbf16, #tpu.memory_space<vmem>>, vector<16x128xbf16>
    %c0_4 = arith.constant 0 : index
    %c0_5 = arith.constant 0 : index
    %5 = vector.load %arg4[%c0_4, %c0_5] : memref<128x128xbf16, #tpu.memory_space<vmem>>, vector<128x128xbf16>
    %cst = arith.constant dense<0.000000e+00> : vector<16x128xf32>
    %6 = tpu.matmul %4, %5, %cst {dimension_numbers = #tpu.dot_dimension_numbers<[1], [0], [0], [1], [0, 0, 1, 1], [], []>} : vector<16x128xbf16>, vector<128x128xbf16>, vector<16x128xf32> -> vector<16x128xf32>
    %7 = arith.addf %3, %6 : vector<16x128xf32>
    %c0_6 = arith.constant 0 : index
    %c0_7 = arith.constant 0 : index
    %8 = vector.load %arg8[%c0_6, %c0_7] : memref<16x128xf32, #tpu.memory_space<vmem>>, vector<16x128xf32>
    tpu.vector_store %arg8[%c0_6, %c0_7], %7 {strides = array<i32>} : memref<16x128xf32, #tpu.memory_space<vmem>>, vector<16x128xf32>,
    %c0_i32_8 = arith.constant 0 : i32
    %9 = arith.cmpi eq, %arg2, %c0_i32_8 : i32
    %10 = arith.extui %9 : i1 to i32
    %c0_i32_9 = arith.constant 0 : i32
    %11 = arith.cmpi ne, %10, %c0_i32_9 : i32
    scf.if %11 {
      %c0_10 = arith.constant 0 : index
      %c0_11 = arith.constant 0 : index
      %12 = vector.load %arg8[%c0_10, %c0_11] : memref<16x128xf32, #tpu.memory_space<vmem>>, vector<16x128xf32>
      %c0_12 = arith.constant 0 : index
      %c0_13 = arith.constant 0 : index
      %13 = vector.load %arg5[%c0_12, %c0_13] : memref<1x128xf32, #tpu.memory_space<vmem>>, vector<1x128xf32>
      %14 = vector.broadcast %13 : vector<1x128xf32> to vector<16x128xf32>
      %15 = arith.mulf %12, %14 : vector<16x128xf32>
      %c0_14 = arith.constant 0 : index
      %c0_15 = arith.constant 0 : index
      %16 = vector.load %arg6[%c0_14, %c0_15] : memref<1x128xf32, #tpu.memory_space<vmem>>, vector<1x128xf32>
      %17 = vector.broadcast %16 : vector<1x128xf32> to vector<16x128xf32>
      %18 = arith.addf %15, %17 : vector<16x128xf32>
      %cst_16 = arith.constant 0.000000e+00 : f32
      %19 = vector.broadcast %cst_16 : f32 to vector<16x128xf32>
      %20 = arith.maximumf %18, %19 : vector<16x128xf32>
      %21 = arith.truncf %20 : vector<16x128xf32> to vector<16x128xbf16>
      %c0_17 = arith.constant 0 : index
      %c0_18 = arith.constant 0 : index
      %22 = vector.load %arg7[%c0_17, %c0_18] : memref<16x128xbf16, #tpu.memory_space<vmem>>, vector<16x128xbf16>
      tpu.vector_store %arg7[%c0_17, %c0_18], %21 {strides = array<i32>} : memref<16x128xbf16, #tpu.memory_space<vmem>>, vector<16x128xbf16>,
    } else {
    }
    return
  }
  func.func @transform_0(%arg0: i32, %arg1: i32, %arg2: i32) -> (i32, i32) {
    %c0_i32 = arith.constant 0 : i32
    return %arg1, %arg2 : i32, i32
  }
  func.func @transform_1(%arg0: i32, %arg1: i32, %arg2: i32) -> (i32, i32) {
    %c0_i32 = arith.constant 0 : i32
    return %arg2, %arg0 : i32, i32
  }
  func.func @transform_2(%arg0: i32, %arg1: i32, %arg2: i32) -> (i32, i32) {
    %c0_i32 = arith.constant 0 : i32
    %c0_i32_0 = arith.constant 0 : i32
    return %c0_i32, %arg0 : i32, i32
  }
  func.func @transform_3(%arg0: i32, %arg1: i32, %arg2: i32) -> (i32, i32) {
    %c0_i32 = arith.constant 0 : i32
    %c0_i32_0 = arith.constant 0 : i32
    return %c0_i32, %arg0 : i32, i32
  }
  func.func @transform_4(%arg0: i32, %arg1: i32, %arg2: i32) -> (i32, i32) {
    %c0_i32 = arith.constant 0 : i32
    return %arg1, %arg0 : i32, i32
  }
}

module attributes {stable_mosaic.version = 11 : i64} {
  func.func @_conv3x3_kernel(%arg0: i32, %arg1: memref<1x36x128xbf16, #tpu.memory_space<vmem>>, %arg2: memref<9x128x128xbf16, #tpu.memory_space<vmem>>, %arg3: memref<1x128xf32, #tpu.memory_space<vmem>>, %arg4: memref<1x128xf32, #tpu.memory_space<vmem>>, %arg5: memref<1x4x4x128xbf16, #tpu.memory_space<vmem>>) attributes {dimension_semantics = [#tpu.dimension_semantics<parallel>], iteration_bounds = array<i64: 2>, scalar_prefetch = 0 : i64, scratch_operands = 0 : i64, tpu.core_type = #tpu.core_type<tc>, window_params = [{transform_indices = @transform_0, window_bounds = array<i64: 1, 36, 128>}, {pipeline_mode = #tpu.pipeline_mode<synchronous>, transform_indices = @transform_1, window_bounds = array<i64: 9, 128, 128>}, {pipeline_mode = #tpu.pipeline_mode<synchronous>, transform_indices = @transform_2, window_bounds = array<i64: 1, 128>}, {pipeline_mode = #tpu.pipeline_mode<synchronous>, transform_indices = @transform_3, window_bounds = array<i64: 1, 128>}, {transform_indices = @transform_4, window_bounds = array<i64: 1, 4, 4, 128>}]} {
    %cst = arith.constant 0.000000e+00 : f32
    %0 = vector.broadcast %cst : f32 to vector<22x128xf32>
    %c0 = arith.constant 0 : index
    %c0_0 = arith.constant 0 : index
    %c0_1 = arith.constant 0 : index
    %1 = vector.load %arg1[%c0, %c0_0, %c0_1] : memref<1x36x128xbf16, #tpu.memory_space<vmem>>, vector<1x22x128xbf16>
    %2 = vector.shape_cast %1 : vector<1x22x128xbf16> to vector<22x128xbf16>
    %c0_2 = arith.constant 0 : index
    %c0_3 = arith.constant 0 : index
    %c0_4 = arith.constant 0 : index
    %3 = vector.load %arg2[%c0_2, %c0_3, %c0_4] : memref<9x128x128xbf16, #tpu.memory_space<vmem>>, vector<1x128x128xbf16>
    %4 = vector.shape_cast %3 : vector<1x128x128xbf16> to vector<128x128xbf16>
    %cst_5 = arith.constant dense<0.000000e+00> : vector<22x128xf32>
    %5 = tpu.matmul %2, %4, %cst_5 {dimension_numbers = #tpu.dot_dimension_numbers<[1], [0], [0], [1], [0, 0, 1, 1], [], []>} : vector<22x128xbf16>, vector<128x128xbf16>, vector<22x128xf32> -> vector<22x128xf32>
    %6 = arith.addf %0, %5 : vector<22x128xf32>
    %c0_6 = arith.constant 0 : index
    %c1 = arith.constant 1 : index
    %c0_7 = arith.constant 0 : index
    %7 = vector.load %arg1[%c0_6, %c1, %c0_7] : memref<1x36x128xbf16, #tpu.memory_space<vmem>>, vector<1x22x128xbf16>
    %8 = vector.shape_cast %7 : vector<1x22x128xbf16> to vector<22x128xbf16>
    %c1_8 = arith.constant 1 : index
    %c0_9 = arith.constant 0 : index
    %c0_10 = arith.constant 0 : index
    %9 = vector.load %arg2[%c1_8, %c0_9, %c0_10] : memref<9x128x128xbf16, #tpu.memory_space<vmem>>, vector<1x128x128xbf16>
    %10 = vector.shape_cast %9 : vector<1x128x128xbf16> to vector<128x128xbf16>
    %cst_11 = arith.constant dense<0.000000e+00> : vector<22x128xf32>
    %11 = tpu.matmul %8, %10, %cst_11 {dimension_numbers = #tpu.dot_dimension_numbers<[1], [0], [0], [1], [0, 0, 1, 1], [], []>} : vector<22x128xbf16>, vector<128x128xbf16>, vector<22x128xf32> -> vector<22x128xf32>
    %12 = arith.addf %6, %11 : vector<22x128xf32>
    %c0_12 = arith.constant 0 : index
    %c2 = arith.constant 2 : index
    %c0_13 = arith.constant 0 : index
    %13 = vector.load %arg1[%c0_12, %c2, %c0_13] : memref<1x36x128xbf16, #tpu.memory_space<vmem>>, vector<1x22x128xbf16>
    %14 = vector.shape_cast %13 : vector<1x22x128xbf16> to vector<22x128xbf16>
    %c2_14 = arith.constant 2 : index
    %c0_15 = arith.constant 0 : index
    %c0_16 = arith.constant 0 : index
    %15 = vector.load %arg2[%c2_14, %c0_15, %c0_16] : memref<9x128x128xbf16, #tpu.memory_space<vmem>>, vector<1x128x128xbf16>
    %16 = vector.shape_cast %15 : vector<1x128x128xbf16> to vector<128x128xbf16>
    %cst_17 = arith.constant dense<0.000000e+00> : vector<22x128xf32>
    %17 = tpu.matmul %14, %16, %cst_17 {dimension_numbers = #tpu.dot_dimension_numbers<[1], [0], [0], [1], [0, 0, 1, 1], [], []>} : vector<22x128xbf16>, vector<128x128xbf16>, vector<22x128xf32> -> vector<22x128xf32>
    %18 = arith.addf %12, %17 : vector<22x128xf32>
    %c0_18 = arith.constant 0 : index
    %c6 = arith.constant 6 : index
    %c0_19 = arith.constant 0 : index
    %19 = vector.load %arg1[%c0_18, %c6, %c0_19] : memref<1x36x128xbf16, #tpu.memory_space<vmem>>, vector<1x22x128xbf16>
    %20 = vector.shape_cast %19 : vector<1x22x128xbf16> to vector<22x128xbf16>
    %c3 = arith.constant 3 : index
    %c0_20 = arith.constant 0 : index
    %c0_21 = arith.constant 0 : index
    %21 = vector.load %arg2[%c3, %c0_20, %c0_21] : memref<9x128x128xbf16, #tpu.memory_space<vmem>>, vector<1x128x128xbf16>
    %22 = vector.shape_cast %21 : vector<1x128x128xbf16> to vector<128x128xbf16>
    %cst_22 = arith.constant dense<0.000000e+00> : vector<22x128xf32>
    %23 = tpu.matmul %20, %22, %cst_22 {dimension_numbers = #tpu.dot_dimension_numbers<[1], [0], [0], [1], [0, 0, 1, 1], [], []>} : vector<22x128xbf16>, vector<128x128xbf16>, vector<22x128xf32> -> vector<22x128xf32>
    %24 = arith.addf %18, %23 : vector<22x128xf32>
    %c0_23 = arith.constant 0 : index
    %c7 = arith.constant 7 : index
    %c0_24 = arith.constant 0 : index
    %25 = vector.load %arg1[%c0_23, %c7, %c0_24] : memref<1x36x128xbf16, #tpu.memory_space<vmem>>, vector<1x22x128xbf16>
    %26 = vector.shape_cast %25 : vector<1x22x128xbf16> to vector<22x128xbf16>
    %c4 = arith.constant 4 : index
    %c0_25 = arith.constant 0 : index
    %c0_26 = arith.constant 0 : index
    %27 = vector.load %arg2[%c4, %c0_25, %c0_26] : memref<9x128x128xbf16, #tpu.memory_space<vmem>>, vector<1x128x128xbf16>
    %28 = vector.shape_cast %27 : vector<1x128x128xbf16> to vector<128x128xbf16>
    %cst_27 = arith.constant dense<0.000000e+00> : vector<22x128xf32>
    %29 = tpu.matmul %26, %28, %cst_27 {dimension_numbers = #tpu.dot_dimension_numbers<[1], [0], [0], [1], [0, 0, 1, 1], [], []>} : vector<22x128xbf16>, vector<128x128xbf16>, vector<22x128xf32> -> vector<22x128xf32>
    %30 = arith.addf %24, %29 : vector<22x128xf32>
    %c0_28 = arith.constant 0 : index
    %c8 = arith.constant 8 : index
    %c0_29 = arith.constant 0 : index
    %31 = vector.load %arg1[%c0_28, %c8, %c0_29] : memref<1x36x128xbf16, #tpu.memory_space<vmem>>, vector<1x22x128xbf16>
    %32 = vector.shape_cast %31 : vector<1x22x128xbf16> to vector<22x128xbf16>
    %c5 = arith.constant 5 : index
    %c0_30 = arith.constant 0 : index
    %c0_31 = arith.constant 0 : index
    %33 = vector.load %arg2[%c5, %c0_30, %c0_31] : memref<9x128x128xbf16, #tpu.memory_space<vmem>>, vector<1x128x128xbf16>
    %34 = vector.shape_cast %33 : vector<1x128x128xbf16> to vector<128x128xbf16>
    %cst_32 = arith.constant dense<0.000000e+00> : vector<22x128xf32>
    %35 = tpu.matmul %32, %34, %cst_32 {dimension_numbers = #tpu.dot_dimension_numbers<[1], [0], [0], [1], [0, 0, 1, 1], [], []>} : vector<22x128xbf16>, vector<128x128xbf16>, vector<22x128xf32> -> vector<22x128xf32>
    %36 = arith.addf %30, %35 : vector<22x128xf32>
    %c0_33 = arith.constant 0 : index
    %c12 = arith.constant 12 : index
    %c0_34 = arith.constant 0 : index
    %37 = vector.load %arg1[%c0_33, %c12, %c0_34] : memref<1x36x128xbf16, #tpu.memory_space<vmem>>, vector<1x22x128xbf16>
    %38 = vector.shape_cast %37 : vector<1x22x128xbf16> to vector<22x128xbf16>
    %c6_35 = arith.constant 6 : index
    %c0_36 = arith.constant 0 : index
    %c0_37 = arith.constant 0 : index
    %39 = vector.load %arg2[%c6_35, %c0_36, %c0_37] : memref<9x128x128xbf16, #tpu.memory_space<vmem>>, vector<1x128x128xbf16>
    %40 = vector.shape_cast %39 : vector<1x128x128xbf16> to vector<128x128xbf16>
    %cst_38 = arith.constant dense<0.000000e+00> : vector<22x128xf32>
    %41 = tpu.matmul %38, %40, %cst_38 {dimension_numbers = #tpu.dot_dimension_numbers<[1], [0], [0], [1], [0, 0, 1, 1], [], []>} : vector<22x128xbf16>, vector<128x128xbf16>, vector<22x128xf32> -> vector<22x128xf32>
    %42 = arith.addf %36, %41 : vector<22x128xf32>
    %c0_39 = arith.constant 0 : index
    %c13 = arith.constant 13 : index
    %c0_40 = arith.constant 0 : index
    %43 = vector.load %arg1[%c0_39, %c13, %c0_40] : memref<1x36x128xbf16, #tpu.memory_space<vmem>>, vector<1x22x128xbf16>
    %44 = vector.shape_cast %43 : vector<1x22x128xbf16> to vector<22x128xbf16>
    %c7_41 = arith.constant 7 : index
    %c0_42 = arith.constant 0 : index
    %c0_43 = arith.constant 0 : index
    %45 = vector.load %arg2[%c7_41, %c0_42, %c0_43] : memref<9x128x128xbf16, #tpu.memory_space<vmem>>, vector<1x128x128xbf16>
    %46 = vector.shape_cast %45 : vector<1x128x128xbf16> to vector<128x128xbf16>
    %cst_44 = arith.constant dense<0.000000e+00> : vector<22x128xf32>
    %47 = tpu.matmul %44, %46, %cst_44 {dimension_numbers = #tpu.dot_dimension_numbers<[1], [0], [0], [1], [0, 0, 1, 1], [], []>} : vector<22x128xbf16>, vector<128x128xbf16>, vector<22x128xf32> -> vector<22x128xf32>
    %48 = arith.addf %42, %47 : vector<22x128xf32>
    %c0_45 = arith.constant 0 : index
    %c14 = arith.constant 14 : index
    %c0_46 = arith.constant 0 : index
    %49 = vector.load %arg1[%c0_45, %c14, %c0_46] : memref<1x36x128xbf16, #tpu.memory_space<vmem>>, vector<1x22x128xbf16>
    %50 = vector.shape_cast %49 : vector<1x22x128xbf16> to vector<22x128xbf16>
    %c8_47 = arith.constant 8 : index
    %c0_48 = arith.constant 0 : index
    %c0_49 = arith.constant 0 : index
    %51 = vector.load %arg2[%c8_47, %c0_48, %c0_49] : memref<9x128x128xbf16, #tpu.memory_space<vmem>>, vector<1x128x128xbf16>
    %52 = vector.shape_cast %51 : vector<1x128x128xbf16> to vector<128x128xbf16>
    %cst_50 = arith.constant dense<0.000000e+00> : vector<22x128xf32>
    %53 = tpu.matmul %50, %52, %cst_50 {dimension_numbers = #tpu.dot_dimension_numbers<[1], [0], [0], [1], [0, 0, 1, 1], [], []>} : vector<22x128xbf16>, vector<128x128xbf16>, vector<22x128xf32> -> vector<22x128xf32>
    %54 = arith.addf %48, %53 : vector<22x128xf32>
    %c0_51 = arith.constant 0 : index
    %c0_52 = arith.constant 0 : index
    %55 = vector.load %arg3[%c0_51, %c0_52] : memref<1x128xf32, #tpu.memory_space<vmem>>, vector<1x128xf32>
    %56 = vector.broadcast %55 : vector<1x128xf32> to vector<22x128xf32>
    %57 = arith.mulf %54, %56 : vector<22x128xf32>
    %c0_53 = arith.constant 0 : index
    %c0_54 = arith.constant 0 : index
    %58 = vector.load %arg4[%c0_53, %c0_54] : memref<1x128xf32, #tpu.memory_space<vmem>>, vector<1x128xf32>
    %59 = vector.broadcast %58 : vector<1x128xf32> to vector<22x128xf32>
    %60 = arith.addf %57, %59 : vector<22x128xf32>
    %cst_55 = arith.constant 0.000000e+00 : f32
    %61 = vector.broadcast %cst_55 : f32 to vector<22x128xf32>
    %62 = arith.maximumf %60, %61 : vector<22x128xf32>
    %63 = arith.truncf %62 : vector<22x128xf32> to vector<22x128xbf16>
    %64 = vector.extract_strided_slice %63 {offsets = [0, 0], sizes = [4, 128], strides = [1, 1]} : vector<22x128xbf16> to vector<4x128xbf16>
    %c0_56 = arith.constant 0 : index
    %c0_57 = arith.constant 0 : index
    %c0_58 = arith.constant 0 : index
    %c0_59 = arith.constant 0 : index
    %65 = vector.load %arg5[%c0_56, %c0_57, %c0_58, %c0_59] : memref<1x4x4x128xbf16, #tpu.memory_space<vmem>>, vector<1x1x4x128xbf16>
    %66 = vector.shape_cast %65 : vector<1x1x4x128xbf16> to vector<4x128xbf16>
    %67 = vector.shape_cast %64 : vector<4x128xbf16> to vector<1x1x4x128xbf16>
    tpu.vector_store %arg5[%c0_56, %c0_57, %c0_58, %c0_59], %67 {strides = array<i32>} : memref<1x4x4x128xbf16, #tpu.memory_space<vmem>>, vector<1x1x4x128xbf16>,
    %68 = vector.extract_strided_slice %63 {offsets = [6, 0], sizes = [4, 128], strides = [1, 1]} : vector<22x128xbf16> to vector<4x128xbf16>
    %c0_60 = arith.constant 0 : index
    %c1_61 = arith.constant 1 : index
    %c0_62 = arith.constant 0 : index
    %c0_63 = arith.constant 0 : index
    %69 = vector.load %arg5[%c0_60, %c1_61, %c0_62, %c0_63] : memref<1x4x4x128xbf16, #tpu.memory_space<vmem>>, vector<1x1x4x128xbf16>
    %70 = vector.shape_cast %69 : vector<1x1x4x128xbf16> to vector<4x128xbf16>
    %71 = vector.shape_cast %68 : vector<4x128xbf16> to vector<1x1x4x128xbf16>
    tpu.vector_store %arg5[%c0_60, %c1_61, %c0_62, %c0_63], %71 {strides = array<i32>} : memref<1x4x4x128xbf16, #tpu.memory_space<vmem>>, vector<1x1x4x128xbf16>,
    %72 = vector.extract_strided_slice %63 {offsets = [12, 0], sizes = [4, 128], strides = [1, 1]} : vector<22x128xbf16> to vector<4x128xbf16>
    %c0_64 = arith.constant 0 : index
    %c2_65 = arith.constant 2 : index
    %c0_66 = arith.constant 0 : index
    %c0_67 = arith.constant 0 : index
    %73 = vector.load %arg5[%c0_64, %c2_65, %c0_66, %c0_67] : memref<1x4x4x128xbf16, #tpu.memory_space<vmem>>, vector<1x1x4x128xbf16>
    %74 = vector.shape_cast %73 : vector<1x1x4x128xbf16> to vector<4x128xbf16>
    %75 = vector.shape_cast %72 : vector<4x128xbf16> to vector<1x1x4x128xbf16>
    tpu.vector_store %arg5[%c0_64, %c2_65, %c0_66, %c0_67], %75 {strides = array<i32>} : memref<1x4x4x128xbf16, #tpu.memory_space<vmem>>, vector<1x1x4x128xbf16>,
    %76 = vector.extract_strided_slice %63 {offsets = [18, 0], sizes = [4, 128], strides = [1, 1]} : vector<22x128xbf16> to vector<4x128xbf16>
    %c0_68 = arith.constant 0 : index
    %c3_69 = arith.constant 3 : index
    %c0_70 = arith.constant 0 : index
    %c0_71 = arith.constant 0 : index
    %77 = vector.load %arg5[%c0_68, %c3_69, %c0_70, %c0_71] : memref<1x4x4x128xbf16, #tpu.memory_space<vmem>>, vector<1x1x4x128xbf16>
    %78 = vector.shape_cast %77 : vector<1x1x4x128xbf16> to vector<4x128xbf16>
    %79 = vector.shape_cast %76 : vector<4x128xbf16> to vector<1x1x4x128xbf16>
    tpu.vector_store %arg5[%c0_68, %c3_69, %c0_70, %c0_71], %79 {strides = array<i32>} : memref<1x4x4x128xbf16, #tpu.memory_space<vmem>>, vector<1x1x4x128xbf16>,
    return
  }
  func.func @transform_0(%arg0: i32) -> (i32, i32, i32) {
    %c0_i32 = arith.constant 0 : i32
    %c0_i32_0 = arith.constant 0 : i32
    %c0_i32_1 = arith.constant 0 : i32
    return %arg0, %c0_i32, %c0_i32_0 : i32, i32, i32
  }
  func.func @transform_1(%arg0: i32) -> (i32, i32, i32) {
    %c0_i32 = arith.constant 0 : i32
    %c0_i32_0 = arith.constant 0 : i32
    %c0_i32_1 = arith.constant 0 : i32
    %c0_i32_2 = arith.constant 0 : i32
    return %c0_i32, %c0_i32_0, %c0_i32_1 : i32, i32, i32
  }
  func.func @transform_2(%arg0: i32) -> (i32, i32) {
    %c0_i32 = arith.constant 0 : i32
    %c0_i32_0 = arith.constant 0 : i32
    %c0_i32_1 = arith.constant 0 : i32
    return %c0_i32, %c0_i32_0 : i32, i32
  }
  func.func @transform_3(%arg0: i32) -> (i32, i32) {
    %c0_i32 = arith.constant 0 : i32
    %c0_i32_0 = arith.constant 0 : i32
    %c0_i32_1 = arith.constant 0 : i32
    return %c0_i32, %c0_i32_0 : i32, i32
  }
  func.func @transform_4(%arg0: i32) -> (i32, i32, i32, i32) {
    %c0_i32 = arith.constant 0 : i32
    %c0_i32_0 = arith.constant 0 : i32
    %c0_i32_1 = arith.constant 0 : i32
    %c0_i32_2 = arith.constant 0 : i32
    return %arg0, %c0_i32, %c0_i32_0, %c0_i32_1 : i32, i32, i32, i32
  }
}

module attributes {stable_mosaic.version = 11 : i64} {
  func.func @_mm_kernel(%arg0: i32, %arg1: i32, %arg2: i32, %arg3: memref<16x128xbf16, #tpu.memory_space<vmem>>, %arg4: memref<128x128xbf16, #tpu.memory_space<vmem>>, %arg5: memref<1x128xf32, #tpu.memory_space<vmem>>, %arg6: memref<1x128xf32, #tpu.memory_space<vmem>>, %arg7: memref<16x128xbf16, #tpu.memory_space<vmem>>, %arg8: memref<16x128xf32, #tpu.memory_space<vmem>>) attributes {dimension_semantics = [#tpu.dimension_semantics<parallel>, #tpu.dimension_semantics<parallel>, #tpu.dimension_semantics<arbitrary>], iteration_bounds = array<i64: 1, 2, 1>, scalar_prefetch = 0 : i64, scratch_operands = 1 : i64, tpu.core_type = #tpu.core_type<tc>, window_params = [{transform_indices = @transform_0, window_bounds = array<i64: 16, 128>}, {transform_indices = @transform_1, window_bounds = array<i64: 128, 128>}, {transform_indices = @transform_2, window_bounds = array<i64: 1, 128>}, {transform_indices = @transform_3, window_bounds = array<i64: 1, 128>}, {transform_indices = @transform_4, window_bounds = array<i64: 16, 128>}]} {
    %c0_i32 = arith.constant 0 : i32
    %0 = arith.cmpi eq, %arg2, %c0_i32 : i32
    %1 = arith.extui %0 : i1 to i32
    %c0_i32_0 = arith.constant 0 : i32
    %2 = arith.cmpi ne, %1, %c0_i32_0 : i32
    scf.if %2 {
      %cst_10 = arith.constant 0.000000e+00 : f32
      %12 = vector.broadcast %cst_10 : f32 to vector<16x128xf32>
      %c0_11 = arith.constant 0 : index
      %c0_12 = arith.constant 0 : index
      %13 = vector.load %arg8[%c0_11, %c0_12] : memref<16x128xf32, #tpu.memory_space<vmem>>, vector<16x128xf32>
      tpu.vector_store %arg8[%c0_11, %c0_12], %12 {strides = array<i32>} : memref<16x128xf32, #tpu.memory_space<vmem>>, vector<16x128xf32>,
    } else {
    }
    %c0 = arith.constant 0 : index
    %c0_1 = arith.constant 0 : index
    %3 = vector.load %arg8[%c0, %c0_1] : memref<16x128xf32, #tpu.memory_space<vmem>>, vector<16x128xf32>
    %c0_2 = arith.constant 0 : index
    %c0_3 = arith.constant 0 : index
    %4 = vector.load %arg3[%c0_2, %c0_3] : memref<16x128xbf16, #tpu.memory_space<vmem>>, vector<16x128xbf16>
    %c0_4 = arith.constant 0 : index
    %c0_5 = arith.constant 0 : index
    %5 = vector.load %arg4[%c0_4, %c0_5] : memref<128x128xbf16, #tpu.memory_space<vmem>>, vector<128x128xbf16>
    %cst = arith.constant dense<0.000000e+00> : vector<16x128xf32>
    %6 = tpu.matmul %4, %5, %cst {dimension_numbers = #tpu.dot_dimension_numbers<[1], [0], [0], [1], [0, 0, 1, 1], [], []>} : vector<16x128xbf16>, vector<128x128xbf16>, vector<16x128xf32> -> vector<16x128xf32>
    %7 = arith.addf %3, %6 : vector<16x128xf32>
    %c0_6 = arith.constant 0 : index
    %c0_7 = arith.constant 0 : index
    %8 = vector.load %arg8[%c0_6, %c0_7] : memref<16x128xf32, #tpu.memory_space<vmem>>, vector<16x128xf32>
    tpu.vector_store %arg8[%c0_6, %c0_7], %7 {strides = array<i32>} : memref<16x128xf32, #tpu.memory_space<vmem>>, vector<16x128xf32>,
    %c0_i32_8 = arith.constant 0 : i32
    %9 = arith.cmpi eq, %arg2, %c0_i32_8 : i32
    %10 = arith.extui %9 : i1 to i32
    %c0_i32_9 = arith.constant 0 : i32
    %11 = arith.cmpi ne, %10, %c0_i32_9 : i32
    scf.if %11 {
      %c0_10 = arith.constant 0 : index
      %c0_11 = arith.constant 0 : index
      %12 = vector.load %arg8[%c0_10, %c0_11] : memref<16x128xf32, #tpu.memory_space<vmem>>, vector<16x128xf32>
      %c0_12 = arith.constant 0 : index
      %c0_13 = arith.constant 0 : index
      %13 = vector.load %arg5[%c0_12, %c0_13] : memref<1x128xf32, #tpu.memory_space<vmem>>, vector<1x128xf32>
      %14 = vector.broadcast %13 : vector<1x128xf32> to vector<16x128xf32>
      %15 = arith.mulf %12, %14 : vector<16x128xf32>
      %c0_14 = arith.constant 0 : index
      %c0_15 = arith.constant 0 : index
      %16 = vector.load %arg6[%c0_14, %c0_15] : memref<1x128xf32, #tpu.memory_space<vmem>>, vector<1x128xf32>
      %17 = vector.broadcast %16 : vector<1x128xf32> to vector<16x128xf32>
      %18 = arith.addf %15, %17 : vector<16x128xf32>
      %19 = arith.truncf %18 : vector<16x128xf32> to vector<16x128xbf16>
      %c0_16 = arith.constant 0 : index
      %c0_17 = arith.constant 0 : index
      %20 = vector.load %arg7[%c0_16, %c0_17] : memref<16x128xbf16, #tpu.memory_space<vmem>>, vector<16x128xbf16>
      tpu.vector_store %arg7[%c0_16, %c0_17], %19 {strides = array<i32>} : memref<16x128xbf16, #tpu.memory_space<vmem>>, vector<16x128xbf16>,
    } else {
    }
    return
  }
  func.func @transform_0(%arg0: i32, %arg1: i32, %arg2: i32) -> (i32, i32) {
    %c0_i32 = arith.constant 0 : i32
    return %arg1, %arg2 : i32, i32
  }
  func.func @transform_1(%arg0: i32, %arg1: i32, %arg2: i32) -> (i32, i32) {
    %c0_i32 = arith.constant 0 : i32
    return %arg2, %arg0 : i32, i32
  }
  func.func @transform_2(%arg0: i32, %arg1: i32, %arg2: i32) -> (i32, i32) {
    %c0_i32 = arith.constant 0 : i32
    %c0_i32_0 = arith.constant 0 : i32
    return %c0_i32, %arg0 : i32, i32
  }
  func.func @transform_3(%arg0: i32, %arg1: i32, %arg2: i32) -> (i32, i32) {
    %c0_i32 = arith.constant 0 : i32
    %c0_i32_0 = arith.constant 0 : i32
    return %c0_i32, %arg0 : i32, i32
  }
  func.func @transform_4(%arg0: i32, %arg1: i32, %arg2: i32) -> (i32, i32) {
    %c0_i32 = arith.constant 0 : i32
    return %arg1, %arg0 : i32, i32
  }
}

module attributes {stable_mosaic.version = 11 : i64} {
  func.func @_mm_res_kernel(%arg0: i32, %arg1: i32, %arg2: i32, %arg3: memref<16x128xbf16, #tpu.memory_space<vmem>>, %arg4: memref<128x128xbf16, #tpu.memory_space<vmem>>, %arg5: memref<1x128xf32, #tpu.memory_space<vmem>>, %arg6: memref<1x128xf32, #tpu.memory_space<vmem>>, %arg7: memref<16x128xbf16, #tpu.memory_space<vmem>>, %arg8: memref<16x128xbf16, #tpu.memory_space<vmem>>, %arg9: memref<16x128xf32, #tpu.memory_space<vmem>>) attributes {dimension_semantics = [#tpu.dimension_semantics<parallel>, #tpu.dimension_semantics<parallel>, #tpu.dimension_semantics<arbitrary>], iteration_bounds = array<i64: 1, 2, 1>, scalar_prefetch = 0 : i64, scratch_operands = 1 : i64, tpu.core_type = #tpu.core_type<tc>, window_params = [{transform_indices = @transform_0, window_bounds = array<i64: 16, 128>}, {transform_indices = @transform_1, window_bounds = array<i64: 128, 128>}, {transform_indices = @transform_2, window_bounds = array<i64: 1, 128>}, {transform_indices = @transform_3, window_bounds = array<i64: 1, 128>}, {transform_indices = @transform_4, window_bounds = array<i64: 16, 128>}, {transform_indices = @transform_5, window_bounds = array<i64: 16, 128>}]} {
    %c0_i32 = arith.constant 0 : i32
    %0 = arith.cmpi eq, %arg2, %c0_i32 : i32
    %1 = arith.extui %0 : i1 to i32
    %c0_i32_0 = arith.constant 0 : i32
    %2 = arith.cmpi ne, %1, %c0_i32_0 : i32
    scf.if %2 {
      %cst_10 = arith.constant 0.000000e+00 : f32
      %12 = vector.broadcast %cst_10 : f32 to vector<16x128xf32>
      %c0_11 = arith.constant 0 : index
      %c0_12 = arith.constant 0 : index
      %13 = vector.load %arg9[%c0_11, %c0_12] : memref<16x128xf32, #tpu.memory_space<vmem>>, vector<16x128xf32>
      tpu.vector_store %arg9[%c0_11, %c0_12], %12 {strides = array<i32>} : memref<16x128xf32, #tpu.memory_space<vmem>>, vector<16x128xf32>,
    } else {
    }
    %c0 = arith.constant 0 : index
    %c0_1 = arith.constant 0 : index
    %3 = vector.load %arg9[%c0, %c0_1] : memref<16x128xf32, #tpu.memory_space<vmem>>, vector<16x128xf32>
    %c0_2 = arith.constant 0 : index
    %c0_3 = arith.constant 0 : index
    %4 = vector.load %arg3[%c0_2, %c0_3] : memref<16x128xbf16, #tpu.memory_space<vmem>>, vector<16x128xbf16>
    %c0_4 = arith.constant 0 : index
    %c0_5 = arith.constant 0 : index
    %5 = vector.load %arg4[%c0_4, %c0_5] : memref<128x128xbf16, #tpu.memory_space<vmem>>, vector<128x128xbf16>
    %cst = arith.constant dense<0.000000e+00> : vector<16x128xf32>
    %6 = tpu.matmul %4, %5, %cst {dimension_numbers = #tpu.dot_dimension_numbers<[1], [0], [0], [1], [0, 0, 1, 1], [], []>} : vector<16x128xbf16>, vector<128x128xbf16>, vector<16x128xf32> -> vector<16x128xf32>
    %7 = arith.addf %3, %6 : vector<16x128xf32>
    %c0_6 = arith.constant 0 : index
    %c0_7 = arith.constant 0 : index
    %8 = vector.load %arg9[%c0_6, %c0_7] : memref<16x128xf32, #tpu.memory_space<vmem>>, vector<16x128xf32>
    tpu.vector_store %arg9[%c0_6, %c0_7], %7 {strides = array<i32>} : memref<16x128xf32, #tpu.memory_space<vmem>>, vector<16x128xf32>,
    %c0_i32_8 = arith.constant 0 : i32
    %9 = arith.cmpi eq, %arg2, %c0_i32_8 : i32
    %10 = arith.extui %9 : i1 to i32
    %c0_i32_9 = arith.constant 0 : i32
    %11 = arith.cmpi ne, %10, %c0_i32_9 : i32
    scf.if %11 {
      %c0_10 = arith.constant 0 : index
      %c0_11 = arith.constant 0 : index
      %12 = vector.load %arg9[%c0_10, %c0_11] : memref<16x128xf32, #tpu.memory_space<vmem>>, vector<16x128xf32>
      %c0_12 = arith.constant 0 : index
      %c0_13 = arith.constant 0 : index
      %13 = vector.load %arg5[%c0_12, %c0_13] : memref<1x128xf32, #tpu.memory_space<vmem>>, vector<1x128xf32>
      %14 = vector.broadcast %13 : vector<1x128xf32> to vector<16x128xf32>
      %15 = arith.mulf %12, %14 : vector<16x128xf32>
      %c0_14 = arith.constant 0 : index
      %c0_15 = arith.constant 0 : index
      %16 = vector.load %arg6[%c0_14, %c0_15] : memref<1x128xf32, #tpu.memory_space<vmem>>, vector<1x128xf32>
      %17 = vector.broadcast %16 : vector<1x128xf32> to vector<16x128xf32>
      %18 = arith.addf %15, %17 : vector<16x128xf32>
      %c0_16 = arith.constant 0 : index
      %c0_17 = arith.constant 0 : index
      %19 = vector.load %arg7[%c0_16, %c0_17] : memref<16x128xbf16, #tpu.memory_space<vmem>>, vector<16x128xbf16>
      %20 = arith.extf %19 : vector<16x128xbf16> to vector<16x128xf32>
      %21 = arith.addf %18, %20 : vector<16x128xf32>
      %cst_18 = arith.constant 0.000000e+00 : f32
      %22 = vector.broadcast %cst_18 : f32 to vector<16x128xf32>
      %23 = arith.maximumf %21, %22 : vector<16x128xf32>
      %24 = arith.truncf %23 : vector<16x128xf32> to vector<16x128xbf16>
      %c0_19 = arith.constant 0 : index
      %c0_20 = arith.constant 0 : index
      %25 = vector.load %arg8[%c0_19, %c0_20] : memref<16x128xbf16, #tpu.memory_space<vmem>>, vector<16x128xbf16>
      tpu.vector_store %arg8[%c0_19, %c0_20], %24 {strides = array<i32>} : memref<16x128xbf16, #tpu.memory_space<vmem>>, vector<16x128xbf16>,
    } else {
    }
    return
  }
  func.func @transform_0(%arg0: i32, %arg1: i32, %arg2: i32) -> (i32, i32) {
    %c0_i32 = arith.constant 0 : i32
    return %arg1, %arg2 : i32, i32
  }
  func.func @transform_1(%arg0: i32, %arg1: i32, %arg2: i32) -> (i32, i32) {
    %c0_i32 = arith.constant 0 : i32
    return %arg2, %arg0 : i32, i32
  }
  func.func @transform_2(%arg0: i32, %arg1: i32, %arg2: i32) -> (i32, i32) {
    %c0_i32 = arith.constant 0 : i32
    %c0_i32_0 = arith.constant 0 : i32
    return %c0_i32, %arg0 : i32, i32
  }
  func.func @transform_3(%arg0: i32, %arg1: i32, %arg2: i32) -> (i32, i32) {
    %c0_i32 = arith.constant 0 : i32
    %c0_i32_0 = arith.constant 0 : i32
    return %c0_i32, %arg0 : i32, i32
  }
  func.func @transform_4(%arg0: i32, %arg1: i32, %arg2: i32) -> (i32, i32) {
    %c0_i32 = arith.constant 0 : i32
    return %arg1, %arg0 : i32, i32
  }
  func.func @transform_5(%arg0: i32, %arg1: i32, %arg2: i32) -> (i32, i32) {
    %c0_i32 = arith.constant 0 : i32
    return %arg1, %arg0 : i32, i32
  }
}

module attributes {stable_mosaic.version = 11 : i64} {
  func.func @_conv3x3_kernel(%arg0: i32, %arg1: memref<1x36x128xbf16, #tpu.memory_space<vmem>>, %arg2: memref<9x128x128xbf16, #tpu.memory_space<vmem>>, %arg3: memref<1x128xf32, #tpu.memory_space<vmem>>, %arg4: memref<1x128xf32, #tpu.memory_space<vmem>>, %arg5: memref<1x4x4x128xbf16, #tpu.memory_space<vmem>>) attributes {dimension_semantics = [#tpu.dimension_semantics<parallel>], iteration_bounds = array<i64: 2>, scalar_prefetch = 0 : i64, scratch_operands = 0 : i64, tpu.core_type = #tpu.core_type<tc>, window_params = [{transform_indices = @transform_0, window_bounds = array<i64: 1, 36, 128>}, {pipeline_mode = #tpu.pipeline_mode<synchronous>, transform_indices = @transform_1, window_bounds = array<i64: 9, 128, 128>}, {pipeline_mode = #tpu.pipeline_mode<synchronous>, transform_indices = @transform_2, window_bounds = array<i64: 1, 128>}, {pipeline_mode = #tpu.pipeline_mode<synchronous>, transform_indices = @transform_3, window_bounds = array<i64: 1, 128>}, {transform_indices = @transform_4, window_bounds = array<i64: 1, 4, 4, 128>}]} {
    %cst = arith.constant 0.000000e+00 : f32
    %0 = vector.broadcast %cst : f32 to vector<22x128xf32>
    %c0 = arith.constant 0 : index
    %c0_0 = arith.constant 0 : index
    %c0_1 = arith.constant 0 : index
    %1 = vector.load %arg1[%c0, %c0_0, %c0_1] : memref<1x36x128xbf16, #tpu.memory_space<vmem>>, vector<1x22x128xbf16>
    %2 = vector.shape_cast %1 : vector<1x22x128xbf16> to vector<22x128xbf16>
    %c0_2 = arith.constant 0 : index
    %c0_3 = arith.constant 0 : index
    %c0_4 = arith.constant 0 : index
    %3 = vector.load %arg2[%c0_2, %c0_3, %c0_4] : memref<9x128x128xbf16, #tpu.memory_space<vmem>>, vector<1x128x128xbf16>
    %4 = vector.shape_cast %3 : vector<1x128x128xbf16> to vector<128x128xbf16>
    %cst_5 = arith.constant dense<0.000000e+00> : vector<22x128xf32>
    %5 = tpu.matmul %2, %4, %cst_5 {dimension_numbers = #tpu.dot_dimension_numbers<[1], [0], [0], [1], [0, 0, 1, 1], [], []>} : vector<22x128xbf16>, vector<128x128xbf16>, vector<22x128xf32> -> vector<22x128xf32>
    %6 = arith.addf %0, %5 : vector<22x128xf32>
    %c0_6 = arith.constant 0 : index
    %c1 = arith.constant 1 : index
    %c0_7 = arith.constant 0 : index
    %7 = vector.load %arg1[%c0_6, %c1, %c0_7] : memref<1x36x128xbf16, #tpu.memory_space<vmem>>, vector<1x22x128xbf16>
    %8 = vector.shape_cast %7 : vector<1x22x128xbf16> to vector<22x128xbf16>
    %c1_8 = arith.constant 1 : index
    %c0_9 = arith.constant 0 : index
    %c0_10 = arith.constant 0 : index
    %9 = vector.load %arg2[%c1_8, %c0_9, %c0_10] : memref<9x128x128xbf16, #tpu.memory_space<vmem>>, vector<1x128x128xbf16>
    %10 = vector.shape_cast %9 : vector<1x128x128xbf16> to vector<128x128xbf16>
    %cst_11 = arith.constant dense<0.000000e+00> : vector<22x128xf32>
    %11 = tpu.matmul %8, %10, %cst_11 {dimension_numbers = #tpu.dot_dimension_numbers<[1], [0], [0], [1], [0, 0, 1, 1], [], []>} : vector<22x128xbf16>, vector<128x128xbf16>, vector<22x128xf32> -> vector<22x128xf32>
    %12 = arith.addf %6, %11 : vector<22x128xf32>
    %c0_12 = arith.constant 0 : index
    %c2 = arith.constant 2 : index
    %c0_13 = arith.constant 0 : index
    %13 = vector.load %arg1[%c0_12, %c2, %c0_13] : memref<1x36x128xbf16, #tpu.memory_space<vmem>>, vector<1x22x128xbf16>
    %14 = vector.shape_cast %13 : vector<1x22x128xbf16> to vector<22x128xbf16>
    %c2_14 = arith.constant 2 : index
    %c0_15 = arith.constant 0 : index
    %c0_16 = arith.constant 0 : index
    %15 = vector.load %arg2[%c2_14, %c0_15, %c0_16] : memref<9x128x128xbf16, #tpu.memory_space<vmem>>, vector<1x128x128xbf16>
    %16 = vector.shape_cast %15 : vector<1x128x128xbf16> to vector<128x128xbf16>
    %cst_17 = arith.constant dense<0.000000e+00> : vector<22x128xf32>
    %17 = tpu.matmul %14, %16, %cst_17 {dimension_numbers = #tpu.dot_dimension_numbers<[1], [0], [0], [1], [0, 0, 1, 1], [], []>} : vector<22x128xbf16>, vector<128x128xbf16>, vector<22x128xf32> -> vector<22x128xf32>
    %18 = arith.addf %12, %17 : vector<22x128xf32>
    %c0_18 = arith.constant 0 : index
    %c6 = arith.constant 6 : index
    %c0_19 = arith.constant 0 : index
    %19 = vector.load %arg1[%c0_18, %c6, %c0_19] : memref<1x36x128xbf16, #tpu.memory_space<vmem>>, vector<1x22x128xbf16>
    %20 = vector.shape_cast %19 : vector<1x22x128xbf16> to vector<22x128xbf16>
    %c3 = arith.constant 3 : index
    %c0_20 = arith.constant 0 : index
    %c0_21 = arith.constant 0 : index
    %21 = vector.load %arg2[%c3, %c0_20, %c0_21] : memref<9x128x128xbf16, #tpu.memory_space<vmem>>, vector<1x128x128xbf16>
    %22 = vector.shape_cast %21 : vector<1x128x128xbf16> to vector<128x128xbf16>
    %cst_22 = arith.constant dense<0.000000e+00> : vector<22x128xf32>
    %23 = tpu.matmul %20, %22, %cst_22 {dimension_numbers = #tpu.dot_dimension_numbers<[1], [0], [0], [1], [0, 0, 1, 1], [], []>} : vector<22x128xbf16>, vector<128x128xbf16>, vector<22x128xf32> -> vector<22x128xf32>
    %24 = arith.addf %18, %23 : vector<22x128xf32>
    %c0_23 = arith.constant 0 : index
    %c7 = arith.constant 7 : index
    %c0_24 = arith.constant 0 : index
    %25 = vector.load %arg1[%c0_23, %c7, %c0_24] : memref<1x36x128xbf16, #tpu.memory_space<vmem>>, vector<1x22x128xbf16>
    %26 = vector.shape_cast %25 : vector<1x22x128xbf16> to vector<22x128xbf16>
    %c4 = arith.constant 4 : index
    %c0_25 = arith.constant 0 : index
    %c0_26 = arith.constant 0 : index
    %27 = vector.load %arg2[%c4, %c0_25, %c0_26] : memref<9x128x128xbf16, #tpu.memory_space<vmem>>, vector<1x128x128xbf16>
    %28 = vector.shape_cast %27 : vector<1x128x128xbf16> to vector<128x128xbf16>
    %cst_27 = arith.constant dense<0.000000e+00> : vector<22x128xf32>
    %29 = tpu.matmul %26, %28, %cst_27 {dimension_numbers = #tpu.dot_dimension_numbers<[1], [0], [0], [1], [0, 0, 1, 1], [], []>} : vector<22x128xbf16>, vector<128x128xbf16>, vector<22x128xf32> -> vector<22x128xf32>
    %30 = arith.addf %24, %29 : vector<22x128xf32>
    %c0_28 = arith.constant 0 : index
    %c8 = arith.constant 8 : index
    %c0_29 = arith.constant 0 : index
    %31 = vector.load %arg1[%c0_28, %c8, %c0_29] : memref<1x36x128xbf16, #tpu.memory_space<vmem>>, vector<1x22x128xbf16>
    %32 = vector.shape_cast %31 : vector<1x22x128xbf16> to vector<22x128xbf16>
    %c5 = arith.constant 5 : index
    %c0_30 = arith.constant 0 : index
    %c0_31 = arith.constant 0 : index
    %33 = vector.load %arg2[%c5, %c0_30, %c0_31] : memref<9x128x128xbf16, #tpu.memory_space<vmem>>, vector<1x128x128xbf16>
    %34 = vector.shape_cast %33 : vector<1x128x128xbf16> to vector<128x128xbf16>
    %cst_32 = arith.constant dense<0.000000e+00> : vector<22x128xf32>
    %35 = tpu.matmul %32, %34, %cst_32 {dimension_numbers = #tpu.dot_dimension_numbers<[1], [0], [0], [1], [0, 0, 1, 1], [], []>} : vector<22x128xbf16>, vector<128x128xbf16>, vector<22x128xf32> -> vector<22x128xf32>
    %36 = arith.addf %30, %35 : vector<22x128xf32>
    %c0_33 = arith.constant 0 : index
    %c12 = arith.constant 12 : index
    %c0_34 = arith.constant 0 : index
    %37 = vector.load %arg1[%c0_33, %c12, %c0_34] : memref<1x36x128xbf16, #tpu.memory_space<vmem>>, vector<1x22x128xbf16>
    %38 = vector.shape_cast %37 : vector<1x22x128xbf16> to vector<22x128xbf16>
    %c6_35 = arith.constant 6 : index
    %c0_36 = arith.constant 0 : index
    %c0_37 = arith.constant 0 : index
    %39 = vector.load %arg2[%c6_35, %c0_36, %c0_37] : memref<9x128x128xbf16, #tpu.memory_space<vmem>>, vector<1x128x128xbf16>
    %40 = vector.shape_cast %39 : vector<1x128x128xbf16> to vector<128x128xbf16>
    %cst_38 = arith.constant dense<0.000000e+00> : vector<22x128xf32>
    %41 = tpu.matmul %38, %40, %cst_38 {dimension_numbers = #tpu.dot_dimension_numbers<[1], [0], [0], [1], [0, 0, 1, 1], [], []>} : vector<22x128xbf16>, vector<128x128xbf16>, vector<22x128xf32> -> vector<22x128xf32>
    %42 = arith.addf %36, %41 : vector<22x128xf32>
    %c0_39 = arith.constant 0 : index
    %c13 = arith.constant 13 : index
    %c0_40 = arith.constant 0 : index
    %43 = vector.load %arg1[%c0_39, %c13, %c0_40] : memref<1x36x128xbf16, #tpu.memory_space<vmem>>, vector<1x22x128xbf16>
    %44 = vector.shape_cast %43 : vector<1x22x128xbf16> to vector<22x128xbf16>
    %c7_41 = arith.constant 7 : index
    %c0_42 = arith.constant 0 : index
    %c0_43 = arith.constant 0 : index
    %45 = vector.load %arg2[%c7_41, %c0_42, %c0_43] : memref<9x128x128xbf16, #tpu.memory_space<vmem>>, vector<1x128x128xbf16>
    %46 = vector.shape_cast %45 : vector<1x128x128xbf16> to vector<128x128xbf16>
    %cst_44 = arith.constant dense<0.000000e+00> : vector<22x128xf32>
    %47 = tpu.matmul %44, %46, %cst_44 {dimension_numbers = #tpu.dot_dimension_numbers<[1], [0], [0], [1], [0, 0, 1, 1], [], []>} : vector<22x128xbf16>, vector<128x128xbf16>, vector<22x128xf32> -> vector<22x128xf32>
    %48 = arith.addf %42, %47 : vector<22x128xf32>
    %c0_45 = arith.constant 0 : index
    %c14 = arith.constant 14 : index
    %c0_46 = arith.constant 0 : index
    %49 = vector.load %arg1[%c0_45, %c14, %c0_46] : memref<1x36x128xbf16, #tpu.memory_space<vmem>>, vector<1x22x128xbf16>
    %50 = vector.shape_cast %49 : vector<1x22x128xbf16> to vector<22x128xbf16>
    %c8_47 = arith.constant 8 : index
    %c0_48 = arith.constant 0 : index
    %c0_49 = arith.constant 0 : index
    %51 = vector.load %arg2[%c8_47, %c0_48, %c0_49] : memref<9x128x128xbf16, #tpu.memory_space<vmem>>, vector<1x128x128xbf16>
    %52 = vector.shape_cast %51 : vector<1x128x128xbf16> to vector<128x128xbf16>
    %cst_50 = arith.constant dense<0.000000e+00> : vector<22x128xf32>
    %53 = tpu.matmul %50, %52, %cst_50 {dimension_numbers = #tpu.dot_dimension_numbers<[1], [0], [0], [1], [0, 0, 1, 1], [], []>} : vector<22x128xbf16>, vector<128x128xbf16>, vector<22x128xf32> -> vector<22x128xf32>
    %54 = arith.addf %48, %53 : vector<22x128xf32>
    %c0_51 = arith.constant 0 : index
    %c0_52 = arith.constant 0 : index
    %55 = vector.load %arg3[%c0_51, %c0_52] : memref<1x128xf32, #tpu.memory_space<vmem>>, vector<1x128xf32>
    %56 = vector.broadcast %55 : vector<1x128xf32> to vector<22x128xf32>
    %57 = arith.mulf %54, %56 : vector<22x128xf32>
    %c0_53 = arith.constant 0 : index
    %c0_54 = arith.constant 0 : index
    %58 = vector.load %arg4[%c0_53, %c0_54] : memref<1x128xf32, #tpu.memory_space<vmem>>, vector<1x128xf32>
    %59 = vector.broadcast %58 : vector<1x128xf32> to vector<22x128xf32>
    %60 = arith.addf %57, %59 : vector<22x128xf32>
    %cst_55 = arith.constant 0.000000e+00 : f32
    %61 = vector.broadcast %cst_55 : f32 to vector<22x128xf32>
    %62 = arith.maximumf %60, %61 : vector<22x128xf32>
    %63 = arith.truncf %62 : vector<22x128xf32> to vector<22x128xbf16>
    %64 = vector.extract_strided_slice %63 {offsets = [0, 0], sizes = [4, 128], strides = [1, 1]} : vector<22x128xbf16> to vector<4x128xbf16>
    %c0_56 = arith.constant 0 : index
    %c0_57 = arith.constant 0 : index
    %c0_58 = arith.constant 0 : index
    %c0_59 = arith.constant 0 : index
    %65 = vector.load %arg5[%c0_56, %c0_57, %c0_58, %c0_59] : memref<1x4x4x128xbf16, #tpu.memory_space<vmem>>, vector<1x1x4x128xbf16>
    %66 = vector.shape_cast %65 : vector<1x1x4x128xbf16> to vector<4x128xbf16>
    %67 = vector.shape_cast %64 : vector<4x128xbf16> to vector<1x1x4x128xbf16>
    tpu.vector_store %arg5[%c0_56, %c0_57, %c0_58, %c0_59], %67 {strides = array<i32>} : memref<1x4x4x128xbf16, #tpu.memory_space<vmem>>, vector<1x1x4x128xbf16>,
    %68 = vector.extract_strided_slice %63 {offsets = [6, 0], sizes = [4, 128], strides = [1, 1]} : vector<22x128xbf16> to vector<4x128xbf16>
    %c0_60 = arith.constant 0 : index
    %c1_61 = arith.constant 1 : index
    %c0_62 = arith.constant 0 : index
    %c0_63 = arith.constant 0 : index
    %69 = vector.load %arg5[%c0_60, %c1_61, %c0_62, %c0_63] : memref<1x4x4x128xbf16, #tpu.memory_space<vmem>>, vector<1x1x4x128xbf16>
    %70 = vector.shape_cast %69 : vector<1x1x4x128xbf16> to vector<4x128xbf16>
    %71 = vector.shape_cast %68 : vector<4x128xbf16> to vector<1x1x4x128xbf16>
    tpu.vector_store %arg5[%c0_60, %c1_61, %c0_62, %c0_63], %71 {strides = array<i32>} : memref<1x4x4x128xbf16, #tpu.memory_space<vmem>>, vector<1x1x4x128xbf16>,
    %72 = vector.extract_strided_slice %63 {offsets = [12, 0], sizes = [4, 128], strides = [1, 1]} : vector<22x128xbf16> to vector<4x128xbf16>
    %c0_64 = arith.constant 0 : index
    %c2_65 = arith.constant 2 : index
    %c0_66 = arith.constant 0 : index
    %c0_67 = arith.constant 0 : index
    %73 = vector.load %arg5[%c0_64, %c2_65, %c0_66, %c0_67] : memref<1x4x4x128xbf16, #tpu.memory_space<vmem>>, vector<1x1x4x128xbf16>
    %74 = vector.shape_cast %73 : vector<1x1x4x128xbf16> to vector<4x128xbf16>
    %75 = vector.shape_cast %72 : vector<4x128xbf16> to vector<1x1x4x128xbf16>
    tpu.vector_store %arg5[%c0_64, %c2_65, %c0_66, %c0_67], %75 {strides = array<i32>} : memref<1x4x4x128xbf16, #tpu.memory_space<vmem>>, vector<1x1x4x128xbf16>,
    %76 = vector.extract_strided_slice %63 {offsets = [18, 0], sizes = [4, 128], strides = [1, 1]} : vector<22x128xbf16> to vector<4x128xbf16>
    %c0_68 = arith.constant 0 : index
    %c3_69 = arith.constant 3 : index
    %c0_70 = arith.constant 0 : index
    %c0_71 = arith.constant 0 : index
    %77 = vector.load %arg5[%c0_68, %c3_69, %c0_70, %c0_71] : memref<1x4x4x128xbf16, #tpu.memory_space<vmem>>, vector<1x1x4x128xbf16>
    %78 = vector.shape_cast %77 : vector<1x1x4x128xbf16> to vector<4x128xbf16>
    %79 = vector.shape_cast %76 : vector<4x128xbf16> to vector<1x1x4x128xbf16>
    tpu.vector_store %arg5[%c0_68, %c3_69, %c0_70, %c0_71], %79 {strides = array<i32>} : memref<1x4x4x128xbf16, #tpu.memory_space<vmem>>, vector<1x1x4x128xbf16>,
    return
  }
  func.func @transform_0(%arg0: i32) -> (i32, i32, i32) {
    %c0_i32 = arith.constant 0 : i32
    %c0_i32_0 = arith.constant 0 : i32
    %c0_i32_1 = arith.constant 0 : i32
    return %arg0, %c0_i32, %c0_i32_0 : i32, i32, i32
  }
  func.func @transform_1(%arg0: i32) -> (i32, i32, i32) {
    %c0_i32 = arith.constant 0 : i32
    %c0_i32_0 = arith.constant 0 : i32
    %c0_i32_1 = arith.constant 0 : i32
    %c0_i32_2 = arith.constant 0 : i32
    return %c0_i32, %c0_i32_0, %c0_i32_1 : i32, i32, i32
  }
  func.func @transform_2(%arg0: i32) -> (i32, i32) {
    %c0_i32 = arith.constant 0 : i32
    %c0_i32_0 = arith.constant 0 : i32
    %c0_i32_1 = arith.constant 0 : i32
    return %c0_i32, %c0_i32_0 : i32, i32
  }
  func.func @transform_3(%arg0: i32) -> (i32, i32) {
    %c0_i32 = arith.constant 0 : i32
    %c0_i32_0 = arith.constant 0 : i32
    %c0_i32_1 = arith.constant 0 : i32
    return %c0_i32, %c0_i32_0 : i32, i32
  }
  func.func @transform_4(%arg0: i32) -> (i32, i32, i32, i32) {
    %c0_i32 = arith.constant 0 : i32
    %c0_i32_0 = arith.constant 0 : i32
    %c0_i32_1 = arith.constant 0 : i32
    %c0_i32_2 = arith.constant 0 : i32
    return %arg0, %c0_i32, %c0_i32_0, %c0_i32_1 : i32, i32, i32, i32
  }
}

module attributes {stable_mosaic.version = 11 : i64} {
  func.func @_conv3x3_kernel(%arg0: i32, %arg1: memref<1x16x128xbf16, #tpu.memory_space<vmem>>, %arg2: memref<9x128x128xbf16, #tpu.memory_space<vmem>>, %arg3: memref<1x128xf32, #tpu.memory_space<vmem>>, %arg4: memref<1x128xf32, #tpu.memory_space<vmem>>, %arg5: memref<1x2x2x128xbf16, #tpu.memory_space<vmem>>) attributes {dimension_semantics = [#tpu.dimension_semantics<parallel>], iteration_bounds = array<i64: 2>, scalar_prefetch = 0 : i64, scratch_operands = 0 : i64, tpu.core_type = #tpu.core_type<tc>, window_params = [{transform_indices = @transform_0, window_bounds = array<i64: 1, 16, 128>}, {pipeline_mode = #tpu.pipeline_mode<synchronous>, transform_indices = @transform_1, window_bounds = array<i64: 9, 128, 128>}, {pipeline_mode = #tpu.pipeline_mode<synchronous>, transform_indices = @transform_2, window_bounds = array<i64: 1, 128>}, {pipeline_mode = #tpu.pipeline_mode<synchronous>, transform_indices = @transform_3, window_bounds = array<i64: 1, 128>}, {transform_indices = @transform_4, window_bounds = array<i64: 1, 2, 2, 128>}]} {
    %cst = arith.constant 0.000000e+00 : f32
    %0 = vector.broadcast %cst : f32 to vector<6x128xf32>
    %c0 = arith.constant 0 : index
    %c0_0 = arith.constant 0 : index
    %c0_1 = arith.constant 0 : index
    %1 = vector.load %arg1[%c0, %c0_0, %c0_1] : memref<1x16x128xbf16, #tpu.memory_space<vmem>>, vector<1x6x128xbf16>
    %2 = vector.shape_cast %1 : vector<1x6x128xbf16> to vector<6x128xbf16>
    %c0_2 = arith.constant 0 : index
    %c0_3 = arith.constant 0 : index
    %c0_4 = arith.constant 0 : index
    %3 = vector.load %arg2[%c0_2, %c0_3, %c0_4] : memref<9x128x128xbf16, #tpu.memory_space<vmem>>, vector<1x128x128xbf16>
    %4 = vector.shape_cast %3 : vector<1x128x128xbf16> to vector<128x128xbf16>
    %cst_5 = arith.constant dense<0.000000e+00> : vector<6x128xf32>
    %5 = tpu.matmul %2, %4, %cst_5 {dimension_numbers = #tpu.dot_dimension_numbers<[1], [0], [0], [1], [0, 0, 1, 1], [], []>} : vector<6x128xbf16>, vector<128x128xbf16>, vector<6x128xf32> -> vector<6x128xf32>
    %6 = arith.addf %0, %5 : vector<6x128xf32>
    %c0_6 = arith.constant 0 : index
    %c1 = arith.constant 1 : index
    %c0_7 = arith.constant 0 : index
    %7 = vector.load %arg1[%c0_6, %c1, %c0_7] : memref<1x16x128xbf16, #tpu.memory_space<vmem>>, vector<1x6x128xbf16>
    %8 = vector.shape_cast %7 : vector<1x6x128xbf16> to vector<6x128xbf16>
    %c1_8 = arith.constant 1 : index
    %c0_9 = arith.constant 0 : index
    %c0_10 = arith.constant 0 : index
    %9 = vector.load %arg2[%c1_8, %c0_9, %c0_10] : memref<9x128x128xbf16, #tpu.memory_space<vmem>>, vector<1x128x128xbf16>
    %10 = vector.shape_cast %9 : vector<1x128x128xbf16> to vector<128x128xbf16>
    %cst_11 = arith.constant dense<0.000000e+00> : vector<6x128xf32>
    %11 = tpu.matmul %8, %10, %cst_11 {dimension_numbers = #tpu.dot_dimension_numbers<[1], [0], [0], [1], [0, 0, 1, 1], [], []>} : vector<6x128xbf16>, vector<128x128xbf16>, vector<6x128xf32> -> vector<6x128xf32>
    %12 = arith.addf %6, %11 : vector<6x128xf32>
    %c0_12 = arith.constant 0 : index
    %c2 = arith.constant 2 : index
    %c0_13 = arith.constant 0 : index
    %13 = vector.load %arg1[%c0_12, %c2, %c0_13] : memref<1x16x128xbf16, #tpu.memory_space<vmem>>, vector<1x6x128xbf16>
    %14 = vector.shape_cast %13 : vector<1x6x128xbf16> to vector<6x128xbf16>
    %c2_14 = arith.constant 2 : index
    %c0_15 = arith.constant 0 : index
    %c0_16 = arith.constant 0 : index
    %15 = vector.load %arg2[%c2_14, %c0_15, %c0_16] : memref<9x128x128xbf16, #tpu.memory_space<vmem>>, vector<1x128x128xbf16>
    %16 = vector.shape_cast %15 : vector<1x128x128xbf16> to vector<128x128xbf16>
    %cst_17 = arith.constant dense<0.000000e+00> : vector<6x128xf32>
    %17 = tpu.matmul %14, %16, %cst_17 {dimension_numbers = #tpu.dot_dimension_numbers<[1], [0], [0], [1], [0, 0, 1, 1], [], []>} : vector<6x128xbf16>, vector<128x128xbf16>, vector<6x128xf32> -> vector<6x128xf32>
    %18 = arith.addf %12, %17 : vector<6x128xf32>
    %c0_18 = arith.constant 0 : index
    %c4 = arith.constant 4 : index
    %c0_19 = arith.constant 0 : index
    %19 = vector.load %arg1[%c0_18, %c4, %c0_19] : memref<1x16x128xbf16, #tpu.memory_space<vmem>>, vector<1x6x128xbf16>
    %20 = vector.shape_cast %19 : vector<1x6x128xbf16> to vector<6x128xbf16>
    %c3 = arith.constant 3 : index
    %c0_20 = arith.constant 0 : index
    %c0_21 = arith.constant 0 : index
    %21 = vector.load %arg2[%c3, %c0_20, %c0_21] : memref<9x128x128xbf16, #tpu.memory_space<vmem>>, vector<1x128x128xbf16>
    %22 = vector.shape_cast %21 : vector<1x128x128xbf16> to vector<128x128xbf16>
    %cst_22 = arith.constant dense<0.000000e+00> : vector<6x128xf32>
    %23 = tpu.matmul %20, %22, %cst_22 {dimension_numbers = #tpu.dot_dimension_numbers<[1], [0], [0], [1], [0, 0, 1, 1], [], []>} : vector<6x128xbf16>, vector<128x128xbf16>, vector<6x128xf32> -> vector<6x128xf32>
    %24 = arith.addf %18, %23 : vector<6x128xf32>
    %c0_23 = arith.constant 0 : index
    %c5 = arith.constant 5 : index
    %c0_24 = arith.constant 0 : index
    %25 = vector.load %arg1[%c0_23, %c5, %c0_24] : memref<1x16x128xbf16, #tpu.memory_space<vmem>>, vector<1x6x128xbf16>
    %26 = vector.shape_cast %25 : vector<1x6x128xbf16> to vector<6x128xbf16>
    %c4_25 = arith.constant 4 : index
    %c0_26 = arith.constant 0 : index
    %c0_27 = arith.constant 0 : index
    %27 = vector.load %arg2[%c4_25, %c0_26, %c0_27] : memref<9x128x128xbf16, #tpu.memory_space<vmem>>, vector<1x128x128xbf16>
    %28 = vector.shape_cast %27 : vector<1x128x128xbf16> to vector<128x128xbf16>
    %cst_28 = arith.constant dense<0.000000e+00> : vector<6x128xf32>
    %29 = tpu.matmul %26, %28, %cst_28 {dimension_numbers = #tpu.dot_dimension_numbers<[1], [0], [0], [1], [0, 0, 1, 1], [], []>} : vector<6x128xbf16>, vector<128x128xbf16>, vector<6x128xf32> -> vector<6x128xf32>
    %30 = arith.addf %24, %29 : vector<6x128xf32>
    %c0_29 = arith.constant 0 : index
    %c6 = arith.constant 6 : index
    %c0_30 = arith.constant 0 : index
    %31 = vector.load %arg1[%c0_29, %c6, %c0_30] : memref<1x16x128xbf16, #tpu.memory_space<vmem>>, vector<1x6x128xbf16>
    %32 = vector.shape_cast %31 : vector<1x6x128xbf16> to vector<6x128xbf16>
    %c5_31 = arith.constant 5 : index
    %c0_32 = arith.constant 0 : index
    %c0_33 = arith.constant 0 : index
    %33 = vector.load %arg2[%c5_31, %c0_32, %c0_33] : memref<9x128x128xbf16, #tpu.memory_space<vmem>>, vector<1x128x128xbf16>
    %34 = vector.shape_cast %33 : vector<1x128x128xbf16> to vector<128x128xbf16>
    %cst_34 = arith.constant dense<0.000000e+00> : vector<6x128xf32>
    %35 = tpu.matmul %32, %34, %cst_34 {dimension_numbers = #tpu.dot_dimension_numbers<[1], [0], [0], [1], [0, 0, 1, 1], [], []>} : vector<6x128xbf16>, vector<128x128xbf16>, vector<6x128xf32> -> vector<6x128xf32>
    %36 = arith.addf %30, %35 : vector<6x128xf32>
    %c0_35 = arith.constant 0 : index
    %c8 = arith.constant 8 : index
    %c0_36 = arith.constant 0 : index
    %37 = vector.load %arg1[%c0_35, %c8, %c0_36] : memref<1x16x128xbf16, #tpu.memory_space<vmem>>, vector<1x6x128xbf16>
    %38 = vector.shape_cast %37 : vector<1x6x128xbf16> to vector<6x128xbf16>
    %c6_37 = arith.constant 6 : index
    %c0_38 = arith.constant 0 : index
    %c0_39 = arith.constant 0 : index
    %39 = vector.load %arg2[%c6_37, %c0_38, %c0_39] : memref<9x128x128xbf16, #tpu.memory_space<vmem>>, vector<1x128x128xbf16>
    %40 = vector.shape_cast %39 : vector<1x128x128xbf16> to vector<128x128xbf16>
    %cst_40 = arith.constant dense<0.000000e+00> : vector<6x128xf32>
    %41 = tpu.matmul %38, %40, %cst_40 {dimension_numbers = #tpu.dot_dimension_numbers<[1], [0], [0], [1], [0, 0, 1, 1], [], []>} : vector<6x128xbf16>, vector<128x128xbf16>, vector<6x128xf32> -> vector<6x128xf32>
    %42 = arith.addf %36, %41 : vector<6x128xf32>
    %c0_41 = arith.constant 0 : index
    %c9 = arith.constant 9 : index
    %c0_42 = arith.constant 0 : index
    %43 = vector.load %arg1[%c0_41, %c9, %c0_42] : memref<1x16x128xbf16, #tpu.memory_space<vmem>>, vector<1x6x128xbf16>
    %44 = vector.shape_cast %43 : vector<1x6x128xbf16> to vector<6x128xbf16>
    %c7 = arith.constant 7 : index
    %c0_43 = arith.constant 0 : index
    %c0_44 = arith.constant 0 : index
    %45 = vector.load %arg2[%c7, %c0_43, %c0_44] : memref<9x128x128xbf16, #tpu.memory_space<vmem>>, vector<1x128x128xbf16>
    %46 = vector.shape_cast %45 : vector<1x128x128xbf16> to vector<128x128xbf16>
    %cst_45 = arith.constant dense<0.000000e+00> : vector<6x128xf32>
    %47 = tpu.matmul %44, %46, %cst_45 {dimension_numbers = #tpu.dot_dimension_numbers<[1], [0], [0], [1], [0, 0, 1, 1], [], []>} : vector<6x128xbf16>, vector<128x128xbf16>, vector<6x128xf32> -> vector<6x128xf32>
    %48 = arith.addf %42, %47 : vector<6x128xf32>
    %c0_46 = arith.constant 0 : index
    %c10 = arith.constant 10 : index
    %c0_47 = arith.constant 0 : index
    %49 = vector.load %arg1[%c0_46, %c10, %c0_47] : memref<1x16x128xbf16, #tpu.memory_space<vmem>>, vector<1x6x128xbf16>
    %50 = vector.shape_cast %49 : vector<1x6x128xbf16> to vector<6x128xbf16>
    %c8_48 = arith.constant 8 : index
    %c0_49 = arith.constant 0 : index
    %c0_50 = arith.constant 0 : index
    %51 = vector.load %arg2[%c8_48, %c0_49, %c0_50] : memref<9x128x128xbf16, #tpu.memory_space<vmem>>, vector<1x128x128xbf16>
    %52 = vector.shape_cast %51 : vector<1x128x128xbf16> to vector<128x128xbf16>
    %cst_51 = arith.constant dense<0.000000e+00> : vector<6x128xf32>
    %53 = tpu.matmul %50, %52, %cst_51 {dimension_numbers = #tpu.dot_dimension_numbers<[1], [0], [0], [1], [0, 0, 1, 1], [], []>} : vector<6x128xbf16>, vector<128x128xbf16>, vector<6x128xf32> -> vector<6x128xf32>
    %54 = arith.addf %48, %53 : vector<6x128xf32>
    %c0_52 = arith.constant 0 : index
    %c0_53 = arith.constant 0 : index
    %55 = vector.load %arg3[%c0_52, %c0_53] : memref<1x128xf32, #tpu.memory_space<vmem>>, vector<1x128xf32>
    %56 = vector.broadcast %55 : vector<1x128xf32> to vector<6x128xf32>
    %57 = arith.mulf %54, %56 : vector<6x128xf32>
    %c0_54 = arith.constant 0 : index
    %c0_55 = arith.constant 0 : index
    %58 = vector.load %arg4[%c0_54, %c0_55] : memref<1x128xf32, #tpu.memory_space<vmem>>, vector<1x128xf32>
    %59 = vector.broadcast %58 : vector<1x128xf32> to vector<6x128xf32>
    %60 = arith.addf %57, %59 : vector<6x128xf32>
    %cst_56 = arith.constant 0.000000e+00 : f32
    %61 = vector.broadcast %cst_56 : f32 to vector<6x128xf32>
    %62 = arith.maximumf %60, %61 : vector<6x128xf32>
    %63 = arith.truncf %62 : vector<6x128xf32> to vector<6x128xbf16>
    %64 = vector.extract_strided_slice %63 {offsets = [0, 0], sizes = [2, 128], strides = [1, 1]} : vector<6x128xbf16> to vector<2x128xbf16>
    %c0_57 = arith.constant 0 : index
    %c0_58 = arith.constant 0 : index
    %c0_59 = arith.constant 0 : index
    %c0_60 = arith.constant 0 : index
    %65 = vector.load %arg5[%c0_57, %c0_58, %c0_59, %c0_60] : memref<1x2x2x128xbf16, #tpu.memory_space<vmem>>, vector<1x1x2x128xbf16>
    %66 = vector.shape_cast %65 : vector<1x1x2x128xbf16> to vector<2x128xbf16>
    %67 = vector.shape_cast %64 : vector<2x128xbf16> to vector<1x1x2x128xbf16>
    tpu.vector_store %arg5[%c0_57, %c0_58, %c0_59, %c0_60], %67 {strides = array<i32>} : memref<1x2x2x128xbf16, #tpu.memory_space<vmem>>, vector<1x1x2x128xbf16>,
    %68 = vector.extract_strided_slice %63 {offsets = [4, 0], sizes = [2, 128], strides = [1, 1]} : vector<6x128xbf16> to vector<2x128xbf16>
    %c0_61 = arith.constant 0 : index
    %c1_62 = arith.constant 1 : index
    %c0_63 = arith.constant 0 : index
    %c0_64 = arith.constant 0 : index
    %69 = vector.load %arg5[%c0_61, %c1_62, %c0_63, %c0_64] : memref<1x2x2x128xbf16, #tpu.memory_space<vmem>>, vector<1x1x2x128xbf16>
    %70 = vector.shape_cast %69 : vector<1x1x2x128xbf16> to vector<2x128xbf16>
    %71 = vector.shape_cast %68 : vector<2x128xbf16> to vector<1x1x2x128xbf16>
    tpu.vector_store %arg5[%c0_61, %c1_62, %c0_63, %c0_64], %71 {strides = array<i32>} : memref<1x2x2x128xbf16, #tpu.memory_space<vmem>>, vector<1x1x2x128xbf16>,
    return
  }
  func.func @transform_0(%arg0: i32) -> (i32, i32, i32) {
    %c0_i32 = arith.constant 0 : i32
    %c0_i32_0 = arith.constant 0 : i32
    %c0_i32_1 = arith.constant 0 : i32
    return %arg0, %c0_i32, %c0_i32_0 : i32, i32, i32
  }
  func.func @transform_1(%arg0: i32) -> (i32, i32, i32) {
    %c0_i32 = arith.constant 0 : i32
    %c0_i32_0 = arith.constant 0 : i32
    %c0_i32_1 = arith.constant 0 : i32
    %c0_i32_2 = arith.constant 0 : i32
    return %c0_i32, %c0_i32_0, %c0_i32_1 : i32, i32, i32
  }
  func.func @transform_2(%arg0: i32) -> (i32, i32) {
    %c0_i32 = arith.constant 0 : i32
    %c0_i32_0 = arith.constant 0 : i32
    %c0_i32_1 = arith.constant 0 : i32
    return %c0_i32, %c0_i32_0 : i32, i32
  }
  func.func @transform_3(%arg0: i32) -> (i32, i32) {
    %c0_i32 = arith.constant 0 : i32
    %c0_i32_0 = arith.constant 0 : i32
    %c0_i32_1 = arith.constant 0 : i32
    return %c0_i32, %c0_i32_0 : i32, i32
  }
  func.func @transform_4(%arg0: i32) -> (i32, i32, i32, i32) {
    %c0_i32 = arith.constant 0 : i32
    %c0_i32_0 = arith.constant 0 : i32
    %c0_i32_1 = arith.constant 0 : i32
    %c0_i32_2 = arith.constant 0 : i32
    return %arg0, %c0_i32, %c0_i32_0, %c0_i32_1 : i32, i32, i32, i32
  }
}

module attributes {stable_mosaic.version = 11 : i64} {
  func.func @_mm_kernel(%arg0: i32, %arg1: i32, %arg2: i32, %arg3: memref<16x128xbf16, #tpu.memory_space<vmem>>, %arg4: memref<128x128xbf16, #tpu.memory_space<vmem>>, %arg5: memref<1x128xf32, #tpu.memory_space<vmem>>, %arg6: memref<1x128xf32, #tpu.memory_space<vmem>>, %arg7: memref<16x128xbf16, #tpu.memory_space<vmem>>, %arg8: memref<16x128xf32, #tpu.memory_space<vmem>>) attributes {dimension_semantics = [#tpu.dimension_semantics<parallel>, #tpu.dimension_semantics<parallel>, #tpu.dimension_semantics<arbitrary>], iteration_bounds = array<i64: 1, 1, 1>, scalar_prefetch = 0 : i64, scratch_operands = 1 : i64, tpu.core_type = #tpu.core_type<tc>, window_params = [{transform_indices = @transform_0, window_bounds = array<i64: 16, 128>}, {transform_indices = @transform_1, window_bounds = array<i64: 128, 128>}, {transform_indices = @transform_2, window_bounds = array<i64: 1, 128>}, {transform_indices = @transform_3, window_bounds = array<i64: 1, 128>}, {transform_indices = @transform_4, window_bounds = array<i64: 16, 128>}]} {
    %c0_i32 = arith.constant 0 : i32
    %0 = arith.cmpi eq, %arg2, %c0_i32 : i32
    %1 = arith.extui %0 : i1 to i32
    %c0_i32_0 = arith.constant 0 : i32
    %2 = arith.cmpi ne, %1, %c0_i32_0 : i32
    scf.if %2 {
      %cst_10 = arith.constant 0.000000e+00 : f32
      %12 = vector.broadcast %cst_10 : f32 to vector<16x128xf32>
      %c0_11 = arith.constant 0 : index
      %c0_12 = arith.constant 0 : index
      %13 = vector.load %arg8[%c0_11, %c0_12] : memref<16x128xf32, #tpu.memory_space<vmem>>, vector<16x128xf32>
      tpu.vector_store %arg8[%c0_11, %c0_12], %12 {strides = array<i32>} : memref<16x128xf32, #tpu.memory_space<vmem>>, vector<16x128xf32>,
    } else {
    }
    %c0 = arith.constant 0 : index
    %c0_1 = arith.constant 0 : index
    %3 = vector.load %arg8[%c0, %c0_1] : memref<16x128xf32, #tpu.memory_space<vmem>>, vector<16x128xf32>
    %c0_2 = arith.constant 0 : index
    %c0_3 = arith.constant 0 : index
    %4 = vector.load %arg3[%c0_2, %c0_3] : memref<16x128xbf16, #tpu.memory_space<vmem>>, vector<16x128xbf16>
    %c0_4 = arith.constant 0 : index
    %c0_5 = arith.constant 0 : index
    %5 = vector.load %arg4[%c0_4, %c0_5] : memref<128x128xbf16, #tpu.memory_space<vmem>>, vector<128x128xbf16>
    %cst = arith.constant dense<0.000000e+00> : vector<16x128xf32>
    %6 = tpu.matmul %4, %5, %cst {dimension_numbers = #tpu.dot_dimension_numbers<[1], [0], [0], [1], [0, 0, 1, 1], [], []>} : vector<16x128xbf16>, vector<128x128xbf16>, vector<16x128xf32> -> vector<16x128xf32>
    %7 = arith.addf %3, %6 : vector<16x128xf32>
    %c0_6 = arith.constant 0 : index
    %c0_7 = arith.constant 0 : index
    %8 = vector.load %arg8[%c0_6, %c0_7] : memref<16x128xf32, #tpu.memory_space<vmem>>, vector<16x128xf32>
    tpu.vector_store %arg8[%c0_6, %c0_7], %7 {strides = array<i32>} : memref<16x128xf32, #tpu.memory_space<vmem>>, vector<16x128xf32>,
    %c0_i32_8 = arith.constant 0 : i32
    %9 = arith.cmpi eq, %arg2, %c0_i32_8 : i32
    %10 = arith.extui %9 : i1 to i32
    %c0_i32_9 = arith.constant 0 : i32
    %11 = arith.cmpi ne, %10, %c0_i32_9 : i32
    scf.if %11 {
      %c0_10 = arith.constant 0 : index
      %c0_11 = arith.constant 0 : index
      %12 = vector.load %arg8[%c0_10, %c0_11] : memref<16x128xf32, #tpu.memory_space<vmem>>, vector<16x128xf32>
      %c0_12 = arith.constant 0 : index
      %c0_13 = arith.constant 0 : index
      %13 = vector.load %arg5[%c0_12, %c0_13] : memref<1x128xf32, #tpu.memory_space<vmem>>, vector<1x128xf32>
      %14 = vector.broadcast %13 : vector<1x128xf32> to vector<16x128xf32>
      %15 = arith.mulf %12, %14 : vector<16x128xf32>
      %c0_14 = arith.constant 0 : index
      %c0_15 = arith.constant 0 : index
      %16 = vector.load %arg6[%c0_14, %c0_15] : memref<1x128xf32, #tpu.memory_space<vmem>>, vector<1x128xf32>
      %17 = vector.broadcast %16 : vector<1x128xf32> to vector<16x128xf32>
      %18 = arith.addf %15, %17 : vector<16x128xf32>
      %cst_16 = arith.constant 0.000000e+00 : f32
      %19 = vector.broadcast %cst_16 : f32 to vector<16x128xf32>
      %20 = arith.maximumf %18, %19 : vector<16x128xf32>
      %21 = arith.truncf %20 : vector<16x128xf32> to vector<16x128xbf16>
      %c0_17 = arith.constant 0 : index
      %c0_18 = arith.constant 0 : index
      %22 = vector.load %arg7[%c0_17, %c0_18] : memref<16x128xbf16, #tpu.memory_space<vmem>>, vector<16x128xbf16>
      tpu.vector_store %arg7[%c0_17, %c0_18], %21 {strides = array<i32>} : memref<16x128xbf16, #tpu.memory_space<vmem>>, vector<16x128xbf16>,
    } else {
    }
    return
  }
  func.func @transform_0(%arg0: i32, %arg1: i32, %arg2: i32) -> (i32, i32) {
    %c0_i32 = arith.constant 0 : i32
    return %arg1, %arg2 : i32, i32
  }
  func.func @transform_1(%arg0: i32, %arg1: i32, %arg2: i32) -> (i32, i32) {
    %c0_i32 = arith.constant 0 : i32
    return %arg2, %arg0 : i32, i32
  }
  func.func @transform_2(%arg0: i32, %arg1: i32, %arg2: i32) -> (i32, i32) {
    %c0_i32 = arith.constant 0 : i32
    %c0_i32_0 = arith.constant 0 : i32
    return %c0_i32, %arg0 : i32, i32
  }
  func.func @transform_3(%arg0: i32, %arg1: i32, %arg2: i32) -> (i32, i32) {
    %c0_i32 = arith.constant 0 : i32
    %c0_i32_0 = arith.constant 0 : i32
    return %c0_i32, %arg0 : i32, i32
  }
  func.func @transform_4(%arg0: i32, %arg1: i32, %arg2: i32) -> (i32, i32) {
    %c0_i32 = arith.constant 0 : i32
    return %arg1, %arg0 : i32, i32
  }
}

module attributes {stable_mosaic.version = 11 : i64} {
  func.func @_mm_kernel(%arg0: i32, %arg1: i32, %arg2: i32, %arg3: memref<16x128xbf16, #tpu.memory_space<vmem>>, %arg4: memref<128x128xbf16, #tpu.memory_space<vmem>>, %arg5: memref<1x128xf32, #tpu.memory_space<vmem>>, %arg6: memref<1x128xf32, #tpu.memory_space<vmem>>, %arg7: memref<16x128xbf16, #tpu.memory_space<vmem>>, %arg8: memref<16x128xf32, #tpu.memory_space<vmem>>) attributes {dimension_semantics = [#tpu.dimension_semantics<parallel>, #tpu.dimension_semantics<parallel>, #tpu.dimension_semantics<arbitrary>], iteration_bounds = array<i64: 1, 1, 1>, scalar_prefetch = 0 : i64, scratch_operands = 1 : i64, tpu.core_type = #tpu.core_type<tc>, window_params = [{transform_indices = @transform_0, window_bounds = array<i64: 16, 128>}, {transform_indices = @transform_1, window_bounds = array<i64: 128, 128>}, {transform_indices = @transform_2, window_bounds = array<i64: 1, 128>}, {transform_indices = @transform_3, window_bounds = array<i64: 1, 128>}, {transform_indices = @transform_4, window_bounds = array<i64: 16, 128>}]} {
    %c0_i32 = arith.constant 0 : i32
    %0 = arith.cmpi eq, %arg2, %c0_i32 : i32
    %1 = arith.extui %0 : i1 to i32
    %c0_i32_0 = arith.constant 0 : i32
    %2 = arith.cmpi ne, %1, %c0_i32_0 : i32
    scf.if %2 {
      %cst_10 = arith.constant 0.000000e+00 : f32
      %12 = vector.broadcast %cst_10 : f32 to vector<16x128xf32>
      %c0_11 = arith.constant 0 : index
      %c0_12 = arith.constant 0 : index
      %13 = vector.load %arg8[%c0_11, %c0_12] : memref<16x128xf32, #tpu.memory_space<vmem>>, vector<16x128xf32>
      tpu.vector_store %arg8[%c0_11, %c0_12], %12 {strides = array<i32>} : memref<16x128xf32, #tpu.memory_space<vmem>>, vector<16x128xf32>,
    } else {
    }
    %c0 = arith.constant 0 : index
    %c0_1 = arith.constant 0 : index
    %3 = vector.load %arg8[%c0, %c0_1] : memref<16x128xf32, #tpu.memory_space<vmem>>, vector<16x128xf32>
    %c0_2 = arith.constant 0 : index
    %c0_3 = arith.constant 0 : index
    %4 = vector.load %arg3[%c0_2, %c0_3] : memref<16x128xbf16, #tpu.memory_space<vmem>>, vector<16x128xbf16>
    %c0_4 = arith.constant 0 : index
    %c0_5 = arith.constant 0 : index
    %5 = vector.load %arg4[%c0_4, %c0_5] : memref<128x128xbf16, #tpu.memory_space<vmem>>, vector<128x128xbf16>
    %cst = arith.constant dense<0.000000e+00> : vector<16x128xf32>
    %6 = tpu.matmul %4, %5, %cst {dimension_numbers = #tpu.dot_dimension_numbers<[1], [0], [0], [1], [0, 0, 1, 1], [], []>} : vector<16x128xbf16>, vector<128x128xbf16>, vector<16x128xf32> -> vector<16x128xf32>
    %7 = arith.addf %3, %6 : vector<16x128xf32>
    %c0_6 = arith.constant 0 : index
    %c0_7 = arith.constant 0 : index
    %8 = vector.load %arg8[%c0_6, %c0_7] : memref<16x128xf32, #tpu.memory_space<vmem>>, vector<16x128xf32>
    tpu.vector_store %arg8[%c0_6, %c0_7], %7 {strides = array<i32>} : memref<16x128xf32, #tpu.memory_space<vmem>>, vector<16x128xf32>,
    %c0_i32_8 = arith.constant 0 : i32
    %9 = arith.cmpi eq, %arg2, %c0_i32_8 : i32
    %10 = arith.extui %9 : i1 to i32
    %c0_i32_9 = arith.constant 0 : i32
    %11 = arith.cmpi ne, %10, %c0_i32_9 : i32
    scf.if %11 {
      %c0_10 = arith.constant 0 : index
      %c0_11 = arith.constant 0 : index
      %12 = vector.load %arg8[%c0_10, %c0_11] : memref<16x128xf32, #tpu.memory_space<vmem>>, vector<16x128xf32>
      %c0_12 = arith.constant 0 : index
      %c0_13 = arith.constant 0 : index
      %13 = vector.load %arg5[%c0_12, %c0_13] : memref<1x128xf32, #tpu.memory_space<vmem>>, vector<1x128xf32>
      %14 = vector.broadcast %13 : vector<1x128xf32> to vector<16x128xf32>
      %15 = arith.mulf %12, %14 : vector<16x128xf32>
      %c0_14 = arith.constant 0 : index
      %c0_15 = arith.constant 0 : index
      %16 = vector.load %arg6[%c0_14, %c0_15] : memref<1x128xf32, #tpu.memory_space<vmem>>, vector<1x128xf32>
      %17 = vector.broadcast %16 : vector<1x128xf32> to vector<16x128xf32>
      %18 = arith.addf %15, %17 : vector<16x128xf32>
      %19 = arith.truncf %18 : vector<16x128xf32> to vector<16x128xbf16>
      %c0_16 = arith.constant 0 : index
      %c0_17 = arith.constant 0 : index
      %20 = vector.load %arg7[%c0_16, %c0_17] : memref<16x128xbf16, #tpu.memory_space<vmem>>, vector<16x128xbf16>
      tpu.vector_store %arg7[%c0_16, %c0_17], %19 {strides = array<i32>} : memref<16x128xbf16, #tpu.memory_space<vmem>>, vector<16x128xbf16>,
    } else {
    }
    return
  }
  func.func @transform_0(%arg0: i32, %arg1: i32, %arg2: i32) -> (i32, i32) {
    %c0_i32 = arith.constant 0 : i32
    return %arg1, %arg2 : i32, i32
  }
  func.func @transform_1(%arg0: i32, %arg1: i32, %arg2: i32) -> (i32, i32) {
    %c0_i32 = arith.constant 0 : i32
    return %arg2, %arg0 : i32, i32
  }
  func.func @transform_2(%arg0: i32, %arg1: i32, %arg2: i32) -> (i32, i32) {
    %c0_i32 = arith.constant 0 : i32
    %c0_i32_0 = arith.constant 0 : i32
    return %c0_i32, %arg0 : i32, i32
  }
  func.func @transform_3(%arg0: i32, %arg1: i32, %arg2: i32) -> (i32, i32) {
    %c0_i32 = arith.constant 0 : i32
    %c0_i32_0 = arith.constant 0 : i32
    return %c0_i32, %arg0 : i32, i32
  }
  func.func @transform_4(%arg0: i32, %arg1: i32, %arg2: i32) -> (i32, i32) {
    %c0_i32 = arith.constant 0 : i32
    return %arg1, %arg0 : i32, i32
  }
}

module attributes {stable_mosaic.version = 11 : i64} {
  func.func @_mm_res_kernel(%arg0: i32, %arg1: i32, %arg2: i32, %arg3: memref<16x128xbf16, #tpu.memory_space<vmem>>, %arg4: memref<128x128xbf16, #tpu.memory_space<vmem>>, %arg5: memref<1x128xf32, #tpu.memory_space<vmem>>, %arg6: memref<1x128xf32, #tpu.memory_space<vmem>>, %arg7: memref<16x128xbf16, #tpu.memory_space<vmem>>, %arg8: memref<16x128xbf16, #tpu.memory_space<vmem>>, %arg9: memref<16x128xf32, #tpu.memory_space<vmem>>) attributes {dimension_semantics = [#tpu.dimension_semantics<parallel>, #tpu.dimension_semantics<parallel>, #tpu.dimension_semantics<arbitrary>], iteration_bounds = array<i64: 1, 1, 1>, scalar_prefetch = 0 : i64, scratch_operands = 1 : i64, tpu.core_type = #tpu.core_type<tc>, window_params = [{transform_indices = @transform_0, window_bounds = array<i64: 16, 128>}, {transform_indices = @transform_1, window_bounds = array<i64: 128, 128>}, {transform_indices = @transform_2, window_bounds = array<i64: 1, 128>}, {transform_indices = @transform_3, window_bounds = array<i64: 1, 128>}, {transform_indices = @transform_4, window_bounds = array<i64: 16, 128>}, {transform_indices = @transform_5, window_bounds = array<i64: 16, 128>}]} {
    %c0_i32 = arith.constant 0 : i32
    %0 = arith.cmpi eq, %arg2, %c0_i32 : i32
    %1 = arith.extui %0 : i1 to i32
    %c0_i32_0 = arith.constant 0 : i32
    %2 = arith.cmpi ne, %1, %c0_i32_0 : i32
    scf.if %2 {
      %cst_10 = arith.constant 0.000000e+00 : f32
      %12 = vector.broadcast %cst_10 : f32 to vector<16x128xf32>
      %c0_11 = arith.constant 0 : index
      %c0_12 = arith.constant 0 : index
      %13 = vector.load %arg9[%c0_11, %c0_12] : memref<16x128xf32, #tpu.memory_space<vmem>>, vector<16x128xf32>
      tpu.vector_store %arg9[%c0_11, %c0_12], %12 {strides = array<i32>} : memref<16x128xf32, #tpu.memory_space<vmem>>, vector<16x128xf32>,
    } else {
    }
    %c0 = arith.constant 0 : index
    %c0_1 = arith.constant 0 : index
    %3 = vector.load %arg9[%c0, %c0_1] : memref<16x128xf32, #tpu.memory_space<vmem>>, vector<16x128xf32>
    %c0_2 = arith.constant 0 : index
    %c0_3 = arith.constant 0 : index
    %4 = vector.load %arg3[%c0_2, %c0_3] : memref<16x128xbf16, #tpu.memory_space<vmem>>, vector<16x128xbf16>
    %c0_4 = arith.constant 0 : index
    %c0_5 = arith.constant 0 : index
    %5 = vector.load %arg4[%c0_4, %c0_5] : memref<128x128xbf16, #tpu.memory_space<vmem>>, vector<128x128xbf16>
    %cst = arith.constant dense<0.000000e+00> : vector<16x128xf32>
    %6 = tpu.matmul %4, %5, %cst {dimension_numbers = #tpu.dot_dimension_numbers<[1], [0], [0], [1], [0, 0, 1, 1], [], []>} : vector<16x128xbf16>, vector<128x128xbf16>, vector<16x128xf32> -> vector<16x128xf32>
    %7 = arith.addf %3, %6 : vector<16x128xf32>
    %c0_6 = arith.constant 0 : index
    %c0_7 = arith.constant 0 : index
    %8 = vector.load %arg9[%c0_6, %c0_7] : memref<16x128xf32, #tpu.memory_space<vmem>>, vector<16x128xf32>
    tpu.vector_store %arg9[%c0_6, %c0_7], %7 {strides = array<i32>} : memref<16x128xf32, #tpu.memory_space<vmem>>, vector<16x128xf32>,
    %c0_i32_8 = arith.constant 0 : i32
    %9 = arith.cmpi eq, %arg2, %c0_i32_8 : i32
    %10 = arith.extui %9 : i1 to i32
    %c0_i32_9 = arith.constant 0 : i32
    %11 = arith.cmpi ne, %10, %c0_i32_9 : i32
    scf.if %11 {
      %c0_10 = arith.constant 0 : index
      %c0_11 = arith.constant 0 : index
      %12 = vector.load %arg9[%c0_10, %c0_11] : memref<16x128xf32, #tpu.memory_space<vmem>>, vector<16x128xf32>
      %c0_12 = arith.constant 0 : index
      %c0_13 = arith.constant 0 : index
      %13 = vector.load %arg5[%c0_12, %c0_13] : memref<1x128xf32, #tpu.memory_space<vmem>>, vector<1x128xf32>
      %14 = vector.broadcast %13 : vector<1x128xf32> to vector<16x128xf32>
      %15 = arith.mulf %12, %14 : vector<16x128xf32>
      %c0_14 = arith.constant 0 : index
      %c0_15 = arith.constant 0 : index
      %16 = vector.load %arg6[%c0_14, %c0_15] : memref<1x128xf32, #tpu.memory_space<vmem>>, vector<1x128xf32>
      %17 = vector.broadcast %16 : vector<1x128xf32> to vector<16x128xf32>
      %18 = arith.addf %15, %17 : vector<16x128xf32>
      %c0_16 = arith.constant 0 : index
      %c0_17 = arith.constant 0 : index
      %19 = vector.load %arg7[%c0_16, %c0_17] : memref<16x128xbf16, #tpu.memory_space<vmem>>, vector<16x128xbf16>
      %20 = arith.extf %19 : vector<16x128xbf16> to vector<16x128xf32>
      %21 = arith.addf %18, %20 : vector<16x128xf32>
      %cst_18 = arith.constant 0.000000e+00 : f32
      %22 = vector.broadcast %cst_18 : f32 to vector<16x128xf32>
      %23 = arith.maximumf %21, %22 : vector<16x128xf32>
      %24 = arith.truncf %23 : vector<16x128xf32> to vector<16x128xbf16>
      %c0_19 = arith.constant 0 : index
      %c0_20 = arith.constant 0 : index
      %25 = vector.load %arg8[%c0_19, %c0_20] : memref<16x128xbf16, #tpu.memory_space<vmem>>, vector<16x128xbf16>
      tpu.vector_store %arg8[%c0_19, %c0_20], %24 {strides = array<i32>} : memref<16x128xbf16, #tpu.memory_space<vmem>>, vector<16x128xbf16>,
    } else {
    }
    return
  }
  func.func @transform_0(%arg0: i32, %arg1: i32, %arg2: i32) -> (i32, i32) {
    %c0_i32 = arith.constant 0 : i32
    return %arg1, %arg2 : i32, i32
  }
  func.func @transform_1(%arg0: i32, %arg1: i32, %arg2: i32) -> (i32, i32) {
    %c0_i32 = arith.constant 0 : i32
    return %arg2, %arg0 : i32, i32
  }
  func.func @transform_2(%arg0: i32, %arg1: i32, %arg2: i32) -> (i32, i32) {
    %c0_i32 = arith.constant 0 : i32
    %c0_i32_0 = arith.constant 0 : i32
    return %c0_i32, %arg0 : i32, i32
  }
  func.func @transform_3(%arg0: i32, %arg1: i32, %arg2: i32) -> (i32, i32) {
    %c0_i32 = arith.constant 0 : i32
    %c0_i32_0 = arith.constant 0 : i32
    return %c0_i32, %arg0 : i32, i32
  }
  func.func @transform_4(%arg0: i32, %arg1: i32, %arg2: i32) -> (i32, i32) {
    %c0_i32 = arith.constant 0 : i32
    return %arg1, %arg0 : i32, i32
  }
  func.func @transform_5(%arg0: i32, %arg1: i32, %arg2: i32) -> (i32, i32) {
    %c0_i32 = arith.constant 0 : i32
    return %arg1, %arg0 : i32, i32
  }
}

module attributes {stable_mosaic.version = 11 : i64} {
  func.func @_cgnl_sums_kernel(%arg0: i32, %arg1: i32, %arg2: memref<1x4x128xbf16, #tpu.memory_space<vmem>>, %arg3: memref<1x4x128xbf16, #tpu.memory_space<vmem>>, %arg4: memref<1x4x128xf32, #tpu.memory_space<vmem>>) attributes {dimension_semantics = [#tpu.dimension_semantics<parallel>, #tpu.dimension_semantics<arbitrary>], iteration_bounds = array<i64: 2, 1>, scalar_prefetch = 0 : i64, scratch_operands = 0 : i64, tpu.core_type = #tpu.core_type<tc>, window_params = [{transform_indices = @transform_0, window_bounds = array<i64: 1, 4, 128>}, {transform_indices = @transform_1, window_bounds = array<i64: 1, 4, 128>}, {transform_indices = @transform_2, window_bounds = array<i64: 1, 4, 128>}]} {
    %c0_i32 = arith.constant 0 : i32
    %0 = arith.cmpi eq, %arg1, %c0_i32 : i32
    %1 = arith.extui %0 : i1 to i32
    %c0_i32_0 = arith.constant 0 : i32
    %2 = arith.cmpi ne, %1, %c0_i32_0 : i32
    scf.if %2 {
      %cst_16 = arith.constant 0.000000e+00 : f32
      %32 = vector.broadcast %cst_16 : f32 to vector<1x4x128xf32>
      %c0_17 = arith.constant 0 : index
      %c0_18 = arith.constant 0 : index
      %c0_19 = arith.constant 0 : index
      %33 = vector.load %arg4[%c0_17, %c0_18, %c0_19] : memref<1x4x128xf32, #tpu.memory_space<vmem>>, vector<1x4x128xf32>
      tpu.vector_store %arg4[%c0_17, %c0_18, %c0_19], %32 {strides = array<i32>} : memref<1x4x128xf32, #tpu.memory_space<vmem>>, vector<1x4x128xf32>,
    } else {
    }
    %c0 = arith.constant 0 : index
    %c0_1 = arith.constant 0 : index
    %c0_2 = arith.constant 0 : index
    %3 = vector.load %arg2[%c0, %c0_1, %c0_2] : memref<1x4x128xbf16, #tpu.memory_space<vmem>>, vector<1x4x128xbf16>
    %4 = vector.shape_cast %3 : vector<1x4x128xbf16> to vector<4x128xbf16>
    %5 = arith.extf %4 : vector<4x128xbf16> to vector<4x128xf32>
    %c0_3 = arith.constant 0 : index
    %c0_4 = arith.constant 0 : index
    %c0_5 = arith.constant 0 : index
    %6 = vector.load %arg3[%c0_3, %c0_4, %c0_5] : memref<1x4x128xbf16, #tpu.memory_space<vmem>>, vector<1x4x128xbf16>
    %7 = vector.shape_cast %6 : vector<1x4x128xbf16> to vector<4x128xbf16>
    %8 = arith.extf %7 : vector<4x128xbf16> to vector<4x128xf32>
    %cst = arith.constant 1.000000e+00 : f32
    %9 = vector.broadcast %cst : f32 to vector<4x128xf32>
    %10 = arith.mulf %9, %8 : vector<4x128xf32>
    %cst_6 = arith.constant dense<0.000000e+00> : vector<128xf32>
    %11 = vector.multi_reduction <add>, %10, %cst_6 [0] : vector<4x128xf32> to vector<128xf32>
    %12 = vector.shape_cast %11 : vector<128xf32> to vector<1x128xf32>
    %13 = arith.mulf %9, %5 : vector<4x128xf32>
    %14 = arith.mulf %13, %8 : vector<4x128xf32>
    %cst_7 = arith.constant dense<0.000000e+00> : vector<128xf32>
    %15 = vector.multi_reduction <add>, %14, %cst_7 [0] : vector<4x128xf32> to vector<128xf32>
    %16 = vector.shape_cast %15 : vector<128xf32> to vector<1x128xf32>
    %17 = arith.mulf %13, %5 : vector<4x128xf32>
    %18 = arith.mulf %17, %8 : vector<4x128xf32>
    %cst_8 = arith.constant dense<0.000000e+00> : vector<128xf32>
    %19 = vector.multi_reduction <add>, %18, %cst_8 [0] : vector<4x128xf32> to vector<128xf32>
    %20 = vector.shape_cast %19 : vector<128xf32> to vector<1x128xf32>
    %21 = arith.mulf %17, %5 : vector<4x128xf32>
    %22 = arith.mulf %21, %8 : vector<4x128xf32>
    %cst_9 = arith.constant dense<0.000000e+00> : vector<128xf32>
    %23 = vector.multi_reduction <add>, %22, %cst_9 [0] : vector<4x128xf32> to vector<128xf32>
    %24 = vector.shape_cast %23 : vector<128xf32> to vector<1x128xf32>
    %c0_10 = arith.constant 0 : index
    %c0_11 = arith.constant 0 : index
    %c0_12 = arith.constant 0 : index
    %25 = vector.load %arg4[%c0_10, %c0_11, %c0_12] : memref<1x4x128xf32, #tpu.memory_space<vmem>>, vector<1x4x128xf32>
    %26 = vector.shape_cast %25 : vector<1x4x128xf32> to vector<4x128xf32>
    %27 = tpu.concatenate %12, %16, %20, %24 in 0 : vector<1x128xf32>, vector<1x128xf32>, vector<1x128xf32>, vector<1x128xf32> -> vector<4x128xf32>
    %28 = arith.addf %26, %27 : vector<4x128xf32>
    %c0_13 = arith.constant 0 : index
    %c0_14 = arith.constant 0 : index
    %c0_15 = arith.constant 0 : index
    %29 = vector.load %arg4[%c0_13, %c0_14, %c0_15] : memref<1x4x128xf32, #tpu.memory_space<vmem>>, vector<1x4x128xf32>
    %30 = vector.shape_cast %29 : vector<1x4x128xf32> to vector<4x128xf32>
    %31 = vector.shape_cast %28 : vector<4x128xf32> to vector<1x4x128xf32>
    tpu.vector_store %arg4[%c0_13, %c0_14, %c0_15], %31 {strides = array<i32>} : memref<1x4x128xf32, #tpu.memory_space<vmem>>, vector<1x4x128xf32>,
    return
  }
  func.func @transform_0(%arg0: i32, %arg1: i32) -> (i32, i32, i32) {
    %c0_i32 = arith.constant 0 : i32
    %c0_i32_0 = arith.constant 0 : i32
    return %arg0, %arg1, %c0_i32 : i32, i32, i32
  }
  func.func @transform_1(%arg0: i32, %arg1: i32) -> (i32, i32, i32) {
    %c0_i32 = arith.constant 0 : i32
    %c0_i32_0 = arith.constant 0 : i32
    return %arg0, %arg1, %c0_i32 : i32, i32, i32
  }
  func.func @transform_2(%arg0: i32, %arg1: i32) -> (i32, i32, i32) {
    %c0_i32 = arith.constant 0 : i32
    %c0_i32_0 = arith.constant 0 : i32
    %c0_i32_1 = arith.constant 0 : i32
    return %arg0, %c0_i32, %c0_i32_0 : i32, i32, i32
  }
}

module attributes {stable_mosaic.version = 11 : i64} {
  func.func @_gn_res_kernel(%arg0: i32, %arg1: memref<1x4x128xbf16, #tpu.memory_space<vmem>>, %arg2: memref<1x4x128xbf16, #tpu.memory_space<vmem>>, %arg3: memref<1x128xf32, #tpu.memory_space<vmem>>, %arg4: memref<1x128xf32, #tpu.memory_space<vmem>>, %arg5: memref<1x4x128xbf16, #tpu.memory_space<vmem>>) attributes {dimension_semantics = [#tpu.dimension_semantics<parallel>], iteration_bounds = array<i64: 2>, scalar_prefetch = 0 : i64, scratch_operands = 0 : i64, tpu.core_type = #tpu.core_type<tc>, window_params = [{transform_indices = @transform_0, window_bounds = array<i64: 1, 4, 128>}, {transform_indices = @transform_1, window_bounds = array<i64: 1, 4, 128>}, {pipeline_mode = #tpu.pipeline_mode<synchronous>, transform_indices = @transform_2, window_bounds = array<i64: 1, 128>}, {pipeline_mode = #tpu.pipeline_mode<synchronous>, transform_indices = @transform_3, window_bounds = array<i64: 1, 128>}, {transform_indices = @transform_4, window_bounds = array<i64: 1, 4, 128>}]} {
    %c0 = arith.constant 0 : index
    %c0_0 = arith.constant 0 : index
    %c0_1 = arith.constant 0 : index
    %0 = vector.load %arg1[%c0, %c0_0, %c0_1] : memref<1x4x128xbf16, #tpu.memory_space<vmem>>, vector<1x4x128xbf16>
    %1 = vector.shape_cast %0 : vector<1x4x128xbf16> to vector<4x128xbf16>
    %2 = arith.extf %1 : vector<4x128xbf16> to vector<4x128xf32>
    %3 = vector.extract_strided_slice %2 {offsets = [0, 0], sizes = [4, 8], strides = [1, 1]} : vector<4x128xf32> to vector<4x8xf32>
    %4 = vector.shape_cast %3 : vector<4x8xf32> to vector<1x4x8xf32>
    %cst = arith.constant dense<0.000000e+00> : vector<1xf32>
    %5 = vector.multi_reduction <add>, %4, %cst [1, 2] : vector<1x4x8xf32> to vector<1xf32>
    %6 = vector.shape_cast %5 : vector<1xf32> to vector<1x1x1xf32>
    %7 = vector.extract %6[0, 0, 0] : f32 from vector<1x1x1xf32>
    %cst_2 = arith.constant 3.200000e+01 : f32
    %8 = arith.divf %7, %cst_2 : f32
    %9 = vector.broadcast %8 : f32 to vector<4x8xf32>
    %10 = arith.subf %3, %9 : vector<4x8xf32>
    %11 = arith.mulf %10, %10 : vector<4x8xf32>
    %12 = vector.shape_cast %11 : vector<4x8xf32> to vector<1x4x8xf32>
    %cst_3 = arith.constant dense<0.000000e+00> : vector<1xf32>
    %13 = vector.multi_reduction <add>, %12, %cst_3 [1, 2] : vector<1x4x8xf32> to vector<1xf32>
    %14 = vector.shape_cast %13 : vector<1xf32> to vector<1x1x1xf32>
    %15 = vector.extract %14[0, 0, 0] : f32 from vector<1x1x1xf32>
    %cst_4 = arith.constant 3.200000e+01 : f32
    %16 = arith.divf %15, %cst_4 : f32
    %17 = vector.broadcast %8 : f32 to vector<4x8xf32>
    %18 = arith.subf %3, %17 : vector<4x8xf32>
    %cst_5 = arith.constant 9.99999974E-6 : f32
    %19 = arith.addf %16, %cst_5 : f32
    %20 = math.rsqrt %19 : f32
    %21 = vector.broadcast %20 : f32 to vector<4x8xf32>
    %22 = arith.mulf %18, %21 : vector<4x8xf32>
    %23 = vector.extract_strided_slice %2 {offsets = [0, 8], sizes = [4, 8], strides = [1, 1]} : vector<4x128xf32> to vector<4x8xf32>
    %24 = vector.shape_cast %23 : vector<4x8xf32> to vector<1x4x8xf32>
    %cst_6 = arith.constant dense<0.000000e+00> : vector<1xf32>
    %25 = vector.multi_reduction <add>, %24, %cst_6 [1, 2] : vector<1x4x8xf32> to vector<1xf32>
    %26 = vector.shape_cast %25 : vector<1xf32> to vector<1x1x1xf32>
    %27 = vector.extract %26[0, 0, 0] : f32 from vector<1x1x1xf32>
    %cst_7 = arith.constant 3.200000e+01 : f32
    %28 = arith.divf %27, %cst_7 : f32
    %29 = vector.broadcast %28 : f32 to vector<4x8xf32>
    %30 = arith.subf %23, %29 : vector<4x8xf32>
    %31 = arith.mulf %30, %30 : vector<4x8xf32>
    %32 = vector.shape_cast %31 : vector<4x8xf32> to vector<1x4x8xf32>
    %cst_8 = arith.constant dense<0.000000e+00> : vector<1xf32>
    %33 = vector.multi_reduction <add>, %32, %cst_8 [1, 2] : vector<1x4x8xf32> to vector<1xf32>
    %34 = vector.shape_cast %33 : vector<1xf32> to vector<1x1x1xf32>
    %35 = vector.extract %34[0, 0, 0] : f32 from vector<1x1x1xf32>
    %cst_9 = arith.constant 3.200000e+01 : f32
    %36 = arith.divf %35, %cst_9 : f32
    %37 = vector.broadcast %28 : f32 to vector<4x8xf32>
    %38 = arith.subf %23, %37 : vector<4x8xf32>
    %cst_10 = arith.constant 9.99999974E-6 : f32
    %39 = arith.addf %36, %cst_10 : f32
    %40 = math.rsqrt %39 : f32
    %41 = vector.broadcast %40 : f32 to vector<4x8xf32>
    %42 = arith.mulf %38, %41 : vector<4x8xf32>
    %43 = vector.extract_strided_slice %2 {offsets = [0, 16], sizes = [4, 8], strides = [1, 1]} : vector<4x128xf32> to vector<4x8xf32>
    %44 = vector.shape_cast %43 : vector<4x8xf32> to vector<1x4x8xf32>
    %cst_11 = arith.constant dense<0.000000e+00> : vector<1xf32>
    %45 = vector.multi_reduction <add>, %44, %cst_11 [1, 2] : vector<1x4x8xf32> to vector<1xf32>
    %46 = vector.shape_cast %45 : vector<1xf32> to vector<1x1x1xf32>
    %47 = vector.extract %46[0, 0, 0] : f32 from vector<1x1x1xf32>
    %cst_12 = arith.constant 3.200000e+01 : f32
    %48 = arith.divf %47, %cst_12 : f32
    %49 = vector.broadcast %48 : f32 to vector<4x8xf32>
    %50 = arith.subf %43, %49 : vector<4x8xf32>
    %51 = arith.mulf %50, %50 : vector<4x8xf32>
    %52 = vector.shape_cast %51 : vector<4x8xf32> to vector<1x4x8xf32>
    %cst_13 = arith.constant dense<0.000000e+00> : vector<1xf32>
    %53 = vector.multi_reduction <add>, %52, %cst_13 [1, 2] : vector<1x4x8xf32> to vector<1xf32>
    %54 = vector.shape_cast %53 : vector<1xf32> to vector<1x1x1xf32>
    %55 = vector.extract %54[0, 0, 0] : f32 from vector<1x1x1xf32>
    %cst_14 = arith.constant 3.200000e+01 : f32
    %56 = arith.divf %55, %cst_14 : f32
    %57 = vector.broadcast %48 : f32 to vector<4x8xf32>
    %58 = arith.subf %43, %57 : vector<4x8xf32>
    %cst_15 = arith.constant 9.99999974E-6 : f32
    %59 = arith.addf %56, %cst_15 : f32
    %60 = math.rsqrt %59 : f32
    %61 = vector.broadcast %60 : f32 to vector<4x8xf32>
    %62 = arith.mulf %58, %61 : vector<4x8xf32>
    %63 = vector.extract_strided_slice %2 {offsets = [0, 24], sizes = [4, 8], strides = [1, 1]} : vector<4x128xf32> to vector<4x8xf32>
    %64 = vector.shape_cast %63 : vector<4x8xf32> to vector<1x4x8xf32>
    %cst_16 = arith.constant dense<0.000000e+00> : vector<1xf32>
    %65 = vector.multi_reduction <add>, %64, %cst_16 [1, 2] : vector<1x4x8xf32> to vector<1xf32>
    %66 = vector.shape_cast %65 : vector<1xf32> to vector<1x1x1xf32>
    %67 = vector.extract %66[0, 0, 0] : f32 from vector<1x1x1xf32>
    %cst_17 = arith.constant 3.200000e+01 : f32
    %68 = arith.divf %67, %cst_17 : f32
    %69 = vector.broadcast %68 : f32 to vector<4x8xf32>
    %70 = arith.subf %63, %69 : vector<4x8xf32>
    %71 = arith.mulf %70, %70 : vector<4x8xf32>
    %72 = vector.shape_cast %71 : vector<4x8xf32> to vector<1x4x8xf32>
    %cst_18 = arith.constant dense<0.000000e+00> : vector<1xf32>
    %73 = vector.multi_reduction <add>, %72, %cst_18 [1, 2] : vector<1x4x8xf32> to vector<1xf32>
    %74 = vector.shape_cast %73 : vector<1xf32> to vector<1x1x1xf32>
    %75 = vector.extract %74[0, 0, 0] : f32 from vector<1x1x1xf32>
    %cst_19 = arith.constant 3.200000e+01 : f32
    %76 = arith.divf %75, %cst_19 : f32
    %77 = vector.broadcast %68 : f32 to vector<4x8xf32>
    %78 = arith.subf %63, %77 : vector<4x8xf32>
    %cst_20 = arith.constant 9.99999974E-6 : f32
    %79 = arith.addf %76, %cst_20 : f32
    %80 = math.rsqrt %79 : f32
    %81 = vector.broadcast %80 : f32 to vector<4x8xf32>
    %82 = arith.mulf %78, %81 : vector<4x8xf32>
    %83 = vector.extract_strided_slice %2 {offsets = [0, 32], sizes = [4, 8], strides = [1, 1]} : vector<4x128xf32> to vector<4x8xf32>
    %84 = vector.shape_cast %83 : vector<4x8xf32> to vector<1x4x8xf32>
    %cst_21 = arith.constant dense<0.000000e+00> : vector<1xf32>
    %85 = vector.multi_reduction <add>, %84, %cst_21 [1, 2] : vector<1x4x8xf32> to vector<1xf32>
    %86 = vector.shape_cast %85 : vector<1xf32> to vector<1x1x1xf32>
    %87 = vector.extract %86[0, 0, 0] : f32 from vector<1x1x1xf32>
    %cst_22 = arith.constant 3.200000e+01 : f32
    %88 = arith.divf %87, %cst_22 : f32
    %89 = vector.broadcast %88 : f32 to vector<4x8xf32>
    %90 = arith.subf %83, %89 : vector<4x8xf32>
    %91 = arith.mulf %90, %90 : vector<4x8xf32>
    %92 = vector.shape_cast %91 : vector<4x8xf32> to vector<1x4x8xf32>
    %cst_23 = arith.constant dense<0.000000e+00> : vector<1xf32>
    %93 = vector.multi_reduction <add>, %92, %cst_23 [1, 2] : vector<1x4x8xf32> to vector<1xf32>
    %94 = vector.shape_cast %93 : vector<1xf32> to vector<1x1x1xf32>
    %95 = vector.extract %94[0, 0, 0] : f32 from vector<1x1x1xf32>
    %cst_24 = arith.constant 3.200000e+01 : f32
    %96 = arith.divf %95, %cst_24 : f32
    %97 = vector.broadcast %88 : f32 to vector<4x8xf32>
    %98 = arith.subf %83, %97 : vector<4x8xf32>
    %cst_25 = arith.constant 9.99999974E-6 : f32
    %99 = arith.addf %96, %cst_25 : f32
    %100 = math.rsqrt %99 : f32
    %101 = vector.broadcast %100 : f32 to vector<4x8xf32>
    %102 = arith.mulf %98, %101 : vector<4x8xf32>
    %103 = vector.extract_strided_slice %2 {offsets = [0, 40], sizes = [4, 8], strides = [1, 1]} : vector<4x128xf32> to vector<4x8xf32>
    %104 = vector.shape_cast %103 : vector<4x8xf32> to vector<1x4x8xf32>
    %cst_26 = arith.constant dense<0.000000e+00> : vector<1xf32>
    %105 = vector.multi_reduction <add>, %104, %cst_26 [1, 2] : vector<1x4x8xf32> to vector<1xf32>
    %106 = vector.shape_cast %105 : vector<1xf32> to vector<1x1x1xf32>
    %107 = vector.extract %106[0, 0, 0] : f32 from vector<1x1x1xf32>
    %cst_27 = arith.constant 3.200000e+01 : f32
    %108 = arith.divf %107, %cst_27 : f32
    %109 = vector.broadcast %108 : f32 to vector<4x8xf32>
    %110 = arith.subf %103, %109 : vector<4x8xf32>
    %111 = arith.mulf %110, %110 : vector<4x8xf32>
    %112 = vector.shape_cast %111 : vector<4x8xf32> to vector<1x4x8xf32>
    %cst_28 = arith.constant dense<0.000000e+00> : vector<1xf32>
    %113 = vector.multi_reduction <add>, %112, %cst_28 [1, 2] : vector<1x4x8xf32> to vector<1xf32>
    %114 = vector.shape_cast %113 : vector<1xf32> to vector<1x1x1xf32>
    %115 = vector.extract %114[0, 0, 0] : f32 from vector<1x1x1xf32>
    %cst_29 = arith.constant 3.200000e+01 : f32
    %116 = arith.divf %115, %cst_29 : f32
    %117 = vector.broadcast %108 : f32 to vector<4x8xf32>
    %118 = arith.subf %103, %117 : vector<4x8xf32>
    %cst_30 = arith.constant 9.99999974E-6 : f32
    %119 = arith.addf %116, %cst_30 : f32
    %120 = math.rsqrt %119 : f32
    %121 = vector.broadcast %120 : f32 to vector<4x8xf32>
    %122 = arith.mulf %118, %121 : vector<4x8xf32>
    %123 = vector.extract_strided_slice %2 {offsets = [0, 48], sizes = [4, 8], strides = [1, 1]} : vector<4x128xf32> to vector<4x8xf32>
    %124 = vector.shape_cast %123 : vector<4x8xf32> to vector<1x4x8xf32>
    %cst_31 = arith.constant dense<0.000000e+00> : vector<1xf32>
    %125 = vector.multi_reduction <add>, %124, %cst_31 [1, 2] : vector<1x4x8xf32> to vector<1xf32>
    %126 = vector.shape_cast %125 : vector<1xf32> to vector<1x1x1xf32>
    %127 = vector.extract %126[0, 0, 0] : f32 from vector<1x1x1xf32>
    %cst_32 = arith.constant 3.200000e+01 : f32
    %128 = arith.divf %127, %cst_32 : f32
    %129 = vector.broadcast %128 : f32 to vector<4x8xf32>
    %130 = arith.subf %123, %129 : vector<4x8xf32>
    %131 = arith.mulf %130, %130 : vector<4x8xf32>
    %132 = vector.shape_cast %131 : vector<4x8xf32> to vector<1x4x8xf32>
    %cst_33 = arith.constant dense<0.000000e+00> : vector<1xf32>
    %133 = vector.multi_reduction <add>, %132, %cst_33 [1, 2] : vector<1x4x8xf32> to vector<1xf32>
    %134 = vector.shape_cast %133 : vector<1xf32> to vector<1x1x1xf32>
    %135 = vector.extract %134[0, 0, 0] : f32 from vector<1x1x1xf32>
    %cst_34 = arith.constant 3.200000e+01 : f32
    %136 = arith.divf %135, %cst_34 : f32
    %137 = vector.broadcast %128 : f32 to vector<4x8xf32>
    %138 = arith.subf %123, %137 : vector<4x8xf32>
    %cst_35 = arith.constant 9.99999974E-6 : f32
    %139 = arith.addf %136, %cst_35 : f32
    %140 = math.rsqrt %139 : f32
    %141 = vector.broadcast %140 : f32 to vector<4x8xf32>
    %142 = arith.mulf %138, %141 : vector<4x8xf32>
    %143 = vector.extract_strided_slice %2 {offsets = [0, 56], sizes = [4, 8], strides = [1, 1]} : vector<4x128xf32> to vector<4x8xf32>
    %144 = vector.shape_cast %143 : vector<4x8xf32> to vector<1x4x8xf32>
    %cst_36 = arith.constant dense<0.000000e+00> : vector<1xf32>
    %145 = vector.multi_reduction <add>, %144, %cst_36 [1, 2] : vector<1x4x8xf32> to vector<1xf32>
    %146 = vector.shape_cast %145 : vector<1xf32> to vector<1x1x1xf32>
    %147 = vector.extract %146[0, 0, 0] : f32 from vector<1x1x1xf32>
    %cst_37 = arith.constant 3.200000e+01 : f32
    %148 = arith.divf %147, %cst_37 : f32
    %149 = vector.broadcast %148 : f32 to vector<4x8xf32>
    %150 = arith.subf %143, %149 : vector<4x8xf32>
    %151 = arith.mulf %150, %150 : vector<4x8xf32>
    %152 = vector.shape_cast %151 : vector<4x8xf32> to vector<1x4x8xf32>
    %cst_38 = arith.constant dense<0.000000e+00> : vector<1xf32>
    %153 = vector.multi_reduction <add>, %152, %cst_38 [1, 2] : vector<1x4x8xf32> to vector<1xf32>
    %154 = vector.shape_cast %153 : vector<1xf32> to vector<1x1x1xf32>
    %155 = vector.extract %154[0, 0, 0] : f32 from vector<1x1x1xf32>
    %cst_39 = arith.constant 3.200000e+01 : f32
    %156 = arith.divf %155, %cst_39 : f32
    %157 = vector.broadcast %148 : f32 to vector<4x8xf32>
    %158 = arith.subf %143, %157 : vector<4x8xf32>
    %cst_40 = arith.constant 9.99999974E-6 : f32
    %159 = arith.addf %156, %cst_40 : f32
    %160 = math.rsqrt %159 : f32
    %161 = vector.broadcast %160 : f32 to vector<4x8xf32>
    %162 = arith.mulf %158, %161 : vector<4x8xf32>
    %cst_41 = arith.constant 0.000000e+00 : f32
    %163 = vector.broadcast %cst_41 : f32 to vector<4x64xf32>
    %164 = tpu.concatenate %22, %42, %62, %82, %102, %122, %142, %162, %163 in 1 : vector<4x8xf32>, vector<4x8xf32>, vector<4x8xf32>, vector<4x8xf32>, vector<4x8xf32>, vector<4x8xf32>, vector<4x8xf32>, vector<4x8xf32>, vector<4x64xf32> -> vector<4x128xf32>
    %c0_42 = arith.constant 0 : index
    %c0_43 = arith.constant 0 : index
    %165 = vector.load %arg3[%c0_42, %c0_43] : memref<1x128xf32, #tpu.memory_space<vmem>>, vector<1x128xf32>
    %166 = vector.broadcast %165 : vector<1x128xf32> to vector<4x128xf32>
    %167 = arith.mulf %164, %166 : vector<4x128xf32>
    %c0_44 = arith.constant 0 : index
    %c0_45 = arith.constant 0 : index
    %168 = vector.load %arg4[%c0_44, %c0_45] : memref<1x128xf32, #tpu.memory_space<vmem>>, vector<1x128xf32>
    %169 = vector.broadcast %168 : vector<1x128xf32> to vector<4x128xf32>
    %170 = arith.addf %167, %169 : vector<4x128xf32>
    %c0_46 = arith.constant 0 : index
    %c0_47 = arith.constant 0 : index
    %c0_48 = arith.constant 0 : index
    %171 = vector.load %arg2[%c0_46, %c0_47, %c0_48] : memref<1x4x128xbf16, #tpu.memory_space<vmem>>, vector<1x4x128xbf16>
    %172 = vector.shape_cast %171 : vector<1x4x128xbf16> to vector<4x128xbf16>
    %173 = arith.extf %172 : vector<4x128xbf16> to vector<4x128xf32>
    %174 = arith.addf %170, %173 : vector<4x128xf32>
    %175 = arith.truncf %174 : vector<4x128xf32> to vector<4x128xbf16>
    %c0_49 = arith.constant 0 : index
    %c0_50 = arith.constant 0 : index
    %c0_51 = arith.constant 0 : index
    %176 = vector.load %arg5[%c0_49, %c0_50, %c0_51] : memref<1x4x128xbf16, #tpu.memory_space<vmem>>, vector<1x4x128xbf16>
    %177 = vector.shape_cast %176 : vector<1x4x128xbf16> to vector<4x128xbf16>
    %178 = vector.shape_cast %175 : vector<4x128xbf16> to vector<1x4x128xbf16>
    tpu.vector_store %arg5[%c0_49, %c0_50, %c0_51], %178 {strides = array<i32>} : memref<1x4x128xbf16, #tpu.memory_space<vmem>>, vector<1x4x128xbf16>,
    return
  }
  func.func @transform_0(%arg0: i32) -> (i32, i32, i32) {
    %c0_i32 = arith.constant 0 : i32
    %c0_i32_0 = arith.constant 0 : i32
    %c0_i32_1 = arith.constant 0 : i32
    return %arg0, %c0_i32, %c0_i32_0 : i32, i32, i32
  }
  func.func @transform_1(%arg0: i32) -> (i32, i32, i32) {
    %c0_i32 = arith.constant 0 : i32
    %c0_i32_0 = arith.constant 0 : i32
    %c0_i32_1 = arith.constant 0 : i32
    return %arg0, %c0_i32, %c0_i32_0 : i32, i32, i32
  }
  func.func @transform_2(%arg0: i32) -> (i32, i32) {
    %c0_i32 = arith.constant 0 : i32
    %c0_i32_0 = arith.constant 0 : i32
    %c0_i32_1 = arith.constant 0 : i32
    return %c0_i32, %c0_i32_0 : i32, i32
  }
  func.func @transform_3(%arg0: i32) -> (i32, i32) {
    %c0_i32 = arith.constant 0 : i32
    %c0_i32_0 = arith.constant 0 : i32
    %c0_i32_1 = arith.constant 0 : i32
    return %c0_i32, %c0_i32_0 : i32, i32
  }
  func.func @transform_4(%arg0: i32) -> (i32, i32, i32) {
    %c0_i32 = arith.constant 0 : i32
    %c0_i32_0 = arith.constant 0 : i32
    %c0_i32_1 = arith.constant 0 : i32
    return %arg0, %c0_i32, %c0_i32_0 : i32, i32, i32
  }
}

module attributes {stable_mosaic.version = 11 : i64} {
  func.func @_cgnl_apply_kernel(%arg0: i32, %arg1: i32, %arg2: memref<1x4x128xbf16, #tpu.memory_space<vmem>>, %arg3: memref<1x4x128xf32, #tpu.memory_space<vmem>>, %arg4: memref<1x4x128xbf16, #tpu.memory_space<vmem>>) attributes {dimension_semantics = [#tpu.dimension_semantics<parallel>, #tpu.dimension_semantics<parallel>], iteration_bounds = array<i64: 2, 1>, scalar_prefetch = 0 : i64, scratch_operands = 0 : i64, tpu.core_type = #tpu.core_type<tc>, window_params = [{transform_indices = @transform_0, window_bounds = array<i64: 1, 4, 128>}, {transform_indices = @transform_1, window_bounds = array<i64: 1, 4, 128>}, {transform_indices = @transform_2, window_bounds = array<i64: 1, 4, 128>}]} {
    %c0 = arith.constant 0 : index
    %c0_0 = arith.constant 0 : index
    %c0_1 = arith.constant 0 : index
    %0 = vector.load %arg2[%c0, %c0_0, %c0_1] : memref<1x4x128xbf16, #tpu.memory_space<vmem>>, vector<1x4x128xbf16>
    %1 = vector.shape_cast %0 : vector<1x4x128xbf16> to vector<4x128xbf16>
    %2 = arith.extf %1 : vector<4x128xbf16> to vector<4x128xf32>
    %c0_2 = arith.constant 0 : index
    %c0_3 = arith.constant 0 : index
    %c0_4 = arith.constant 0 : index
    %3 = vector.load %arg3[%c0_2, %c0_3, %c0_4] : memref<1x4x128xf32, #tpu.memory_space<vmem>>, vector<1x4x128xf32>
    %4 = vector.shape_cast %3 : vector<1x4x128xf32> to vector<4x128xf32>
    %cst = arith.constant 1.000000e+00 : f32
    %5 = vector.broadcast %cst : f32 to vector<4x128xf32>
    %cst_5 = arith.constant 0.000000e+00 : f32
    %6 = vector.broadcast %cst_5 : f32 to vector<4x128xf32>
    %7 = vector.extract_strided_slice %4 {offsets = [0, 0], sizes = [1, 128], strides = [1, 1]} : vector<4x128xf32> to vector<1x128xf32>
    %cst_6 = arith.constant 9.998000e-01 : f32
    %8 = vector.broadcast %cst_6 : f32 to vector<1x128xf32>
    %9 = arith.mulf %8, %7 : vector<1x128xf32>
    %10 = vector.broadcast %9 : vector<1x128xf32> to vector<4x128xf32>
    %11 = arith.mulf %10, %5 : vector<4x128xf32>
    %12 = arith.addf %6, %11 : vector<4x128xf32>
    %13 = arith.mulf %5, %2 : vector<4x128xf32>
    %14 = vector.extract_strided_slice %4 {offsets = [1, 0], sizes = [1, 128], strides = [1, 1]} : vector<4x128xf32> to vector<1x128xf32>
    %cst_7 = arith.constant 1.999600e-04 : f32
    %15 = vector.broadcast %cst_7 : f32 to vector<1x128xf32>
    %16 = arith.mulf %15, %14 : vector<1x128xf32>
    %17 = vector.broadcast %16 : vector<1x128xf32> to vector<4x128xf32>
    %18 = arith.mulf %17, %13 : vector<4x128xf32>
    %19 = arith.addf %12, %18 : vector<4x128xf32>
    %20 = arith.mulf %13, %2 : vector<4x128xf32>
    %21 = vector.extract_strided_slice %4 {offsets = [2, 0], sizes = [1, 128], strides = [1, 1]} : vector<4x128xf32> to vector<1x128xf32>
    %cst_8 = arith.constant 1.999600e-08 : f32
    %22 = vector.broadcast %cst_8 : f32 to vector<1x128xf32>
    %23 = arith.mulf %22, %21 : vector<1x128xf32>
    %24 = vector.broadcast %23 : vector<1x128xf32> to vector<4x128xf32>
    %25 = arith.mulf %24, %20 : vector<4x128xf32>
    %26 = arith.addf %19, %25 : vector<4x128xf32>
    %27 = arith.mulf %20, %2 : vector<4x128xf32>
    %28 = vector.extract_strided_slice %4 {offsets = [3, 0], sizes = [1, 128], strides = [1, 1]} : vector<4x128xf32> to vector<1x128xf32>
    %cst_9 = arith.constant 1.33306669E-12 : f32
    %29 = vector.broadcast %cst_9 : f32 to vector<1x128xf32>
    %30 = arith.mulf %29, %28 : vector<1x128xf32>
    %31 = vector.broadcast %30 : vector<1x128xf32> to vector<4x128xf32>
    %32 = arith.mulf %31, %27 : vector<4x128xf32>
    %33 = arith.addf %26, %32 : vector<4x128xf32>
    %34 = arith.truncf %33 : vector<4x128xf32> to vector<4x128xbf16>
    %c0_10 = arith.constant 0 : index
    %c0_11 = arith.constant 0 : index
    %c0_12 = arith.constant 0 : index
    %35 = vector.load %arg4[%c0_10, %c0_11, %c0_12] : memref<1x4x128xbf16, #tpu.memory_space<vmem>>, vector<1x4x128xbf16>
    %36 = vector.shape_cast %35 : vector<1x4x128xbf16> to vector<4x128xbf16>
    %37 = vector.shape_cast %34 : vector<4x128xbf16> to vector<1x4x128xbf16>
    tpu.vector_store %arg4[%c0_10, %c0_11, %c0_12], %37 {strides = array<i32>} : memref<1x4x128xbf16, #tpu.memory_space<vmem>>, vector<1x4x128xbf16>,
    return
  }
  func.func @transform_0(%arg0: i32, %arg1: i32) -> (i32, i32, i32) {
    %c0_i32 = arith.constant 0 : i32
    %c0_i32_0 = arith.constant 0 : i32
    return %arg0, %arg1, %c0_i32 : i32, i32, i32
  }
  func.func @transform_1(%arg0: i32, %arg1: i32) -> (i32, i32, i32) {
    %c0_i32 = arith.constant 0 : i32
    %c0_i32_0 = arith.constant 0 : i32
    %c0_i32_1 = arith.constant 0 : i32
    return %arg0, %c0_i32, %c0_i32_0 : i32, i32, i32
  }
  func.func @transform_2(%arg0: i32, %arg1: i32) -> (i32, i32, i32) {
    %c0_i32 = arith.constant 0 : i32
    %c0_i32_0 = arith.constant 0 : i32
    return %arg0, %arg1, %c0_i32 : i32, i32, i32
  }
}

</mosaic_0001>

<bundles_post_ra>
// kernel: _lambda_.54
= control target key start
LH: loop header
LB: loop body
LE: loop exit
PB: predicated region body
PF: predicated region fallthrough
CT: control target
= control target key end

     0   :  { %s839_s15 = smov 0   ;;  %s841_s16 = smov 0   ;;  %s912_s0 = inlined_call_operand.vmem [shape: bf16[128,128], index: 0, kind: input, shape index: {}]   ;;  %s913_s1 = inlined_call_operand.vmem [shape: bf16[128,128], index: 1, kind: input, shape index: {}]   ;;  %s914_s2 = inlined_call_operand.vmem [shape: f32[1,128], index: 2, kind: input, shape index: {}]   ;;  %s915_s3 = inlined_call_operand.vmem [shape: f32[1,128], index: 3, kind: input, shape index: {}]   ;;  %s916_s4 = inlined_call_operand.vmem [shape: bf16[128,128], index: 4, kind: output, shape index: {}]  }
   0x1   :  { %s843_s17 = smov 0  }
   0x2 LB: > { %s29_s18 = sadd.s32 1, %s808_s16  ;;  %p650_p0 = scmp.ge.s32.totalorder %s812_s17, 1  ;;  %s812_s17 = sphi %s843_s17, %s14_s17   ;;  %s808_s16 = sphi %s841_s16, %s918_s16   ;;  %s804_s15 = sphi %s839_s15, %s917_s15  }
   0x3   : > { %p31_p1 = scmp.ge.s32.totalorder %s29_s18, 2  ;;  %p221_p2 = scmp.lt.s32.totalorder %s812_s17, 3 }
   0x5   : > { %s920_s18 = smov (%p31_p1, %s29_s18), 0  ;;  %p222_p3 = pnand %p650_p0, %p221_p2 }
   0x6   : > { %s651_s27 = sshll.u32 (!%p222_p3), %s804_s15, 3 }
   0x7   : > { %225 = sbr.rel (%p222_p3) target bundleno = 195 (0xc3), region = 36  ;;  %p268_p4 = scmp.lt.s32.totalorder (!%p222_p3), %s651_s27, 15 }
   0xc   : > { %v716_v0 = vld [vmem:[%s913_s1 + $0x38] sm:$0xff]  ;;  %v715_v1 = vld [vmem:[%s913_s1 + $0x30] sm:$0xff]  ;;  %v714_v2 = vld [vmem:[%s913_s1 + $0x28] sm:$0xff]  ;;  %s922_s27 = smov (!%p268_p4, %s651_s27), 15 }
   0xd   : > { %416 = vmatpush.bf16.msra.mxu0 %v716_v0  ;;  %740 = vmatpush.bf16.msra.mxu1 %v716_v0  ;;  %v713_v3 = vld [vmem:[%s913_s1 + $0x20] sm:$0xff]  ;;  %v712_v4 = vld [vmem:[%s913_s1 + $0x18] sm:$0xff]  ;;  %v711_v5 = vld [vmem:[%s913_s1 + $0x10] sm:$0xff]  ;;  %s652_s8 = sshll.u32 %s922_s27, 2 }
   0xe   : > { %741 = vmatpush.bf16.msra.mxu2 %v716_v0  ;;  %742 = vmatpush.bf16.msra.mxu3 %v716_v0  ;;  %v710_v6 = vld [vmem:[%s913_s1 + $0x8] sm:$0xff]  ;;  %v709_v7 = vld [vmem:[%s913_s1] sm:$0xff]  ;;  %s274_s13 = scalar_lea.vmem %s912_s0, %s652_s8  ;;  %s298_s23 = scalar_lea.vmem %s916_s4, %s652_s8 }
   0xf   : > { %v705_v8 = vld [vmem:[%s274_s13] sm:$0xff]  ;;  %v706_v9 = vld [vmem:[%s274_s13 + $0x8] sm:$0xff]  ;;  %v707_v10 = vld [vmem:[%s274_s13 + $0x10] sm:$0xff] }
  0x10   : > { %v708_v11 = vld [vmem:[%s274_s13 + $0x18] sm:$0xff]  ;;  %v788_v14 = vld [vmem:[%s914_s2] ss:$0 sm:$0xff] }
  0x11   : > { %417 = vmatpush.bf16.msra.mxu0 %v715_v1  ;;  %743 = vmatpush.bf16.msra.mxu1 %v715_v1  ;;  %v789_v16 = vld [vmem:[%s915_s3] ss:$0 sm:$0xff] }
  0x12   : > { %744 = vmatpush.bf16.msra.mxu2 %v715_v1  ;;  %745 = vmatpush.bf16.msra.mxu3 %v715_v1 }
  0x15   : > { %418 = vmatpush.bf16.msra.mxu0 %v714_v2  ;;  %746 = vmatpush.bf16.msra.mxu1 %v714_v2 }
  0x16   : > { %747 = vmatpush.bf16.msra.mxu2 %v714_v2  ;;  %748 = vmatpush.bf16.msra.mxu3 %v714_v2 }
  0x19   : > { %419 = vmatpush.bf16.msra.mxu0 %v713_v3  ;;  %749 = vmatpush.bf16.msra.mxu1 %v713_v3 }
  0x1a   : > { %750 = vmatpush.bf16.msra.mxu2 %v713_v3  ;;  %751 = vmatpush.bf16.msra.mxu3 %v713_v3 }
  0x1d   : > { %420 = vmatpush.bf16.msra.mxu0 %v712_v4  ;;  %752 = vmatpush.bf16.msra.mxu1 %v712_v4 }
  0x1e   : > { %753 = vmatpush.bf16.msra.mxu2 %v712_v4  ;;  %754 = vmatpush.bf16.msra.mxu3 %v712_v4 }
  0x21   : > { %421 = vmatpush.bf16.msra.mxu0 %v711_v5  ;;  %755 = vmatpush.bf16.msra.mxu1 %v711_v5 }
  0x22   : > { %756 = vmatpush.bf16.msra.mxu2 %v711_v5  ;;  %757 = vmatpush.bf16.msra.mxu3 %v711_v5 }
  0x25   : > { %422 = vmatpush.bf16.msra.mxu0 %v710_v6  ;;  %758 = vmatpush.bf16.msra.mxu1 %v710_v6 }
  0x26   : > { %759 = vmatpush.bf16.msra.mxu2 %v710_v6  ;;  %760 = vmatpush.bf16.msra.mxu3 %v710_v6 }
  0x29   : > { %423 = vmatpush.bf16.msra.mxu0 %v709_v7  ;;  %761 = vmatpush.bf16.msra.mxu1 %v709_v7 }
  0x2a   : > { %762 = vmatpush.bf16.msra.mxu2 %v709_v7  ;;  %763 = vmatpush.bf16.msra.mxu3 %v709_v7 }
  0x2c   : > { %424 = vmatmul.bf16.vlgmr.msra.gmra.mxu0 %v705_v8  ;;  %429 = vmatmul.bf16.vlgmr.msra.gmra.mxu1 %v706_v9 }
  0x2d   : > { %434 = vmatmul.bf16.vlgmr.msra.gmra.mxu2 %v707_v10  ;;  %439 = vmatmul.bf16.vlgmr.msra.gmra.mxu3 %v708_v11 }
  0xa9   : > { %v425_v12 = vpop.f32.mrf.mxu0  ;;  %v430_v13 = vpop.f32.mrf.mxu1 }
  0xaa   : > { %v476_v15 = vmul.f32 %v788_v14, %v425_v12  ;;  %v478_v17 = vmul.f32 %v788_v14, %v430_v13 }
  0xac   : > { %v488_v22 = vadd.f32 %v789_v16, %v476_v15  ;;  %v490_v23 = vadd.f32 %v789_v16, %v478_v17 }
  0xae   : > { %v496_v30 = vmax.f32 %v488_v22, 0.0  ;;  %v498_v31 = vmax.f32 %v490_v23, 0.0 }
  0xb0   : > { %v435_v18 = vpop.f32.mrf.mxu2  ;;  %v440_v19 = vpop.f32.mrf.mxu3 }
  0xb1   : > { %v427_v20 = vpop.f32.mrf.mxu0  ;;  %v432_v21 = vpop.f32.mrf.mxu1  ;;  %v480_v28 = vmul.f32 %v788_v14, %v435_v18  ;;  %v482_v29 = vmul.f32 %v788_v14, %v440_v19 }
  0xb2   : > { %v477_v24 = vmul.f32 %v788_v14, %v427_v20  ;;  %v479_v25 = vmul.f32 %v788_v14, %v432_v21 }
  0xb3   : > { %v492_v38 = vadd.f32 %v789_v16, %v480_v28  ;;  %v494_v39 = vadd.f32 %v789_v16, %v482_v29 }
  0xb4   : > { %v489_v26 = vadd.f32 %v789_v16, %v477_v24  ;;  %v491_v27 = vadd.f32 %v789_v16, %v479_v25 }
  0xb5   : > { %v500_v44 = vmax.f32 %v492_v38, 0.0  ;;  %v502_v45 = vmax.f32 %v494_v39, 0.0 }
  0xb6   : > { %v497_v32 = vmax.f32 %v489_v26, 0.0  ;;  %v499_v33 = vmax.f32 %v491_v27, 0.0 }
  0xb8   : > { %v720_v34 = vpack.c.bf16 %v497_v32, %v496_v30  ;;  %v725_v35 = vpack.c.bf16 %v499_v33, %v498_v31  ;;  %v437_v36 = vpop.f32.mrf.mxu2  ;;  %v442_v37 = vpop.f32.mrf.mxu3 }
  0xb9   : > { %v481_v40 = vmul.f32 %v788_v14, %v437_v36  ;;  %v483_v41 = vmul.f32 %v788_v14, %v442_v37 }
  0xba   : > { %721 = vst [vmem:[%s298_s23] sm:$0xff] %v720_v34  }
  0xbb   : > { %737 = vst [vmem:[%s298_s23 + $0x8] sm:$0xff] %v725_v35   ;;  %v493_v42 = vadd.f32 %v789_v16, %v481_v40  ;;  %v495_v43 = vadd.f32 %v789_v16, %v483_v41 }
  0xbd   : > { %v501_v46 = vmax.f32 %v493_v42, 0.0  ;;  %v503_v47 = vmax.f32 %v495_v43, 0.0 }
  0xbf   : > { %v730_v48 = vpack.c.bf16 %v501_v46, %v500_v44  ;;  %v735_v49 = vpack.c.bf16 %v503_v47, %v502_v45 }
  0xc1   : > { %738 = vst [vmem:[%s298_s23 + $0x10] sm:$0xff] %v730_v48  }
  0xc2   : > { %739 = vst [vmem:[%s298_s23 + $0x18] sm:$0xff] %v735_v49  }
  0xc3 PF: > { %s14_s17 = sadd.s32 1, %s812_s17   ;;  %s917_s15 = smov %s808_s16 }
  0xc4   : > { %p11_p5 = scmp.ge.s32.totalorder %s14_s17, 4   ;;  %s918_s16 = smov %s920_s18 }
  0xc6   :  { %13 = sbr.rel (!%p11_p5) target bundleno = 2 (0x2), region = 83 }

// kernel: _lambda_.52
= control target key start
LH: loop header
LB: loop body
LE: loop exit
PB: predicated region body
PF: predicated region fallthrough
CT: control target
= control target key end

     0   :  { %s935_s15 = smov 0   ;;  %s1207_s0 = inlined_call_operand.vmem [shape: bf16[2,9,9,128], index: 0, kind: input, shape index: {}]   ;;  %s1208_s1 = inlined_call_operand.vmem [shape: bf16[2,9,9,128], index: 1, kind: input, shape index: {}]   ;;  %s1209_s2 = inlined_call_operand.vmem [shape: bf16[2,9,9,128], index: 2, kind: input, shape index: {}]   ;;  %s1210_s3 = inlined_call_operand.vmem [shape: bf16[2,9,9,128], index: 3, kind: input, shape index: {}]   ;;  %s1211_s4 = inlined_call_operand.vmem [shape: bf16[2,8,8,128], index: 4, kind: output, shape index: {}]  }
   0x1 LB: > { %s832_s16 = sadd.s32 4294967295, %s908_s15   ;;  %p836_p0 = scmp.ge.s32.totalorder %s908_s15, 1  ;;  %s908_s15 = sphi %s935_s15, %s14_s15  }
   0x2   : > { %p192_p1 = scmp.lt.s32.totalorder %s908_s15, 3 }
   0x4   : > { %p193_p2 = pnand %p836_p0, %p192_p1 }
   0x5   : > { %p233_p3 = scmp.lt.s32.totalorder (!%p193_p2), %s832_s16, 1 }
   0x6   : > { %196 = sbr.rel (%p193_p2) target bundleno = 74 (0x4a), region = 36 }
   0xb   : > { %s1213_s16 = smov (!%p233_p3, %s832_s16), 1  ;;  %vm346_vm0 = vcmask 1046528  }
   0xc   : > { %s946_s17 = smul.u32 72, %s1213_s16  ;;  %s869_s30 = sshll.u32 %s1213_s16, 5 }
   0xd   : > { %s257_s7 = scalar_lea.vmem %s1211_s4, %s869_s30 }
   0xe   : > { %s952_s20 = scalar_lea.vmem %s1207_s0, %s946_s17  ;;  %s958_s23 = scalar_lea.vmem %s1208_s1, %s946_s17 }
   0xf   : > { %v258_v0 = vld [vmem:[%s952_s20] sm:$0xf]  ;;  %v259_v1 = vld [vmem:[%s952_s20 + $0x8] sm:$0xf]  ;;  %v260_v2 = vld [vmem:[%s952_s20 + $0x10] sm:$0xf]  ;;  %s1016_s26 = scalar_lea.vmem %s1209_s2, %s946_s17  ;;  %s1036_s29 = scalar_lea.vmem %s1210_s3, %s946_s17 }
  0x10   : > { %v261_v3 = vld [vmem:[%s952_s20 + $0x18] sm:$0xf]  ;;  %v965_v4 = vld [vmem:[%s952_s20 + $0x20] sm:$0xf]  ;;  %v968_v5 = vld [vmem:[%s952_s20 + $0x28] sm:$0xf]  ;;  %v274_v6 = vunpack.c.l.bf16 %v258_v0  ;;  %v275_v10 = vunpack.c.l.bf16 %v259_v1  ;;  %v276_v11 = vunpack.c.l.bf16 %v260_v2 }
  0x11   : > { %v971_v7 = vld [vmem:[%s952_s20 + $0x30] sm:$0xf]  ;;  %v974_v8 = vld [vmem:[%s952_s20 + $0x38] sm:$0xf]  ;;  %v266_v9 = vld [vmem:[%s958_s23] sm:$0xf]  ;;  %v277_v12 = vunpack.c.l.bf16 %v261_v3  ;;  %v278_v16 = vunpack.c.l.bf16 %v965_v4  ;;  %v279_v17 = vunpack.c.l.bf16 %v968_v5 }
  0x12   : > { %v267_v13 = vld [vmem:[%s958_s23 + $0x8] sm:$0xf]  ;;  %v268_v14 = vld [vmem:[%s958_s23 + $0x10] sm:$0xf]  ;;  %v269_v15 = vld [vmem:[%s958_s23 + $0x18] sm:$0xf]  ;;  %v280_v18 = vunpack.c.l.bf16 %v971_v7  ;;  %v282_v19 = vunpack.c.l.bf16 %v266_v9  ;;  %v281_v23 = vunpack.c.l.bf16 %v974_v8 }
  0x13   : > { %v270_v20 = vld [vmem:[%s958_s23 + $0x20] sm:$0xf]  ;;  %v271_v21 = vld [vmem:[%s958_s23 + $0x28] sm:$0xf]  ;;  %v272_v22 = vld [vmem:[%s958_s23 + $0x30] sm:$0xf]  ;;  %v283_v24 = vunpack.c.l.bf16 %v267_v13  ;;  %v284_v25 = vunpack.c.l.bf16 %v268_v14  ;;  %v285_v26 = vunpack.c.l.bf16 %v269_v15 }
  0x14   : > { %v273_v27 = vld [vmem:[%s958_s23 + $0x38] sm:$0xf]  ;;  %v286_v28 = vunpack.c.l.bf16 %v270_v20  ;;  %v287_v29 = vunpack.c.l.bf16 %v271_v21  ;;  %v288_v30 = vunpack.c.l.bf16 %v272_v22  ;;  %v988_v31 = vmax.f32 %v274_v6, %v282_v19  ;;  %v306_v32 = vld [vmem:[%s952_s20 + $0x4] sm:$0x1]  ;;  %v307_v33 = vld [vmem:[%s952_s20 + $0xc] sm:$0x1] }
  0x15   : > { %v289_v34 = vunpack.c.l.bf16 %v273_v27  ;;  %v992_v35 = vmax.f32 %v275_v10, %v283_v24  ;;  %v994_v36 = vmax.f32 %v276_v11, %v284_v25  ;;  %v996_v37 = vmax.f32 %v277_v12, %v285_v26  ;;  %v308_v38 = vld [vmem:[%s952_s20 + $0x14] sm:$0x1]  ;;  %v309_v39 = vld [vmem:[%s952_s20 + $0x1c] sm:$0x1]  ;;  %v310_v40 = vld [vmem:[%s952_s20 + $0x24] sm:$0x1] }
  0x16   : > { %v1001_v41 = vmax.f32 %v278_v16, %v286_v28  ;;  %v1003_v42 = vmax.f32 %v279_v17, %v287_v29  ;;  %v1005_v43 = vmax.f32 %v280_v18, %v288_v30  ;;  %v311_v44 = vld [vmem:[%s952_s20 + $0x2c] sm:$0x1]  ;;  %v312_v45 = vld [vmem:[%s952_s20 + $0x34] sm:$0x1]  ;;  %v313_v46 = vld [vmem:[%s952_s20 + $0x3c] sm:$0x1]  ;;  %v322_v47 = vunpack.c.l.bf16 %v306_v32 }
  0x17   : > { %v1010_v48 = vmax.f32 %v281_v23, %v289_v34  ;;  %v323_v49 = vunpack.c.l.bf16 %v307_v33  ;;  %v324_v50 = vunpack.c.l.bf16 %v308_v38  ;;  %v325_v51 = vunpack.c.l.bf16 %v309_v39  ;;  %v1023_v8 = vld [vmem:[%s1016_s26] sm:$0xf]  ;;  %v1026_v9 = vld [vmem:[%s1016_s26 + $0x8] sm:$0xf]  ;;  %v1030_v14 = vld [vmem:[%s1016_s26 + $0x10] sm:$0xf] }
  0x18   : > { %v326_v52 = vunpack.c.l.bf16 %v310_v40  ;;  %v327_v53 = vunpack.c.l.bf16 %v311_v44  ;;  %v328_v54 = vunpack.c.l.bf16 %v312_v45  ;;  %v329_v55 = vunpack.c.l.bf16 %v313_v46  ;;  %v1042_v20 = vld [vmem:[%s1016_s26 + $0x18] sm:$0xf]  ;;  %v1052_v25 = vld [vmem:[%s1016_s26 + $0x28] sm:$0xf]  ;;  %v1055_v26 = vld [vmem:[%s1016_s26 + $0x30] sm:$0xf] }
  0x19   : > { %v347_v56 = vrot.slane %v274_v6, 1  ;;  %v348_v57 = vrot.slane %v322_v47, 1  ;;  %v350_v58 = vrot.slane %v275_v10, 1  ;;  %v351_v59 = vrot.slane %v323_v49, 1  ;;  %v1058_v27 = vld [vmem:[%s1016_s26 + $0x38] sm:$0xf] }
  0x1a   : > { %v353_v60 = vrot.slane %v276_v11, 1  ;;  %v354_v61 = vrot.slane %v324_v50, 1  ;;  %v356_v62 = vrot.slane %v277_v12, 1  ;;  %v357_v63 = vrot.slane %v325_v51, 1  ;;  %v439_v44 = vld [vmem:[%s1036_s29 + $0x20] sm:$0xf] }
  0x1b   : > { %v349_v0 = vsel %vm346_vm0, %v347_v56, %v348_v57  ;;  %v352_v1 = vsel %vm346_vm0, %v350_v58, %v351_v59  ;;  %v359_v2 = vrot.slane %v278_v16, 1  ;;  %v360_v3 = vrot.slane %v326_v52, 1  ;;  %v440_v49 = vld [vmem:[%s1036_s29 + $0x28] sm:$0xf]  ;;  %v441_v50 = vld [vmem:[%s1036_s29 + $0x30] sm:$0xf] }
  0x1c   : > { %v355_v4 = vsel %vm346_vm0, %v353_v60, %v354_v61  ;;  %v358_v5 = vsel %vm346_vm0, %v356_v62, %v357_v63  ;;  %v362_v6 = vrot.slane %v279_v17, 1  ;;  %v363_v7 = vrot.slane %v327_v53, 1  ;;  %v442_v51 = vld [vmem:[%s1036_s29 + $0x38] sm:$0xf]  ;;  %v475_v60 = vld [vmem:[%s1016_s26 + $0x4] sm:$0x1] }
  0x1d   : > { %v361_v10 = vsel %vm346_vm0, %v359_v2, %v360_v3  ;;  %v365_v11 = vrot.slane %v280_v18, 1  ;;  %v366_v12 = vrot.slane %v328_v54, 1  ;;  %v368_v13 = vrot.slane %v281_v23, 1  ;;  %v1045_v18 = vld [vmem:[%s1016_s26 + $0x20] sm:$0xf] }
  0x1e   : > { %v364_v15 = vsel %vm346_vm0, %v362_v6, %v363_v7  ;;  %v369_v16 = vrot.slane %v329_v55, 1  ;;  %v379_v17 = vmax.f32 %v988_v31, %v349_v0  ;;  %v380_v19 = vmax.f32 %v992_v35, %v352_v1  ;;  %v476_v61 = vld [vmem:[%s1016_s26 + $0xc] sm:$0x1]  ;;  %v477_v2 = vld [vmem:[%s1016_s26 + $0x14] sm:$0x1] }
  0x1f   : > { %v367_v21 = vsel %vm346_vm0, %v365_v11, %v366_v12  ;;  %v381_v22 = vmax.f32 %v994_v36, %v355_v4  ;;  %v382_v23 = vmax.f32 %v996_v37, %v358_v5  ;;  %v383_v24 = vmax.f32 %v1001_v41, %v361_v10  ;;  %v435_v36 = vld [vmem:[%s1036_s29] sm:$0xf]  ;;  %v436_v37 = vld [vmem:[%s1036_s29 + $0x8] sm:$0xf]  ;;  %v478_v3 = vld [vmem:[%s1016_s26 + $0x1c] sm:$0x1] }
  0x20   : > { %v370_v28 = vsel %vm346_vm0, %v368_v13, %v369_v16  ;;  %v384_v29 = vmax.f32 %v1003_v42, %v364_v15  ;;  %v385_v30 = vmax.f32 %v1005_v43, %v367_v21  ;;  %v411_v31 = vunpack.c.l.bf16 %v1023_v8  ;;  %v437_v42 = vld [vmem:[%s1036_s29 + $0x10] sm:$0xf]  ;;  %v438_v43 = vld [vmem:[%s1036_s29 + $0x18] sm:$0xf]  ;;  %v479_v4 = vld [vmem:[%s1016_s26 + $0x24] sm:$0x1] }
  0x21   : > { %v386_v32 = vmax.f32 %v1010_v48, %v370_v28  ;;  %v412_v33 = vunpack.c.l.bf16 %v1026_v9  ;;  %v413_v34 = vunpack.c.l.bf16 %v1030_v14  ;;  %v414_v35 = vunpack.c.l.bf16 %v1042_v20  ;;  %v480_v9 = vld [vmem:[%s1016_s26 + $0x2c] sm:$0x1]  ;;  %v481_v10 = vld [vmem:[%s1016_s26 + $0x34] sm:$0x1]  ;;  %v482_v11 = vld [vmem:[%s1016_s26 + $0x3c] sm:$0x1] }
  0x22   : > { %v415_v38 = vunpack.c.l.bf16 %v1045_v18  ;;  %v416_v39 = vunpack.c.l.bf16 %v1052_v25  ;;  %v417_v40 = vunpack.c.l.bf16 %v1055_v26  ;;  %v418_v41 = vunpack.c.l.bf16 %v1058_v27 }
  0x23   : > { %v419_v45 = vmax.f32 %v379_v17, %v411_v31  ;;  %v420_v46 = vmax.f32 %v380_v19, %v412_v33  ;;  %v421_v47 = vmax.f32 %v381_v22, %v413_v34  ;;  %v422_v48 = vmax.f32 %v382_v23, %v414_v35 }
  0x24   : > { %v423_v52 = vmax.f32 %v383_v24, %v415_v38  ;;  %v424_v53 = vmax.f32 %v384_v29, %v416_v39  ;;  %v425_v54 = vmax.f32 %v385_v30, %v417_v40  ;;  %v426_v55 = vmax.f32 %v386_v32, %v418_v41 }
  0x25   : > { %v451_v56 = vunpack.c.l.bf16 %v435_v36  ;;  %v452_v57 = vunpack.c.l.bf16 %v436_v37  ;;  %v453_v58 = vunpack.c.l.bf16 %v437_v42  ;;  %v454_v59 = vunpack.c.l.bf16 %v438_v43 }
  0x26   : > { %v455_v62 = vunpack.c.l.bf16 %v439_v44  ;;  %v456_v63 = vunpack.c.l.bf16 %v440_v49  ;;  %v457_v0 = vunpack.c.l.bf16 %v441_v50  ;;  %v458_v1 = vunpack.c.l.bf16 %v442_v51 }
  0x27   : > { %v1091_v5 = vmax.f32 %v419_v45, %v451_v56  ;;  %v1093_v6 = vmax.f32 %v420_v46, %v452_v57  ;;  %v1095_v7 = vmax.f32 %v421_v47, %v453_v58  ;;  %v1097_v8 = vmax.f32 %v422_v48, %v454_v59  ;;  %v1117_v48 = vld [vmem:[%s952_s20 + $0x8] sm:$0xf]  ;;  %v1144_v57 = vld [vmem:[%s952_s20 + $0x30] sm:$0xf]  ;;  %v1147_v58 = vld [vmem:[%s952_s20 + $0x38] sm:$0xf] }
  0x28   : > { %v1102_v12 = vmax.f32 %v423_v52, %v455_v62  ;;  %v1104_v13 = vmax.f32 %v424_v53, %v456_v63  ;;  %v1106_v14 = vmax.f32 %v425_v54, %v457_v0  ;;  %v1108_v15 = vmax.f32 %v426_v55, %v458_v1  ;;  %v1128_v52 = vld [vmem:[%s952_s20 + $0x18] sm:$0xf]  ;;  %v1134_v55 = vld [vmem:[%s952_s20 + $0x20] sm:$0xf]  ;;  %v1137_v56 = vld [vmem:[%s952_s20 + $0x28] sm:$0xf] }
  0x29   : > { %v491_v16 = vunpack.c.l.bf16 %v475_v60  ;;  %v492_v17 = vunpack.c.l.bf16 %v476_v61  ;;  %v493_v19 = vunpack.c.l.bf16 %v477_v2  ;;  %v494_v20 = vunpack.c.l.bf16 %v478_v3  ;;  %v1150_v59 = vld [vmem:[%s952_s20 + $0x40] sm:$0xf] }
  0x2a   : > { %v495_v18 = vunpack.c.l.bf16 %v479_v4  ;;  %v496_v21 = vunpack.c.l.bf16 %v480_v9  ;;  %v497_v22 = vunpack.c.l.bf16 %v481_v10  ;;  %v498_v23 = vunpack.c.l.bf16 %v482_v11  ;;  %v851_v4 = vld [vmem:[%s958_s23 + $0x8] sm:$0xf]  ;;  %v853_v10 = vld [vmem:[%s958_s23 + $0x18] sm:$0xf]  ;;  %v854_v11 = vld [vmem:[%s958_s23 + $0x20] sm:$0xf] }
  0x2b   : > { %v515_v24 = vrot.slane %v411_v31, 1  ;;  %v516_v28 = vrot.slane %v491_v16, 1  ;;  %v518_v29 = vrot.slane %v412_v33, 1  ;;  %v519_v30 = vrot.slane %v492_v17, 1  ;;  %v856_v17 = vld [vmem:[%s958_s23 + $0x30] sm:$0xf] }
  0x2c   : > { %v521_v32 = vrot.slane %v413_v34, 1  ;;  %v522_v36 = vrot.slane %v493_v19, 1  ;;  %v524_v37 = vrot.slane %v414_v35, 1  ;;  %v525_v42 = vrot.slane %v494_v20, 1  ;;  %v1120_v35 = vld [vmem:[%s952_s20 + $0x10] sm:$0xf] }
  0x2d   : > { %v517_v43 = vsel %vm346_vm0, %v515_v24, %v516_v28  ;;  %v520_v44 = vsel %vm346_vm0, %v518_v29, %v519_v30  ;;  %v527_v45 = vrot.slane %v415_v38, 1  ;;  %v528_v46 = vrot.slane %v495_v18, 1  ;;  %v857_v19 = vld [vmem:[%s958_s23 + $0x38] sm:$0xf]  ;;  %v858_v20 = vld [vmem:[%s958_s23 + $0x40] sm:$0xf] }
  0x2e   : > { %v523_v47 = vsel %vm346_vm0, %v521_v32, %v522_v36  ;;  %v526_v31 = vsel %vm346_vm0, %v524_v37, %v525_v42  ;;  %v530_v33 = vrot.slane %v416_v39, 1  ;;  %v531_v34 = vrot.slane %v496_v21, 1  ;;  %v859_v32 = vld [vmem:[%s952_s20 + $0xc] sm:$0x1]  ;;  %v860_v36 = vld [vmem:[%s952_s20 + $0x14] sm:$0x1] }
  0x2f   : > { %v529_v49 = vsel %vm346_vm0, %v527_v45, %v528_v46  ;;  %v533_v38 = vrot.slane %v417_v40, 1  ;;  %v534_v50 = vrot.slane %v497_v22, 1  ;;  %v536_v51 = vrot.slane %v418_v41, 1  ;;  %v861_v45 = vld [vmem:[%s952_s20 + $0x1c] sm:$0x1] }
  0x30   : > { %v532_v25 = vsel %vm346_vm0, %v530_v33, %v531_v34  ;;  %v537_v39 = vrot.slane %v498_v23, 1  ;;  %v547_v53 = vmax.f32 %v1091_v5, %v517_v43  ;;  %v548_v54 = vmax.f32 %v1093_v6, %v520_v44  ;;  %v852_v5 = vld [vmem:[%s958_s23 + $0x10] sm:$0xf]  ;;  %v862_v46 = vld [vmem:[%s952_s20 + $0x24] sm:$0x1] }
  0x31   : > { %v535_v26 = vsel %vm346_vm0, %v533_v38, %v534_v50  ;;  %v549_v27 = vmax.f32 %v1095_v7, %v523_v47  ;;  %v550_v40 = vmax.f32 %v1097_v8, %v526_v31  ;;  %v551_v41 = vmax.f32 %v1102_v12, %v529_v49  ;;  %v855_v12 = vld [vmem:[%s958_s23 + $0x28] sm:$0xf]  ;;  %v863_v47 = vld [vmem:[%s952_s20 + $0x2c] sm:$0x1]  ;;  %v865_v49 = vld [vmem:[%s952_s20 + $0x3c] sm:$0x1] }
  0x32   : > { %v538_v60 = vsel %vm346_vm0, %v536_v51, %v537_v39  ;;  %v552_v61 = vmax.f32 %v1104_v13, %v532_v25  ;;  %v553_v62 = vmax.f32 %v1106_v14, %v535_v26  ;;  %v580_v63 = vunpack.c.l.bf16 %v1117_v48  ;;  %v866_v38 = vld [vmem:[%s952_s20 + $0x44] sm:$0x1] }
  0x33   : > { %v554_v0 = vmax.f32 %v1108_v15, %v538_v60  ;;  %v581_v1 = vunpack.c.l.bf16 %v1120_v35  ;;  %v582_v2 = vunpack.c.l.bf16 %v1128_v52  ;;  %v583_v3 = vunpack.c.l.bf16 %v1134_v55  ;;  %v864_v35 = vld [vmem:[%s952_s20 + $0x34] sm:$0x1] }
  0x34   : > { %v584_v6 = vunpack.c.l.bf16 %v1137_v56  ;;  %v585_v7 = vunpack.c.l.bf16 %v1144_v57  ;;  %v586_v8 = vunpack.c.l.bf16 %v1147_v58  ;;  %v587_v9 = vunpack.c.l.bf16 %v1150_v59 }
  0x35   : > { %v588_v13 = vmax.f32 %v547_v53, %v580_v63  ;;  %v589_v14 = vmax.f32 %v548_v54, %v581_v1  ;;  %v590_v15 = vmax.f32 %v549_v27, %v582_v2  ;;  %v591_v16 = vmax.f32 %v550_v40, %v583_v3 }
  0x36   : > { %v592_v18 = vmax.f32 %v551_v41, %v584_v6  ;;  %v593_v21 = vmax.f32 %v552_v61, %v585_v7  ;;  %v594_v22 = vmax.f32 %v553_v62, %v586_v8  ;;  %v595_v23 = vmax.f32 %v554_v0, %v587_v9 }
  0x37   : > { %v621_v24 = vunpack.c.l.bf16 %v851_v4  ;;  %v622_v28 = vunpack.c.l.bf16 %v852_v5  ;;  %v623_v29 = vunpack.c.l.bf16 %v853_v10  ;;  %v624_v30 = vunpack.c.l.bf16 %v854_v11 }
  0x38   : > { %v625_v37 = vunpack.c.l.bf16 %v855_v12  ;;  %v626_v42 = vunpack.c.l.bf16 %v856_v17  ;;  %v627_v43 = vunpack.c.l.bf16 %v857_v19  ;;  %v628_v44 = vunpack.c.l.bf16 %v858_v20 }
  0x39   : > { %v629_v31 = vmax.f32 %v588_v13, %v621_v24  ;;  %v630_v33 = vmax.f32 %v589_v14, %v622_v28  ;;  %v631_v34 = vmax.f32 %v590_v15, %v623_v29  ;;  %v632_v48 = vmax.f32 %v591_v16, %v624_v30 }
  0x3a   : > { %v633_v50 = vmax.f32 %v592_v18, %v625_v37  ;;  %v634_v51 = vmax.f32 %v593_v21, %v626_v42  ;;  %v635_v52 = vmax.f32 %v594_v22, %v627_v43  ;;  %v636_v25 = vmax.f32 %v595_v23, %v628_v44 }
  0x3b   : > { %v661_v39 = vunpack.c.l.bf16 %v859_v32  ;;  %v662_v53 = vunpack.c.l.bf16 %v860_v36  ;;  %v663_v54 = vunpack.c.l.bf16 %v861_v45  ;;  %v664_v55 = vunpack.c.l.bf16 %v862_v46 }
  0x3c   : > { %v665_v56 = vunpack.c.l.bf16 %v863_v47  ;;  %v666_v26 = vunpack.c.l.bf16 %v864_v35  ;;  %v667_v27 = vunpack.c.l.bf16 %v865_v49  ;;  %v668_v40 = vunpack.c.l.bf16 %v866_v38 }
  0x3d   : > { %v685_v41 = vrot.slane %v580_v63, 1  ;;  %v686_v60 = vrot.slane %v661_v39, 1  ;;  %v688_v61 = vrot.slane %v581_v1, 1  ;;  %v689_v62 = vrot.slane %v662_v53, 1 }
  0x3e   : > { %v691_v0 = vrot.slane %v582_v2, 1  ;;  %v692_v4 = vrot.slane %v663_v54, 1  ;;  %v694_v5 = vrot.slane %v583_v3, 1  ;;  %v695_v10 = vrot.slane %v664_v55, 1 }
  0x3f   : > { %v687_v11 = vsel %vm346_vm0, %v685_v41, %v686_v60  ;;  %v690_v12 = vsel %vm346_vm0, %v688_v61, %v689_v62  ;;  %v697_v13 = vrot.slane %v584_v6, 1  ;;  %v698_v14 = vrot.slane %v665_v56, 1 }
  0x40   : > { %v693_v15 = vsel %vm346_vm0, %v691_v0, %v692_v4  ;;  %v696_v16 = vsel %vm346_vm0, %v694_v5, %v695_v10  ;;  %v700_v63 = vrot.slane %v585_v7, 1  ;;  %v701_v1 = vrot.slane %v666_v26, 1 }
  0x41   : > { %v699_v2 = vsel %vm346_vm0, %v697_v13, %v698_v14  ;;  %v703_v3 = vrot.slane %v586_v8, 1  ;;  %v704_v17 = vrot.slane %v667_v27, 1  ;;  %v706_v19 = vrot.slane %v587_v9, 1 }
  0x42   : > { %v702_v6 = vsel %vm346_vm0, %v700_v63, %v701_v1  ;;  %v707_v20 = vrot.slane %v668_v40, 1  ;;  %v717_v18 = vmax.f32 %v629_v31, %v687_v11  ;;  %v718_v21 = vmax.f32 %v630_v33, %v690_v12 }
  0x43   : > { %v705_v57 = vsel %vm346_vm0, %v703_v3, %v704_v17  ;;  %v719_v7 = vmax.f32 %v631_v34, %v693_v15  ;;  %v720_v22 = vmax.f32 %v632_v48, %v696_v16  ;;  %v721_v23 = vmax.f32 %v633_v50, %v699_v2 }
  0x44   : > { %v708_v58 = vsel %vm346_vm0, %v706_v19, %v707_v20  ;;  %v722_v8 = vmax.f32 %v634_v51, %v702_v6  ;;  %v723_v24 = vmax.f32 %v635_v52, %v705_v57  ;;  %v873_v59 = vpack.c.bf16 %v718_v21, %v717_v18 }
  0x45   : > { %v724_v9 = vmax.f32 %v636_v25, %v708_v58  ;;  %v878_v28 = vpack.c.bf16 %v720_v22, %v719_v7 }
  0x46   : > { %874 = vst [vmem:[%s257_s7] sm:$0xff] %v873_v59   ;;  %v883_v29 = vpack.c.bf16 %v722_v8, %v721_v23 }
  0x47   : > { %890 = vst [vmem:[%s257_s7 + $0x8] sm:$0xff] %v878_v28   ;;  %v888_v30 = vpack.c.bf16 %v724_v9, %v723_v24 }
  0x48   : > { %891 = vst [vmem:[%s257_s7 + $0x10] sm:$0xff] %v883_v29  }
  0x49   : > { %892 = vst [vmem:[%s257_s7 + $0x18] sm:$0xff] %v888_v30  }
  0x4a PF: > { %s14_s15 = sadd.s32 1, %s908_s15  }
  0x4b   : > { %p11_p4 = scmp.ge.s32.totalorder %s14_s15, 4  }
  0x4d   :  { %13 = sbr.rel (!%p11_p4) target bundleno = 1 (0x1), region = 77 }

// kernel: _lambda_.51
= control target key start
LH: loop header
LB: loop body
LE: loop exit
PB: predicated region body
PF: predicated region fallthrough
CT: control target
= control target key end

     0   :  { %s1709_s15 = smov 0   ;;  %s1711_s16 = smov 0   ;;  %s1955_s0 = inlined_call_operand.vmem [shape: bf16[512,256], index: 0, kind: input, shape index: {}]   ;;  %s1956_s1 = inlined_call_operand.vmem [shape: bf16[256,128], index: 1, kind: input, shape index: {}]   ;;  %s1957_s2 = inlined_call_operand.vmem [shape: f32[1,128], index: 2, kind: input, shape index: {}]   ;;  %s1958_s3 = inlined_call_operand.vmem [shape: f32[1,128], index: 3, kind: input, shape index: {}]   ;;  %s1959_s4 = inlined_call_operand.vmem [shape: bf16[512,128], index: 4, kind: output, shape index: {}]  }
   0x1   :  { %s1713_s17 = smov 0  }
   0x2 LB: > { %s29_s18 = sadd.s32 1, %s1678_s16  ;;  %p1274_p0 = scmp.ge.s32.totalorder %s1682_s17, 1  ;;  %s1682_s17 = sphi %s1713_s17, %s14_s17   ;;  %s1678_s16 = sphi %s1711_s16, %s1961_s16   ;;  %s1674_s15 = sphi %s1709_s15, %s1960_s15  }
   0x3   : > { %p31_p1 = scmp.ge.s32.totalorder %s29_s18, 2  ;;  %p224_p2 = scmp.lt.s32.totalorder %s1682_s17, 3 }
   0x5   : > { %s1963_s18 = smov (%p31_p1, %s29_s18), 0  ;;  %p225_p3 = pnand %p1274_p0, %p224_p2 }
   0x6   : > { %s1275_s5 = sshll.u32 (!%p225_p3), %s1674_s15, 5 }
   0x7   : > { %228 = sbr.rel (%p225_p3) target bundleno = 308 (0x134), region = 36  ;;  %p274_p4 = scmp.lt.s32.totalorder (!%p225_p3), %s1275_s5, 63 }
   0xc   : > { %v1514_v0 = vld [vmem:[%s1956_s1 + $0x38] sm:$0xff]  ;;  %v1513_v2 = vld [vmem:[%s1956_s1 + $0x30] sm:$0xff]  ;;  %v1512_v4 = vld [vmem:[%s1956_s1 + $0x28] sm:$0xff]  ;;  %s1965_s5 = smov (!%p274_p4, %s1275_s5), 63 }
   0xd   : > { %v1522_v1 = vld [vmem:[%s1956_s1 + $0x78] sm:$0xff]  ;;  %696 = vmatpush.bf16.msra.mxu0 %v1514_v0  ;;  %1618 = vmatpush.bf16.msra.mxu2 %v1514_v0  ;;  %v1521_v3 = vld [vmem:[%s1956_s1 + $0x70] sm:$0xff]  ;;  %v1520_v5 = vld [vmem:[%s1956_s1 + $0x68] sm:$0xff]  ;;  %s1474_s21 = sshll.u32 %s1965_s5, 3  ;;  %s1279_s12 = sshll.u32 %s1965_s5, 2 }
   0xe   : > { %785 = vmatpush.bf16.msra.mxu1 %v1522_v1  ;;  %1626 = vmatpush.bf16.msra.mxu3 %v1522_v1  ;;  %v1511_v6 = vld [vmem:[%s1956_s1 + $0x20] sm:$0xff]  ;;  %v1510_v8 = vld [vmem:[%s1956_s1 + $0x18] sm:$0xff]  ;;  %v1509_v10 = vld [vmem:[%s1956_s1 + $0x10] sm:$0xff]  ;;  %s1775_s26 = scalar_lea.vmem %s1955_s0, %s1474_s21  ;;  %s1869_s15 = scalar_lea.vmem %s1959_s4, %s1279_s12 }
   0xf   : > { %v1519_v7 = vld [vmem:[%s1956_s1 + $0x60] sm:$0xff]  ;;  %v1518_v9 = vld [vmem:[%s1956_s1 + $0x58] sm:$0xff]  ;;  %v1517_v11 = vld [vmem:[%s1956_s1 + $0x50] sm:$0xff] }
  0x10   : > { %v1508_v12 = vld [vmem:[%s1956_s1 + $0x8] sm:$0xff]  ;;  %v1507_v14 = vld [vmem:[%s1956_s1] sm:$0xff]  ;;  %v1290_v28 = vld [vmem:[%s1775_s26 + $0x10] sm:$0xf] }
  0x11   : > { %697 = vmatpush.bf16.msra.mxu0 %v1513_v2  ;;  %1619 = vmatpush.bf16.msra.mxu2 %v1513_v2  ;;  %v1516_v13 = vld [vmem:[%s1956_s1 + $0x48] sm:$0xff]  ;;  %v1515_v15 = vld [vmem:[%s1956_s1 + $0x40] sm:$0xff]  ;;  %v1478_v29 = vld [vmem:[%s1775_s26 + $0x14] sm:$0xf0] }
  0x12   : > { %786 = vmatpush.bf16.msra.mxu1 %v1521_v3  ;;  %1627 = vmatpush.bf16.msra.mxu3 %v1521_v3  ;;  %v1282_v16 = vld [vmem:[%s1775_s26] sm:$0xf]  ;;  %v1476_v17 = vld [vmem:[%s1775_s26 + $0x4] sm:$0xf0]  ;;  %v1475_v20 = vld [vmem:[%s1775_s26 + $0x4] sm:$0xf]  ;;  %v1291_v36 = vor.u32 %v1478_v29, %v1290_v28 }
  0x13   : > { %v1346_v18 = vld [vmem:[%s1775_s26 + $0x80] sm:$0xf]  ;;  %v1492_v19 = vld [vmem:[%s1775_s26 + $0x84] sm:$0xf0]  ;;  %v1284_v21 = vld [vmem:[%s1775_s26 + $0x8] sm:$0xf0]  ;;  %v1283_v24 = vor.u32 %v1476_v17, %v1282_v16 }
  0x14   : > { %v1491_v22 = vld [vmem:[%s1775_s26 + $0x84] sm:$0xf]  ;;  %v1348_v23 = vld [vmem:[%s1775_s26 + $0x88] sm:$0xf0]  ;;  %v1347_v25 = vor.u32 %v1492_v19, %v1346_v18  ;;  %v1287_v26 = vor.u32 %v1475_v20, %v1284_v21  ;;  %v1354_v30 = vld [vmem:[%s1775_s26 + $0x90] sm:$0xf] }
  0x15   : > { %698 = vmatpush.bf16.msra.mxu0 %v1512_v4  ;;  %1620 = vmatpush.bf16.msra.mxu2 %v1512_v4  ;;  %v1351_v27 = vor.u32 %v1491_v22, %v1348_v23  ;;  %v1494_v31 = vld [vmem:[%s1775_s26 + $0x94] sm:$0xf0]  ;;  %v1477_v32 = vld [vmem:[%s1775_s26 + $0x14] sm:$0xf]  ;;  %v1292_v33 = vld [vmem:[%s1775_s26 + $0x18] sm:$0xf0] }
  0x16   : > { %787 = vmatpush.bf16.msra.mxu1 %v1520_v5  ;;  %1628 = vmatpush.bf16.msra.mxu3 %v1520_v5  ;;  %v1493_v34 = vld [vmem:[%s1775_s26 + $0x94] sm:$0xf]  ;;  %v1356_v35 = vld [vmem:[%s1775_s26 + $0x98] sm:$0xf0]  ;;  %v1355_v37 = vor.u32 %v1494_v31, %v1354_v30  ;;  %v1295_v38 = vor.u32 %v1477_v32, %v1292_v33  ;;  %v1298_v40 = vld [vmem:[%s1775_s26 + $0x20] sm:$0xf] }
  0x17   : > { %v1359_v39 = vor.u32 %v1493_v34, %v1356_v35  ;;  %v1480_v41 = vld [vmem:[%s1775_s26 + $0x24] sm:$0xf0]  ;;  %v1362_v42 = vld [vmem:[%s1775_s26 + $0xa0] sm:$0xf]  ;;  %v1479_v44 = vld [vmem:[%s1775_s26 + $0x24] sm:$0xf] }
  0x18   : > { %v1496_v43 = vld [vmem:[%s1775_s26 + $0xa4] sm:$0xf0]  ;;  %v1300_v45 = vld [vmem:[%s1775_s26 + $0x28] sm:$0xf0]  ;;  %v1495_v46 = vld [vmem:[%s1775_s26 + $0xa4] sm:$0xf]  ;;  %v1299_v48 = vor.u32 %v1480_v41, %v1298_v40 }
  0x19   : > { %699 = vmatpush.bf16.msra.mxu0 %v1511_v6  ;;  %1621 = vmatpush.bf16.msra.mxu2 %v1511_v6  ;;  %v1364_v47 = vld [vmem:[%s1775_s26 + $0xa8] sm:$0xf0]  ;;  %v1363_v49 = vor.u32 %v1496_v43, %v1362_v42  ;;  %v1303_v50 = vor.u32 %v1479_v44, %v1300_v45  ;;  %v1306_v52 = vld [vmem:[%s1775_s26 + $0x30] sm:$0xf]  ;;  %v1482_v53 = vld [vmem:[%s1775_s26 + $0x34] sm:$0xf0] }
  0x1a   : > { %788 = vmatpush.bf16.msra.mxu1 %v1519_v7  ;;  %1629 = vmatpush.bf16.msra.mxu3 %v1519_v7  ;;  %v1367_v51 = vor.u32 %v1495_v46, %v1364_v47  ;;  %v1370_v54 = vld [vmem:[%s1775_s26 + $0xb0] sm:$0xf]  ;;  %v1498_v55 = vld [vmem:[%s1775_s26 + $0xb4] sm:$0xf0]  ;;  %v1481_v56 = vld [vmem:[%s1775_s26 + $0x34] sm:$0xf]  ;;  %v1307_v60 = vor.u32 %v1482_v53, %v1306_v52 }
  0x1b   : > { %v1308_v57 = vld [vmem:[%s1775_s26 + $0x38] sm:$0xf0]  ;;  %v1497_v58 = vld [vmem:[%s1775_s26 + $0xb4] sm:$0xf]  ;;  %v1371_v61 = vor.u32 %v1498_v55, %v1370_v54  ;;  %v1314_v0 = vld [vmem:[%s1775_s26 + $0x40] sm:$0xf] }
  0x1c   : > { %v1372_v59 = vld [vmem:[%s1775_s26 + $0xb8] sm:$0xf0]  ;;  %v1311_v62 = vor.u32 %v1481_v56, %v1308_v57  ;;  %v1484_v1 = vld [vmem:[%s1775_s26 + $0x44] sm:$0xf0]  ;;  %v1378_v2 = vld [vmem:[%s1775_s26 + $0xc0] sm:$0xf] }
  0x1d   : > { %700 = vmatpush.bf16.msra.mxu0 %v1510_v8  ;;  %1622 = vmatpush.bf16.msra.mxu2 %v1510_v8  ;;  %v1375_v63 = vor.u32 %v1497_v58, %v1372_v59  ;;  %v1500_v3 = vld [vmem:[%s1775_s26 + $0xc4] sm:$0xf0]  ;;  %v1483_v4 = vld [vmem:[%s1775_s26 + $0x44] sm:$0xf]  ;;  %v1316_v5 = vld [vmem:[%s1775_s26 + $0x48] sm:$0xf0]  ;;  %v1315_v8 = vor.u32 %v1484_v1, %v1314_v0 }
  0x1e   : > { %789 = vmatpush.bf16.msra.mxu1 %v1518_v9  ;;  %1630 = vmatpush.bf16.msra.mxu3 %v1518_v9  ;;  %v1499_v6 = vld [vmem:[%s1775_s26 + $0xc4] sm:$0xf]  ;;  %v1380_v7 = vld [vmem:[%s1775_s26 + $0xc8] sm:$0xf0]  ;;  %v1379_v9 = vor.u32 %v1500_v3, %v1378_v2  ;;  %v1485_v16 = vld [vmem:[%s1775_s26 + $0x54] sm:$0xf] }
  0x1f   : > { %v1324_v17 = vld [vmem:[%s1775_s26 + $0x58] sm:$0xf0]  ;;  %v1501_v18 = vld [vmem:[%s1775_s26 + $0xd4] sm:$0xf]  ;;  %v1487_v28 = vld [vmem:[%s1775_s26 + $0x64] sm:$0xf] }
  0x20   : > { %v1388_v19 = vld [vmem:[%s1775_s26 + $0xd8] sm:$0xf0]  ;;  %v1327_v22 = vor.u32 %v1485_v16, %v1324_v17  ;;  %v1332_v29 = vld [vmem:[%s1775_s26 + $0x68] sm:$0xf0]  ;;  %v1503_v30 = vld [vmem:[%s1775_s26 + $0xe4] sm:$0xf] }
  0x21   : > { %701 = vmatpush.bf16.msra.mxu0 %v1509_v10  ;;  %1623 = vmatpush.bf16.msra.mxu2 %v1509_v10  ;;  %v1319_v10 = vor.u32 %v1483_v4, %v1316_v5  ;;  %v1391_v23 = vor.u32 %v1501_v18, %v1388_v19  ;;  %v1396_v31 = vld [vmem:[%s1775_s26 + $0xe8] sm:$0xf0]  ;;  %v1335_v34 = vor.u32 %v1487_v28, %v1332_v29  ;;  %v1489_v40 = vld [vmem:[%s1775_s26 + $0x74] sm:$0xf]  ;;  %v1340_v41 = vld [vmem:[%s1775_s26 + $0x78] sm:$0xf0] }
  0x22   : > { %790 = vmatpush.bf16.msra.mxu1 %v1517_v11  ;;  %1631 = vmatpush.bf16.msra.mxu3 %v1517_v11  ;;  %v1383_v11 = vor.u32 %v1499_v6, %v1380_v7  ;;  %v1399_v35 = vor.u32 %v1503_v30, %v1396_v31  ;;  %v1505_v42 = vld [vmem:[%s1775_s26 + $0xf4] sm:$0xf]  ;;  %v1404_v43 = vld [vmem:[%s1775_s26 + $0xf8] sm:$0xf0]  ;;  %v1343_v46 = vor.u32 %v1489_v40, %v1340_v41  ;;  %v1859_v55 = vld [vmem:[%s1958_s3] ss:$0 sm:$0xff] }
  0x23   : > { %v1407_v47 = vor.u32 %v1505_v42, %v1404_v43 }
  0x25   : > { %702 = vmatpush.bf16.msra.mxu0 %v1508_v12  ;;  %1624 = vmatpush.bf16.msra.mxu2 %v1508_v12  ;;  %v1322_v12 = vld [vmem:[%s1775_s26 + $0x50] sm:$0xf] }
  0x26   : > { %791 = vmatpush.bf16.msra.mxu1 %v1516_v13  ;;  %1632 = vmatpush.bf16.msra.mxu3 %v1516_v13  ;;  %v1486_v13 = vld [vmem:[%s1775_s26 + $0x54] sm:$0xf0] }
  0x27   : > { %v1323_v20 = vor.u32 %v1486_v13, %v1322_v12 }
  0x29   : > { %703 = vmatpush.bf16.msra.mxu0 %v1507_v14  ;;  %1625 = vmatpush.bf16.msra.mxu2 %v1507_v14  ;;  %v1386_v14 = vld [vmem:[%s1775_s26 + $0xd0] sm:$0xf] }
  0x2a   : > { %792 = vmatpush.bf16.msra.mxu1 %v1515_v15  ;;  %1633 = vmatpush.bf16.msra.mxu3 %v1515_v15  ;;  %v1502_v15 = vld [vmem:[%s1775_s26 + $0xd4] sm:$0xf0] }
  0x2b   : > { %v1387_v21 = vor.u32 %v1502_v15, %v1386_v14 }
  0x2c   : > { %704 = vmatmul.bf16.vlgmr.msra.gmra.mxu0 %v1283_v24  ;;  %744 = vmatmul.bf16.vlgmr.msra.gmra.mxu2 %v1347_v25  ;;  %v1330_v24 = vld [vmem:[%s1775_s26 + $0x60] sm:$0xf]  ;;  %v1488_v25 = vld [vmem:[%s1775_s26 + $0x64] sm:$0xf0] }
  0x2d   : > { %793 = vmatmul.bf16.vlgmr.msra.gmra.mxu1 %v1287_v26  ;;  %833 = vmatmul.bf16.vlgmr.msra.gmra.mxu3 %v1351_v27  ;;  %v1394_v26 = vld [vmem:[%s1775_s26 + $0xe0] sm:$0xf]  ;;  %v1504_v27 = vld [vmem:[%s1775_s26 + $0xe4] sm:$0xf0]  ;;  %v1331_v32 = vor.u32 %v1488_v25, %v1330_v24 }
  0x2e   : > { %v1395_v33 = vor.u32 %v1504_v27, %v1394_v26 }
  0x3c   : > { %709 = vmatmul.bf16.gmra.mxu0 %v1291_v36  ;;  %749 = vmatmul.bf16.gmra.mxu2 %v1355_v37  ;;  %v1338_v36 = vld [vmem:[%s1775_s26 + $0x70] sm:$0xf]  ;;  %v1490_v37 = vld [vmem:[%s1775_s26 + $0x74] sm:$0xf0] }
  0x3d   : > { %798 = vmatmul.bf16.gmra.mxu1 %v1295_v38  ;;  %838 = vmatmul.bf16.gmra.mxu3 %v1359_v39  ;;  %v1402_v38 = vld [vmem:[%s1775_s26 + $0xf0] sm:$0xf]  ;;  %v1506_v39 = vld [vmem:[%s1775_s26 + $0xf4] sm:$0xf0]  ;;  %v1339_v44 = vor.u32 %v1490_v37, %v1338_v36 }
  0x3e   : > { %v1403_v45 = vor.u32 %v1506_v39, %v1402_v38 }
  0x4c   : > { %714 = vmatmul.bf16.gmra.mxu0 %v1299_v48  ;;  %754 = vmatmul.bf16.gmra.mxu2 %v1363_v49 }
  0x4d   : > { %803 = vmatmul.bf16.gmra.mxu1 %v1303_v50  ;;  %843 = vmatmul.bf16.gmra.mxu3 %v1367_v51  ;;  %v1853_v51 = vld [vmem:[%s1957_s2] ss:$0 sm:$0xff] }
  0x5c   : > { %719 = vmatmul.bf16.gmra.mxu0 %v1307_v60  ;;  %759 = vmatmul.bf16.gmra.mxu2 %v1371_v61 }
  0x5d   : > { %808 = vmatmul.bf16.gmra.mxu1 %v1311_v62  ;;  %848 = vmatmul.bf16.gmra.mxu3 %v1375_v63 }
  0x6c   : > { %724 = vmatmul.bf16.gmra.mxu0 %v1315_v8  ;;  %764 = vmatmul.bf16.gmra.mxu2 %v1379_v9 }
  0x6d   : > { %813 = vmatmul.bf16.gmra.mxu1 %v1319_v10  ;;  %853 = vmatmul.bf16.gmra.mxu3 %v1383_v11 }
  0x7c   : > { %729 = vmatmul.bf16.gmra.mxu0 %v1323_v20  ;;  %769 = vmatmul.bf16.gmra.mxu2 %v1387_v21 }
  0x7d   : > { %818 = vmatmul.bf16.gmra.mxu1 %v1327_v22  ;;  %858 = vmatmul.bf16.gmra.mxu3 %v1391_v23 }
  0x8c   : > { %734 = vmatmul.bf16.gmra.mxu0 %v1331_v32  ;;  %774 = vmatmul.bf16.gmra.mxu2 %v1395_v33 }
  0x8d   : > { %823 = vmatmul.bf16.gmra.mxu1 %v1335_v34  ;;  %863 = vmatmul.bf16.gmra.mxu3 %v1399_v35 }
  0x9c   : > { %739 = vmatmul.bf16.gmra.mxu0 %v1339_v44  ;;  %779 = vmatmul.bf16.gmra.mxu2 %v1403_v45 }
  0x9d   : > { %828 = vmatmul.bf16.gmra.mxu1 %v1343_v46  ;;  %868 = vmatmul.bf16.gmra.mxu3 %v1407_v47 }
  0xa9   : > { %v705_v48 = vpop.f32.mrf.mxu0 }
  0xaa   : > { %v794_v49 = vpop.f32.mrf.mxu1 }
  0xab   : > { %v795_v50 = vadd.f32 %v794_v49, %v705_v48 }
  0xad   : > { %v977_v54 = vmul.f32 %v1853_v51, %v795_v50 }
  0xaf   : > { %v745_v52 = vpop.f32.mrf.mxu2  ;;  %v1013_v60 = vadd.f32 %v1859_v55, %v977_v54 }
  0xb0   : > { %v834_v53 = vpop.f32.mrf.mxu3 }
  0xb1   : > { %v707_v56 = vpop.f32.mrf.mxu0  ;;  %v835_v58 = vadd.f32 %v834_v53, %v745_v52  ;;  %v1045_v2 = vmax.f32 %v1013_v60, 0.0 }
  0xb2   : > { %v796_v57 = vpop.f32.mrf.mxu1 }
  0xb3   : > { %v797_v59 = vadd.f32 %v796_v57, %v707_v56  ;;  %v993_v62 = vmul.f32 %v1853_v51, %v835_v58 }
  0xb5   : > { %v978_v61 = vmul.f32 %v1853_v51, %v797_v59  ;;  %v1029_v7 = vadd.f32 %v1859_v55, %v993_v62 }
  0xb7   : > { %v1014_v63 = vadd.f32 %v1859_v55, %v978_v61  ;;  %v747_v0 = vpop.f32.mrf.mxu2  ;;  %v1061_v12 = vmax.f32 %v1029_v7, 0.0 }
  0xb8   : > { %v836_v1 = vpop.f32.mrf.mxu3 }
  0xb9   : > { %v1046_v3 = vmax.f32 %v1014_v63, 0.0  ;;  %v837_v4 = vadd.f32 %v836_v1, %v747_v0  ;;  %v710_v5 = vpop.f32.mrf.mxu0 }
  0xba   : > { %v799_v6 = vpop.f32.mrf.mxu1 }
  0xbb   : > { %v1526_v8 = vpack.c.bf16 %v1046_v3, %v1045_v2  ;;  %v994_v9 = vmul.f32 %v1853_v51, %v837_v4  ;;  %v800_v11 = vadd.f32 %v799_v6, %v710_v5 }
  0xbd   : > { %1527 = vst [vmem:[%s1869_s15] sm:$0xff] %v1526_v8   ;;  %v1030_v10 = vadd.f32 %v1859_v55, %v994_v9  ;;  %v979_v17 = vmul.f32 %v1853_v51, %v800_v11 }
  0xbf   : > { %v1062_v13 = vmax.f32 %v1030_v10, 0.0  ;;  %v750_v14 = vpop.f32.mrf.mxu2  ;;  %v1015_v22 = vadd.f32 %v1859_v55, %v979_v17 }
  0xc0   : > { %v839_v15 = vpop.f32.mrf.mxu3 }
  0xc1   : > { %v1566_v16 = vpack.c.bf16 %v1062_v13, %v1061_v12  ;;  %v712_v18 = vpop.f32.mrf.mxu0  ;;  %v840_v20 = vadd.f32 %v839_v15, %v750_v14  ;;  %v1047_v28 = vmax.f32 %v1015_v22, 0.0 }
  0xc2   : > { %v801_v19 = vpop.f32.mrf.mxu1 }
  0xc3   : > { %1610 = vst [vmem:[%s1869_s15 + $0x40] sm:$0xff] %v1566_v16   ;;  %v802_v21 = vadd.f32 %v801_v19, %v712_v18  ;;  %v995_v24 = vmul.f32 %v1853_v51, %v840_v20 }
  0xc5   : > { %v980_v23 = vmul.f32 %v1853_v51, %v802_v21  ;;  %v1031_v33 = vadd.f32 %v1859_v55, %v995_v24 }
  0xc7   : > { %v1016_v25 = vadd.f32 %v1859_v55, %v980_v23  ;;  %v752_v26 = vpop.f32.mrf.mxu2  ;;  %v1063_v38 = vmax.f32 %v1031_v33, 0.0 }
  0xc8   : > { %v841_v27 = vpop.f32.mrf.mxu3 }
  0xc9   : > { %v1048_v29 = vmax.f32 %v1016_v25, 0.0  ;;  %v842_v30 = vadd.f32 %v841_v27, %v752_v26  ;;  %v715_v31 = vpop.f32.mrf.mxu0 }
  0xca   : > { %v804_v32 = vpop.f32.mrf.mxu1 }
  0xcb   : > { %v1531_v34 = vpack.c.bf16 %v1048_v29, %v1047_v28  ;;  %v996_v35 = vmul.f32 %v1853_v51, %v842_v30  ;;  %v805_v37 = vadd.f32 %v804_v32, %v715_v31 }
  0xcd   : > { %1603 = vst [vmem:[%s1869_s15 + $0x8] sm:$0xff] %v1531_v34   ;;  %v1032_v36 = vadd.f32 %v1859_v55, %v996_v35  ;;  %v981_v43 = vmul.f32 %v1853_v51, %v805_v37 }
  0xcf   : > { %v1064_v39 = vmax.f32 %v1032_v36, 0.0  ;;  %v755_v40 = vpop.f32.mrf.mxu2  ;;  %v1017_v48 = vadd.f32 %v1859_v55, %v981_v43 }
  0xd0   : > { %v844_v41 = vpop.f32.mrf.mxu3 }
  0xd1   : > { %v1571_v42 = vpack.c.bf16 %v1064_v39, %v1063_v38  ;;  %v717_v44 = vpop.f32.mrf.mxu0  ;;  %v845_v46 = vadd.f32 %v844_v41, %v755_v40  ;;  %v1049_v56 = vmax.f32 %v1017_v48, 0.0 }
  0xd2   : > { %v806_v45 = vpop.f32.mrf.mxu1 }
  0xd3   : > { %1611 = vst [vmem:[%s1869_s15 + $0x48] sm:$0xff] %v1571_v42   ;;  %v807_v47 = vadd.f32 %v806_v45, %v717_v44  ;;  %v997_v50 = vmul.f32 %v1853_v51, %v845_v46 }
  0xd5   : > { %v982_v49 = vmul.f32 %v1853_v51, %v807_v47  ;;  %v1033_v61 = vadd.f32 %v1859_v55, %v997_v50 }
  0xd7   : > { %v1018_v52 = vadd.f32 %v1859_v55, %v982_v49  ;;  %v757_v53 = vpop.f32.mrf.mxu2  ;;  %v1065_v2 = vmax.f32 %v1033_v61, 0.0 }
  0xd8   : > { %v846_v54 = vpop.f32.mrf.mxu3 }
  0xd9   : > { %v1050_v57 = vmax.f32 %v1018_v52, 0.0  ;;  %v847_v58 = vadd.f32 %v846_v54, %v757_v53  ;;  %v720_v59 = vpop.f32.mrf.mxu0 }
  0xda   : > { %v809_v60 = vpop.f32.mrf.mxu1 }
  0xdb   : > { %v1536_v62 = vpack.c.bf16 %v1050_v57, %v1049_v56  ;;  %v998_v63 = vmul.f32 %v1853_v51, %v847_v58  ;;  %v810_v1 = vadd.f32 %v809_v60, %v720_v59 }
  0xdd   : > { %1604 = vst [vmem:[%s1869_s15 + $0x10] sm:$0xff] %v1536_v62   ;;  %v1034_v0 = vadd.f32 %v1859_v55, %v998_v63  ;;  %v983_v7 = vmul.f32 %v1853_v51, %v810_v1 }
  0xdf   : > { %v1066_v3 = vmax.f32 %v1034_v0, 0.0  ;;  %v760_v4 = vpop.f32.mrf.mxu2  ;;  %v1019_v12 = vadd.f32 %v1859_v55, %v983_v7 }
  0xe0   : > { %v849_v5 = vpop.f32.mrf.mxu3 }
  0xe1   : > { %v1576_v6 = vpack.c.bf16 %v1066_v3, %v1065_v2  ;;  %v722_v8 = vpop.f32.mrf.mxu0  ;;  %v850_v10 = vadd.f32 %v849_v5, %v760_v4  ;;  %v1051_v18 = vmax.f32 %v1019_v12, 0.0 }
  0xe2   : > { %v811_v9 = vpop.f32.mrf.mxu1 }
  0xe3   : > { %1612 = vst [vmem:[%s1869_s15 + $0x50] sm:$0xff] %v1576_v6   ;;  %v812_v11 = vadd.f32 %v811_v9, %v722_v8  ;;  %v999_v14 = vmul.f32 %v1853_v51, %v850_v10 }
  0xe5   : > { %v984_v13 = vmul.f32 %v1853_v51, %v812_v11  ;;  %v1035_v23 = vadd.f32 %v1859_v55, %v999_v14 }
  0xe7   : > { %v1020_v15 = vadd.f32 %v1859_v55, %v984_v13  ;;  %v762_v16 = vpop.f32.mrf.mxu2  ;;  %v1067_v28 = vmax.f32 %v1035_v23, 0.0 }
  0xe8   : > { %v851_v17 = vpop.f32.mrf.mxu3 }
  0xe9   : > { %v1052_v19 = vmax.f32 %v1020_v15, 0.0  ;;  %v852_v20 = vadd.f32 %v851_v17, %v762_v16  ;;  %v725_v21 = vpop.f32.mrf.mxu0 }
  0xea   : > { %v814_v22 = vpop.f32.mrf.mxu1 }
  0xeb   : > { %v1541_v24 = vpack.c.bf16 %v1052_v19, %v1051_v18  ;;  %v1000_v25 = vmul.f32 %v1853_v51, %v852_v20  ;;  %v815_v27 = vadd.f32 %v814_v22, %v725_v21 }
  0xed   : > { %1605 = vst [vmem:[%s1869_s15 + $0x18] sm:$0xff] %v1541_v24   ;;  %v1036_v26 = vadd.f32 %v1859_v55, %v1000_v25  ;;  %v985_v33 = vmul.f32 %v1853_v51, %v815_v27 }
  0xef   : > { %v1068_v29 = vmax.f32 %v1036_v26, 0.0  ;;  %v765_v30 = vpop.f32.mrf.mxu2  ;;  %v1021_v38 = vadd.f32 %v1859_v55, %v985_v33 }
  0xf0   : > { %v854_v31 = vpop.f32.mrf.mxu3 }
  0xf1   : > { %v1581_v32 = vpack.c.bf16 %v1068_v29, %v1067_v28  ;;  %v727_v34 = vpop.f32.mrf.mxu0  ;;  %v855_v36 = vadd.f32 %v854_v31, %v765_v30  ;;  %v1053_v44 = vmax.f32 %v1021_v38, 0.0 }
  0xf2   : > { %v816_v35 = vpop.f32.mrf.mxu1 }
  0xf3   : > { %1613 = vst [vmem:[%s1869_s15 + $0x58] sm:$0xff] %v1581_v32   ;;  %v817_v37 = vadd.f32 %v816_v35, %v727_v34  ;;  %v1001_v40 = vmul.f32 %v1853_v51, %v855_v36 }
  0xf5   : > { %v986_v39 = vmul.f32 %v1853_v51, %v817_v37  ;;  %v1037_v49 = vadd.f32 %v1859_v55, %v1001_v40 }
  0xf7   : > { %v1022_v41 = vadd.f32 %v1859_v55, %v986_v39  ;;  %v767_v42 = vpop.f32.mrf.mxu2  ;;  %v1069_v56 = vmax.f32 %v1037_v49, 0.0 }
  0xf8   : > { %v856_v43 = vpop.f32.mrf.mxu3 }
  0xf9   : > { %v1054_v45 = vmax.f32 %v1022_v41, 0.0  ;;  %v857_v46 = vadd.f32 %v856_v43, %v767_v42  ;;  %v730_v47 = vpop.f32.mrf.mxu0 }
  0xfa   : > { %v819_v48 = vpop.f32.mrf.mxu1 }
  0xfb   : > { %v1546_v50 = vpack.c.bf16 %v1054_v45, %v1053_v44  ;;  %v1002_v52 = vmul.f32 %v1853_v51, %v857_v46  ;;  %v820_v54 = vadd.f32 %v819_v48, %v730_v47 }
  0xfd   : > { %1606 = vst [vmem:[%s1869_s15 + $0x20] sm:$0xff] %v1546_v50   ;;  %v1038_v53 = vadd.f32 %v1859_v55, %v1002_v52  ;;  %v987_v61 = vmul.f32 %v1853_v51, %v820_v54 }
  0xff   : > { %v1070_v57 = vmax.f32 %v1038_v53, 0.0  ;;  %v770_v58 = vpop.f32.mrf.mxu2  ;;  %v1023_v2 = vadd.f32 %v1859_v55, %v987_v61 }
 0x100   : > { %v859_v59 = vpop.f32.mrf.mxu3 }
 0x101   : > { %v1586_v60 = vpack.c.bf16 %v1070_v57, %v1069_v56  ;;  %v732_v62 = vpop.f32.mrf.mxu0  ;;  %v860_v0 = vadd.f32 %v859_v59, %v770_v58  ;;  %v1055_v8 = vmax.f32 %v1023_v2, 0.0 }
 0x102   : > { %v821_v63 = vpop.f32.mrf.mxu1 }
 0x103   : > { %1614 = vst [vmem:[%s1869_s15 + $0x60] sm:$0xff] %v1586_v60   ;;  %v822_v1 = vadd.f32 %v821_v63, %v732_v62  ;;  %v1003_v4 = vmul.f32 %v1853_v51, %v860_v0 }
 0x105   : > { %v988_v3 = vmul.f32 %v1853_v51, %v822_v1  ;;  %v1039_v13 = vadd.f32 %v1859_v55, %v1003_v4 }
 0x107   : > { %v1024_v5 = vadd.f32 %v1859_v55, %v988_v3  ;;  %v772_v6 = vpop.f32.mrf.mxu2  ;;  %v1071_v18 = vmax.f32 %v1039_v13, 0.0 }
 0x108   : > { %v861_v7 = vpop.f32.mrf.mxu3 }
 0x109   : > { %v1056_v9 = vmax.f32 %v1024_v5, 0.0  ;;  %v862_v10 = vadd.f32 %v861_v7, %v772_v6  ;;  %v735_v11 = vpop.f32.mrf.mxu0 }
 0x10a   : > { %v824_v12 = vpop.f32.mrf.mxu1 }
 0x10b   : > { %v1551_v14 = vpack.c.bf16 %v1056_v9, %v1055_v8  ;;  %v1004_v15 = vmul.f32 %v1853_v51, %v862_v10  ;;  %v825_v17 = vadd.f32 %v824_v12, %v735_v11 }
 0x10d   : > { %1607 = vst [vmem:[%s1869_s15 + $0x28] sm:$0xff] %v1551_v14   ;;  %v1040_v16 = vadd.f32 %v1859_v55, %v1004_v15  ;;  %v989_v23 = vmul.f32 %v1853_v51, %v825_v17 }
 0x10f   : > { %v1072_v19 = vmax.f32 %v1040_v16, 0.0  ;;  %v775_v20 = vpop.f32.mrf.mxu2  ;;  %v1025_v28 = vadd.f32 %v1859_v55, %v989_v23 }
 0x110   : > { %v864_v21 = vpop.f32.mrf.mxu3 }
 0x111   : > { %v1591_v22 = vpack.c.bf16 %v1072_v19, %v1071_v18  ;;  %v737_v24 = vpop.f32.mrf.mxu0  ;;  %v865_v26 = vadd.f32 %v864_v21, %v775_v20  ;;  %v1057_v34 = vmax.f32 %v1025_v28, 0.0 }
 0x112   : > { %v826_v25 = vpop.f32.mrf.mxu1 }
 0x113   : > { %1615 = vst [vmem:[%s1869_s15 + $0x68] sm:$0xff] %v1591_v22   ;;  %v827_v27 = vadd.f32 %v826_v25, %v737_v24  ;;  %v1005_v30 = vmul.f32 %v1853_v51, %v865_v26 }
 0x115   : > { %v990_v29 = vmul.f32 %v1853_v51, %v827_v27  ;;  %v1041_v39 = vadd.f32 %v1859_v55, %v1005_v30 }
 0x117   : > { %v1026_v31 = vadd.f32 %v1859_v55, %v990_v29  ;;  %v777_v32 = vpop.f32.mrf.mxu2  ;;  %v1073_v44 = vmax.f32 %v1041_v39, 0.0 }
 0x118   : > { %v866_v33 = vpop.f32.mrf.mxu3 }
 0x119   : > { %v1058_v35 = vmax.f32 %v1026_v31, 0.0  ;;  %v867_v36 = vadd.f32 %v866_v33, %v777_v32  ;;  %v740_v37 = vpop.f32.mrf.mxu0 }
 0x11a   : > { %v829_v38 = vpop.f32.mrf.mxu1 }
 0x11b   : > { %v1556_v40 = vpack.c.bf16 %v1058_v35, %v1057_v34  ;;  %v1006_v41 = vmul.f32 %v1853_v51, %v867_v36  ;;  %v830_v43 = vadd.f32 %v829_v38, %v740_v37 }
 0x11d   : > { %1608 = vst [vmem:[%s1869_s15 + $0x30] sm:$0xff] %v1556_v40   ;;  %v1042_v42 = vadd.f32 %v1859_v55, %v1006_v41  ;;  %v991_v49 = vmul.f32 %v1853_v51, %v830_v43 }
 0x11f   : > { %v1074_v45 = vmax.f32 %v1042_v42, 0.0  ;;  %v780_v46 = vpop.f32.mrf.mxu2  ;;  %v1027_v56 = vadd.f32 %v1859_v55, %v991_v49 }
 0x120   : > { %v869_v47 = vpop.f32.mrf.mxu3 }
 0x121   : > { %v1596_v48 = vpack.c.bf16 %v1074_v45, %v1073_v44  ;;  %v742_v50 = vpop.f32.mrf.mxu0  ;;  %v870_v53 = vadd.f32 %v869_v47, %v780_v46  ;;  %v1059_v62 = vmax.f32 %v1027_v56, 0.0 }
 0x122   : > { %v831_v52 = vpop.f32.mrf.mxu1 }
 0x123   : > { %1616 = vst [vmem:[%s1869_s15 + $0x70] sm:$0xff] %v1596_v48   ;;  %v832_v54 = vadd.f32 %v831_v52, %v742_v50  ;;  %v1007_v58 = vmul.f32 %v1853_v51, %v870_v53 }
 0x125   : > { %v992_v57 = vmul.f32 %v1853_v51, %v832_v54  ;;  %v1043_v1 = vadd.f32 %v1859_v55, %v1007_v58 }
 0x127   : > { %v1028_v59 = vadd.f32 %v1859_v55, %v992_v57  ;;  %v782_v60 = vpop.f32.mrf.mxu2  ;;  %v1075_v5 = vmax.f32 %v1043_v1, 0.0 }
 0x128   : > { %v871_v61 = vpop.f32.mrf.mxu3 }
 0x129   : > { %v1060_v63 = vmax.f32 %v1028_v59, 0.0  ;;  %v872_v0 = vadd.f32 %v871_v61, %v782_v60 }
 0x12b   : > { %v1561_v2 = vpack.c.bf16 %v1060_v63, %v1059_v62  ;;  %v1008_v3 = vmul.f32 %v1853_v51, %v872_v0 }
 0x12d   : > { %1609 = vst [vmem:[%s1869_s15 + $0x38] sm:$0xff] %v1561_v2   ;;  %v1044_v4 = vadd.f32 %v1859_v55, %v1008_v3 }
 0x12f   : > { %v1076_v6 = vmax.f32 %v1044_v4, 0.0 }
 0x131   : > { %v1601_v7 = vpack.c.bf16 %v1076_v6, %v1075_v5 }
 0x133   : > { %1617 = vst [vmem:[%s1869_s15 + $0x78] sm:$0xff] %v1601_v7  }
 0x134 PF: > { %s14_s17 = sadd.s32 1, %s1682_s17   ;;  %s1960_s15 = smov %s1678_s16 }
 0x135   : > { %p11_p5 = scmp.ge.s32.totalorder %s14_s17, 4   ;;  %s1961_s16 = smov %s1963_s18 }
 0x137   :  { %13 = sbr.rel (!%p11_p5) target bundleno = 2 (0x2), region = 83 }

// kernel: _lambda_.53
= control target key start
LH: loop header
LB: loop body
LE: loop exit
PB: predicated region body
PF: predicated region fallthrough
CT: control target
= control target key end

     0   :  { %s831_s15 = smov 0   ;;  %s833_s16 = smov 0   ;;  %s904_s0 = inlined_call_operand.vmem [shape: bf16[128,128], index: 0, kind: input, shape index: {}]   ;;  %s905_s1 = inlined_call_operand.vmem [shape: bf16[128,128], index: 1, kind: input, shape index: {}]   ;;  %s906_s2 = inlined_call_operand.vmem [shape: f32[1,128], index: 2, kind: input, shape index: {}]   ;;  %s907_s3 = inlined_call_operand.vmem [shape: f32[1,128], index: 3, kind: input, shape index: {}]   ;;  %s908_s4 = inlined_call_operand.vmem [shape: bf16[128,128], index: 4, kind: output, shape index: {}]  }
   0x1   :  { %s835_s17 = smov 0  }
   0x2 LB: > { %s29_s18 = sadd.s32 1, %s800_s16  ;;  %p642_p0 = scmp.ge.s32.totalorder %s804_s17, 1  ;;  %s804_s17 = sphi %s835_s17, %s14_s17   ;;  %s800_s16 = sphi %s833_s16, %s910_s16   ;;  %s796_s15 = sphi %s831_s15, %s909_s15  }
   0x3   : > { %p31_p1 = scmp.ge.s32.totalorder %s29_s18, 2  ;;  %p221_p2 = scmp.lt.s32.totalorder %s804_s17, 3 }
   0x5   : > { %s912_s18 = smov (%p31_p1, %s29_s18), 0  ;;  %p222_p3 = pnand %p642_p0, %p221_p2 }
   0x6   : > { %s643_s27 = sshll.u32 (!%p222_p3), %s796_s15, 3 }
   0x7   : > { %225 = sbr.rel (%p222_p3) target bundleno = 193 (0xc1), region = 36  ;;  %p268_p4 = scmp.lt.s32.totalorder (!%p222_p3), %s643_s27, 15 }
   0xc   : > { %v708_v0 = vld [vmem:[%s905_s1 + $0x38] sm:$0xff]  ;;  %v707_v1 = vld [vmem:[%s905_s1 + $0x30] sm:$0xff]  ;;  %v706_v2 = vld [vmem:[%s905_s1 + $0x28] sm:$0xff]  ;;  %s914_s27 = smov (!%p268_p4, %s643_s27), 15 }
   0xd   : > { %416 = vmatpush.bf16.msra.mxu0 %v708_v0  ;;  %732 = vmatpush.bf16.msra.mxu1 %v708_v0  ;;  %v705_v3 = vld [vmem:[%s905_s1 + $0x20] sm:$0xff]  ;;  %v704_v4 = vld [vmem:[%s905_s1 + $0x18] sm:$0xff]  ;;  %v703_v5 = vld [vmem:[%s905_s1 + $0x10] sm:$0xff]  ;;  %s644_s8 = sshll.u32 %s914_s27, 2 }
   0xe   : > { %733 = vmatpush.bf16.msra.mxu2 %v708_v0  ;;  %734 = vmatpush.bf16.msra.mxu3 %v708_v0  ;;  %v702_v6 = vld [vmem:[%s905_s1 + $0x8] sm:$0xff]  ;;  %v701_v7 = vld [vmem:[%s905_s1] sm:$0xff]  ;;  %s274_s13 = scalar_lea.vmem %s904_s0, %s644_s8  ;;  %s298_s23 = scalar_lea.vmem %s908_s4, %s644_s8 }
   0xf   : > { %v697_v8 = vld [vmem:[%s274_s13] sm:$0xff]  ;;  %v698_v9 = vld [vmem:[%s274_s13 + $0x8] sm:$0xff]  ;;  %v699_v10 = vld [vmem:[%s274_s13 + $0x10] sm:$0xff] }
  0x10   : > { %v700_v11 = vld [vmem:[%s274_s13 + $0x18] sm:$0xff]  ;;  %v780_v14 = vld [vmem:[%s906_s2] ss:$0 sm:$0xff] }
  0x11   : > { %417 = vmatpush.bf16.msra.mxu0 %v707_v1  ;;  %735 = vmatpush.bf16.msra.mxu1 %v707_v1  ;;  %v781_v16 = vld [vmem:[%s907_s3] ss:$0 sm:$0xff] }
  0x12   : > { %736 = vmatpush.bf16.msra.mxu2 %v707_v1  ;;  %737 = vmatpush.bf16.msra.mxu3 %v707_v1 }
  0x15   : > { %418 = vmatpush.bf16.msra.mxu0 %v706_v2  ;;  %738 = vmatpush.bf16.msra.mxu1 %v706_v2 }
  0x16   : > { %739 = vmatpush.bf16.msra.mxu2 %v706_v2  ;;  %740 = vmatpush.bf16.msra.mxu3 %v706_v2 }
  0x19   : > { %419 = vmatpush.bf16.msra.mxu0 %v705_v3  ;;  %741 = vmatpush.bf16.msra.mxu1 %v705_v3 }
  0x1a   : > { %742 = vmatpush.bf16.msra.mxu2 %v705_v3  ;;  %743 = vmatpush.bf16.msra.mxu3 %v705_v3 }
  0x1d   : > { %420 = vmatpush.bf16.msra.mxu0 %v704_v4  ;;  %744 = vmatpush.bf16.msra.mxu1 %v704_v4 }
  0x1e   : > { %745 = vmatpush.bf16.msra.mxu2 %v704_v4  ;;  %746 = vmatpush.bf16.msra.mxu3 %v704_v4 }
  0x21   : > { %421 = vmatpush.bf16.msra.mxu0 %v703_v5  ;;  %747 = vmatpush.bf16.msra.mxu1 %v703_v5 }
  0x22   : > { %748 = vmatpush.bf16.msra.mxu2 %v703_v5  ;;  %749 = vmatpush.bf16.msra.mxu3 %v703_v5 }
  0x25   : > { %422 = vmatpush.bf16.msra.mxu0 %v702_v6  ;;  %750 = vmatpush.bf16.msra.mxu1 %v702_v6 }
  0x26   : > { %751 = vmatpush.bf16.msra.mxu2 %v702_v6  ;;  %752 = vmatpush.bf16.msra.mxu3 %v702_v6 }
  0x29   : > { %423 = vmatpush.bf16.msra.mxu0 %v701_v7  ;;  %753 = vmatpush.bf16.msra.mxu1 %v701_v7 }
  0x2a   : > { %754 = vmatpush.bf16.msra.mxu2 %v701_v7  ;;  %755 = vmatpush.bf16.msra.mxu3 %v701_v7 }
  0x2c   : > { %424 = vmatmul.bf16.vlgmr.msra.gmra.mxu0 %v697_v8  ;;  %429 = vmatmul.bf16.vlgmr.msra.gmra.mxu1 %v698_v9 }
  0x2d   : > { %434 = vmatmul.bf16.vlgmr.msra.gmra.mxu2 %v699_v10  ;;  %439 = vmatmul.bf16.vlgmr.msra.gmra.mxu3 %v700_v11 }
  0xa9   : > { %v425_v12 = vpop.f32.mrf.mxu0  ;;  %v430_v13 = vpop.f32.mrf.mxu1 }
  0xaa   : > { %v476_v15 = vmul.f32 %v780_v14, %v425_v12  ;;  %v478_v17 = vmul.f32 %v780_v14, %v430_v13 }
  0xac   : > { %v488_v24 = vadd.f32 %v781_v16, %v476_v15  ;;  %v490_v25 = vadd.f32 %v781_v16, %v478_v17 }
  0xb0   : > { %v435_v18 = vpop.f32.mrf.mxu2  ;;  %v440_v19 = vpop.f32.mrf.mxu3 }
  0xb1   : > { %v427_v20 = vpop.f32.mrf.mxu0  ;;  %v432_v21 = vpop.f32.mrf.mxu1  ;;  %v480_v30 = vmul.f32 %v780_v14, %v435_v18  ;;  %v482_v31 = vmul.f32 %v780_v14, %v440_v19 }
  0xb2   : > { %v477_v22 = vmul.f32 %v780_v14, %v427_v20  ;;  %v479_v23 = vmul.f32 %v780_v14, %v432_v21 }
  0xb3   : > { %v492_v36 = vadd.f32 %v781_v16, %v480_v30  ;;  %v494_v37 = vadd.f32 %v781_v16, %v482_v31 }
  0xb4   : > { %v489_v26 = vadd.f32 %v781_v16, %v477_v22  ;;  %v491_v27 = vadd.f32 %v781_v16, %v479_v23 }
  0xb6   : > { %v712_v28 = vpack.c.bf16 %v489_v26, %v488_v24  ;;  %v717_v29 = vpack.c.bf16 %v491_v27, %v490_v25 }
  0xb8   : > { %713 = vst [vmem:[%s298_s23] sm:$0xff] %v712_v28   ;;  %v437_v32 = vpop.f32.mrf.mxu2  ;;  %v442_v33 = vpop.f32.mrf.mxu3 }
  0xb9   : > { %729 = vst [vmem:[%s298_s23 + $0x8] sm:$0xff] %v717_v29   ;;  %v481_v34 = vmul.f32 %v780_v14, %v437_v32  ;;  %v483_v35 = vmul.f32 %v780_v14, %v442_v33 }
  0xbb   : > { %v493_v38 = vadd.f32 %v781_v16, %v481_v34  ;;  %v495_v39 = vadd.f32 %v781_v16, %v483_v35 }
  0xbd   : > { %v722_v40 = vpack.c.bf16 %v493_v38, %v492_v36  ;;  %v727_v41 = vpack.c.bf16 %v495_v39, %v494_v37 }
  0xbf   : > { %730 = vst [vmem:[%s298_s23 + $0x10] sm:$0xff] %v722_v40  }
  0xc0   : > { %731 = vst [vmem:[%s298_s23 + $0x18] sm:$0xff] %v727_v41  }
  0xc1 PF: > { %s14_s17 = sadd.s32 1, %s804_s17   ;;  %s909_s15 = smov %s800_s16 }
  0xc2   : > { %p11_p5 = scmp.ge.s32.totalorder %s14_s17, 4   ;;  %s910_s16 = smov %s912_s18 }
  0xc4   :  { %13 = sbr.rel (!%p11_p5) target bundleno = 2 (0x2), region = 83 }

// kernel: _lambda_.56
= control target key start
LH: loop header
LB: loop body
LE: loop exit
PB: predicated region body
PF: predicated region fallthrough
CT: control target
= control target key end

     0   :  { %s964_s18 = smov 0   ;;  %s966_s19 = smov 0   ;;  %s1038_s0 = inlined_call_operand.vmem [shape: bf16[128,128], index: 0, kind: input, shape index: {}]   ;;  %s1039_s1 = inlined_call_operand.vmem [shape: bf16[128,128], index: 1, kind: input, shape index: {}]   ;;  %s1040_s2 = inlined_call_operand.vmem [shape: f32[1,128], index: 2, kind: input, shape index: {}]   ;;  %s1041_s3 = inlined_call_operand.vmem [shape: f32[1,128], index: 3, kind: input, shape index: {}]   ;;  %s1042_s4 = inlined_call_operand.vmem [shape: bf16[128,128], index: 4, kind: input, shape index: {}]   ;;  %s1043_s5 = inlined_call_operand.vmem [shape: bf16[128,128], index: 5, kind: output, shape index: {}]  }
   0x1   :  { %s968_s20 = smov 0  }
   0x2 LB: > { %s30_s21 = sadd.s32 1, %s928_s19  ;;  %p749_p0 = scmp.ge.s32.totalorder %s932_s20, 1  ;;  %s932_s20 = sphi %s968_s20, %s15_s20   ;;  %s928_s19 = sphi %s966_s19, %s1045_s19   ;;  %s924_s18 = sphi %s964_s18, %s1044_s18  }
   0x3   : > { %p32_p1 = scmp.ge.s32.totalorder %s30_s21, 2  ;;  %p262_p2 = scmp.lt.s32.totalorder %s932_s20, 3 }
   0x5   : > { %s1047_s21 = smov (%p32_p1, %s30_s21), 0  ;;  %p263_p3 = pnand %p749_p0, %p262_p2 }
   0x6   : > { %s750_s30 = sshll.u32 (!%p263_p3), %s924_s18, 3 }
   0x7   : > { %266 = sbr.rel (%p263_p3) target bundleno = 197 (0xc5), region = 40  ;;  %p319_p4 = scmp.lt.s32.totalorder (!%p263_p3), %s750_s30, 15 }
   0xc   : > { %v817_v0 = vld [vmem:[%s1039_s1 + $0x38] sm:$0xff]  ;;  %v816_v1 = vld [vmem:[%s1039_s1 + $0x30] sm:$0xff]  ;;  %v815_v2 = vld [vmem:[%s1039_s1 + $0x28] sm:$0xff]  ;;  %s1049_s30 = smov (!%p319_p4, %s750_s30), 15 }
   0xd   : > { %476 = vmatpush.bf16.msra.mxu0 %v817_v0  ;;  %860 = vmatpush.bf16.msra.mxu1 %v817_v0  ;;  %v814_v3 = vld [vmem:[%s1039_s1 + $0x20] sm:$0xff]  ;;  %v813_v4 = vld [vmem:[%s1039_s1 + $0x18] sm:$0xff]  ;;  %v812_v5 = vld [vmem:[%s1039_s1 + $0x10] sm:$0xff]  ;;  %s1006_s12 = sshll.u32 %s1049_s30, 2 }
   0xe   : > { %861 = vmatpush.bf16.msra.mxu2 %v817_v0  ;;  %862 = vmatpush.bf16.msra.mxu3 %v817_v0  ;;  %v811_v6 = vld [vmem:[%s1039_s1 + $0x8] sm:$0xff]  ;;  %v810_v7 = vld [vmem:[%s1039_s1] sm:$0xff]  ;;  %s325_s17 = scalar_lea.vmem %s1038_s0, %s1006_s12  ;;  %s349_s25 = scalar_lea.vmem %s1042_s4, %s1006_s12 }
   0xf   : > { %v806_v8 = vld [vmem:[%s325_s17] sm:$0xff]  ;;  %v807_v9 = vld [vmem:[%s325_s17 + $0x8] sm:$0xff]  ;;  %v808_v10 = vld [vmem:[%s325_s17 + $0x10] sm:$0xff]  ;;  %s358_s30 = scalar_lea.vmem %s1043_s5, %s1006_s12 }
  0x10   : > { %v809_v11 = vld [vmem:[%s325_s17 + $0x18] sm:$0xff]  ;;  %v908_v12 = vld [vmem:[%s1040_s2] ss:$0 sm:$0xff]  ;;  %v854_v19 = vld [vmem:[%s349_s25 + $0x8] sm:$0xff]  }
  0x11   : > { %477 = vmatpush.bf16.msra.mxu0 %v816_v1  ;;  %863 = vmatpush.bf16.msra.mxu1 %v816_v1  ;;  %v909_v16 = vld [vmem:[%s1041_s3] ss:$0 sm:$0xff]  ;;  %v824_v23 = vunpack.c.l.bf16 %v854_v19  ;;  %v825_v31 = vunpack.c.h.bf16 %v854_v19  ;;  %v855_v36 = vld [vmem:[%s349_s25 + $0x10] sm:$0xff]   ;;  %v856_v37 = vld [vmem:[%s349_s25 + $0x18] sm:$0xff]  }
  0x12   : > { %864 = vmatpush.bf16.msra.mxu2 %v816_v1  ;;  %865 = vmatpush.bf16.msra.mxu3 %v816_v1  ;;  %v819_v18 = vld [vmem:[%s349_s25] sm:$0xff]   ;;  %v828_v43 = vunpack.c.l.bf16 %v855_v36  ;;  %v832_v45 = vunpack.c.l.bf16 %v856_v37  ;;  %v829_v53 = vunpack.c.h.bf16 %v855_v36  ;;  %v833_v55 = vunpack.c.h.bf16 %v856_v37 }
  0x13   : > { %v820_v21 = vunpack.c.l.bf16 %v819_v18  ;;  %v821_v29 = vunpack.c.h.bf16 %v819_v18 }
  0x15   : > { %478 = vmatpush.bf16.msra.mxu0 %v815_v2  ;;  %866 = vmatpush.bf16.msra.mxu1 %v815_v2 }
  0x16   : > { %867 = vmatpush.bf16.msra.mxu2 %v815_v2  ;;  %868 = vmatpush.bf16.msra.mxu3 %v815_v2 }
  0x19   : > { %479 = vmatpush.bf16.msra.mxu0 %v814_v3  ;;  %869 = vmatpush.bf16.msra.mxu1 %v814_v3 }
  0x1a   : > { %870 = vmatpush.bf16.msra.mxu2 %v814_v3  ;;  %871 = vmatpush.bf16.msra.mxu3 %v814_v3 }
  0x1d   : > { %480 = vmatpush.bf16.msra.mxu0 %v813_v4  ;;  %872 = vmatpush.bf16.msra.mxu1 %v813_v4 }
  0x1e   : > { %873 = vmatpush.bf16.msra.mxu2 %v813_v4  ;;  %874 = vmatpush.bf16.msra.mxu3 %v813_v4 }
  0x21   : > { %481 = vmatpush.bf16.msra.mxu0 %v812_v5  ;;  %875 = vmatpush.bf16.msra.mxu1 %v812_v5 }
  0x22   : > { %876 = vmatpush.bf16.msra.mxu2 %v812_v5  ;;  %877 = vmatpush.bf16.msra.mxu3 %v812_v5 }
  0x25   : > { %482 = vmatpush.bf16.msra.mxu0 %v811_v6  ;;  %878 = vmatpush.bf16.msra.mxu1 %v811_v6 }
  0x26   : > { %879 = vmatpush.bf16.msra.mxu2 %v811_v6  ;;  %880 = vmatpush.bf16.msra.mxu3 %v811_v6 }
  0x29   : > { %483 = vmatpush.bf16.msra.mxu0 %v810_v7  ;;  %881 = vmatpush.bf16.msra.mxu1 %v810_v7 }
  0x2a   : > { %882 = vmatpush.bf16.msra.mxu2 %v810_v7  ;;  %883 = vmatpush.bf16.msra.mxu3 %v810_v7 }
  0x2c   : > { %484 = vmatmul.bf16.vlgmr.msra.gmra.mxu0 %v806_v8  ;;  %489 = vmatmul.bf16.vlgmr.msra.gmra.mxu1 %v807_v9 }
  0x2d   : > { %494 = vmatmul.bf16.vlgmr.msra.gmra.mxu2 %v808_v10  ;;  %499 = vmatmul.bf16.vlgmr.msra.gmra.mxu3 %v809_v11 }
  0xa9   : > { %v485_v13 = vpop.f32.mrf.mxu0  ;;  %v490_v14 = vpop.f32.mrf.mxu1 }
  0xaa   : > { %v536_v15 = vmul.f32 %v908_v12, %v485_v13  ;;  %v538_v17 = vmul.f32 %v908_v12, %v490_v14 }
  0xac   : > { %v548_v20 = vadd.f32 %v909_v16, %v536_v15  ;;  %v550_v22 = vadd.f32 %v909_v16, %v538_v17 }
  0xae   : > { %v572_v34 = vadd.f32 %v820_v21, %v548_v20  ;;  %v574_v35 = vadd.f32 %v824_v23, %v550_v22 }
  0xb0   : > { %v495_v24 = vpop.f32.mrf.mxu2  ;;  %v500_v25 = vpop.f32.mrf.mxu3  ;;  %v580_v46 = vmax.f32 %v572_v34, 0.0  ;;  %v582_v47 = vmax.f32 %v574_v35, 0.0 }
  0xb1   : > { %v487_v26 = vpop.f32.mrf.mxu0  ;;  %v492_v27 = vpop.f32.mrf.mxu1  ;;  %v540_v32 = vmul.f32 %v908_v12, %v495_v24  ;;  %v542_v33 = vmul.f32 %v908_v12, %v500_v25 }
  0xb2   : > { %v537_v28 = vmul.f32 %v908_v12, %v487_v26  ;;  %v539_v30 = vmul.f32 %v908_v12, %v492_v27 }
  0xb3   : > { %v552_v42 = vadd.f32 %v909_v16, %v540_v32  ;;  %v554_v44 = vadd.f32 %v909_v16, %v542_v33 }
  0xb4   : > { %v549_v38 = vadd.f32 %v909_v16, %v537_v28  ;;  %v551_v39 = vadd.f32 %v909_v16, %v539_v30 }
  0xb5   : > { %v576_v58 = vadd.f32 %v828_v43, %v552_v42  ;;  %v578_v59 = vadd.f32 %v832_v45, %v554_v44 }
  0xb6   : > { %v573_v40 = vadd.f32 %v821_v29, %v549_v38  ;;  %v575_v41 = vadd.f32 %v825_v31, %v551_v39 }
  0xb7   : > { %v584_v0 = vmax.f32 %v576_v58, 0.0  ;;  %v586_v1 = vmax.f32 %v578_v59, 0.0 }
  0xb8   : > { %v581_v48 = vmax.f32 %v573_v40, 0.0  ;;  %v583_v49 = vmax.f32 %v575_v41, 0.0  ;;  %v497_v50 = vpop.f32.mrf.mxu2  ;;  %v502_v51 = vpop.f32.mrf.mxu3 }
  0xb9   : > { %v541_v52 = vmul.f32 %v908_v12, %v497_v50  ;;  %v543_v54 = vmul.f32 %v908_v12, %v502_v51 }
  0xba   : > { %v837_v56 = vpack.c.bf16 %v581_v48, %v580_v46  ;;  %v842_v57 = vpack.c.bf16 %v583_v49, %v582_v47 }
  0xbb   : > { %v553_v60 = vadd.f32 %v909_v16, %v541_v52  ;;  %v555_v61 = vadd.f32 %v909_v16, %v543_v54 }
  0xbc   : > { %838 = vst [vmem:[%s358_s30] sm:$0xff] %v837_v56  }
  0xbd   : > { %857 = vst [vmem:[%s358_s30 + $0x8] sm:$0xff] %v842_v57   ;;  %v577_v62 = vadd.f32 %v829_v53, %v553_v60  ;;  %v579_v63 = vadd.f32 %v833_v55, %v555_v61 }
  0xbf   : > { %v585_v2 = vmax.f32 %v577_v62, 0.0  ;;  %v587_v3 = vmax.f32 %v579_v63, 0.0 }
  0xc1   : > { %v847_v4 = vpack.c.bf16 %v585_v2, %v584_v0  ;;  %v852_v5 = vpack.c.bf16 %v587_v3, %v586_v1 }
  0xc3   : > { %858 = vst [vmem:[%s358_s30 + $0x10] sm:$0xff] %v847_v4  }
  0xc4   : > { %859 = vst [vmem:[%s358_s30 + $0x18] sm:$0xff] %v852_v5  }
  0xc5 PF: > { %s15_s20 = sadd.s32 1, %s932_s20   ;;  %s1044_s18 = smov %s928_s19 }
  0xc6   : > { %p12_p5 = scmp.ge.s32.totalorder %s15_s20, 4   ;;  %s1045_s19 = smov %s1047_s21 }
  0xc8   :  { %14 = sbr.rel (!%p12_p5) target bundleno = 2 (0x2), region = 90 }

// kernel: _lambda_.64
= control target key start
LH: loop header
LB: loop body
LE: loop exit
PB: predicated region body
PF: predicated region fallthrough
CT: control target
= control target key end

     0   :  { %s683_s15 = smov 0   ;;  %s685_s16 = smov 0   ;;  %s746_s0 = inlined_call_operand.vmem [shape: bf16[32,128], index: 0, kind: input, shape index: {}]   ;;  %s747_s1 = inlined_call_operand.vmem [shape: bf16[128,128], index: 1, kind: input, shape index: {}]   ;;  %s748_s2 = inlined_call_operand.vmem [shape: f32[1,128], index: 2, kind: input, shape index: {}]   ;;  %s749_s3 = inlined_call_operand.vmem [shape: f32[1,128], index: 3, kind: input, shape index: {}]   ;;  %s750_s4 = inlined_call_operand.vmem [shape: bf16[32,128], index: 4, kind: output, shape index: {}]  }
   0x1   :  { %s687_s17 = smov 0  }
   0x2 LB: > { %s29_s18 = sadd.s32 1, %s652_s16  ;;  %p551_p0 = scmp.ge.s32.totalorder %s656_s17, 1  ;;  %s656_s17 = sphi %s687_s17, %s14_s17   ;;  %s652_s16 = sphi %s685_s16, %s752_s16   ;;  %s648_s15 = sphi %s683_s15, %s751_s15  }
   0x3   : > { %p31_p1 = scmp.ge.s32.totalorder %s29_s18, 2  ;;  %p221_p2 = scmp.lt.s32.totalorder %s656_s17, 3 }
   0x5   : > { %s754_s18 = smov (%p31_p1, %s29_s18), 0  ;;  %p222_p3 = pnand %p551_p0, %p221_p2 }
   0x6   : > { %s552_s27 = sshll.u32 (!%p222_p3), %s648_s15, 1 }
   0x7   : > { %225 = sbr.rel (%p222_p3) target bundleno = 187 (0xbb), region = 36  ;;  %p268_p4 = scmp.lt.s32.totalorder (!%p222_p3), %s552_s27, 3 }
   0xc   : > { %v602_v0 = vld [vmem:[%s747_s1 + $0x38] sm:$0xff]  ;;  %v601_v1 = vld [vmem:[%s747_s1 + $0x30] sm:$0xff]  ;;  %v600_v2 = vld [vmem:[%s747_s1 + $0x28] sm:$0xff]  ;;  %s756_s27 = smov (!%p268_p4, %s552_s27), 3 }
   0xd   : > { %380 = vmatpush.bf16.msra.mxu0 %v602_v0  ;;  %v599_v3 = vld [vmem:[%s747_s1 + $0x20] sm:$0xff]  ;;  %v598_v4 = vld [vmem:[%s747_s1 + $0x18] sm:$0xff]  ;;  %v597_v5 = vld [vmem:[%s747_s1 + $0x10] sm:$0xff]  ;;  %s553_s8 = sshll.u32 %s756_s27, 2 }
   0xe   : > { %v596_v6 = vld [vmem:[%s747_s1 + $0x8] sm:$0xff]  ;;  %v595_v7 = vld [vmem:[%s747_s1] sm:$0xff]  ;;  %s274_s13 = scalar_lea.vmem %s746_s0, %s553_s8  ;;  %s298_s23 = scalar_lea.vmem %s750_s4, %s553_s8 }
   0xf   : > { %v594_v8 = vld [vmem:[%s274_s13] sm:$0xff] }
  0x10   : > { %v632_v10 = vld [vmem:[%s748_s2] ss:$0 sm:$0xff] }
  0x11   : > { %381 = vmatpush.bf16.msra.mxu0 %v601_v1  ;;  %v633_v12 = vld [vmem:[%s749_s3] ss:$0 sm:$0xff] }
  0x15   : > { %382 = vmatpush.bf16.msra.mxu0 %v600_v2 }
  0x19   : > { %383 = vmatpush.bf16.msra.mxu0 %v599_v3 }
  0x1d   : > { %384 = vmatpush.bf16.msra.mxu0 %v598_v4 }
  0x21   : > { %385 = vmatpush.bf16.msra.mxu0 %v597_v5 }
  0x25   : > { %386 = vmatpush.bf16.msra.mxu0 %v596_v6 }
  0x29   : > { %387 = vmatpush.bf16.msra.mxu0 %v595_v7 }
  0x2c   : > { %388 = vmatmul.bf16.vlgmr.msra.gmra.mxu0 %v594_v8 }
  0xa9   : > { %v389_v9 = vpop.f32.mrf.mxu0 }
  0xaa   : > { %v407_v11 = vmul.f32 %v632_v10, %v389_v9 }
  0xac   : > { %v413_v14 = vadd.f32 %v633_v12, %v407_v11 }
  0xae   : > { %v415_v17 = vmax.f32 %v413_v14, 0.0 }
  0xb1   : > { %v391_v13 = vpop.f32.mrf.mxu0 }
  0xb2   : > { %v408_v15 = vmul.f32 %v632_v10, %v391_v13 }
  0xb4   : > { %v414_v16 = vadd.f32 %v633_v12, %v408_v15 }
  0xb6   : > { %v416_v18 = vmax.f32 %v414_v16, 0.0 }
  0xb8   : > { %v606_v19 = vpack.c.bf16 %v416_v18, %v415_v17 }
  0xba   : > { %607 = vst [vmem:[%s298_s23] sm:$0xff] %v606_v19  }
  0xbb PF: > { %s14_s17 = sadd.s32 1, %s656_s17   ;;  %s751_s15 = smov %s652_s16 }
  0xbc   : > { %p11_p5 = scmp.ge.s32.totalorder %s14_s17, 4   ;;  %s752_s16 = smov %s754_s18 }
  0xbe   :  { %13 = sbr.rel (!%p11_p5) target bundleno = 2 (0x2), region = 83 }

// kernel: _lambda_.63
= control target key start
LH: loop header
LB: loop body
LE: loop exit
PB: predicated region body
PF: predicated region fallthrough
CT: control target
= control target key end

     0   :  { %s681_s15 = smov 0   ;;  %s683_s16 = smov 0   ;;  %s744_s0 = inlined_call_operand.vmem [shape: bf16[32,128], index: 0, kind: input, shape index: {}]   ;;  %s745_s1 = inlined_call_operand.vmem [shape: bf16[128,128], index: 1, kind: input, shape index: {}]   ;;  %s746_s2 = inlined_call_operand.vmem [shape: f32[1,128], index: 2, kind: input, shape index: {}]   ;;  %s747_s3 = inlined_call_operand.vmem [shape: f32[1,128], index: 3, kind: input, shape index: {}]   ;;  %s748_s4 = inlined_call_operand.vmem [shape: bf16[32,128], index: 4, kind: output, shape index: {}]  }
   0x1   :  { %s685_s17 = smov 0  }
   0x2 LB: > { %s29_s18 = sadd.s32 1, %s650_s16  ;;  %p549_p0 = scmp.ge.s32.totalorder %s654_s17, 1  ;;  %s654_s17 = sphi %s685_s17, %s14_s17   ;;  %s650_s16 = sphi %s683_s16, %s750_s16   ;;  %s646_s15 = sphi %s681_s15, %s749_s15  }
   0x3   : > { %p31_p1 = scmp.ge.s32.totalorder %s29_s18, 2  ;;  %p221_p2 = scmp.lt.s32.totalorder %s654_s17, 3 }
   0x5   : > { %s752_s18 = smov (%p31_p1, %s29_s18), 0  ;;  %p222_p3 = pnand %p549_p0, %p221_p2 }
   0x6   : > { %s550_s27 = sshll.u32 (!%p222_p3), %s646_s15, 1 }
   0x7   : > { %225 = sbr.rel (%p222_p3) target bundleno = 185 (0xb9), region = 36  ;;  %p268_p4 = scmp.lt.s32.totalorder (!%p222_p3), %s550_s27, 3 }
   0xc   : > { %v600_v0 = vld [vmem:[%s745_s1 + $0x38] sm:$0xff]  ;;  %v599_v1 = vld [vmem:[%s745_s1 + $0x30] sm:$0xff]  ;;  %v598_v2 = vld [vmem:[%s745_s1 + $0x28] sm:$0xff]  ;;  %s754_s27 = smov (!%p268_p4, %s550_s27), 3 }
   0xd   : > { %380 = vmatpush.bf16.msra.mxu0 %v600_v0  ;;  %v597_v3 = vld [vmem:[%s745_s1 + $0x20] sm:$0xff]  ;;  %v596_v4 = vld [vmem:[%s745_s1 + $0x18] sm:$0xff]  ;;  %v595_v5 = vld [vmem:[%s745_s1 + $0x10] sm:$0xff]  ;;  %s551_s8 = sshll.u32 %s754_s27, 2 }
   0xe   : > { %v594_v6 = vld [vmem:[%s745_s1 + $0x8] sm:$0xff]  ;;  %v593_v7 = vld [vmem:[%s745_s1] sm:$0xff]  ;;  %s274_s13 = scalar_lea.vmem %s744_s0, %s551_s8  ;;  %s298_s23 = scalar_lea.vmem %s748_s4, %s551_s8 }
   0xf   : > { %v592_v8 = vld [vmem:[%s274_s13] sm:$0xff] }
  0x10   : > { %v630_v10 = vld [vmem:[%s746_s2] ss:$0 sm:$0xff] }
  0x11   : > { %381 = vmatpush.bf16.msra.mxu0 %v599_v1  ;;  %v631_v12 = vld [vmem:[%s747_s3] ss:$0 sm:$0xff] }
  0x15   : > { %382 = vmatpush.bf16.msra.mxu0 %v598_v2 }
  0x19   : > { %383 = vmatpush.bf16.msra.mxu0 %v597_v3 }
  0x1d   : > { %384 = vmatpush.bf16.msra.mxu0 %v596_v4 }
  0x21   : > { %385 = vmatpush.bf16.msra.mxu0 %v595_v5 }
  0x25   : > { %386 = vmatpush.bf16.msra.mxu0 %v594_v6 }
  0x29   : > { %387 = vmatpush.bf16.msra.mxu0 %v593_v7 }
  0x2c   : > { %388 = vmatmul.bf16.vlgmr.msra.gmra.mxu0 %v592_v8 }
  0xa9   : > { %v389_v9 = vpop.f32.mrf.mxu0 }
  0xaa   : > { %v407_v11 = vmul.f32 %v630_v10, %v389_v9 }
  0xac   : > { %v413_v15 = vadd.f32 %v631_v12, %v407_v11 }
  0xb1   : > { %v391_v13 = vpop.f32.mrf.mxu0 }
  0xb2   : > { %v408_v14 = vmul.f32 %v630_v10, %v391_v13 }
  0xb4   : > { %v414_v16 = vadd.f32 %v631_v12, %v408_v14 }
  0xb6   : > { %v604_v17 = vpack.c.bf16 %v414_v16, %v413_v15 }
  0xb8   : > { %605 = vst [vmem:[%s298_s23] sm:$0xff] %v604_v17  }
  0xb9 PF: > { %s14_s17 = sadd.s32 1, %s654_s17   ;;  %s749_s15 = smov %s650_s16 }
  0xba   : > { %p11_p5 = scmp.ge.s32.totalorder %s14_s17, 4   ;;  %s750_s16 = smov %s752_s18 }
  0xbc   :  { %13 = sbr.rel (!%p11_p5) target bundleno = 2 (0x2), region = 83 }

// kernel: _lambda_.65
= control target key start
LH: loop header
LB: loop body
LE: loop exit
PB: predicated region body
PF: predicated region fallthrough
CT: control target
= control target key end

     0   :  { %s1804_s15 = smov 0   ;;  %s2147_s0 = inlined_call_operand.vmem [shape: bf16[2,36,128], index: 0, kind: input, shape index: {}]   ;;  %s2148_s1 = inlined_call_operand.vmem [shape: bf16[9,128,128], index: 1, kind: input, shape index: {}]   ;;  %s2149_s2 = inlined_call_operand.vmem [shape: f32[1,128], index: 2, kind: input, shape index: {}]   ;;  %s2150_s3 = inlined_call_operand.vmem [shape: f32[1,128], index: 3, kind: input, shape index: {}]   ;;  %s2151_s4 = inlined_call_operand.vmem [shape: bf16[2,4,4,128], index: 4, kind: output, shape index: {}]  }
   0x1 LB: > { %s1235_s16 = sadd.s32 4294967295, %s1777_s15   ;;  %p1239_p0 = scmp.ge.s32.totalorder %s1777_s15, 1  ;;  %s1777_s15 = sphi %s1804_s15, %s14_s15  }
   0x2   : > { %p162_p1 = scmp.lt.s32.totalorder %s1777_s15, 3 }
   0x4   : > { %p163_p2 = pnand %p1239_p0, %p162_p1 }
   0x5   : > { %p188_p3 = scmp.lt.s32.totalorder (!%p163_p2), %s1235_s16, 1 }
   0x6   : > { %166 = sbr.rel (%p163_p2) target bundleno = 263 (0x107), region = 36 }
   0xb   : > { %v1683_v0 = vld [vmem:[%s2148_s1 + $0x78] sm:$0xff]  ;;  %v1682_v4 = vld [vmem:[%s2148_s1 + $0x70] sm:$0xff]  ;;  %s2155_s16 = smov (!%p188_p3, %s1235_s16), 1  ;;  %v1681_v8 = vld [vmem:[%s2148_s1 + $0x68] sm:$0xff]  ;;  %vm243_vm0 = vsmask.f32 7424 }
   0xc   : > { %v1675_v1 = vld [vmem:[%s2148_s1 + $0x38] sm:$0xff]  ;;  %309 = vmatpush.bf16.msra.mxu0 %v1683_v0  ;;  %v1674_v5 = vld [vmem:[%s2148_s1 + $0x30] sm:$0xff]  ;;  %s1760_s7 = smul.u32 20, %s2155_s16  ;;  %v1673_v9 = vld [vmem:[%s2148_s1 + $0x28] sm:$0xff]  ;;  %vm419_vm1 = vcmask 1046528   ;;  %vm525_vm2 = vcmask 1044480  }
   0xd   : > { %v1691_v2 = vld [vmem:[%s2148_s1 + $0xb8] sm:$0xff]  ;;  %380 = vmatpush.bf16.msra.mxu1 %v1675_v1  ;;  %v1690_v6 = vld [vmem:[%s2148_s1 + $0xb0] sm:$0xff]  ;;  %v1689_v10 = vld [vmem:[%s2148_s1 + $0xa8] sm:$0xff]  ;;  %vm621_vm3 = vsmask.f32 4352  ;;  %vm831_vm4 = vcmask 1045504  }
   0xe   : > { %v1699_v3 = vld [vmem:[%s2148_s1 + $0xf8] sm:$0xff]  ;;  %473 = vmatpush.bf16.msra.mxu2 %v1691_v2  ;;  %v1698_v7 = vld [vmem:[%s2148_s1 + $0xf0] sm:$0xff]  ;;  %v1697_v11 = vld [vmem:[%s2148_s1 + $0xe8] sm:$0xff]  ;;  %s1854_s20 = scalar_lea.vmem %s2147_s0, %s1760_s7  ;;  %vm927_vm5 = vsmask.f32 5376  ;;  %vm1142_vm6 = vcmask 1040384  }
   0xf   : > { %579 = vmatpush.bf16.msra.mxu3 %v1699_v3  ;;  %v1680_v12 = vld [vmem:[%s2148_s1 + $0x60] sm:$0xff]  ;;  %v1679_v17 = vld [vmem:[%s2148_s1 + $0x58] sm:$0xff]  ;;  %v496_v24 = vld [vmem:[%s1854_s20 + $0x8] sm:$0xf]  ;;  %vm1143_vm7 = vcmask 1042434   ;;  %s1667_s29 = sshll.u32 %s2155_s16, 3 }
  0x10   : > { %310 = vmatpush.bf16.msra.mxu0 %v1682_v4  ;;  %v1672_v13 = vld [vmem:[%s2148_s1 + $0x20] sm:$0xff]  ;;  %v1671_v18 = vld [vmem:[%s2148_s1 + $0x18] sm:$0xff]  ;;  %v497_v25 = vld [vmem:[%s1854_s20 + $0xc] sm:$0x3]  ;;  %v1906_v34 = vunpack.c.l.b16 %v496_v24  ;;  %vm1145_vm9 = vcmask 1044484   ;;  %s2130_s6 = scalar_lea.vmem %s2151_s4, %s1667_s29  ;;  %vm1147_vm11 = vcmask 1046534  }
  0x11   : > { %381 = vmatpush.bf16.msra.mxu1 %v1674_v5  ;;  %v1688_v14 = vld [vmem:[%s2148_s1 + $0xa0] sm:$0xff]  ;;  %v1687_v20 = vld [vmem:[%s2148_s1 + $0x98] sm:$0xff]  ;;  %v1678_v26 = vld [vmem:[%s2148_s1 + $0x50] sm:$0xff]  ;;  %v522_v35 = vunpack.c.l.b16 %v497_v25  ;;  %vm1164_vm12 = vcmask 1041408   ;;  %vm1169_vm13 = vcmask 1043458  }
  0x12   : > { %474 = vmatpush.bf16.msra.mxu2 %v1690_v6  ;;  %v1696_v15 = vld [vmem:[%s2148_s1 + $0xe0] sm:$0xff]  ;;  %v1695_v21 = vld [vmem:[%s2148_s1 + $0xd8] sm:$0xff]  ;;  %v1670_v27 = vld [vmem:[%s2148_s1 + $0x10] sm:$0xff] }
  0x13   : > { %580 = vmatpush.bf16.msra.mxu3 %v1698_v7  ;;  %v1869_v16 = vld [vmem:[%s1854_s20 + $0x4] sm:$0xff]   ;;  %v494_v23 = vld [vmem:[%s1854_s20] sm:$0x8]  ;;  %v1686_v30 = vld [vmem:[%s2148_s1 + $0x90] sm:$0xff]  ;;  %v1929_v47 = vpack.c.b16 %v522_v35, %v1906_v34 }
  0x14   : > { %311 = vmatpush.bf16.msra.mxu0 %v1681_v8  ;;  %v240_v19 = vunpack.c.h.b16 %v1869_v16  ;;  %v1885_v22 = vld [vmem:[%s1854_s20] sm:$0xff]   ;;  %v1694_v31 = vld [vmem:[%s2148_s1 + $0xd0] sm:$0xff]  ;;  %v519_v32 = vunpack.c.l.b16 %v494_v23  ;;  %v520_v33 = vunpack.c.l.b16 %v1869_v16  ;;  %v1677_v38 = vld [vmem:[%s2148_s1 + $0x48] sm:$0xff] }
  0x15   : > { %382 = vmatpush.bf16.msra.mxu1 %v1673_v9  ;;  %v247_v29 = vshll.u32 %v1885_v22, 16  ;;  %v1748_v36 = vld [vmem:[%s1854_s20] sm:$0xf0]  ;;  %v1749_v37 = vld [vmem:[%s1854_s20] sm:$0xe]  ;;  %v1669_v39 = vld [vmem:[%s2148_s1 + $0x8] sm:$0xff] }
  0x16   : > { %475 = vmatpush.bf16.msra.mxu2 %v1689_v10  ;;  %v1896_v28 = vpack.c.b16 %v240_v19, %v240_v19  ;;  %v245_v40 = vshrl.u32 %v1885_v22, 16  ;;  %v1685_v43 = vld [vmem:[%s2148_s1 + $0x88] sm:$0xff]  ;;  %v1750_v45 = vor.u32 %v1749_v37, %v1748_v36  ;;  %v1926_v46 = vpack.c.b16 %v520_v33, %v519_v32  ;;  %v1676_v48 = vld [vmem:[%s2148_s1 + $0x40] sm:$0xff]  ;;  %v1707_v58 = vld [vmem:[%s2148_s1 + $0x138] sm:$0xff] }
  0x17   : > { %581 = vmatpush.bf16.msra.mxu3 %v1697_v11  ;;  %v249_v41 = vrot.slane %v247_v29, 1  ;;  %v1693_v44 = vld [vmem:[%s2148_s1 + $0xc8] sm:$0xff]  ;;  %v1668_v49 = vld [vmem:[%s2148_s1] sm:$0xff]  ;;  %v527_v57 = vrot.slane %v1929_v47, 3  ;;  %v1715_v59 = vld [vmem:[%s2148_s1 + $0x178] sm:$0xff] }
  0x18   : > { %312 = vmatpush.bf16.msra.mxu0 %v1680_v12  ;;  %v252_v42 = vshll.u32 %v1896_v28, 16  ;;  %v1684_v52 = vld [vmem:[%s2148_s1 + $0x80] sm:$0xff]  ;;  %v420_v54 = vrot.slane %v1750_v45, 1  ;;  %v421_v55 = vrot.slane %v1896_v28, 1  ;;  %v526_v56 = vrot.slane %v1926_v46, 3  ;;  %v1723_v62 = vld [vmem:[%s2148_s1 + $0x1b8] sm:$0xff]  ;;  %vm1144_vm8 = vmor %vm1142_vm6, %vm1143_vm7 }
  0x19   : > { %383 = vmatpush.bf16.msra.mxu1 %v1672_v13  ;;  %v250_v50 = vor.u32 %v249_v41, %v245_v40  ;;  %v1692_v53 = vld [vmem:[%s2148_s1 + $0xc0] sm:$0xff]  ;;  %v1731_v0 = vld [vmem:[%s2148_s1 + $0x1f8] sm:$0xff]  ;;  %v1706_v1 = vld [vmem:[%s2148_s1 + $0x130] sm:$0xff]  ;;  %v623_v41 = vshrl.u32 %v1926_v46, 16 }
  0x1a   : > { %476 = vmatpush.bf16.msra.mxu2 %v1688_v14  ;;  %v1937_v51 = vrot.slane %v252_v42, 1  ;;  %v422_v61 = vsel %vm419_vm1, %v420_v54, %v421_v55  ;;  %v528_v63 = vsel %vm525_vm2, %v526_v56, %v527_v57  ;;  %v1714_v2 = vld [vmem:[%s2148_s1 + $0x170] sm:$0xff]  ;;  %v1705_v5 = vld [vmem:[%s2148_s1 + $0x128] sm:$0xff]  ;;  %v1704_v10 = vld [vmem:[%s2148_s1 + $0x120] sm:$0xff]  ;;  %v626_v42 = vshll.u32 %v1926_v46, 16 }
  0x1b   : > { %582 = vmatpush.bf16.msra.mxu3 %v1696_v15  ;;  %v1722_v3 = vld [vmem:[%s2148_s1 + $0x1b0] sm:$0xff]  ;;  %v1713_v6 = vld [vmem:[%s2148_s1 + $0x168] sm:$0xff]  ;;  %v1712_v11 = vld [vmem:[%s2148_s1 + $0x160] sm:$0xff] }
  0x1c   : > { %313 = vmatpush.bf16.msra.mxu0 %v1679_v17  ;;  %v255_v60 = vsel %vm243_vm0, %v250_v50, %v1937_v51  ;;  %v1730_v4 = vld [vmem:[%s2148_s1 + $0x1f0] sm:$0xff]  ;;  %v1721_v7 = vld [vmem:[%s2148_s1 + $0x1a8] sm:$0xff]  ;;  %v800_v13 = vld [vmem:[%s1854_s20 + $0x4] sm:$0xc]  ;;  %v256_v17 = vshrl.u32 %v1896_v28, 16  ;;  %v628_v54 = vrot.slane %v626_v42, 4 }
  0x1d   : > { %384 = vmatpush.bf16.msra.mxu1 %v1671_v18  ;;  %v1729_v8 = vld [vmem:[%s2148_s1 + $0x1e8] sm:$0xff]  ;;  %v906_v15 = vld [vmem:[%s1854_s20 + $0x10] sm:$0x3]  ;;  %v825_v24 = vunpack.c.l.b16 %v800_v13  ;;  %v1719_v32 = vld [vmem:[%s2148_s1 + $0x198] sm:$0xff] }
  0x1e   : > { %477 = vmatpush.bf16.msra.mxu2 %v1687_v20  ;;  %v200_v9 = vld [vmem:[%s1854_s20 + $0x8] sm:$0x7]  ;;  %v600_v12 = vld [vmem:[%s1854_s20 + $0xc] sm:$0x7]  ;;  %v1720_v20 = vld [vmem:[%s2148_s1 + $0x1a0] sm:$0xff]  ;;  %v925_v25 = vunpack.c.l.b16 %v906_v15  ;;  %v258_v29 = vor.u32 %v256_v17, %v1937_v51 }
  0x1f   : > { %583 = vmatpush.bf16.msra.mxu3 %v1695_v21  ;;  %v2002_v14 = vld [vmem:[%s1854_s20 + $0x8] sm:$0xff]   ;;  %v328_v18 = vunpack.c.l.b16 %v200_v9  ;;  %v2006_v19 = vunpack.c.l.b16 %v600_v12  ;;  %v1728_v21 = vld [vmem:[%s2148_s1 + $0x1e0] sm:$0xff]  ;;  %v1727_v35 = vld [vmem:[%s2148_s1 + $0x1d8] sm:$0xff] }
  0x20   : > { %314 = vmatpush.bf16.msra.mxu0 %v1678_v26  ;;  %v1747_v23 = vunpack.c.h.b16 %v2002_v14  ;;  %v1703_v26 = vld [vmem:[%s2148_s1 + $0x118] sm:$0xff]  ;;  %v803_v36 = vld [vmem:[%s1854_s20 + $0x10] sm:$0x1]  ;;  %v1701_v51 = vld [vmem:[%s2148_s1 + $0x108] sm:$0xff] }
  0x21   : > { %385 = vmatpush.bf16.msra.mxu1 %v1670_v27  ;;  %v1711_v27 = vld [vmem:[%s2148_s1 + $0x158] sm:$0xff]  ;;  %v1710_v40 = vld [vmem:[%s2148_s1 + $0x150] sm:$0xff]  ;;  %v828_v45 = vunpack.c.l.b16 %v803_v36  ;;  %v1737_v16 = vld [vmem:[%s2148_s1 + $0x228] sm:$0xff] }
  0x22   : > { %478 = vmatpush.bf16.msra.mxu2 %v1686_v30  ;;  %v329_v30 = vpack.c.b16 %v328_v18, %v328_v18  ;;  %v1738_v17 = vld [vmem:[%s2148_s1 + $0x230] sm:$0xff]  ;;  %v728_v18 = vpack.c.b16 %v2006_v19, %v2006_v19  ;;  %vm1146_vm10 = vmor %vm1144_vm8, %vm1145_vm9 }
  0x23   : > { %584 = vmatpush.bf16.msra.mxu3 %v1694_v31  ;;  %v620_v31 = vpack.c.b16 %v2006_v19, %v1906_v34  ;;  %vm2133_vm14 = vmor %vm1146_vm10, %vm1147_vm11 }
  0x24   : > { %315 = vmatpush.bf16.msra.mxu0 %v1677_v38  ;;  %v2036_v38 = vpack.c.b16 %v925_v25, %v1747_v23  ;;  %v1732_v25 = vld [vmem:[%s2148_s1 + $0x200] sm:$0xff] }
  0x25   : > { %386 = vmatpush.bf16.msra.mxu1 %v1669_v39  ;;  %v1702_v39 = vld [vmem:[%s2148_s1 + $0x110] sm:$0xff] }
  0x26   : > { %479 = vmatpush.bf16.msra.mxu2 %v1685_v43  ;;  %v631_v43 = vshrl.u32 %v620_v31, 16  ;;  %v937_v50 = vshrl.u32 %v2036_v38, 16  ;;  %v940_v46 = vshll.u32 %v2036_v38, 16 }
  0x27   : > { %585 = vmatpush.bf16.msra.mxu3 %v1693_v44  ;;  %v634_v44 = vshll.u32 %v620_v31, 16 }
  0x28   : > { %316 = vmatpush.bf16.msra.mxu0 %v1676_v48  ;;  %v1718_v48 = vld [vmem:[%s2148_s1 + $0x190] sm:$0xff] }
  0x29   : > { %387 = vmatpush.bf16.msra.mxu1 %v1668_v49  ;;  %v1726_v49 = vld [vmem:[%s2148_s1 + $0x1d0] sm:$0xff]  ;;  %v636_v56 = vrot.slane %v634_v44, 4 }
  0x2a   : > { %480 = vmatpush.bf16.msra.mxu2 %v1684_v52  ;;  %v1709_v52 = vld [vmem:[%s2148_s1 + $0x148] sm:$0xff] }
  0x2b   : > { %586 = vmatpush.bf16.msra.mxu3 %v1692_v53  ;;  %317 = vmatmul.bf16.vlgmr.msra.gmra.mxu0 %v255_v60  ;;  %v625_v53 = vrot.slane %v623_v41, 3 }
  0x2c   : > { %689 = vmatpush.bf16.msrb.mxu0 %v1707_v58  ;;  %388 = vmatmul.bf16.vlgmr.msra.gmra.mxu1 %v1885_v22  ;;  %v1746_v22 = vunpack.c.l.b16 %v2002_v14  ;;  %v1717_v58 = vld [vmem:[%s2148_s1 + $0x188] sm:$0xff] }
  0x2d   : > { %779 = vmatpush.bf16.msrb.mxu1 %v1715_v59  ;;  %481 = vmatmul.bf16.vlgmr.msra.gmra.mxu2 %v422_v61  ;;  %v1725_v59 = vld [vmem:[%s2148_s1 + $0x1c8] sm:$0xff] }
  0x2e   : > { %587 = vmatmul.bf16.vlgmr.msra.gmra.mxu3 %v528_v63  ;;  %885 = vmatpush.bf16.msrb.mxu2 %v1723_v62  ;;  %v2034_v37 = vpack.c.b16 %v1746_v22, %v825_v24  ;;  %v939_v62 = vrot.slane %v937_v50, 2  ;;  %v942_v63 = vrot.slane %v940_v46, 3  ;;  %v1733_v24 = vld [vmem:[%s2148_s1 + $0x208] sm:$0xff] }
  0x2f   : > { %995 = vmatpush.bf16.msrb.mxu3 %v1731_v0  ;;  %v1700_v0 = vld [vmem:[%s2148_s1 + $0x100] sm:$0xff] }
  0x30   : > { %690 = vmatpush.bf16.msrb.mxu0 %v1706_v1  ;;  %v929_v28 = vshrl.u32 %v2034_v37, 16  ;;  %v932_v47 = vshll.u32 %v2034_v37, 16  ;;  %v1708_v1 = vld [vmem:[%s2148_s1 + $0x140] sm:$0xff] }
  0x31   : > { %780 = vmatpush.bf16.msrb.mxu1 %v1714_v2  ;;  %v1739_v2 = vld [vmem:[%s2148_s1 + $0x238] sm:$0xff] }
  0x32   : > { %886 = vmatpush.bf16.msrb.mxu2 %v1722_v3  ;;  %v931_v60 = vrot.slane %v929_v28, 2  ;;  %v934_v61 = vrot.slane %v932_v47, 3  ;;  %v629_v3 = vor.u32 %v628_v54, %v625_v53 }
  0x33   : > { %996 = vmatpush.bf16.msrb.mxu3 %v1730_v4 }
  0x34   : > { %691 = vmatpush.bf16.msrb.mxu0 %v1705_v5  ;;  %v1716_v5 = vld [vmem:[%s2148_s1 + $0x180] sm:$0xff]  ;;  %v935_v9 = vor.u32 %v934_v61, %v931_v60 }
  0x35   : > { %781 = vmatpush.bf16.msrb.mxu1 %v1713_v6  ;;  %v1724_v6 = vld [vmem:[%s2148_s1 + $0x1c0] sm:$0xff] }
  0x36   : > { %887 = vmatpush.bf16.msrb.mxu2 %v1721_v7  ;;  %v832_v7 = vrot.slane %v2034_v37, 2 }
  0x37   : > { %997 = vmatpush.bf16.msrb.mxu3 %v1729_v8 }
  0x38   : > { %692 = vmatpush.bf16.msrb.mxu0 %v1704_v10  ;;  %v943_v10 = vor.u32 %v942_v63, %v939_v62 }
  0x39   : > { %782 = vmatpush.bf16.msrb.mxu1 %v1712_v11  ;;  %v727_v11 = vpack.c.b16 %v1906_v34, %v520_v33  ;;  %v1736_v33 = vld [vmem:[%s2148_s1 + $0x220] sm:$0xff]  ;;  %v1735_v34 = vld [vmem:[%s2148_s1 + $0x218] sm:$0xff] }
  0x3a   : > { %888 = vmatpush.bf16.msrb.mxu2 %v1720_v20  ;;  %v944_v15 = vsel %vm927_vm5, %v935_v9, %v943_v10  ;;  %v1734_v20 = vld [vmem:[%s2148_s1 + $0x210] sm:$0xff] }
  0x3b   : > { %998 = vmatpush.bf16.msrb.mxu3 %v1728_v21  ;;  %322 = vmatmul.bf16.gmra.mxu0 %v258_v29  ;;  %v1016_v21 = vld [vmem:[%s1854_s20 + $0x4] sm:$0x8] }
  0x3c   : > { %693 = vmatpush.bf16.msrb.mxu0 %v1703_v26  ;;  %393 = vmatmul.bf16.gmra.mxu1 %v329_v30 }
  0x3d   : > { %783 = vmatpush.bf16.msrb.mxu1 %v1711_v27  ;;  %486 = vmatmul.bf16.gmra.mxu2 %v421_v55  ;;  %v633_v55 = vrot.slane %v631_v43, 3  ;;  %v1038_v27 = vrot.slane %v2036_v38, 3 }
  0x3e   : > { %592 = vmatmul.bf16.gmra.mxu3 %v527_v57  ;;  %889 = vmatpush.bf16.msrb.mxu2 %v1719_v32  ;;  %v830_v57 = vpack.c.b16 %v828_v45, %v1747_v23  ;;  %v1035_v23 = vunpack.c.l.b16 %v1016_v21 }
  0x3f   : > { %999 = vmatpush.bf16.msrb.mxu3 %v1727_v35  ;;  %v637_v4 = vor.u32 %v636_v56, %v633_v55 }
  0x40   : > { %694 = vmatpush.bf16.msrb.mxu0 %v1702_v39  ;;  %v833_v8 = vrot.slane %v830_v57, 2  ;;  %v1036_v19 = vpack.c.b16 %v1746_v22, %v1035_v23 }
  0x41   : > { %784 = vmatpush.bf16.msrb.mxu1 %v1710_v40  ;;  %v638_v12 = vsel %vm621_vm3, %v629_v3, %v637_v4 }
  0x42   : > { %890 = vmatpush.bf16.msrb.mxu2 %v1718_v48  ;;  %v834_v13 = vsel %vm831_vm4, %v832_v7, %v833_v8  ;;  %v1037_v26 = vrot.slane %v1036_v19, 3 }
  0x43   : > { %1000 = vmatpush.bf16.msrb.mxu3 %v1726_v49 }
  0x44   : > { %695 = vmatpush.bf16.msrb.mxu0 %v1701_v51  ;;  %v1039_v29 = vsel %vm525_vm2, %v1037_v26, %v1038_v27 }
  0x45   : > { %785 = vmatpush.bf16.msrb.mxu1 %v1709_v52 }
  0x46   : > { %891 = vmatpush.bf16.msrb.mxu2 %v1717_v58 }
  0x47   : > { %1001 = vmatpush.bf16.msrb.mxu3 %v1725_v59 }
  0x48   : > { %696 = vmatpush.bf16.msrb.mxu0 %v1700_v0 }
  0x49   : > { %786 = vmatpush.bf16.msrb.mxu1 %v1708_v1 }
  0x4a   : > { %892 = vmatpush.bf16.msrb.mxu2 %v1716_v5 }
  0x4b   : > { %1002 = vmatpush.bf16.msrb.mxu3 %v1724_v6  ;;  %697 = vmatmul.bf16.vlgmr.msrb.gmra.mxu0 %v638_v12 }
  0x4c   : > { %1090 = vmatpush.bf16.msra.mxu0 %v1739_v2  ;;  %787 = vmatmul.bf16.vlgmr.msrb.gmra.mxu1 %v727_v11 }
  0x4d   : > { %1752 = vmatpush.bf16.msra.mxu1 %v1739_v2  ;;  %893 = vmatmul.bf16.vlgmr.msrb.gmra.mxu2 %v834_v13  ;;  %v1769_v13 = vld [vmem:[%s2149_s2] ss:$0 sm:$0xff] }
  0x4e   : > { %1003 = vmatmul.bf16.vlgmr.msrb.gmra.mxu3 %v944_v15 }
  0x50   : > { %1091 = vmatpush.bf16.msra.mxu0 %v1738_v17 }
  0x51   : > { %1753 = vmatpush.bf16.msra.mxu1 %v1738_v17 }
  0x54   : > { %1092 = vmatpush.bf16.msra.mxu0 %v1737_v16 }
  0x55   : > { %1754 = vmatpush.bf16.msra.mxu1 %v1737_v16 }
  0x58   : > { %1093 = vmatpush.bf16.msra.mxu0 %v1736_v33 }
  0x59   : > { %1755 = vmatpush.bf16.msra.mxu1 %v1736_v33 }
  0x5b   : > { %702 = vmatmul.bf16.gmra.mxu0 %v637_v4 }
  0x5c   : > { %1094 = vmatpush.bf16.msra.mxu0 %v1735_v34  ;;  %792 = vmatmul.bf16.gmra.mxu1 %v728_v18 }
  0x5d   : > { %1756 = vmatpush.bf16.msra.mxu1 %v1735_v34  ;;  %898 = vmatmul.bf16.gmra.mxu2 %v833_v8 }
  0x5e   : > { %1008 = vmatmul.bf16.gmra.mxu3 %v943_v10 }
  0x60   : > { %1095 = vmatpush.bf16.msra.mxu0 %v1734_v20 }
  0x61   : > { %1757 = vmatpush.bf16.msra.mxu1 %v1734_v20  ;;  %v1770_v20 = vld [vmem:[%s2150_s3] ss:$0 sm:$0xff] }
  0x64   : > { %1096 = vmatpush.bf16.msra.mxu0 %v1733_v24 }
  0x65   : > { %1758 = vmatpush.bf16.msra.mxu1 %v1733_v24 }
  0x68   : > { %1097 = vmatpush.bf16.msra.mxu0 %v1732_v25 }
  0x69   : > { %1759 = vmatpush.bf16.msra.mxu1 %v1732_v25 }
  0x6b   : > { %1098 = vmatmul.bf16.vlgmr.msra.gmra.mxu0 %v1039_v29 }
  0x6c   : > { %1103 = vmatmul.bf16.vlgmr.msra.gmra.mxu1 %v1038_v27 }
  0xa8   : > { %v318_v30 = vpop.f32.mrf.mxu0 }
  0xa9   : > { %v389_v31 = vpop.f32.mrf.mxu1 }
  0xaa   : > { %v390_v51 = vadd.f32 %v389_v31, %v318_v30 }
  0xb0   : > { %v482_v32 = vpop.f32.mrf.mxu2  ;;  %v320_v22 = vpop.f32.mrf.mxu0 }
  0xb1   : > { %v588_v14 = vpop.f32.mrf.mxu3  ;;  %v391_v35 = vpop.f32.mrf.mxu1  ;;  %v491_v53 = vadd.f32 %v482_v32, %v390_v51 }
  0xb2   : > { %v392_v61 = vadd.f32 %v391_v35, %v320_v22 }
  0xb3   : > { %v597_v59 = vadd.f32 %v588_v14, %v491_v53 }
  0xb8   : > { %v484_v36 = vpop.f32.mrf.mxu2  ;;  %v323_v39 = vpop.f32.mrf.mxu0 }
  0xb9   : > { %v590_v37 = vpop.f32.mrf.mxu3  ;;  %v394_v40 = vpop.f32.mrf.mxu1  ;;  %v492_v0 = vadd.f32 %v484_v36, %v392_v61 }
  0xba   : > { %v395_v52 = vadd.f32 %v394_v40, %v323_v39 }
  0xbb   : > { %v598_v7 = vadd.f32 %v590_v37, %v492_v0 }
  0xc0   : > { %v487_v41 = vpop.f32.mrf.mxu2  ;;  %v325_v43 = vpop.f32.mrf.mxu0 }
  0xc1   : > { %v593_v42 = vpop.f32.mrf.mxu3  ;;  %v396_v38 = vpop.f32.mrf.mxu1  ;;  %v493_v54 = vadd.f32 %v487_v41, %v395_v52 }
  0xc3   : > { %v599_v60 = vadd.f32 %v593_v42, %v493_v54 }
  0xc8   : > { %v489_v44 = vpop.f32.mrf.mxu2  ;;  %v698_v48 = vpop.f32.mrf.mxu0 }
  0xc9   : > { %v595_v45 = vpop.f32.mrf.mxu3  ;;  %v788_v49 = vpop.f32.mrf.mxu1  ;;  %v707_v62 = vadd.f32 %v698_v48, %v597_v59 }
  0xcb   : > { %v797_v5 = vadd.f32 %v788_v49, %v707_v62 }
  0xd0   : > { %v894_v28 = vpop.f32.mrf.mxu2  ;;  %v700_v50 = vpop.f32.mrf.mxu0 }
  0xd1   : > { %v1004_v47 = vpop.f32.mrf.mxu3  ;;  %v790_v46 = vpop.f32.mrf.mxu1  ;;  %v903_v8 = vadd.f32 %v894_v28, %v797_v5  ;;  %v708_v10 = vadd.f32 %v700_v50, %v598_v7 }
  0xd3   : > { %v1013_v11 = vadd.f32 %v1004_v47, %v903_v8  ;;  %v798_v34 = vadd.f32 %v790_v46, %v708_v10 }
  0xd8   : > { %v896_v55 = vpop.f32.mrf.mxu2  ;;  %v703_v57 = vpop.f32.mrf.mxu0 }
  0xd9   : > { %v1006_v56 = vpop.f32.mrf.mxu3  ;;  %v793_v58 = vpop.f32.mrf.mxu1  ;;  %v709_v63 = vadd.f32 %v703_v57, %v599_v60  ;;  %v904_v23 = vadd.f32 %v896_v55, %v798_v34 }
  0xdb   : > { %v799_v6 = vadd.f32 %v793_v58, %v709_v63  ;;  %v1014_v27 = vadd.f32 %v1006_v56, %v904_v23 }
  0xe0   : > { %v899_v1 = vpop.f32.mrf.mxu2  ;;  %v705_v3 = vpop.f32.mrf.mxu0 }
  0xe1   : > { %v1009_v2 = vpop.f32.mrf.mxu3  ;;  %v795_v4 = vpop.f32.mrf.mxu1  ;;  %v905_v9 = vadd.f32 %v899_v1, %v799_v6 }
  0xe3   : > { %v1015_v12 = vadd.f32 %v1009_v2, %v905_v9 }
  0xe8   : > { %v901_v15 = vpop.f32.mrf.mxu2  ;;  %v1099_v16 = vpop.f32.mrf.mxu0 }
  0xe9   : > { %v1011_v17 = vpop.f32.mrf.mxu3  ;;  %v1104_v33 = vpop.f32.mrf.mxu1  ;;  %v1108_v18 = vadd.f32 %v1099_v16, %v1013_v11 }
  0xea   : > { %v1110_v21 = vadd.f32 %v1104_v33, %v1015_v12 }
  0xeb   : > { %v1115_v24 = vmul.f32 %v1769_v13, %v1108_v18 }
  0xec   : > { %v1117_v19 = vmul.f32 %v1769_v13, %v1110_v21 }
  0xed   : > { %v1122_v25 = vadd.f32 %v1770_v20, %v1115_v24 }
  0xee   : > { %v1124_v26 = vadd.f32 %v1770_v20, %v1117_v19 }
  0xef   : > { %v1125_v29 = vmax.f32 %v1122_v25, 0.0 }
  0xf0   : > { %v1127_v30 = vmax.f32 %v1124_v26, 0.0  ;;  %v1101_v31 = vpop.f32.mrf.mxu0 }
  0xf1   : > { %v1106_v32 = vpop.f32.mrf.mxu1  ;;  %v1128_v14 = vpack.c.bf16 %v1125_v29, %v1125_v29  ;;  %v1109_v35 = vadd.f32 %v1101_v31, %v1014_v27 }
  0xf2   : > { %v1130_v22 = vpack.c.bf16 %v1127_v30, %v1127_v30 }
  0xf3   : > { %1131 = vst [vmem:[%s2130_s6] sm:$0x3] %v1128_v14  ;;  %v1116_v37 = vmul.f32 %v1769_v13, %v1109_v35 }
  0xf4   : > { %v1163_v36 = vrot.slane %v1130_v22, 2  ;;  %1133 = vst.sshfl [vmem:[#allocation1] sm:$0xff pattern:$0x75643120] %v1128_v14 }
  0xf5   : > { %v1123_v42 = vadd.f32 %v1770_v20, %v1116_v37 }
  0xf6   : > { %v1167_v40 = vsel %vm1164_vm12, %v1130_v22, %v1163_v36  ;;  %v1170_v41 = vsel %vm1169_vm13, %v1130_v22, %v1163_v36 }
  0xf7   : > { %v1662_v43 = vrot.slane %v1167_v40, 9  ;;  %v1663_v38 = vrot.slane %v1170_v41, 9  ;;  %v1126_v44 = vmax.f32 %v1123_v42, 0.0 }
  0xf9   : > { %v1176_v45 = vsel %vm2133_vm14, %v1662_v43, %v1663_v38  ;;  %v1129_v48 = vpack.c.bf16 %v1126_v44, %v1126_v44 }
  0xfa   : > { %1664 = vst [vmem:[%s2130_s6 + $0x6] sm:$0x3] %v1176_v45 }
  0xfb   : > { %1135 = vst.sshfl [vmem:[#allocation1 + $0x10] sm:$0xff pattern:$0x75643120] %v1129_v48  ;;  %v1137_v49 = vld [vmem:[#allocation1 + $0x1] ss:$2 sm:$0xff] }
  0xfc   : > { %1156 = vst.sshfl [vmem:[#allocation1] sm:$0xff pattern:$0x75643120] %v1129_v48  ;;  %v1659_v47 = vrot.slane %v1137_v49, 9 }
 0x102   : > { %v1140_v28 = vld [vmem:[#allocation1 + $0x10] ss:$2 sm:$0xff] }
 0x103   : > { %v1151_v50 = vrot.slane %v1140_v28, 7  ;;  %v1158_v46 = vld [vmem:[#allocation1 + $0x1] ss:$2 sm:$0xff] }
 0x104   : > { %1661 = vst [vmem:[%s2130_s6 + $0x4] sm:$0x3] %v1158_v46 }
 0x105   : > { %v1152_v51 = vsel %vm2133_vm14, %v1659_v47, %v1151_v50 }
 0x106   : > { %1660 = vst [vmem:[%s2130_s6 + $0x2] sm:$0x3] %v1152_v51 }
 0x107 PF: > { %s14_s15 = sadd.s32 1, %s1777_s15  }
 0x108   : > { %p11_p4 = scmp.ge.s32.totalorder %s14_s15, 4  }
 0x10a   :  { %13 = sbr.rel (!%p11_p4) target bundleno = 1 (0x1), region = 80 }

// kernel: _lambda_.66
= control target key start
LH: loop header
LB: loop body
LE: loop exit
PB: predicated region body
PF: predicated region fallthrough
CT: control target
= control target key end

     0   :  { %s775_s18 = smov 0   ;;  %s777_s19 = smov 0   ;;  %s841_s0 = inlined_call_operand.vmem [shape: bf16[32,128], index: 0, kind: input, shape index: {}]   ;;  %s842_s1 = inlined_call_operand.vmem [shape: bf16[128,128], index: 1, kind: input, shape index: {}]   ;;  %s843_s2 = inlined_call_operand.vmem [shape: f32[1,128], index: 2, kind: input, shape index: {}]   ;;  %s844_s3 = inlined_call_operand.vmem [shape: f32[1,128], index: 3, kind: input, shape index: {}]   ;;  %s845_s4 = inlined_call_operand.vmem [shape: bf16[32,128], index: 4, kind: input, shape index: {}]   ;;  %s846_s5 = inlined_call_operand.vmem [shape: bf16[32,128], index: 5, kind: output, shape index: {}]  }
   0x1   :  { %s779_s20 = smov 0  }
   0x2 LB: > { %s30_s21 = sadd.s32 1, %s739_s19  ;;  %p632_p0 = scmp.ge.s32.totalorder %s743_s20, 1  ;;  %s743_s20 = sphi %s779_s20, %s15_s20   ;;  %s739_s19 = sphi %s777_s19, %s848_s19   ;;  %s735_s18 = sphi %s775_s18, %s847_s18  }
   0x3   : > { %p32_p1 = scmp.ge.s32.totalorder %s30_s21, 2  ;;  %p262_p2 = scmp.lt.s32.totalorder %s743_s20, 3 }
   0x5   : > { %s850_s21 = smov (%p32_p1, %s30_s21), 0  ;;  %p263_p3 = pnand %p632_p0, %p262_p2 }
   0x6   : > { %s633_s30 = sshll.u32 (!%p263_p3), %s735_s18, 1 }
   0x7   : > { %266 = sbr.rel (%p263_p3) target bundleno = 189 (0xbd), region = 40  ;;  %p319_p4 = scmp.lt.s32.totalorder (!%p263_p3), %s633_s30, 3 }
   0xc   : > { %v685_v0 = vld [vmem:[%s842_s1 + $0x38] sm:$0xff]  ;;  %v684_v1 = vld [vmem:[%s842_s1 + $0x30] sm:$0xff]  ;;  %v683_v2 = vld [vmem:[%s842_s1 + $0x28] sm:$0xff]  ;;  %s852_s30 = smov (!%p319_p4, %s633_s30), 3 }
   0xd   : > { %440 = vmatpush.bf16.msra.mxu0 %v685_v0  ;;  %v682_v3 = vld [vmem:[%s842_s1 + $0x20] sm:$0xff]  ;;  %v681_v4 = vld [vmem:[%s842_s1 + $0x18] sm:$0xff]  ;;  %v680_v5 = vld [vmem:[%s842_s1 + $0x10] sm:$0xff]  ;;  %s634_s12 = sshll.u32 %s852_s30, 2 }
   0xe   : > { %v679_v6 = vld [vmem:[%s842_s1 + $0x8] sm:$0xff]  ;;  %v678_v7 = vld [vmem:[%s842_s1] sm:$0xff]  ;;  %s325_s17 = scalar_lea.vmem %s841_s0, %s634_s12  ;;  %s349_s25 = scalar_lea.vmem %s845_s4, %s634_s12 }
   0xf   : > { %v677_v8 = vld [vmem:[%s325_s17] sm:$0xff]  ;;  %s358_s30 = scalar_lea.vmem %s846_s5, %s634_s12 }
  0x10   : > { %v719_v9 = vld [vmem:[%s843_s2] ss:$0 sm:$0xff] }
  0x11   : > { %441 = vmatpush.bf16.msra.mxu0 %v684_v1  ;;  %v720_v12 = vld [vmem:[%s844_s3] ss:$0 sm:$0xff] }
  0x12   : > { %v687_v13 = vld [vmem:[%s349_s25] sm:$0xff]  }
  0x13   : > { %v688_v15 = vunpack.c.l.bf16 %v687_v13  ;;  %v689_v18 = vunpack.c.h.bf16 %v687_v13 }
  0x15   : > { %442 = vmatpush.bf16.msra.mxu0 %v683_v2 }
  0x19   : > { %443 = vmatpush.bf16.msra.mxu0 %v682_v3 }
  0x1d   : > { %444 = vmatpush.bf16.msra.mxu0 %v681_v4 }
  0x21   : > { %445 = vmatpush.bf16.msra.mxu0 %v680_v5 }
  0x25   : > { %446 = vmatpush.bf16.msra.mxu0 %v679_v6 }
  0x29   : > { %447 = vmatpush.bf16.msra.mxu0 %v678_v7 }
  0x2c   : > { %448 = vmatmul.bf16.vlgmr.msra.gmra.mxu0 %v677_v8 }
  0xa9   : > { %v449_v10 = vpop.f32.mrf.mxu0 }
  0xaa   : > { %v467_v11 = vmul.f32 %v719_v9, %v449_v10 }
  0xac   : > { %v473_v14 = vadd.f32 %v720_v12, %v467_v11 }
  0xae   : > { %v479_v19 = vadd.f32 %v688_v15, %v473_v14 }
  0xb0   : > { %v481_v22 = vmax.f32 %v479_v19, 0.0 }
  0xb1   : > { %v451_v16 = vpop.f32.mrf.mxu0 }
  0xb2   : > { %v468_v17 = vmul.f32 %v719_v9, %v451_v16 }
  0xb4   : > { %v474_v20 = vadd.f32 %v720_v12, %v468_v17 }
  0xb6   : > { %v480_v21 = vadd.f32 %v689_v18, %v474_v20 }
  0xb8   : > { %v482_v23 = vmax.f32 %v480_v21, 0.0 }
  0xba   : > { %v693_v24 = vpack.c.bf16 %v482_v23, %v481_v22 }
  0xbc   : > { %694 = vst [vmem:[%s358_s30] sm:$0xff] %v693_v24  }
  0xbd PF: > { %s15_s20 = sadd.s32 1, %s743_s20   ;;  %s847_s18 = smov %s739_s19 }
  0xbe   : > { %p12_p5 = scmp.ge.s32.totalorder %s15_s20, 4   ;;  %s848_s19 = smov %s850_s21 }
  0xc0   :  { %14 = sbr.rel (!%p12_p5) target bundleno = 2 (0x2), region = 90 }

// kernel: _lambda_.55
= control target key start
LH: loop header
LB: loop body
LE: loop exit
PB: predicated region body
PF: predicated region fallthrough
CT: control target
= control target key end

     0   :  { %s2398_s15 = smov 0   ;;  %s2954_s0 = inlined_call_operand.vmem [shape: bf16[2,100,128], index: 0, kind: input, shape index: {}]   ;;  %s2955_s1 = inlined_call_operand.vmem [shape: bf16[9,128,128], index: 1, kind: input, shape index: {}]   ;;  %s2956_s2 = inlined_call_operand.vmem [shape: f32[1,128], index: 2, kind: input, shape index: {}]   ;;  %s2957_s3 = inlined_call_operand.vmem [shape: f32[1,128], index: 3, kind: input, shape index: {}]   ;;  %s2958_s4 = inlined_call_operand.vmem [shape: bf16[2,8,8,128], index: 4, kind: output, shape index: {}]  }
   0x1 LB: > { %s1734_s16 = sadd.s32 4294967295, %s2371_s15   ;;  %p1738_p0 = scmp.ge.s32.totalorder %s2371_s15, 1  ;;  %s2371_s15 = sphi %s2398_s15, %s14_s15  }
   0x2   : > { %p162_p1 = scmp.lt.s32.totalorder %s2371_s15, 3 }
   0x4   : > { %p163_p2 = pnand %p1738_p0, %p162_p1 }
   0x5   : > { %p188_p3 = scmp.lt.s32.totalorder (!%p163_p2), %s1734_s16, 1 }
   0x6   : > { %166 = sbr.rel (%p163_p2) target bundleno = 380 (0x17c), region = 36 }
   0xb   : > { %v2256_v0 = vld [vmem:[%s2955_s1 + $0x78] sm:$0xff]  ;;  %v2255_v1 = vld [vmem:[%s2955_s1 + $0x70] sm:$0xff]  ;;  %s2966_s16 = smov (!%p188_p3, %s1734_s16), 1  ;;  %v2254_v4 = vld [vmem:[%s2955_s1 + $0x68] sm:$0xff]  ;;  %vm267_vm0 = vsmask.f32 7424 }
   0xc   : > { %360 = vmatpush.bf16.msra.mxu0 %v2256_v0  ;;  %2333 = vmatpush.bf16.msra.mxu1 %v2256_v0  ;;  %v2277_v2 = vld [vmem:[%s2955_s1 + $0xf8] sm:$0xff]  ;;  %v2276_v3 = vld [vmem:[%s2955_s1 + $0xf0] sm:$0xff]  ;;  %s2349_s27 = smul.u32 52, %s2966_s16  ;;  %v2275_v5 = vld [vmem:[%s2955_s1 + $0xe8] sm:$0xff]  ;;  %vm505_vm1 = vcmask 1046528   ;;  %vm994_vm4 = vcmask 1045504  }
   0xd   : > { %2334 = vmatpush.bf16.msra.mxu2 %v2256_v0  ;;  %726 = vmatpush.bf16.msra.mxu3 %v2277_v2  ;;  %v2253_v6 = vld [vmem:[%s2955_s1 + $0x60] sm:$0xff]  ;;  %v2252_v10 = vld [vmem:[%s2955_s1 + $0x58] sm:$0xff]  ;;  %v2251_v17 = vld [vmem:[%s2955_s1 + $0x50] sm:$0xff]  ;;  %vm826_vm2 = vsmask.f32 6400  ;;  %vm1460_vm5 = vcmask 1044480  }
   0xe   : > { %s2433_s8 = scalar_lea.vmem %s2954_s0, %s2349_s27  ;;  %v2274_v9 = vld [vmem:[%s2955_s1 + $0xe0] sm:$0xff]  ;;  %v2273_v13 = vld [vmem:[%s2955_s1 + $0xd8] sm:$0xff]  ;;  %v2272_v19 = vld [vmem:[%s2955_s1 + $0xd0] sm:$0xff]  ;;  %vm1288_vm3 = vsmask.f32 5376  ;;  %s2237_s29 = sshll.u32 %s2966_s16, 5 }
   0xf   : > { %v2436_v7 = vld [vmem:[%s2433_s8 + $0x20] sm:$0xff]   ;;  %v2451_v12 = vld [vmem:[%s2433_s8 + $0x10] sm:$0xff]  ;;  %v2457_v14 = vld [vmem:[%s2433_s8 + $0x8] sm:$0xff]  ;;  %s2891_s6 = scalar_lea.vmem %s2958_s4, %s2237_s29  ;;  %vm1620_vm6 = vcmask 1042432   ;;  %vm1621_vm7 = vcmask 1046532   ;;  %vm1631_vm9 = vcmask 1041408  }
  0x10   : > { %361 = vmatpush.bf16.msra.mxu0 %v2255_v1  ;;  %2335 = vmatpush.bf16.msra.mxu1 %v2255_v1  ;;  %v2439_v8 = vld [vmem:[%s2433_s8 + $0x20] sm:$0xf]   ;;  %v2461_v16 = vld [vmem:[%s2433_s8 + $0x18] sm:$0xff]  ;;  %v284_v18 = vshll.u32 %v2451_v12, 16  ;;  %v276_v22 = vshll.u32 %v2457_v14, 16  ;;  %v2250_v24 = vld [vmem:[%s2955_s1 + $0x48] sm:$0xff] }
  0x11   : > { %2336 = vmatpush.bf16.msra.mxu2 %v2255_v1  ;;  %727 = vmatpush.bf16.msra.mxu3 %v2276_v3  ;;  %v2448_v11 = vld [vmem:[%s2433_s8] sm:$0xff]   ;;  %v292_v23 = vshll.u32 %v2461_v16, 16  ;;  %v288_v26 = vshrl.u32 %v2451_v12, 16  ;;  %v300_v27 = vshll.u32 %v2436_v7, 16  ;;  %v2265_v29 = vld [vmem:[%s2433_s8 + $0x4] sm:$0xf0]  ;;  %vm2901_vm8 = vmor %vm1620_vm6, %vm1621_vm7 }
  0x12   : > { %v271_v15 = vshll.u32 %v2448_v11, 16  ;;  %v269_v20 = vshrl.u32 %v2448_v11, 16  ;;  %v2476_v25 = vrot.slane %v284_v18, 1  ;;  %v1900_v28 = vld [vmem:[%s2433_s8 + $0x4] sm:$0xe]  ;;  %v2271_v30 = vld [vmem:[%s2955_s1 + $0xc8] sm:$0xff] }
  0x13   : > { %v278_v32 = vrot.slane %v276_v22, 1  ;;  %v294_v33 = vrot.slane %v292_v23, 1  ;;  %v2249_v34 = vld [vmem:[%s2955_s1 + $0x40] sm:$0xff]  ;;  %v2489_v36 = vrot.slane %v300_v27, 1  ;;  %v304_v37 = vshrl.u32 %v2436_v7, 16  ;;  %v2493_v38 = vld [vmem:[%s2433_s8 + $0xc] sm:$0xff] }
  0x14   : > { %362 = vmatpush.bf16.msra.mxu0 %v2254_v4  ;;  %2337 = vmatpush.bf16.msra.mxu1 %v2254_v4  ;;  %v273_v21 = vrot.slane %v271_v15, 1  ;;  %v290_v35 = vor.u32 %v288_v26, %v2476_v25  ;;  %v1901_v39 = vor.u32 %v2265_v29, %v1900_v28  ;;  %v2248_v40 = vld [vmem:[%s2955_s1 + $0x38] sm:$0xff]  ;;  %v2270_v46 = vld [vmem:[%s2955_s1 + $0xc0] sm:$0xff]  ;;  %v665_v48 = vrot.slane %v2493_v38, 1  ;;  %v2247_v49 = vld [vmem:[%s2955_s1 + $0x30] sm:$0xff] }
  0x15   : > { %2338 = vmatpush.bf16.msra.mxu2 %v2254_v4  ;;  %728 = vmatpush.bf16.msra.mxu3 %v2275_v5  ;;  %v2264_v41 = vld [vmem:[%s2955_s1 + $0xb8] sm:$0xff]  ;;  %v306_v45 = vor.u32 %v304_v37, %v2489_v36  ;;  %v2263_v51 = vld [vmem:[%s2955_s1 + $0xb0] sm:$0xff]  ;;  %v2246_v54 = vld [vmem:[%s2955_s1 + $0x28] sm:$0xff]  ;;  %v280_v58 = vshrl.u32 %v2457_v14, 16  ;;  %v296_v59 = vshrl.u32 %v2461_v16, 16  ;;  %vm1632_vm10 = vcmask 1045508  }
  0x16   : > { %v274_v31 = vor.u32 %v273_v21, %v269_v20  ;;  %v2289_v42 = vld [vmem:[%s2955_s1 + $0x138] sm:$0xff]  ;;  %v295_v44 = vsel %vm267_vm0, %v290_v35, %v294_v33  ;;  %v664_v47 = vrot.slane %v1901_v39, 1  ;;  %v2288_v52 = vld [vmem:[%s2955_s1 + $0x130] sm:$0xff]  ;;  %v2262_v56 = vld [vmem:[%s2955_s1 + $0xa8] sm:$0xff]  ;;  %vm1642_vm12 = vcmask 1040384  }
  0x17   : > { %v2317_v50 = vld [vmem:[%s2955_s1 + $0x1f8] sm:$0xff]  ;;  %v2316_v55 = vld [vmem:[%s2955_s1 + $0x1f0] sm:$0xff]  ;;  %v2287_v57 = vld [vmem:[%s2955_s1 + $0x128] sm:$0xff]  ;;  %v282_v3 = vor.u32 %v280_v58, %v278_v32  ;;  %v298_v4 = vor.u32 %v296_v59, %v294_v33  ;;  %v511_v58 = vrot.slane %v2461_v16, 1  ;;  %v513_v59 = vrot.slane %v2436_v7, 1 }
  0x18   : > { %363 = vmatpush.bf16.msra.mxu0 %v2253_v6  ;;  %2339 = vmatpush.bf16.msra.mxu1 %v2253_v6  ;;  %v279_v43 = vsel %vm267_vm0, %v274_v31, %v278_v32  ;;  %v666_v53 = vsel %vm505_vm1, %v664_v47, %v665_v48  ;;  %v770_v60 = vld [vmem:[%s2433_s8 + $0x4] sm:$0xe]  ;;  %v2542_v61 = vld [vmem:[%s2433_s8 + $0x8] sm:$0xff]   ;;  %v2555_v5 = vld [vmem:[%s2433_s8 + $0x14] sm:$0xff]  ;;  %vm1643_vm13 = vcmask 1044484  }
  0x19   : > { %2340 = vmatpush.bf16.msra.mxu2 %v2253_v6  ;;  %729 = vmatpush.bf16.msra.mxu3 %v2274_v9  ;;  %v2245_v62 = vld [vmem:[%s2955_s1 + $0x20] sm:$0xff]  ;;  %v809_v1 = vunpack.c.l.b16 %v770_v60  ;;  %v810_v2 = vunpack.c.l.b16 %v2542_v61  ;;  %v2244_v6 = vld [vmem:[%s2955_s1 + $0x18] sm:$0xff]  ;;  %v287_v15 = vsel %vm267_vm0, %v282_v3, %v2476_v25  ;;  %v2573_v18 = vld [vmem:[%s2433_s8 + $0xc] sm:$0xff] }
  0x1a   : > { %v2261_v63 = vld [vmem:[%s2955_s1 + $0xa0] sm:$0xff]  ;;  %v2260_v9 = vld [vmem:[%s2955_s1 + $0x98] sm:$0xff]  ;;  %v2243_v20 = vld [vmem:[%s2955_s1 + $0x10] sm:$0xff]  ;;  %v836_v28 = vshrl.u32 %v2573_v18, 16  ;;  %v839_v29 = vshll.u32 %v2573_v18, 16 }
  0x1b   : > { %v2286_v0 = vld [vmem:[%s2955_s1 + $0x120] sm:$0xff]  ;;  %v2259_v21 = vld [vmem:[%s2955_s1 + $0x90] sm:$0xff]  ;;  %v2315_v26 = vld [vmem:[%s2955_s1 + $0x1e8] sm:$0xff] }
  0x1c   : > { %364 = vmatpush.bf16.msra.mxu0 %v2252_v10  ;;  %2341 = vmatpush.bf16.msra.mxu1 %v2252_v10  ;;  %v2284_v22 = vld [vmem:[%s2955_s1 + $0x110] sm:$0xff]  ;;  %v2330_v23 = vld [vmem:[%s2433_s8] sm:$0xf0]  ;;  %v2242_v31 = vld [vmem:[%s2955_s1 + $0x8] sm:$0xff]  ;;  %v838_v37 = vrot.slane %v836_v28, 1  ;;  %v841_v38 = vrot.slane %v839_v29, 2 }
  0x1d   : > { %2342 = vmatpush.bf16.msra.mxu2 %v2252_v10  ;;  %730 = vmatpush.bf16.msra.mxu3 %v2273_v13  ;;  %v2285_v10 = vld [vmem:[%s2955_s1 + $0x118] sm:$0xff]  ;;  %v820_v13 = vpack.c.b16 %v810_v2, %v809_v1  ;;  %v2258_v32 = vld [vmem:[%s2955_s1 + $0x88] sm:$0xff]  ;;  %v2241_v39 = vld [vmem:[%s2955_s1] sm:$0xff] }
  0x1e   : > { %v2283_v33 = vld [vmem:[%s2955_s1 + $0x108] sm:$0xff]  ;;  %v842_v47 = vor.u32 %v841_v38, %v838_v37  ;;  %v2313_v3 = vld [vmem:[%s2955_s1 + $0x1d8] sm:$0xff]  ;;  %v2312_v28 = vld [vmem:[%s2955_s1 + $0x1d0] sm:$0xff] }
  0x1f   : > { %v828_v25 = vshrl.u32 %v820_v13, 16  ;;  %v831_v27 = vshll.u32 %v820_v13, 16  ;;  %v2323_v1 = vld [vmem:[%s2955_s1 + $0x228] sm:$0xff]  ;;  %v2322_v13 = vld [vmem:[%s2955_s1 + $0x220] sm:$0xff]  ;;  %v2292_v29 = vld [vmem:[%s2955_s1 + $0x150] sm:$0xff] }
  0x20   : > { %365 = vmatpush.bf16.msra.mxu0 %v2251_v17  ;;  %2343 = vmatpush.bf16.msra.mxu1 %v2251_v17  ;;  %vm2911_vm11 = vmor %vm1631_vm9, %vm1632_vm10 }
  0x21   : > { %2344 = vmatpush.bf16.msra.mxu2 %v2251_v17  ;;  %731 = vmatpush.bf16.msra.mxu3 %v2272_v19  ;;  %v303_v17 = vsel %vm267_vm0, %v298_v4, %v2489_v36  ;;  %v667_v19 = vrot.slane %v2555_v5, 1  ;;  %v830_v35 = vrot.slane %v828_v25, 1  ;;  %v833_v36 = vrot.slane %v831_v27, 2  ;;  %v2321_v27 = vld [vmem:[%s2955_s1 + $0x218] sm:$0xff]  ;;  %vm2921_vm14 = vmor %vm1642_vm12, %vm1643_vm13 }
  0x22   : > { %v2671_v4 = vsel %vm505_vm1, %v511_v58, %v513_v59 }
  0x24   : > { %366 = vmatpush.bf16.msra.mxu0 %v2250_v24  ;;  %2345 = vmatpush.bf16.msra.mxu1 %v2250_v24 }
  0x25   : > { %2346 = vmatpush.bf16.msra.mxu2 %v2250_v24  ;;  %732 = vmatpush.bf16.msra.mxu3 %v2271_v30  ;;  %v2331_v24 = vld [vmem:[%s2433_s8] sm:$0xe]  ;;  %v668_v30 = vsel %vm505_vm1, %v665_v48, %v667_v19  ;;  %v2325_v48 = vld [vmem:[%s2955_s1 + $0x238] sm:$0xff] }
  0x28   : > { %367 = vmatpush.bf16.msra.mxu0 %v2249_v34  ;;  %2347 = vmatpush.bf16.msra.mxu1 %v2249_v34 }
  0x29   : > { %2348 = vmatpush.bf16.msra.mxu2 %v2249_v34  ;;  %733 = vmatpush.bf16.msra.mxu3 %v2270_v46  ;;  %v2332_v34 = vor.u32 %v2331_v24, %v2330_v23  ;;  %v834_v46 = vor.u32 %v833_v36, %v830_v35  ;;  %v2693_v24 = vld [vmem:[%s2433_s8 + $0x1c] sm:$0xff] }
  0x2b   : > { %368 = vmatmul.bf16.vlgmr.msra.gmra.mxu0 %v279_v43  ;;  %378 = vmatmul.bf16.vlgmr.msra.gmra.mxu1 %v295_v44  ;;  %v2282_v43 = vld [vmem:[%s2955_s1 + $0x100] sm:$0xff]  ;;  %v2309_v44 = vld [vmem:[%s2955_s1 + $0x1b8] sm:$0xff] }
  0x2c   : > { %450 = vmatpush.bf16.msrb.mxu1 %v2248_v40  ;;  %929 = vmatpush.bf16.msrb.mxu0 %v2289_v42  ;;  %v2257_v40 = vld [vmem:[%s2955_s1 + $0x80] sm:$0xff]  ;;  %v507_v42 = vrot.slane %v2457_v14, 1 }
  0x2d   : > { %568 = vmatpush.bf16.msrb.mxu2 %v2264_v41  ;;  %1395 = vmatpush.bf16.msrb.mxu3 %v2317_v50  ;;  %v506_v41 = vrot.slane %v2332_v34, 1  ;;  %v2311_v34 = vld [vmem:[%s2955_s1 + $0x1c8] sm:$0xff] }
  0x2e   : > { %388 = vmatmul.bf16.vlgmr.msra.gmra.mxu2 %v306_v45  ;;  %734 = vmatmul.bf16.vlgmr.msra.gmra.mxu3 %v666_v53  ;;  %v2297_v45 = vld [vmem:[%s2955_s1 + $0x178] sm:$0xff]  ;;  %v2296_v53 = vld [vmem:[%s2955_s1 + $0x170] sm:$0xff] }
  0x2f   : > { %v508_v50 = vsel %vm505_vm1, %v506_v41, %v507_v42 }
  0x30   : > { %451 = vmatpush.bf16.msrb.mxu1 %v2247_v49  ;;  %930 = vmatpush.bf16.msrb.mxu0 %v2288_v52  ;;  %v2626_v49 = vld [vmem:[%s2433_s8 + $0x1c] sm:$0xff]  ;;  %v2308_v52 = vld [vmem:[%s2955_s1 + $0x1b0] sm:$0xff] }
  0x31   : > { %569 = vmatpush.bf16.msrb.mxu2 %v2263_v51  ;;  %1396 = vmatpush.bf16.msrb.mxu3 %v2316_v55  ;;  %v843_v51 = vsel %vm826_vm2, %v834_v46, %v842_v47  ;;  %v669_v55 = vrot.slane %v2626_v49, 1  ;;  %v2310_v49 = vld [vmem:[%s2955_s1 + $0x1c0] sm:$0xff] }
  0x34   : > { %452 = vmatpush.bf16.msrb.mxu1 %v2246_v54  ;;  %931 = vmatpush.bf16.msrb.mxu0 %v2287_v57  ;;  %v2637_v54 = vld [vmem:[%s2433_s8 + $0x14] sm:$0xff]  ;;  %v2314_v57 = vld [vmem:[%s2955_s1 + $0x1e0] sm:$0xff] }
  0x35   : > { %570 = vmatpush.bf16.msrb.mxu2 %v2262_v56  ;;  %1397 = vmatpush.bf16.msrb.mxu3 %v2315_v26  ;;  %v2324_v56 = vld [vmem:[%s2955_s1 + $0x230] sm:$0xff]  ;;  %v845_v60 = vshrl.u32 %v2637_v54, 16 }
  0x36   : > { %v2304_v26 = vld [vmem:[%s2955_s1 + $0x190] sm:$0xff] }
  0x37   : > { %v847_v5 = vrot.slane %v845_v60, 1 }
  0x38   : > { %453 = vmatpush.bf16.msrb.mxu1 %v2245_v62  ;;  %932 = vmatpush.bf16.msrb.mxu0 %v2286_v0  ;;  %v848_v62 = vshll.u32 %v2637_v54, 16  ;;  %v2295_v0 = vld [vmem:[%s2955_s1 + $0x168] sm:$0xff] }
  0x39   : > { %571 = vmatpush.bf16.msrb.mxu2 %v2261_v63  ;;  %v2307_v63 = vld [vmem:[%s2955_s1 + $0x1a8] sm:$0xff]  ;;  %1398 = vmatpush.bf16.msrb.mxu3 %v2314_v57 }
  0x3b   : > { %373 = vmatmul.bf16.gmra.mxu0 %v287_v15  ;;  %383 = vmatmul.bf16.gmra.mxu1 %v303_v17  ;;  %v509_v15 = vrot.slane %v2451_v12, 1 }
  0x3c   : > { %454 = vmatpush.bf16.msrb.mxu1 %v2244_v6  ;;  %933 = vmatpush.bf16.msrb.mxu0 %v2285_v10  ;;  %v850_v6 = vrot.slane %v848_v62, 2  ;;  %v2294_v10 = vld [vmem:[%s2955_s1 + $0x160] sm:$0xff] }
  0x3d   : > { %572 = vmatpush.bf16.msrb.mxu2 %v2260_v9  ;;  %v2306_v9 = vld [vmem:[%s2955_s1 + $0x1a0] sm:$0xff]  ;;  %1399 = vmatpush.bf16.msrb.mxu3 %v2313_v3  ;;  %v512_v38 = vsel %vm505_vm1, %v509_v15, %v511_v58 }
  0x3e   : > { %739 = vmatmul.bf16.gmra.mxu3 %v668_v30  ;;  %v851_v17 = vor.u32 %v850_v6, %v847_v5  ;;  %v854_v30 = vshrl.u32 %v2693_v24, 16  ;;  %v2318_v3 = vld [vmem:[%s2955_s1 + $0x200] sm:$0xff] }
  0x40   : > { %455 = vmatpush.bf16.msrb.mxu1 %v2243_v20  ;;  %934 = vmatpush.bf16.msrb.mxu0 %v2284_v22  ;;  %v2269_v20 = vld [vmem:[%s2433_s8 + $0x24] sm:$0xff]  ;;  %v510_v22 = vsel %vm505_vm1, %v507_v42, %v509_v15  ;;  %v852_v23 = vsel %vm826_vm2, %v842_v47, %v851_v17  ;;  %v856_v35 = vrot.slane %v854_v30, 1 }
  0x41   : > { %573 = vmatpush.bf16.msrb.mxu2 %v2259_v21  ;;  %v2293_v21 = vld [vmem:[%s2955_s1 + $0x158] sm:$0xff]  ;;  %v671_v25 = vrot.slane %v2269_v20, 1  ;;  %1400 = vmatpush.bf16.msrb.mxu3 %v2312_v28  ;;  %v2302_v47 = vld [vmem:[%s2955_s1 + $0x180] sm:$0xff] }
  0x44   : > { %456 = vmatpush.bf16.msrb.mxu1 %v2242_v31  ;;  %935 = vmatpush.bf16.msrb.mxu0 %v2283_v33  ;;  %v857_v31 = vshll.u32 %v2693_v24, 16  ;;  %v2320_v33 = vld [vmem:[%s2955_s1 + $0x210] sm:$0xff] }
  0x45   : > { %574 = vmatpush.bf16.msrb.mxu2 %v2258_v32  ;;  %v672_v32 = vsel %vm505_vm1, %v669_v55, %v671_v25  ;;  %1401 = vmatpush.bf16.msrb.mxu3 %v2311_v34 }
  0x46   : > { %v859_v36 = vrot.slane %v857_v31, 2 }
  0x48   : > { %457 = vmatpush.bf16.msrb.mxu1 %v2241_v39  ;;  %936 = vmatpush.bf16.msrb.mxu0 %v2282_v43  ;;  %v860_v37 = vor.u32 %v859_v36, %v856_v35  ;;  %v2724_v39 = vld [vmem:[%s2433_s8 + $0x24] sm:$0xff]  ;;  %v1143_v43 = vunpack.c.h.b16 %v2542_v61 }
  0x49   : > { %575 = vmatpush.bf16.msrb.mxu2 %v2257_v40  ;;  %v1103_v40 = vld [vmem:[%s2433_s8 + $0x8] sm:$0xc]  ;;  %v866_v46 = vshll.u32 %v2724_v39, 16  ;;  %1402 = vmatpush.bf16.msrb.mxu3 %v2310_v49  ;;  %v998_v49 = vrot.slane %v2637_v54, 2 }
  0x4a   : > { %v861_v41 = vsel %vm826_vm2, %v851_v17, %v860_v37  ;;  %v1142_v42 = vunpack.c.l.b16 %v1103_v40  ;;  %v2769_v17 = vld [vmem:[%s2433_s8 + $0x18] sm:$0xff] }
  0x4b   : > { %458 = vmatmul.bf16.vlgmr.msrb.gmra.mxu1 %v2448_v11  ;;  %937 = vmatmul.bf16.vlgmr.msrb.gmra.mxu0 %v843_v51  ;;  %v670_v11 = vsel %vm505_vm1, %v667_v19, %v669_v55  ;;  %v2305_v19 = vld [vmem:[%s2955_s1 + $0x198] sm:$0xff] }
  0x4c   : > { %1059 = vmatpush.bf16.msra.mxu1 %v2297_v45  ;;  %1525 = vmatpush.bf16.msra.mxu0 %v2325_v48  ;;  %v863_v45 = vshrl.u32 %v2724_v39, 16  ;;  %v2319_v48 = vld [vmem:[%s2955_s1 + $0x208] sm:$0xff]  ;;  %v2752_v51 = vpack.c.b16 %v1143_v43, %v1142_v42 }
  0x4d   : > { %1223 = vmatpush.bf16.msra.mxu2 %v2309_v44  ;;  %v2291_v44 = vld [vmem:[%s2955_s1 + $0x148] sm:$0xff] }
  0x4e   : > { %576 = vmatmul.bf16.vlgmr.msrb.gmra.mxu2 %v508_v50  ;;  %744 = vmatmul.bf16.gmra.mxu3 %v670_v11  ;;  %v2748_v50 = vld [vmem:[%s2433_s8 + $0x10] sm:$0xff]  ;;  %v1290_v55 = vshrl.u32 %v2752_v51, 16 }
  0x4f   : > { %v1298_v57 = vshrl.u32 %v2748_v50, 16  ;;  %v1301_v58 = vshll.u32 %v2748_v50, 16  ;;  %v1160_v35 = vrot.slane %v2748_v50, 2 }
  0x50   : > { %1060 = vmatpush.bf16.msra.mxu1 %v2296_v53  ;;  %1526 = vmatpush.bf16.msra.mxu0 %v2324_v56  ;;  %v868_v53 = vrot.slane %v866_v46, 2  ;;  %v1293_v56 = vshll.u32 %v2752_v51, 16  ;;  %v1292_v62 = vrot.slane %v1290_v55, 2 }
  0x51   : > { %1224 = vmatpush.bf16.msra.mxu2 %v2308_v52  ;;  %v865_v52 = vrot.slane %v863_v45, 1  ;;  %v1303_v11 = vrot.slane %v1301_v58, 3 }
  0x53   : > { %v869_v60 = vor.u32 %v868_v53, %v865_v52  ;;  %v1267_v53 = vld [vmem:[%s2433_s8 + $0x30] sm:$0x3] }
  0x54   : > { %1061 = vmatpush.bf16.msra.mxu1 %v2295_v0  ;;  %1527 = vmatpush.bf16.msra.mxu0 %v2323_v1  ;;  %v1300_v0 = vrot.slane %v1298_v57, 2  ;;  %v780_v1 = vld [vmem:[%s2433_s8 + $0x2c] sm:$0x1] }
  0x55   : > { %1225 = vmatpush.bf16.msra.mxu2 %v2307_v63  ;;  %v1295_v63 = vrot.slane %v1293_v56, 3  ;;  %v870_v5 = vsel %vm826_vm2, %v860_v37, %v869_v60  ;;  %v819_v6 = vunpack.c.l.b16 %v780_v1  ;;  %v996_v37 = vrot.slane %v2573_v18, 2  ;;  %v2800_v18 = vld [vmem:[%s2433_s8 + $0x28] sm:$0xff] }
  0x56   : > { %v1325_v46 = vshrl.u32 %v2800_v18, 16 }
  0x57   : > { %v999_v57 = vsel %vm994_vm4, %v996_v37, %v998_v49 }
  0x58   : > { %1062 = vmatpush.bf16.msra.mxu1 %v2294_v10  ;;  %1528 = vmatpush.bf16.msra.mxu0 %v2322_v13  ;;  %v1304_v10 = vor.u32 %v1303_v11, %v1300_v0  ;;  %v2765_v13 = vpack.c.b16 %v819_v6, %v819_v6 }
  0x59   : > { %1226 = vmatpush.bf16.msra.mxu2 %v2306_v9  ;;  %v1296_v9 = vor.u32 %v1295_v63, %v1292_v62  ;;  %v1286_v62 = vunpack.c.l.b16 %v1267_v53 }
  0x5a   : > { %v872_v20 = vshll.u32 %v2765_v13, 16 }
  0x5b   : > { %463 = vmatmul.bf16.gmra.mxu1 %v2457_v14  ;;  %942 = vmatmul.bf16.gmra.mxu0 %v852_v23  ;;  %v2303_v14 = vld [vmem:[%s2955_s1 + $0x188] sm:$0xff]  ;;  %v1305_v15 = vsel %vm1288_vm3, %v1296_v9, %v1304_v10  ;;  %v2814_v63 = vpack.c.b16 %v1286_v62, %v1286_v62  ;;  %v1000_v9 = vrot.slane %v2693_v24, 2 }
  0x5c   : > { %1063 = vmatpush.bf16.msra.mxu1 %v2293_v21  ;;  %1529 = vmatpush.bf16.msra.mxu0 %v2321_v27  ;;  %v1307_v21 = vshrl.u32 %v2769_v17, 16  ;;  %v973_v27 = vld [vmem:[%s2433_s8 + $0x4] sm:$0xc] }
  0x5d   : > { %1227 = vmatpush.bf16.msra.mxu2 %v2305_v19  ;;  %v2368_v19 = vld [vmem:[%s2433_s8 + $0x20] sm:$0x70]  ;;  %v992_v30 = vunpack.c.l.b16 %v973_v27  ;;  %v1334_v1 = vshrl.u32 %v2814_v63, 16 }
  0x5e   : > { %581 = vmatmul.bf16.gmra.mxu2 %v510_v22  ;;  %749 = vmatmul.bf16.gmra.mxu3 %v672_v32  ;;  %v874_v22 = vrot.slane %v872_v20, 2  ;;  %v1309_v23 = vrot.slane %v1307_v21, 2 }
  0x60   : > { %1064 = vmatpush.bf16.msra.mxu1 %v2292_v29  ;;  %1530 = vmatpush.bf16.msra.mxu0 %v2320_v33  ;;  %v1439_v29 = vld [vmem:[%s2433_s8 + $0x8] sm:$0x8]  ;;  %v993_v33 = vpack.c.b16 %v810_v2, %v992_v30  ;;  %v1462_v2 = vrot.slane %v2748_v50, 3  ;;  %v1327_v50 = vrot.slane %v1325_v46, 2  ;;  %v1004_v46 = vrot.slane %v2765_v13, 2 }
  0x61   : > { %1228 = vmatpush.bf16.msra.mxu2 %v2304_v26  ;;  %v875_v26 = vsel %vm826_vm2, %v869_v60, %v874_v22  ;;  %v1458_v31 = vunpack.c.l.b16 %v1439_v29 }
  0x62   : > { %v995_v36 = vrot.slane %v993_v33, 2  ;;  %v1113_v33 = vld [vmem:[%s2433_s8 + $0x30] sm:$0x1] }
  0x64   : > { %1065 = vmatpush.bf16.msra.mxu1 %v2291_v44  ;;  %1531 = vmatpush.bf16.msra.mxu0 %v2319_v48  ;;  %v997_v42 = vsel %vm994_vm4, %v995_v36, %v996_v37  ;;  %v1162_v48 = vrot.slane %v2769_v17, 2  ;;  %v1152_v36 = vunpack.c.l.b16 %v1113_v33 }
  0x65   : > { %1229 = vmatpush.bf16.msra.mxu2 %v2303_v14  ;;  %v2783_v14 = vld [vmem:[%s2433_s8 + $0x20] sm:$0xff] }
  0x66   : > { %v1316_v34 = vshrl.u32 %v2783_v14, 16  ;;  %v1319_v7 = vshll.u32 %v2783_v14, 16  ;;  %v1163_v52 = vsel %vm994_vm4, %v1160_v35, %v1162_v48 }
  0x68   : > { %1532 = vmatpush.bf16.msra.mxu0 %v2318_v3  ;;  %v1318_v40 = vrot.slane %v1316_v34, 2  ;;  %v1337_v3 = vshll.u32 %v2814_v63, 16 }
  0x69   : > { %1230 = vmatpush.bf16.msra.mxu2 %v2302_v47  ;;  %v1328_v47 = vshll.u32 %v2800_v18, 16 }
  0x6b   : > { %468 = vmatmul.bf16.gmra.mxu1 %v2451_v12  ;;  %947 = vmatmul.bf16.gmra.mxu0 %v861_v41  ;;  %v2290_v12 = vld [vmem:[%s2955_s1 + $0x140] sm:$0xff]  ;;  %v1321_v41 = vrot.slane %v1319_v7, 3 }
  0x6c   : > { %1066 = vmatpush.bf16.msra.mxu1 %v2290_v12  ;;  %v1464_v12 = vrot.slane %v2769_v17, 3 }
  0x6d   : > { %v1322_v44 = vor.u32 %v1321_v41, %v1318_v40 }
  0x6e   : > { %586 = vmatmul.bf16.gmra.mxu2 %v512_v38  ;;  %754 = vmatmul.bf16.gmra.mxu3 %v671_v25  ;;  %v2363_v25 = vor.u32 %v2368_v19, %v2439_v8  ;;  %v1459_v8 = vpack.c.b16 %v1143_v43, %v1458_v31  ;;  %v1465_v58 = vsel %vm1460_vm5, %v1462_v2, %v1464_v12  ;;  %v1002_v31 = vrot.slane %v2724_v39, 2 }
  0x6f   : > { %v1158_v39 = vpack.c.b16 %v1152_v36, %v1152_v36 }
  0x70   : > { %v1461_v38 = vrot.slane %v1459_v8, 3  ;;  %v1003_v7 = vsel %vm994_vm4, %v1000_v9, %v1002_v31 }
  0x72   : > { %v1463_v43 = vsel %vm1460_vm5, %v1461_v38, %v1462_v2 }
  0x7b   : > { %473 = vmatmul.bf16.gmra.mxu1 %v2461_v16  ;;  %952 = vmatmul.bf16.gmra.mxu0 %v870_v5  ;;  %v1164_v5 = vrot.slane %v2783_v14, 2 }
  0x7d   : > { %v1165_v19 = vsel %vm994_vm4, %v1162_v48, %v1164_v5 }
  0x7e   : > { %591 = vmatmul.bf16.gmra.mxu2 %v2671_v4  ;;  %1403 = vmatmul.bf16.vlgmr.msrb.gmra.mxu3 %v1305_v15  ;;  %v1310_v4 = vshll.u32 %v2769_v17, 16  ;;  %v1336_v15 = vrot.slane %v1334_v1, 2  ;;  %v1339_v17 = vrot.slane %v1337_v3, 3 }
  0x80   : > { %v1312_v16 = vrot.slane %v1310_v4, 3  ;;  %v1001_v4 = vsel %vm994_vm4, %v998_v49, %v1000_v9 }
  0x82   : > { %v1313_v28 = vor.u32 %v1312_v16, %v1309_v23  ;;  %v1340_v23 = vor.u32 %v1339_v17, %v1336_v15 }
  0x84   : > { %v1314_v32 = vsel %vm1288_vm3, %v1304_v10, %v1313_v28  ;;  %v1323_v45 = vsel %vm1288_vm3, %v1313_v28, %v1322_v44  ;;  %v1466_v10 = vrot.slane %v2783_v14, 3  ;;  %v1166_v28 = vrot.slane %v2800_v18, 2 }
  0x86   : > { %v1467_v22 = vsel %vm1460_vm5, %v1464_v12, %v1466_v10  ;;  %v1167_v14 = vsel %vm994_vm4, %v1164_v5, %v1166_v28 }
  0x8b   : > { %478 = vmatmul.bf16.gmra.mxu1 %v2363_v25  ;;  %957 = vmatmul.bf16.gmra.mxu0 %v875_v26 }
  0x8e   : > { %596 = vmatmul.bf16.gmra.mxu2 %v513_v59  ;;  %1408 = vmatmul.bf16.gmra.mxu3 %v1314_v32  ;;  %v1159_v59 = vrot.slane %v2752_v51, 2  ;;  %v1330_v51 = vrot.slane %v1328_v47, 3  ;;  %v1468_v32 = vrot.slane %v2800_v18, 3  ;;  %v1470_v47 = vrot.slane %v2814_v63, 3 }
  0x90   : > { %v1161_v61 = vsel %vm994_vm4, %v1159_v59, %v1160_v35  ;;  %v1331_v60 = vor.u32 %v1330_v51, %v1327_v50  ;;  %v1469_v59 = vsel %vm1460_vm5, %v1466_v10, %v1468_v32  ;;  %v1471_v53 = vsel %vm1460_vm5, %v1468_v32, %v1470_v47 }
  0x92   : > { %v1332_v54 = vsel %vm1288_vm3, %v1322_v44, %v1331_v60  ;;  %v1341_v24 = vsel %vm1288_vm3, %v1331_v60, %v1340_v23  ;;  %v1168_v44 = vrot.slane %v1158_v39, 2 }
  0x94   : > { %v1169_v49 = vsel %vm994_vm4, %v1166_v28, %v1168_v44 }
  0x9b   : > { %1067 = vmatmul.bf16.vlgmr.msra.gmra.mxu1 %v997_v42  ;;  %1533 = vmatmul.bf16.vlgmr.msra.gmra.mxu0 %v1463_v43 }
  0x9e   : > { %1231 = vmatmul.bf16.vlgmr.msra.gmra.mxu2 %v1161_v61  ;;  %1413 = vmatmul.bf16.gmra.mxu3 %v1323_v45 }
  0xa8   : > { %v369_v55 = vpop.f32.mrf.mxu0  ;;  %v2809_v56 = vpop.f32.mrf.mxu1 }
  0xab   : > { %1072 = vmatmul.bf16.gmra.mxu1 %v999_v57  ;;  %1538 = vmatmul.bf16.gmra.mxu0 %v1465_v58 }
  0xae   : > { %1236 = vmatmul.bf16.gmra.mxu2 %v1163_v52  ;;  %1418 = vmatmul.bf16.gmra.mxu3 %v1332_v54  ;;  %v1005_v52 = vsel %vm994_vm4, %v1002_v31, %v1004_v46 }
  0xb0   : > { %v371_v0 = vpop.f32.mrf.mxu0  ;;  %v2816_v11 = vpop.f32.mrf.mxu1 }
  0xb1   : > { %v735_v6 = vpop.f32.mrf.mxu3  ;;  %v2828_v16 = vpop.f32.mrf.mxu2 }
  0xb8   : > { %v374_v20 = vpop.f32.mrf.mxu0  ;;  %v2824_v21 = vpop.f32.mrf.mxu1 }
  0xb9   : > { %v737_v25 = vpop.f32.mrf.mxu3  ;;  %v2834_v30 = vpop.f32.mrf.mxu2 }
  0xbb   : > { %1077 = vmatmul.bf16.gmra.mxu1 %v1001_v4  ;;  %1543 = vmatmul.bf16.gmra.mxu0 %v1467_v22 }
  0xbe   : > { %1241 = vmatmul.bf16.gmra.mxu2 %v1165_v19  ;;  %1423 = vmatmul.bf16.gmra.mxu3 %v1341_v24 }
  0xc0   : > { %v376_v26 = vpop.f32.mrf.mxu0  ;;  %v2831_v27 = vpop.f32.mrf.mxu1 }
  0xc1   : > { %v740_v29 = vpop.f32.mrf.mxu3 }
  0xc8   : > { %v459_v8 = vpop.f32.mrf.mxu1  ;;  %v938_v34 = vpop.f32.mrf.mxu0 }
  0xc9   : > { %v460_v35 = vadd.f32 %v459_v8, %v369_v55  ;;  %v742_v37 = vpop.f32.mrf.mxu3 }
  0xcb   : > { %1082 = vmatmul.bf16.gmra.mxu1 %v1003_v7  ;;  %1548 = vmatmul.bf16.gmra.mxu0 %v1469_v59 }
  0xce   : > { %1246 = vmatmul.bf16.gmra.mxu2 %v1167_v14 }
  0xd0   : > { %v461_v41 = vpop.f32.mrf.mxu1  ;;  %v940_v61 = vpop.f32.mrf.mxu0 }
  0xd1   : > { %v577_v38 = vpop.f32.mrf.mxu2  ;;  %v462_v42 = vadd.f32 %v461_v41, %v371_v0  ;;  %v745_v45 = vpop.f32.mrf.mxu3 }
  0xd2   : > { %v602_v2 = vadd.f32 %v577_v38, %v460_v35 }
  0xd4   : > { %v760_v40 = vadd.f32 %v735_v6, %v602_v2 }
  0xd6   : > { %v2842_v43 = vadd.f32 %v938_v34, %v760_v40 }
  0xd8   : > { %v464_v50 = vpop.f32.mrf.mxu1  ;;  %v943_v51 = vpop.f32.mrf.mxu0 }
  0xd9   : > { %v579_v18 = vpop.f32.mrf.mxu2  ;;  %v465_v55 = vadd.f32 %v464_v50, %v374_v20  ;;  %v747_v58 = vpop.f32.mrf.mxu3 }
  0xda   : > { %v603_v48 = vadd.f32 %v579_v18, %v462_v42 }
  0xdb   : > { %1087 = vmatmul.bf16.gmra.mxu1 %v1005_v52  ;;  %1553 = vmatmul.bf16.gmra.mxu0 %v1471_v53 }
  0xdc   : > { %v761_v12 = vadd.f32 %v737_v25, %v603_v48 }
  0xde   : > { %1251 = vmatmul.bf16.gmra.mxu2 %v1169_v49  ;;  %v2849_v57 = vadd.f32 %v940_v61, %v761_v12 }
  0xe0   : > { %v466_v54 = vpop.f32.mrf.mxu1  ;;  %v945_v63 = vpop.f32.mrf.mxu0 }
  0xe1   : > { %v582_v13 = vpop.f32.mrf.mxu2  ;;  %v467_v0 = vadd.f32 %v466_v54, %v376_v26  ;;  %v750_v3 = vpop.f32.mrf.mxu3 }
  0xe2   : > { %v604_v60 = vadd.f32 %v582_v13, %v465_v55 }
  0xe4   : > { %v762_v62 = vadd.f32 %v740_v29, %v604_v60 }
  0xe6   : > { %v2851_v1 = vadd.f32 %v943_v51, %v762_v62 }
  0xe8   : > { %v469_v10 = vpop.f32.mrf.mxu1  ;;  %v948_v15 = vpop.f32.mrf.mxu0 }
  0xe9   : > { %v584_v5 = vpop.f32.mrf.mxu2  ;;  %v470_v17 = vadd.f32 %v469_v10, %v2809_v56  ;;  %v752_v22 = vpop.f32.mrf.mxu3 }
  0xea   : > { %v605_v6 = vadd.f32 %v584_v5, %v467_v0 }
  0xec   : > { %v763_v9 = vadd.f32 %v742_v37, %v605_v6  ;;  %v2882_v6 = vld [vmem:[%s2957_s3] ss:$0 sm:$0xff] }
  0xee   : > { %v2854_v19 = vadd.f32 %v945_v63, %v763_v9 }
  0xf0   : > { %v471_v25 = vpop.f32.mrf.mxu1  ;;  %v950_v24 = vpop.f32.mrf.mxu0 }
  0xf1   : > { %v587_v20 = vpop.f32.mrf.mxu2  ;;  %v472_v26 = vadd.f32 %v471_v25, %v2816_v11  ;;  %v755_v14 = vpop.f32.mrf.mxu3 }
  0xf2   : > { %v606_v4 = vadd.f32 %v587_v20, %v470_v17 }
  0xf4   : > { %v764_v23 = vadd.f32 %v745_v45, %v606_v4 }
  0xf6   : > { %v2857_v28 = vadd.f32 %v948_v15, %v764_v23 }
  0xf8   : > { %v474_v33 = vpop.f32.mrf.mxu1  ;;  %v953_v8 = vpop.f32.mrf.mxu0 }
  0xf9   : > { %v589_v29 = vpop.f32.mrf.mxu2  ;;  %v475_v56 = vadd.f32 %v474_v33, %v2824_v21  ;;  %v757_v11 = vpop.f32.mrf.mxu3 }
  0xfa   : > { %v607_v31 = vadd.f32 %v589_v29, %v472_v26 }
  0xfc   : > { %v765_v32 = vadd.f32 %v747_v58, %v607_v31 }
  0xfe   : > { %v2860_v34 = vadd.f32 %v950_v24, %v765_v32 }
 0x100   : > { %v476_v36 = vpop.f32.mrf.mxu1  ;;  %v955_v37 = vpop.f32.mrf.mxu0 }
 0x101   : > { %v592_v7 = vpop.f32.mrf.mxu2  ;;  %v477_v38 = vadd.f32 %v476_v36, %v2831_v27  ;;  %v1404_v45 = vpop.f32.mrf.mxu3 }
 0x102   : > { %v608_v59 = vadd.f32 %v592_v7, %v475_v56 }
 0x104   : > { %v766_v35 = vadd.f32 %v750_v3, %v608_v59 }
 0x106   : > { %v2863_v2 = vadd.f32 %v953_v8, %v766_v35 }
 0x108   : > { %v479_v61 = vpop.f32.mrf.mxu1  ;;  %v958_v42 = vpop.f32.mrf.mxu0 }
 0x109   : > { %v594_v39 = vpop.f32.mrf.mxu2  ;;  %v480_v44 = vadd.f32 %v479_v61, %v2828_v16  ;;  %v1406_v52 = vpop.f32.mrf.mxu3 }
 0x10a   : > { %v609_v40 = vadd.f32 %v594_v39, %v477_v38 }
 0x10c   : > { %v767_v41 = vadd.f32 %v752_v22, %v609_v40 }
 0x10e   : > { %v2866_v21 = vadd.f32 %v955_v37, %v767_v41 }
 0x110   : > { %v481_v48 = vpop.f32.mrf.mxu1  ;;  %v960_v49 = vpop.f32.mrf.mxu0 }
 0x111   : > { %v597_v18 = vpop.f32.mrf.mxu2  ;;  %v482_v27 = vadd.f32 %v481_v48, %v2834_v30  ;;  %v2877_v30 = vld [vmem:[%s2956_s2] ss:$0 sm:$0xff]  ;;  %v1409_v63 = vpop.f32.mrf.mxu3 }
 0x112   : > { %v610_v46 = vadd.f32 %v597_v18, %v480_v44 }
 0x114   : > { %v768_v47 = vadd.f32 %v755_v14, %v610_v46 }
 0x116   : > { %v2869_v12 = vadd.f32 %v958_v42, %v768_v47 }
 0x118   : > { %v1068_v55 = vpop.f32.mrf.mxu1  ;;  %v1534_v58 = vpop.f32.mrf.mxu0 }
 0x119   : > { %v599_v50 = vpop.f32.mrf.mxu2  ;;  %v1093_v16 = vadd.f32 %v1068_v55, %v2842_v43  ;;  %v1411_v26 = vpop.f32.mrf.mxu3 }
 0x11a   : > { %v611_v51 = vadd.f32 %v599_v50, %v482_v27 }
 0x11c   : > { %v769_v53 = vadd.f32 %v757_v11, %v611_v51 }
 0x11e   : > { %v2872_v13 = vadd.f32 %v960_v49, %v769_v53 }
 0x120   : > { %v1070_v0 = vpop.f32.mrf.mxu1  ;;  %v1536_v3 = vpop.f32.mrf.mxu0 }
 0x121   : > { %v1232_v60 = vpop.f32.mrf.mxu2  ;;  %v1094_v43 = vadd.f32 %v1070_v0, %v2849_v57  ;;  %v1414_v38 = vpop.f32.mrf.mxu3 }
 0x122   : > { %v1257_v62 = vadd.f32 %v1232_v60, %v1093_v16 }
 0x124   : > { %v1429_v54 = vadd.f32 %v1404_v45, %v1257_v62 }
 0x126   : > { %v1559_v5 = vadd.f32 %v1534_v58, %v1429_v54 }
 0x128   : > { %v1573_v9 = vmul.f32 %v2877_v30, %v1559_v5  ;;  %v1073_v22 = vpop.f32.mrf.mxu1  ;;  %v1539_v23 = vpop.f32.mrf.mxu0 }
 0x129   : > { %v1234_v10 = vpop.f32.mrf.mxu2  ;;  %v1095_v57 = vadd.f32 %v1073_v22, %v2851_v1 }
 0x12a   : > { %v1587_v15 = vadd.f32 %v2882_v6, %v1573_v9  ;;  %v1258_v17 = vadd.f32 %v1234_v10, %v1094_v43 }
 0x12c   : > { %v1597_v20 = vmax.f32 %v1587_v15, 0.0  ;;  %v1430_v4 = vadd.f32 %v1406_v52, %v1258_v17  ;;  %v1416_v52 = vpop.f32.mrf.mxu3 }
 0x12e   : > { %v1607_v25 = vpack.c.bf16 %v1597_v20, %v1597_v20  ;;  %v1560_v24 = vadd.f32 %v1536_v3, %v1430_v4 }
 0x130   : > { %1617 = vst [vmem:[%s2891_s6] sm:$0xf] %v1607_v25  ;;  %v1574_v29 = vmul.f32 %v2877_v30, %v1560_v24  ;;  %v1075_v8 = vpop.f32.mrf.mxu1  ;;  %v1541_v56 = vpop.f32.mrf.mxu0 }
 0x131   : > { %v1237_v31 = vpop.f32.mrf.mxu2  ;;  %v1096_v59 = vadd.f32 %v1075_v8, %v2854_v19 }
 0x132   : > { %v1259_v32 = vadd.f32 %v1237_v31, %v1095_v57  ;;  %v1588_v14 = vadd.f32 %v2882_v6, %v1574_v29 }
 0x134   : > { %v1431_v33 = vadd.f32 %v1409_v63, %v1259_v32  ;;  %v1598_v35 = vmax.f32 %v1588_v14, 0.0  ;;  %v1419_v17 = vpop.f32.mrf.mxu3 }
 0x136   : > { %v1561_v7 = vadd.f32 %v1539_v23, %v1431_v33  ;;  %v1608_v39 = vpack.c.bf16 %v1598_v35, %v1598_v35 }
 0x138   : > { %v1575_v36 = vmul.f32 %v2877_v30, %v1561_v7  ;;  %v1078_v61 = vpop.f32.mrf.mxu1  ;;  %v1544_v42 = vpop.f32.mrf.mxu0  ;;  %v2222_v46 = vrot.slane %v1608_v39, 9 }
 0x139   : > { %v1239_v37 = vpop.f32.mrf.mxu2  ;;  %v1097_v19 = vadd.f32 %v1078_v61, %v2857_v28 }
 0x13a   : > { %v1589_v1 = vadd.f32 %v2882_v6, %v1575_v36  ;;  %v1260_v11 = vadd.f32 %v1239_v37, %v1096_v59 }
 0x13c   : > { %v1599_v40 = vmax.f32 %v1589_v1, 0.0  ;;  %v1432_v41 = vadd.f32 %v1411_v26, %v1260_v11  ;;  %v1421_v36 = vpop.f32.mrf.mxu3 }
 0x13e   : > { %v1609_v44 = vpack.c.bf16 %v1599_v40, %v1599_v40  ;;  %v1562_v45 = vadd.f32 %v1541_v56, %v1432_v41 }
 0x140   : > { %v1625_v47 = vrot.slane %v1609_v44, 5  ;;  %v1576_v48 = vmul.f32 %v2877_v30, %v1562_v45  ;;  %v1080_v55 = vpop.f32.mrf.mxu1  ;;  %v1546_v58 = vpop.f32.mrf.mxu0  ;;  %v2224_v63 = vrot.slane %v1609_v44, 10 }
 0x141   : > { %v1242_v49 = vpop.f32.mrf.mxu2  ;;  %v1098_v62 = vadd.f32 %v1080_v55, %v2860_v34 }
 0x142   : > { %v1626_v27 = vsel %vm2901_vm8, %v2222_v46, %v1625_v47  ;;  %v1590_v50 = vadd.f32 %v2882_v6, %v1576_v48  ;;  %v1261_v51 = vadd.f32 %v1242_v49, %v1097_v19 }
 0x143   : > { %2223 = vst [vmem:[%s2891_s6 + $0x4] sm:$0xf] %v1626_v27 }
 0x144   : > { %v1600_v53 = vmax.f32 %v1590_v50, 0.0  ;;  %v1433_v28 = vadd.f32 %v1414_v38, %v1261_v51  ;;  %v1424_v19 = vpop.f32.mrf.mxu3 }
 0x146   : > { %v1610_v16 = vpack.c.bf16 %v1600_v53, %v1600_v53  ;;  %v1563_v60 = vadd.f32 %v1544_v42, %v1433_v28 }
 0x148   : > { %v1636_v0 = vrot.slane %v1610_v16, 6  ;;  %v1577_v3 = vmul.f32 %v2877_v30, %v1563_v60  ;;  %v1083_v20 = vpop.f32.mrf.mxu1  ;;  %v1549_v24 = vpop.f32.mrf.mxu0  ;;  %v2226_v57 = vrot.slane %v1610_v16, 11 }
 0x149   : > { %v1244_v5 = vpop.f32.mrf.mxu2  ;;  %v1099_v23 = vadd.f32 %v1083_v20, %v2863_v2 }
 0x14a   : > { %v1637_v43 = vsel %vm2911_vm11, %v2224_v63, %v1636_v0  ;;  %v1591_v9 = vadd.f32 %v2882_v6, %v1577_v3  ;;  %v1262_v10 = vadd.f32 %v1244_v5, %v1098_v62 }
 0x14b   : > { %2225 = vst [vmem:[%s2891_s6 + $0x8] sm:$0xf] %v1637_v43 }
 0x14c   : > { %v1601_v15 = vmax.f32 %v1591_v9, 0.0  ;;  %v1434_v34 = vadd.f32 %v1416_v52, %v1262_v10  ;;  %v1426_v0 = vpop.f32.mrf.mxu3 }
 0x14e   : > { %v1611_v4 = vpack.c.bf16 %v1601_v15, %v1601_v15  ;;  %v1564_v22 = vadd.f32 %v1546_v58, %v1434_v34 }
 0x150   : > { %v1647_v26 = vrot.slane %v1611_v4, 7  ;;  %v1578_v29 = vmul.f32 %v2877_v30, %v1564_v22  ;;  %v1085_v56 = vpop.f32.mrf.mxu1  ;;  %v1551_v38 = vpop.f32.mrf.mxu0 }
 0x151   : > { %v1247_v31 = vpop.f32.mrf.mxu2  ;;  %v1100_v35 = vadd.f32 %v1085_v56, %v2866_v21 }
 0x152   : > { %v1648_v32 = vsel %vm2921_vm14, %v2226_v57, %v1647_v26  ;;  %v1592_v14 = vadd.f32 %v2882_v6, %v1578_v29  ;;  %v1263_v33 = vadd.f32 %v1247_v31, %v1099_v23 }
 0x153   : > { %2227 = vst [vmem:[%s2891_s6 + $0xc] sm:$0xf] %v1648_v32 }
 0x154   : > { %v1602_v8 = vmax.f32 %v1592_v14, 0.0  ;;  %v1435_v2 = vadd.f32 %v1419_v17, %v1263_v33 }
 0x156   : > { %v1612_v7 = vpack.c.bf16 %v1602_v8, %v1602_v8  ;;  %v1565_v59 = vadd.f32 %v1549_v24, %v1435_v2 }
 0x158   : > { %2228 = vst [vmem:[%s2891_s6 + $0x10] sm:$0xf] %v1612_v7  ;;  %v1579_v37 = vmul.f32 %v2877_v30, %v1565_v59  ;;  %v1088_v41 = vpop.f32.mrf.mxu1  ;;  %v1554_v48 = vpop.f32.mrf.mxu0 }
 0x159   : > { %v1249_v1 = vpop.f32.mrf.mxu2  ;;  %v1101_v42 = vadd.f32 %v1088_v41, %v2869_v12 }
 0x15a   : > { %v1264_v11 = vadd.f32 %v1249_v1, %v1100_v35  ;;  %v1593_v39 = vadd.f32 %v2882_v6, %v1579_v37 }
 0x15c   : > { %v1436_v40 = vadd.f32 %v1421_v36, %v1264_v11  ;;  %v1603_v44 = vmax.f32 %v1593_v39, 0.0 }
 0x15e   : > { %v1566_v61 = vadd.f32 %v1551_v38, %v1436_v40  ;;  %v1613_v49 = vpack.c.bf16 %v1603_v44, %v1603_v44 }
 0x160   : > { %v1580_v45 = vmul.f32 %v2877_v30, %v1566_v61  ;;  %v1090_v51 = vpop.f32.mrf.mxu1  ;;  %v2229_v55 = vrot.slane %v1613_v49, 9  ;;  %v1556_v43 = vpop.f32.mrf.mxu0 }
 0x161   : > { %v1252_v46 = vpop.f32.mrf.mxu2  ;;  %v1102_v28 = vadd.f32 %v1090_v51, %v2872_v13 }
 0x162   : > { %v1594_v21 = vadd.f32 %v2882_v6, %v1580_v45  ;;  %v1265_v47 = vadd.f32 %v1252_v46, %v1101_v42 }
 0x164   : > { %v1604_v27 = vmax.f32 %v1594_v21, 0.0  ;;  %v1437_v50 = vadd.f32 %v1424_v19, %v1265_v47 }
 0x166   : > { %v1614_v52 = vpack.c.bf16 %v1604_v27, %v1604_v27  ;;  %v1567_v53 = vadd.f32 %v1554_v48, %v1437_v50 }
 0x168   : > { %v1658_v12 = vrot.slane %v1614_v52, 5  ;;  %v1581_v58 = vmul.f32 %v2877_v30, %v1567_v53  ;;  %v2231_v10 = vrot.slane %v1614_v52, 10 }
 0x169   : > { %v1254_v16 = vpop.f32.mrf.mxu2 }
 0x16a   : > { %v1659_v60 = vsel %vm2901_vm8, %v2229_v55, %v1658_v12  ;;  %v1595_v62 = vadd.f32 %v2882_v6, %v1581_v58  ;;  %v1266_v63 = vadd.f32 %v1254_v16, %v1102_v28 }
 0x16b   : > { %2230 = vst [vmem:[%s2891_s6 + $0x14] sm:$0xf] %v1659_v60 }
 0x16c   : > { %v1605_v3 = vmax.f32 %v1595_v62, 0.0  ;;  %v1438_v5 = vadd.f32 %v1426_v0, %v1266_v63 }
 0x16e   : > { %v1615_v9 = vpack.c.bf16 %v1605_v3, %v1605_v3  ;;  %v1568_v13 = vadd.f32 %v1556_v43, %v1438_v5 }
 0x170   : > { %v1666_v15 = vrot.slane %v1615_v9, 6  ;;  %v1582_v34 = vmul.f32 %v2877_v30, %v1568_v13  ;;  %v2233_v22 = vrot.slane %v1615_v9, 11 }
 0x172   : > { %v1667_v18 = vsel %vm2911_vm11, %v2231_v10, %v1666_v15  ;;  %v1596_v17 = vadd.f32 %v2882_v6, %v1582_v34 }
 0x173   : > { %2232 = vst [vmem:[%s2891_s6 + $0x18] sm:$0xf] %v1667_v18 }
 0x174   : > { %v1606_v20 = vmax.f32 %v1596_v17, 0.0 }
 0x176   : > { %v1616_v4 = vpack.c.bf16 %v1606_v20, %v1606_v20 }
 0x178   : > { %v1674_v23 = vrot.slane %v1616_v4, 7 }
 0x17a   : > { %v1675_v24 = vsel %vm2921_vm14, %v2233_v22, %v1674_v23 }
 0x17b   : > { %2234 = vst [vmem:[%s2891_s6 + $0x1c] sm:$0xf] %v1675_v24 }
 0x17c PF: > { %s14_s15 = sadd.s32 1, %s2371_s15  }
 0x17d   : > { %p11_p4 = scmp.ge.s32.totalorder %s14_s15, 4  }
 0x17f   :  { %13 = sbr.rel (!%p11_p4) target bundleno = 1 (0x1), region = 81 }

// kernel: _lambda_.74
= control target key start
LH: loop header
LB: loop body
LE: loop exit
PB: predicated region body
PF: predicated region fallthrough
CT: control target
= control target key end

     0   :  { %9 = vsyncpa [#allocation3], 0  ;;  %s1757_s15 = smov 0   ;;  %s1887_s0 = inlined_call_operand.vmem [shape: bf16[2,36,128], index: 0, kind: input, shape index: {}]   ;;  %s1888_s1 = inlined_call_operand.hbm [shape: bf16[9,128,128], index: 1, kind: input, shape index: {}]   ;;  %s1889_s2 = inlined_call_operand.vmem [shape: f32[1,128], index: 2, kind: input, shape index: {}]   ;;  %s1890_s3 = inlined_call_operand.vmem [shape: f32[1,128], index: 3, kind: input, shape index: {}]   ;;  %s1891_s4 = inlined_call_operand.vmem [shape: bf16[2,4,4,128], index: 4, kind: output, shape index: {}]  }
   0x1 LB: > { %s146_s18 = sshll.u32 %s1888_s1, 4  ;;  %s1264_s19 = sadd.s32 4294967295, %s1727_s15   ;;  %s1727_s15 = sphi %s1757_s15, %s15_s15   ;;  %s147_s18 = int_to_ptr.hbm [resolvable:$true] %s146_s18 }
   0x2   : > { %p1266_p0 = scmp.ge.s32.totalorder %s1727_s15, 1  ;;  %p135_p1 = scmp.lt.s32.totalorder %s1727_s15, 3 }
   0x3   : > { %p1672_p2 = scmp.eq.s32.totalorder %s1264_s19, 0  ;;  %s1729_s20 = smov [#allocation2]  }
   0x4   : > { %p136_p3 = pnand %p1266_p0, %p135_p1  ;;  %s148_s21 = sshll.u32 %s1729_s20, 4  ;;  %s149_s21 = int_to_ptr.vmem [resolvable:$true] %s148_s21 }
   0x5   : > { %s1730_s22 = smov 64   ;;  %s1731_s23 = smov 4  }
   0x6   : > { %p1668_p4 = pneg %p136_p3  ;;  %178 = sbr.rel (%p136_p3) target bundleno = 264 (0x108), region = 36 }
   0x8   : > { %p1669_p5 = pnand %p1672_p2, %p1668_p4 }
   0xa   : > { %1671 = dma.hbm_to_vmem [thread:$0]  (!%p1669_p5), %s147_s18, 9216, %s149_s21, [#allocation3], %s1730_s22, %s1730_s22, %s1731_s23  }
   0xb   : > { %1722 = dma.done.wait (%p1672_p2), [#allocation3], 9216  }
   0xc   : > { %1724 = vsyncadd (%p1672_p2), [#allocation3], 4294958080  ;;  %p205_p6 = scmp.lt.s32.totalorder %s1264_s19, 1  ;;  %v1586_v0 = vld [vmem:[#allocation2 + $0x78] sm:$0xff]  ;;  %v1585_v4 = vld [vmem:[#allocation2 + $0x70] sm:$0xff]  ;;  %vm436_vm1 = vcmask 1046528  }
   0xd   : > { %v1578_v1 = vld [vmem:[#allocation2 + $0x38] sm:$0xff]  ;;  %326 = vmatpush.bf16.msra.mxu0 %v1586_v0  ;;  %v1577_v5 = vld [vmem:[#allocation2 + $0x30] sm:$0xff]  ;;  %v1584_v8 = vld [vmem:[#allocation2 + $0x68] sm:$0xff]  ;;  %vm260_vm0 = vsmask.f32 7424  ;;  %vm542_vm2 = vcmask 1044480  }
   0xe   : > { %v1594_v2 = vld [vmem:[#allocation2 + $0xb8] sm:$0xff]  ;;  %s1895_s19 = smov (!%p205_p6, %s1264_s19), 1  ;;  %397 = vmatpush.bf16.msra.mxu1 %v1578_v1  ;;  %v1593_v6 = vld [vmem:[#allocation2 + $0xb0] sm:$0xff]  ;;  %v1576_v9 = vld [vmem:[#allocation2 + $0x28] sm:$0xff]  ;;  %vm638_vm3 = vsmask.f32 4352 }
   0xf   : > { %v1602_v3 = vld [vmem:[#allocation2 + $0xf8] sm:$0xff]  ;;  %490 = vmatpush.bf16.msra.mxu2 %v1594_v2  ;;  %v1601_v7 = vld [vmem:[#allocation2 + $0xf0] sm:$0xff]  ;;  %s1663_s24 = smul.u32 20, %s1895_s19  ;;  %v1592_v10 = vld [vmem:[#allocation2 + $0xa8] sm:$0xff]  ;;  %vm848_vm4 = vcmask 1045504   ;;  %vm1159_vm6 = vcmask 1040384  }
  0x10   : > { %596 = vmatpush.bf16.msra.mxu3 %v1602_v3  ;;  %v1600_v11 = vld [vmem:[#allocation2 + $0xe8] sm:$0xff]  ;;  %v1583_v12 = vld [vmem:[#allocation2 + $0x60] sm:$0xff]  ;;  %v1582_v17 = vld [vmem:[#allocation2 + $0x58] sm:$0xff]  ;;  %vm944_vm5 = vsmask.f32 5376  ;;  %vm1160_vm7 = vcmask 1042434  }
  0x11   : > { %327 = vmatpush.bf16.msra.mxu0 %v1585_v4  ;;  %s1774_s27 = scalar_lea.vmem %s1887_s0, %s1663_s24  ;;  %v1575_v13 = vld [vmem:[#allocation2 + $0x20] sm:$0xff]  ;;  %v1574_v18 = vld [vmem:[#allocation2 + $0x18] sm:$0xff]  ;;  %v1581_v26 = vld [vmem:[#allocation2 + $0x50] sm:$0xff]  ;;  %s1570_s6 = sshll.u32 %s1895_s19, 3  ;;  %vm1162_vm9 = vcmask 1044484   ;;  %vm1164_vm11 = vcmask 1046534  }
  0x12   : > { %398 = vmatpush.bf16.msra.mxu1 %v1577_v5  ;;  %v1591_v14 = vld [vmem:[#allocation2 + $0xa0] sm:$0xff]  ;;  %v1590_v20 = vld [vmem:[#allocation2 + $0x98] sm:$0xff]  ;;  %v1573_v27 = vld [vmem:[#allocation2 + $0x10] sm:$0xff]  ;;  %s1870_s9 = scalar_lea.vmem %s1891_s4, %s1570_s6  ;;  %vm1181_vm12 = vcmask 1041408   ;;  %vm1186_vm13 = vcmask 1043458  }
  0x13   : > { %491 = vmatpush.bf16.msra.mxu2 %v1593_v6  ;;  %v1599_v15 = vld [vmem:[#allocation2 + $0xe0] sm:$0xff]  ;;  %v1598_v21 = vld [vmem:[#allocation2 + $0xd8] sm:$0xff]  ;;  %v1589_v30 = vld [vmem:[#allocation2 + $0x90] sm:$0xff] }
  0x14   : > { %597 = vmatpush.bf16.msra.mxu3 %v1601_v7  ;;  %v1777_v16 = vld [vmem:[%s1774_s27 + $0x4] sm:$0xff]   ;;  %v511_v23 = vld [vmem:[%s1774_s27] sm:$0x8]  ;;  %v514_v25 = vld [vmem:[%s1774_s27 + $0xc] sm:$0x3] }
  0x15   : > { %328 = vmatpush.bf16.msra.mxu0 %v1584_v8  ;;  %v257_v19 = vunpack.c.h.b16 %v1777_v16  ;;  %v1781_v22 = vld [vmem:[%s1774_s27] sm:$0xff]   ;;  %v513_v24 = vld [vmem:[%s1774_s27 + $0x8] sm:$0xf]  ;;  %v1597_v31 = vld [vmem:[#allocation2 + $0xd0] sm:$0xff]  ;;  %v536_v32 = vunpack.c.l.b16 %v511_v23  ;;  %v537_v33 = vunpack.c.l.b16 %v1777_v16  ;;  %v539_v35 = vunpack.c.l.b16 %v514_v25 }
  0x16   : > { %399 = vmatpush.bf16.msra.mxu1 %v1576_v9  ;;  %v264_v29 = vshll.u32 %v1781_v22, 16  ;;  %v1790_v34 = vunpack.c.l.b16 %v513_v24  ;;  %v1651_v36 = vld [vmem:[%s1774_s27] sm:$0xf0]  ;;  %v1652_v37 = vld [vmem:[%s1774_s27] sm:$0xe]  ;;  %v1580_v38 = vld [vmem:[#allocation2 + $0x48] sm:$0xff] }
  0x17   : > { %492 = vmatpush.bf16.msra.mxu2 %v1592_v10  ;;  %v1786_v28 = vpack.c.b16 %v257_v19, %v257_v19  ;;  %v1572_v39 = vld [vmem:[#allocation2 + $0x8] sm:$0xff]  ;;  %v262_v40 = vshrl.u32 %v1781_v22, 16  ;;  %v1653_v45 = vor.u32 %v1652_v37, %v1651_v36  ;;  %v1798_v46 = vpack.c.b16 %v537_v33, %v536_v32  ;;  %v1579_v48 = vld [vmem:[#allocation2 + $0x40] sm:$0xff]  ;;  %v1610_v58 = vld [vmem:[#allocation2 + $0x138] sm:$0xff] }
  0x18   : > { %598 = vmatpush.bf16.msra.mxu3 %v1600_v11  ;;  %v266_v41 = vrot.slane %v264_v29, 1  ;;  %v1588_v43 = vld [vmem:[#allocation2 + $0x88] sm:$0xff]  ;;  %v1801_v47 = vpack.c.b16 %v539_v35, %v1790_v34  ;;  %v1571_v49 = vld [vmem:[#allocation2] sm:$0xff]  ;;  %v1618_v59 = vld [vmem:[#allocation2 + $0x178] sm:$0xff] }
  0x19   : > { %329 = vmatpush.bf16.msra.mxu0 %v1583_v12  ;;  %v269_v42 = vshll.u32 %v1786_v28, 16  ;;  %v1596_v44 = vld [vmem:[#allocation2 + $0xc8] sm:$0xff]  ;;  %v1587_v52 = vld [vmem:[#allocation2 + $0x80] sm:$0xff]  ;;  %v437_v54 = vrot.slane %v1653_v45, 1  ;;  %v438_v55 = vrot.slane %v1786_v28, 1  ;;  %v543_v56 = vrot.slane %v1798_v46, 3  ;;  %vm1161_vm8 = vmor %vm1159_vm6, %vm1160_vm7 }
  0x1a   : > { %400 = vmatpush.bf16.msra.mxu1 %v1575_v13  ;;  %v267_v50 = vor.u32 %v266_v41, %v262_v40  ;;  %v1595_v53 = vld [vmem:[#allocation2 + $0xc0] sm:$0xff]  ;;  %v544_v57 = vrot.slane %v1801_v47, 3  ;;  %v1626_v62 = vld [vmem:[#allocation2 + $0x1b8] sm:$0xff]  ;;  %v1609_v1 = vld [vmem:[#allocation2 + $0x130] sm:$0xff]  ;;  %v640_v41 = vshrl.u32 %v1798_v46, 16 }
  0x1b   : > { %493 = vmatpush.bf16.msra.mxu2 %v1591_v14  ;;  %v1803_v51 = vrot.slane %v269_v42, 1  ;;  %v439_v61 = vsel %vm436_vm1, %v437_v54, %v438_v55  ;;  %v1634_v0 = vld [vmem:[#allocation2 + $0x1f8] sm:$0xff]  ;;  %v1617_v2 = vld [vmem:[#allocation2 + $0x170] sm:$0xff]  ;;  %v1608_v5 = vld [vmem:[#allocation2 + $0x128] sm:$0xff]  ;;  %v643_v42 = vshll.u32 %v1798_v46, 16 }
  0x1c   : > { %599 = vmatpush.bf16.msra.mxu3 %v1599_v15  ;;  %v545_v63 = vsel %vm542_vm2, %v543_v56, %v544_v57  ;;  %v1625_v3 = vld [vmem:[#allocation2 + $0x1b0] sm:$0xff]  ;;  %v1616_v6 = vld [vmem:[#allocation2 + $0x168] sm:$0xff]  ;;  %v217_v9 = vld [vmem:[%s1774_s27 + $0x8] sm:$0x7]  ;;  %v642_v46 = vrot.slane %v640_v41, 3 }
  0x1d   : > { %330 = vmatpush.bf16.msra.mxu0 %v1582_v17  ;;  %v272_v60 = vsel %vm260_vm0, %v267_v50, %v1803_v51  ;;  %v1633_v4 = vld [vmem:[#allocation2 + $0x1f0] sm:$0xff]  ;;  %v1624_v7 = vld [vmem:[#allocation2 + $0x1a8] sm:$0xff]  ;;  %v1607_v10 = vld [vmem:[#allocation2 + $0x120] sm:$0xff]  ;;  %v273_v17 = vshrl.u32 %v1786_v28, 16  ;;  %v645_v54 = vrot.slane %v643_v42, 4 }
  0x1e   : > { %401 = vmatpush.bf16.msra.mxu1 %v1574_v18  ;;  %v1632_v8 = vld [vmem:[#allocation2 + $0x1e8] sm:$0xff]  ;;  %v1615_v11 = vld [vmem:[#allocation2 + $0x160] sm:$0xff]  ;;  %v817_v13 = vld [vmem:[%s1774_s27 + $0x4] sm:$0xc]  ;;  %v345_v18 = vunpack.c.l.b16 %v217_v9 }
  0x1f   : > { %494 = vmatpush.bf16.msra.mxu2 %v1590_v20  ;;  %v617_v12 = vld [vmem:[%s1774_s27 + $0xc] sm:$0x7]  ;;  %v923_v15 = vld [vmem:[%s1774_s27 + $0x10] sm:$0x3]  ;;  %v842_v24 = vunpack.c.l.b16 %v817_v13  ;;  %v275_v29 = vor.u32 %v273_v17, %v1803_v51  ;;  %v1622_v32 = vld [vmem:[#allocation2 + $0x198] sm:$0xff] }
  0x20   : > { %600 = vmatpush.bf16.msra.mxu3 %v1598_v21  ;;  %v1820_v14 = vld [vmem:[%s1774_s27 + $0x8] sm:$0xff]   ;;  %v1824_v19 = vunpack.c.l.b16 %v617_v12  ;;  %v942_v25 = vunpack.c.l.b16 %v923_v15  ;;  %v1630_v35 = vld [vmem:[#allocation2 + $0x1d8] sm:$0xff]  ;;  %v820_v36 = vld [vmem:[%s1774_s27 + $0x10] sm:$0x1] }
  0x21   : > { %331 = vmatpush.bf16.msra.mxu0 %v1581_v26  ;;  %v1623_v20 = vld [vmem:[#allocation2 + $0x1a0] sm:$0xff]  ;;  %v1650_v23 = vunpack.c.h.b16 %v1820_v14  ;;  %v1606_v26 = vld [vmem:[#allocation2 + $0x118] sm:$0xff]  ;;  %v1613_v40 = vld [vmem:[#allocation2 + $0x150] sm:$0xff]  ;;  %v845_v45 = vunpack.c.l.b16 %v820_v36 }
  0x22   : > { %402 = vmatpush.bf16.msra.mxu1 %v1573_v27  ;;  %v1631_v21 = vld [vmem:[#allocation2 + $0x1e0] sm:$0xff]  ;;  %v1614_v27 = vld [vmem:[#allocation2 + $0x158] sm:$0xff]  ;;  %v1604_v47 = vld [vmem:[#allocation2 + $0x108] sm:$0xff] }
  0x23   : > { %495 = vmatpush.bf16.msra.mxu2 %v1589_v30  ;;  %v346_v30 = vpack.c.b16 %v345_v18, %v345_v18  ;;  %v1641_v17 = vld [vmem:[#allocation2 + $0x230] sm:$0xff]  ;;  %v1640_v18 = vld [vmem:[#allocation2 + $0x228] sm:$0xff]  ;;  %v1639_v16 = vld [vmem:[#allocation2 + $0x220] sm:$0xff] }
  0x24   : > { %601 = vmatpush.bf16.msra.mxu3 %v1597_v31  ;;  %v637_v31 = vpack.c.b16 %v1824_v19, %v1790_v34  ;;  %vm1163_vm10 = vmor %vm1161_vm8, %vm1162_vm9 }
  0x25   : > { %332 = vmatpush.bf16.msra.mxu0 %v1580_v38  ;;  %v1836_v38 = vpack.c.b16 %v942_v25, %v1650_v23  ;;  %vm1873_vm14 = vmor %vm1163_vm10, %vm1164_vm11 }
  0x26   : > { %403 = vmatpush.bf16.msra.mxu1 %v1572_v39  ;;  %v1605_v39 = vld [vmem:[#allocation2 + $0x110] sm:$0xff] }
  0x27   : > { %496 = vmatpush.bf16.msra.mxu2 %v1588_v43  ;;  %v648_v43 = vshrl.u32 %v637_v31, 16  ;;  %v957_v28 = vshll.u32 %v1836_v38, 16 }
  0x28   : > { %602 = vmatpush.bf16.msra.mxu3 %v1596_v44  ;;  %v651_v44 = vshll.u32 %v637_v31, 16 }
  0x29   : > { %333 = vmatpush.bf16.msra.mxu0 %v1579_v48  ;;  %v1621_v48 = vld [vmem:[#allocation2 + $0x190] sm:$0xff] }
  0x2a   : > { %404 = vmatpush.bf16.msra.mxu1 %v1571_v49  ;;  %v1629_v49 = vld [vmem:[#allocation2 + $0x1d0] sm:$0xff]  ;;  %v653_v56 = vrot.slane %v651_v44, 4 }
  0x2b   : > { %497 = vmatpush.bf16.msra.mxu2 %v1587_v52  ;;  %v954_v52 = vshrl.u32 %v1836_v38, 16 }
  0x2c   : > { %603 = vmatpush.bf16.msra.mxu3 %v1595_v53  ;;  %334 = vmatmul.bf16.vlgmr.msra.gmra.mxu0 %v272_v60  ;;  %v1612_v53 = vld [vmem:[#allocation2 + $0x148] sm:$0xff] }
  0x2d   : > { %706 = vmatpush.bf16.msrb.mxu0 %v1610_v58  ;;  %405 = vmatmul.bf16.vlgmr.msra.gmra.mxu1 %v1781_v22  ;;  %v1649_v22 = vunpack.c.l.b16 %v1820_v14  ;;  %v1620_v58 = vld [vmem:[#allocation2 + $0x188] sm:$0xff] }
  0x2e   : > { %796 = vmatpush.bf16.msrb.mxu1 %v1618_v59  ;;  %498 = vmatmul.bf16.vlgmr.msra.gmra.mxu2 %v439_v61  ;;  %v1628_v59 = vld [vmem:[#allocation2 + $0x1c8] sm:$0xff] }
  0x2f   : > { %604 = vmatmul.bf16.vlgmr.msra.gmra.mxu3 %v545_v63  ;;  %902 = vmatpush.bf16.msrb.mxu2 %v1626_v62  ;;  %v1834_v37 = vpack.c.b16 %v1649_v22, %v842_v24  ;;  %v956_v62 = vrot.slane %v954_v52, 2  ;;  %v959_v63 = vrot.slane %v957_v28, 3  ;;  %v1636_v24 = vld [vmem:[#allocation2 + $0x208] sm:$0xff] }
  0x30   : > { %1012 = vmatpush.bf16.msrb.mxu3 %v1634_v0  ;;  %v1603_v0 = vld [vmem:[#allocation2 + $0x100] sm:$0xff] }
  0x31   : > { %707 = vmatpush.bf16.msrb.mxu0 %v1609_v1  ;;  %v946_v50 = vshrl.u32 %v1834_v37, 16  ;;  %v949_v51 = vshll.u32 %v1834_v37, 16  ;;  %v1611_v1 = vld [vmem:[#allocation2 + $0x140] sm:$0xff] }
  0x32   : > { %797 = vmatpush.bf16.msrb.mxu1 %v1617_v2  ;;  %v1642_v2 = vld [vmem:[#allocation2 + $0x238] sm:$0xff] }
  0x33   : > { %903 = vmatpush.bf16.msrb.mxu2 %v1625_v3  ;;  %v948_v60 = vrot.slane %v946_v50, 2  ;;  %v951_v61 = vrot.slane %v949_v51, 3  ;;  %v646_v3 = vor.u32 %v645_v54, %v642_v46 }
  0x34   : > { %1013 = vmatpush.bf16.msrb.mxu3 %v1633_v4 }
  0x35   : > { %708 = vmatpush.bf16.msrb.mxu0 %v1608_v5  ;;  %v1619_v5 = vld [vmem:[#allocation2 + $0x180] sm:$0xff]  ;;  %v952_v9 = vor.u32 %v951_v61, %v948_v60 }
  0x36   : > { %798 = vmatpush.bf16.msrb.mxu1 %v1616_v6  ;;  %v1627_v6 = vld [vmem:[#allocation2 + $0x1c0] sm:$0xff] }
  0x37   : > { %904 = vmatpush.bf16.msrb.mxu2 %v1624_v7  ;;  %v849_v7 = vrot.slane %v1834_v37, 2 }
  0x38   : > { %1014 = vmatpush.bf16.msrb.mxu3 %v1632_v8 }
  0x39   : > { %709 = vmatpush.bf16.msrb.mxu0 %v1607_v10  ;;  %v960_v10 = vor.u32 %v959_v63, %v956_v62 }
  0x3a   : > { %799 = vmatpush.bf16.msrb.mxu1 %v1615_v11  ;;  %v744_v11 = vpack.c.b16 %v1790_v34, %v537_v33  ;;  %v1638_v33 = vld [vmem:[#allocation2 + $0x218] sm:$0xff]  ;;  %v745_v34 = vpack.c.b16 %v1824_v19, %v1824_v19  ;;  %v1055_v19 = vrot.slane %v1836_v38, 3 }
  0x3b   : > { %905 = vmatpush.bf16.msrb.mxu2 %v1623_v20  ;;  %v961_v15 = vsel %vm944_vm5, %v952_v9, %v960_v10  ;;  %v1637_v20 = vld [vmem:[#allocation2 + $0x210] sm:$0xff] }
  0x3c   : > { %1015 = vmatpush.bf16.msrb.mxu3 %v1631_v21  ;;  %339 = vmatmul.bf16.gmra.mxu0 %v275_v29  ;;  %v1033_v21 = vld [vmem:[%s1774_s27 + $0x4] sm:$0x8] }
  0x3d   : > { %710 = vmatpush.bf16.msrb.mxu0 %v1606_v26  ;;  %410 = vmatmul.bf16.gmra.mxu1 %v346_v30  ;;  %v1635_v26 = vld [vmem:[#allocation2 + $0x200] sm:$0xff] }
  0x3e   : > { %800 = vmatpush.bf16.msrb.mxu1 %v1614_v27  ;;  %503 = vmatmul.bf16.gmra.mxu2 %v438_v55  ;;  %v650_v55 = vrot.slane %v648_v43, 3 }
  0x3f   : > { %609 = vmatmul.bf16.gmra.mxu3 %v544_v57  ;;  %906 = vmatpush.bf16.msrb.mxu2 %v1622_v32  ;;  %v847_v57 = vpack.c.b16 %v845_v45, %v1650_v23  ;;  %v1052_v23 = vunpack.c.l.b16 %v1033_v21 }
  0x40   : > { %1016 = vmatpush.bf16.msrb.mxu3 %v1630_v35  ;;  %v654_v4 = vor.u32 %v653_v56, %v650_v55 }
  0x41   : > { %711 = vmatpush.bf16.msrb.mxu0 %v1605_v39  ;;  %v850_v8 = vrot.slane %v847_v57, 2  ;;  %v1053_v25 = vpack.c.b16 %v1649_v22, %v1052_v23 }
  0x42   : > { %801 = vmatpush.bf16.msrb.mxu1 %v1613_v40  ;;  %v655_v12 = vsel %vm638_vm3, %v646_v3, %v654_v4 }
  0x43   : > { %907 = vmatpush.bf16.msrb.mxu2 %v1621_v48  ;;  %v851_v13 = vsel %vm848_vm4, %v849_v7, %v850_v8  ;;  %v1054_v27 = vrot.slane %v1053_v25, 3 }
  0x44   : > { %1017 = vmatpush.bf16.msrb.mxu3 %v1629_v49 }
  0x45   : > { %712 = vmatpush.bf16.msrb.mxu0 %v1604_v47  ;;  %v1056_v29 = vsel %vm542_vm2, %v1054_v27, %v1055_v19 }
  0x46   : > { %802 = vmatpush.bf16.msrb.mxu1 %v1612_v53 }
  0x47   : > { %908 = vmatpush.bf16.msrb.mxu2 %v1620_v58 }
  0x48   : > { %1018 = vmatpush.bf16.msrb.mxu3 %v1628_v59 }
  0x49   : > { %713 = vmatpush.bf16.msrb.mxu0 %v1603_v0 }
  0x4a   : > { %803 = vmatpush.bf16.msrb.mxu1 %v1611_v1 }
  0x4b   : > { %909 = vmatpush.bf16.msrb.mxu2 %v1619_v5 }
  0x4c   : > { %1019 = vmatpush.bf16.msrb.mxu3 %v1627_v6  ;;  %714 = vmatmul.bf16.vlgmr.msrb.gmra.mxu0 %v655_v12 }
  0x4d   : > { %1107 = vmatpush.bf16.msra.mxu0 %v1642_v2  ;;  %804 = vmatmul.bf16.vlgmr.msrb.gmra.mxu1 %v744_v11 }
  0x4e   : > { %1655 = vmatpush.bf16.msra.mxu1 %v1642_v2  ;;  %910 = vmatmul.bf16.vlgmr.msrb.gmra.mxu2 %v851_v13  ;;  %v1685_v13 = vld [vmem:[%s1889_s2] ss:$0 sm:$0xff] }
  0x4f   : > { %1020 = vmatmul.bf16.vlgmr.msrb.gmra.mxu3 %v961_v15 }
  0x51   : > { %1108 = vmatpush.bf16.msra.mxu0 %v1641_v17 }
  0x52   : > { %1656 = vmatpush.bf16.msra.mxu1 %v1641_v17 }
  0x55   : > { %1109 = vmatpush.bf16.msra.mxu0 %v1640_v18 }
  0x56   : > { %1657 = vmatpush.bf16.msra.mxu1 %v1640_v18 }
  0x59   : > { %1110 = vmatpush.bf16.msra.mxu0 %v1639_v16 }
  0x5a   : > { %1658 = vmatpush.bf16.msra.mxu1 %v1639_v16 }
  0x5c   : > { %719 = vmatmul.bf16.gmra.mxu0 %v654_v4 }
  0x5d   : > { %1111 = vmatpush.bf16.msra.mxu0 %v1638_v33  ;;  %809 = vmatmul.bf16.gmra.mxu1 %v745_v34 }
  0x5e   : > { %1659 = vmatpush.bf16.msra.mxu1 %v1638_v33  ;;  %915 = vmatmul.bf16.gmra.mxu2 %v850_v8 }
  0x5f   : > { %1025 = vmatmul.bf16.gmra.mxu3 %v960_v10 }
  0x61   : > { %1112 = vmatpush.bf16.msra.mxu0 %v1637_v20 }
  0x62   : > { %1660 = vmatpush.bf16.msra.mxu1 %v1637_v20  ;;  %v1686_v20 = vld [vmem:[%s1890_s3] ss:$0 sm:$0xff] }
  0x65   : > { %1113 = vmatpush.bf16.msra.mxu0 %v1636_v24 }
  0x66   : > { %1661 = vmatpush.bf16.msra.mxu1 %v1636_v24 }
  0x69   : > { %1114 = vmatpush.bf16.msra.mxu0 %v1635_v26 }
  0x6a   : > { %1662 = vmatpush.bf16.msra.mxu1 %v1635_v26 }
  0x6c   : > { %1115 = vmatmul.bf16.vlgmr.msra.gmra.mxu0 %v1056_v29 }
  0x6d   : > { %1120 = vmatmul.bf16.vlgmr.msra.gmra.mxu1 %v1055_v19 }
  0xa9   : > { %v335_v30 = vpop.f32.mrf.mxu0 }
  0xaa   : > { %v406_v31 = vpop.f32.mrf.mxu1 }
  0xab   : > { %v407_v47 = vadd.f32 %v406_v31, %v335_v30 }
  0xb1   : > { %v499_v32 = vpop.f32.mrf.mxu2  ;;  %v337_v36 = vpop.f32.mrf.mxu0 }
  0xb2   : > { %v605_v35 = vpop.f32.mrf.mxu3  ;;  %v408_v37 = vpop.f32.mrf.mxu1  ;;  %v508_v46 = vadd.f32 %v499_v32, %v407_v47 }
  0xb3   : > { %v409_v61 = vadd.f32 %v408_v37, %v337_v36 }
  0xb4   : > { %v614_v59 = vadd.f32 %v605_v35, %v508_v46 }
  0xb9   : > { %v501_v14 = vpop.f32.mrf.mxu2  ;;  %v340_v39 = vpop.f32.mrf.mxu0 }
  0xba   : > { %v607_v22 = vpop.f32.mrf.mxu3  ;;  %v411_v40 = vpop.f32.mrf.mxu1  ;;  %v509_v0 = vadd.f32 %v501_v14, %v409_v61 }
  0xbb   : > { %v412_v53 = vadd.f32 %v411_v40, %v340_v39 }
  0xbc   : > { %v615_v7 = vadd.f32 %v607_v22, %v509_v0 }
  0xc1   : > { %v504_v41 = vpop.f32.mrf.mxu2  ;;  %v342_v43 = vpop.f32.mrf.mxu0 }
  0xc2   : > { %v610_v42 = vpop.f32.mrf.mxu3  ;;  %v413_v38 = vpop.f32.mrf.mxu1  ;;  %v510_v54 = vadd.f32 %v504_v41, %v412_v53 }
  0xc4   : > { %v616_v60 = vadd.f32 %v610_v42, %v510_v54 }
  0xc9   : > { %v506_v44 = vpop.f32.mrf.mxu2  ;;  %v715_v48 = vpop.f32.mrf.mxu0 }
  0xca   : > { %v612_v45 = vpop.f32.mrf.mxu3  ;;  %v805_v49 = vpop.f32.mrf.mxu1  ;;  %v724_v62 = vadd.f32 %v715_v48, %v614_v59 }
  0xcc   : > { %v814_v5 = vadd.f32 %v805_v49, %v724_v62 }
  0xd1   : > { %v911_v50 = vpop.f32.mrf.mxu2  ;;  %v717_v52 = vpop.f32.mrf.mxu0 }
  0xd2   : > { %v1021_v51 = vpop.f32.mrf.mxu3  ;;  %v807_v28 = vpop.f32.mrf.mxu1  ;;  %v920_v8 = vadd.f32 %v911_v50, %v814_v5  ;;  %v725_v10 = vadd.f32 %v717_v52, %v615_v7 }
  0xd4   : > { %v1030_v11 = vadd.f32 %v1021_v51, %v920_v8  ;;  %v815_v33 = vadd.f32 %v807_v28, %v725_v10 }
  0xd9   : > { %v913_v55 = vpop.f32.mrf.mxu2  ;;  %v720_v57 = vpop.f32.mrf.mxu0 }
  0xda   : > { %v1023_v56 = vpop.f32.mrf.mxu3  ;;  %v810_v58 = vpop.f32.mrf.mxu1  ;;  %v726_v63 = vadd.f32 %v720_v57, %v616_v60  ;;  %v921_v23 = vadd.f32 %v913_v55, %v815_v33 }
  0xdc   : > { %v816_v6 = vadd.f32 %v810_v58, %v726_v63  ;;  %v1031_v19 = vadd.f32 %v1023_v56, %v921_v23 }
  0xe1   : > { %v916_v1 = vpop.f32.mrf.mxu2  ;;  %v722_v3 = vpop.f32.mrf.mxu0 }
  0xe2   : > { %v1026_v2 = vpop.f32.mrf.mxu3  ;;  %v812_v4 = vpop.f32.mrf.mxu1  ;;  %v922_v9 = vadd.f32 %v916_v1, %v816_v6 }
  0xe4   : > { %v1032_v12 = vadd.f32 %v1026_v2, %v922_v9 }
  0xe9   : > { %v918_v15 = vpop.f32.mrf.mxu2  ;;  %v1116_v18 = vpop.f32.mrf.mxu0 }
  0xea   : > { %v1028_v17 = vpop.f32.mrf.mxu3  ;;  %v1121_v16 = vpop.f32.mrf.mxu1  ;;  %v1125_v34 = vadd.f32 %v1116_v18, %v1030_v11 }
  0xeb   : > { %v1127_v21 = vadd.f32 %v1121_v16, %v1032_v12 }
  0xec   : > { %v1132_v24 = vmul.f32 %v1685_v13, %v1125_v34 }
  0xed   : > { %v1134_v25 = vmul.f32 %v1685_v13, %v1127_v21 }
  0xee   : > { %v1139_v26 = vadd.f32 %v1686_v20, %v1132_v24 }
  0xef   : > { %v1141_v27 = vadd.f32 %v1686_v20, %v1134_v25 }
  0xf0   : > { %v1142_v29 = vmax.f32 %v1139_v26, 0.0 }
  0xf1   : > { %v1144_v30 = vmax.f32 %v1141_v27, 0.0  ;;  %v1118_v31 = vpop.f32.mrf.mxu0 }
  0xf2   : > { %v1123_v32 = vpop.f32.mrf.mxu1  ;;  %v1145_v35 = vpack.c.bf16 %v1142_v29, %v1142_v29  ;;  %v1126_v37 = vadd.f32 %v1118_v31, %v1031_v19 }
  0xf3   : > { %v1147_v36 = vpack.c.bf16 %v1144_v30, %v1144_v30 }
  0xf4   : > { %1148 = vst [vmem:[%s1870_s9] sm:$0x3] %v1145_v35  ;;  %v1133_v22 = vmul.f32 %v1685_v13, %v1126_v37 }
  0xf5   : > { %v1180_v14 = vrot.slane %v1147_v36, 2  ;;  %1150 = vst.sshfl [vmem:[#allocation1] sm:$0xff pattern:$0x75643120] %v1145_v35 }
  0xf6   : > { %v1140_v42 = vadd.f32 %v1686_v20, %v1133_v22 }
  0xf7   : > { %v1184_v40 = vsel %vm1181_vm12, %v1147_v36, %v1180_v14  ;;  %v1187_v41 = vsel %vm1186_vm13, %v1147_v36, %v1180_v14 }
  0xf8   : > { %v1565_v43 = vrot.slane %v1184_v40, 9  ;;  %v1566_v38 = vrot.slane %v1187_v41, 9  ;;  %v1143_v44 = vmax.f32 %v1140_v42, 0.0 }
  0xfa   : > { %v1193_v45 = vsel %vm1873_vm14, %v1565_v43, %v1566_v38  ;;  %v1146_v48 = vpack.c.bf16 %v1143_v44, %v1143_v44 }
  0xfb   : > { %1567 = vst [vmem:[%s1870_s9 + $0x6] sm:$0x3] %v1193_v45 }
  0xfc   : > { %1152 = vst.sshfl [vmem:[#allocation1 + $0x10] sm:$0xff pattern:$0x75643120] %v1146_v48  ;;  %v1154_v49 = vld [vmem:[#allocation1 + $0x1] ss:$2 sm:$0xff] }
  0xfd   : > { %1173 = vst.sshfl [vmem:[#allocation1] sm:$0xff pattern:$0x75643120] %v1146_v48  ;;  %v1562_v51 = vrot.slane %v1154_v49, 9 }
 0x103   : > { %v1157_v50 = vld [vmem:[#allocation1 + $0x10] ss:$2 sm:$0xff] }
 0x104   : > { %v1168_v52 = vrot.slane %v1157_v50, 7  ;;  %v1175_v28 = vld [vmem:[#allocation1 + $0x1] ss:$2 sm:$0xff] }
 0x105   : > { %1564 = vst [vmem:[%s1870_s9 + $0x4] sm:$0x3] %v1175_v28 }
 0x106   : > { %v1169_v47 = vsel %vm1873_vm14, %v1562_v51, %v1168_v52 }
 0x107   : > { %1563 = vst [vmem:[%s1870_s9 + $0x2] sm:$0x3] %v1169_v47 }
 0x108 PF: > { %s15_s15 = sadd.s32 1, %s1727_s15  }
 0x109   : > { %p12_p7 = scmp.ge.s32.totalorder %s15_s15, 4  }
 0x10b   :  { %14 = sbr.rel (!%p12_p7) target bundleno = 1 (0x1), region = 85 }
 0x110   :  { %1218 = vsyncpa [#allocation3], 1 }
 0x111   :  { %1220 = vsyncpa [#allocation3 + $0x1], 1 }

// kernel: _lambda_.77
= control target key start
LH: loop header
LB: loop body
LE: loop exit
PB: predicated region body
PF: predicated region fallthrough
CT: control target
= control target key end

     0   :  { %s255_s1 = inlined_call_operand.vmem [shape: bf16[128,128], index: 1, kind: input, shape index: {}]   ;;  %s256_s2 = inlined_call_operand.vmem [shape: f32[1,128], index: 2, kind: input, shape index: {}]   ;;  %s257_s3 = inlined_call_operand.vmem [shape: f32[1,128], index: 3, kind: input, shape index: {}]   ;;  %s258_s0 = inlined_call_operand.vmem [shape: bf16[16,128], index: 0, kind: input, shape index: {}]   ;;  %s259_s4 = inlined_call_operand.vmem [shape: bf16[16,128], index: 4, kind: output, shape index: {}]  }
   0x1   :  { %v186_v0 = vld [vmem:[%s255_s1 + $0x38] sm:$0xff]  ;;  %v185_v1 = vld [vmem:[%s255_s1 + $0x30] sm:$0xff]  ;;  %v184_v2 = vld [vmem:[%s255_s1 + $0x28] sm:$0xff] }
   0x2   :  { %97 = vmatpush.bf16.msra.mxu0 %v186_v0  ;;  %v183_v3 = vld [vmem:[%s255_s1 + $0x20] sm:$0xff]  ;;  %v182_v4 = vld [vmem:[%s255_s1 + $0x18] sm:$0xff]  ;;  %v181_v5 = vld [vmem:[%s255_s1 + $0x10] sm:$0xff] }
   0x3   :  { %v180_v6 = vld [vmem:[%s255_s1 + $0x8] sm:$0xff]  ;;  %v179_v7 = vld [vmem:[%s255_s1] sm:$0xff] }
   0x4   :  { %v178_v8 = vld [vmem:[%s258_s0] sm:$0xff] }
   0x5   :  { %v192_v10 = vld [vmem:[%s256_s2] ss:$0 sm:$0xff] }
   0x6   :  { %98 = vmatpush.bf16.msra.mxu0 %v185_v1  ;;  %v193_v12 = vld [vmem:[%s257_s3] ss:$0 sm:$0xff] }
   0xa   :  { %99 = vmatpush.bf16.msra.mxu0 %v184_v2 }
   0xe   :  { %100 = vmatpush.bf16.msra.mxu0 %v183_v3 }
  0x12   :  { %101 = vmatpush.bf16.msra.mxu0 %v182_v4 }
  0x16   :  { %102 = vmatpush.bf16.msra.mxu0 %v181_v5 }
  0x1a   :  { %103 = vmatpush.bf16.msra.mxu0 %v180_v6 }
  0x1e   :  { %104 = vmatpush.bf16.msra.mxu0 %v179_v7 }
  0x21   :  { %105 = vmatmul.bf16.vlgmr.msra.gmra.mxu0 %v178_v8 }
  0x9e   :  { %v106_v9 = vpop.f32.mrf.mxu0 }
  0x9f   :  { %v124_v11 = vmul.f32 %v192_v10, %v106_v9 }
  0xa1   :  { %v130_v14 = vadd.f32 %v193_v12, %v124_v11 }
  0xa3   :  { %v132_v17 = vmax.f32 %v130_v14, 0.0 }
  0xa6   :  { %v108_v13 = vpop.f32.mrf.mxu0 }
  0xa7   :  { %v125_v15 = vmul.f32 %v192_v10, %v108_v13 }
  0xa9   :  { %v131_v16 = vadd.f32 %v193_v12, %v125_v15 }
  0xab   :  { %v133_v18 = vmax.f32 %v131_v16, 0.0 }
  0xad   :  { %v190_v19 = vpack.c.bf16 %v133_v18, %v132_v17 }
  0xaf   :  { %191 = vst [vmem:[%s259_s4] sm:$0xff] %v190_v19  }

// kernel: _lambda_.76
= control target key start
LH: loop header
LB: loop body
LE: loop exit
PB: predicated region body
PF: predicated region fallthrough
CT: control target
= control target key end

     0   :  { %s253_s1 = inlined_call_operand.vmem [shape: bf16[128,128], index: 1, kind: input, shape index: {}]   ;;  %s254_s2 = inlined_call_operand.vmem [shape: f32[1,128], index: 2, kind: input, shape index: {}]   ;;  %s255_s3 = inlined_call_operand.vmem [shape: f32[1,128], index: 3, kind: input, shape index: {}]   ;;  %s256_s0 = inlined_call_operand.vmem [shape: bf16[16,128], index: 0, kind: input, shape index: {}]   ;;  %s257_s4 = inlined_call_operand.vmem [shape: bf16[16,128], index: 4, kind: output, shape index: {}]  }
   0x1   :  { %v184_v0 = vld [vmem:[%s253_s1 + $0x38] sm:$0xff]  ;;  %v183_v1 = vld [vmem:[%s253_s1 + $0x30] sm:$0xff]  ;;  %v182_v2 = vld [vmem:[%s253_s1 + $0x28] sm:$0xff] }
   0x2   :  { %97 = vmatpush.bf16.msra.mxu0 %v184_v0  ;;  %v181_v3 = vld [vmem:[%s253_s1 + $0x20] sm:$0xff]  ;;  %v180_v4 = vld [vmem:[%s253_s1 + $0x18] sm:$0xff]  ;;  %v179_v5 = vld [vmem:[%s253_s1 + $0x10] sm:$0xff] }
   0x3   :  { %v178_v6 = vld [vmem:[%s253_s1 + $0x8] sm:$0xff]  ;;  %v177_v7 = vld [vmem:[%s253_s1] sm:$0xff] }
   0x4   :  { %v176_v8 = vld [vmem:[%s256_s0] sm:$0xff] }
   0x5   :  { %v190_v10 = vld [vmem:[%s254_s2] ss:$0 sm:$0xff] }
   0x6   :  { %98 = vmatpush.bf16.msra.mxu0 %v183_v1  ;;  %v191_v12 = vld [vmem:[%s255_s3] ss:$0 sm:$0xff] }
   0xa   :  { %99 = vmatpush.bf16.msra.mxu0 %v182_v2 }
   0xe   :  { %100 = vmatpush.bf16.msra.mxu0 %v181_v3 }
  0x12   :  { %101 = vmatpush.bf16.msra.mxu0 %v180_v4 }
  0x16   :  { %102 = vmatpush.bf16.msra.mxu0 %v179_v5 }
  0x1a   :  { %103 = vmatpush.bf16.msra.mxu0 %v178_v6 }
  0x1e   :  { %104 = vmatpush.bf16.msra.mxu0 %v177_v7 }
  0x21   :  { %105 = vmatmul.bf16.vlgmr.msra.gmra.mxu0 %v176_v8 }
  0x9e   :  { %v106_v9 = vpop.f32.mrf.mxu0 }
  0x9f   :  { %v124_v11 = vmul.f32 %v190_v10, %v106_v9 }
  0xa1   :  { %v130_v15 = vadd.f32 %v191_v12, %v124_v11 }
  0xa6   :  { %v108_v13 = vpop.f32.mrf.mxu0 }
  0xa7   :  { %v125_v14 = vmul.f32 %v190_v10, %v108_v13 }
  0xa9   :  { %v131_v16 = vadd.f32 %v191_v12, %v125_v14 }
  0xab   :  { %v188_v17 = vpack.c.bf16 %v131_v16, %v130_v15 }
  0xad   :  { %189 = vst [vmem:[%s257_s4] sm:$0xff] %v188_v17  }

// kernel: _lambda_.78
= control target key start
LH: loop header
LB: loop body
LE: loop exit
PB: predicated region body
PF: predicated region fallthrough
CT: control target
= control target key end

     0   :  { %9 = vsyncpa [#allocation3], 0  ;;  %s1539_s15 = smov 0   ;;  %s1596_s0 = inlined_call_operand.vmem [shape: bf16[2,16,128], index: 0, kind: input, shape index: {}]   ;;  %s1597_s1 = inlined_call_operand.hbm [shape: bf16[9,128,128], index: 1, kind: input, shape index: {}]   ;;  %s1598_s2 = inlined_call_operand.vmem [shape: f32[1,128], index: 2, kind: input, shape index: {}]   ;;  %s1599_s3 = inlined_call_operand.vmem [shape: f32[1,128], index: 3, kind: input, shape index: {}]   ;;  %s1600_s4 = inlined_call_operand.vmem [shape: bf16[2,2,2,128], index: 4, kind: output, shape index: {}]  }
   0x1 LB: > { %s146_s18 = sshll.u32 %s1597_s1, 4  ;;  %s1548_s19 = sadd.s32 4294967295, %s1509_s15   ;;  %s1509_s15 = sphi %s1539_s15, %s15_s15   ;;  %s147_s18 = int_to_ptr.hbm [resolvable:$true] %s146_s18 }
   0x2   : > { %p1074_p0 = scmp.ge.s32.totalorder %s1509_s15, 1  ;;  %p135_p1 = scmp.lt.s32.totalorder %s1509_s15, 3 }
   0x3   : > { %p1454_p2 = scmp.eq.s32.totalorder %s1548_s19, 0  ;;  %s1511_s20 = smov [#allocation2]  }
   0x4   : > { %p136_p3 = pnand %p1074_p0, %p135_p1  ;;  %s148_s21 = sshll.u32 %s1511_s20, 4  ;;  %s149_s21 = int_to_ptr.vmem [resolvable:$true] %s148_s21 }
   0x5   : > { %s1512_s22 = smov 64   ;;  %s1513_s23 = smov 4  }
   0x6   : > { %p1450_p4 = pneg %p136_p3  ;;  %178 = sbr.rel (%p136_p3) target bundleno = 254 (0xfe), region = 36 }
   0x8   : > { %p1451_p5 = pnand %p1454_p2, %p1450_p4 }
   0xa   : > { %1453 = dma.hbm_to_vmem [thread:$0]  (!%p1451_p5), %s147_s18, 9216, %s149_s21, [#allocation3], %s1512_s22, %s1512_s22, %s1513_s23  }
   0xb   : > { %1504 = dma.done.wait (%p1454_p2), [#allocation3], 9216  }
   0xc   : > { %1506 = vsyncadd (%p1454_p2), [#allocation3], 4294958080  ;;  %v1389_v0 = vld [vmem:[#allocation2 + $0x78] sm:$0xff]  ;;  %v1388_v4 = vld [vmem:[#allocation2 + $0x70] sm:$0xff]  ;;  %p204_p6 = scmp.lt.s32.totalorder %s1548_s19, 1 }
   0xd   : > { %v1397_v1 = vld [vmem:[#allocation2 + $0xb8] sm:$0xff]  ;;  %307 = vmatpush.bf16.msra.mxu0 %v1389_v0  ;;  %v1396_v5 = vld [vmem:[#allocation2 + $0xb0] sm:$0xff]  ;;  %v1387_v8 = vld [vmem:[#allocation2 + $0x68] sm:$0xff] }
   0xe   : > { %v1405_v2 = vld [vmem:[#allocation2 + $0xf8] sm:$0xff]  ;;  %452 = vmatpush.bf16.msra.mxu2 %v1397_v1  ;;  %v1404_v6 = vld [vmem:[#allocation2 + $0xf0] sm:$0xff]  ;;  %v1395_v9 = vld [vmem:[#allocation2 + $0xa8] sm:$0xff]  ;;  %s1602_s19 = smov (!%p204_p6, %s1548_s19), 1 }
   0xf   : > { %v1381_v3 = vld [vmem:[#allocation2 + $0x38] sm:$0xff]  ;;  %540 = vmatpush.bf16.msra.mxu3 %v1405_v2  ;;  %v1380_v7 = vld [vmem:[#allocation2 + $0x30] sm:$0xff]  ;;  %v1403_v10 = vld [vmem:[#allocation2 + $0xe8] sm:$0xff]  ;;  %s1373_s24 = sshll.u32 %s1602_s19, 3  ;;  %s1081_s6 = sshll.u32 %s1602_s19, 1 }
  0x10   : > { %368 = vmatpush.bf16.msra.mxu1 %v1381_v3  ;;  %v1379_v11 = vld [vmem:[#allocation2 + $0x28] sm:$0xff]  ;;  %v1386_v12 = vld [vmem:[#allocation2 + $0x60] sm:$0xff]  ;;  %v1385_v16 = vld [vmem:[#allocation2 + $0x58] sm:$0xff]  ;;  %s1561_s27 = scalar_lea.vmem %s1596_s0, %s1373_s24  ;;  %s212_s9 = scalar_lea.vmem %s1600_s4, %s1081_s6 }
  0x11   : > { %308 = vmatpush.bf16.msra.mxu0 %v1388_v4  ;;  %v1394_v13 = vld [vmem:[#allocation2 + $0xa0] sm:$0xff]  ;;  %v1393_v17 = vld [vmem:[#allocation2 + $0x98] sm:$0xff]  ;;  %v1384_v21 = vld [vmem:[#allocation2 + $0x50] sm:$0xff] }
  0x12   : > { %453 = vmatpush.bf16.msra.mxu2 %v1396_v5  ;;  %v1402_v14 = vld [vmem:[#allocation2 + $0xe0] sm:$0xff]  ;;  %v1401_v18 = vld [vmem:[#allocation2 + $0xd8] sm:$0xff]  ;;  %v1392_v22 = vld [vmem:[#allocation2 + $0x90] sm:$0xff] }
  0x13   : > { %541 = vmatpush.bf16.msra.mxu3 %v1404_v6  ;;  %v1378_v15 = vld [vmem:[#allocation2 + $0x20] sm:$0xff]  ;;  %v1377_v19 = vld [vmem:[#allocation2 + $0x18] sm:$0xff]  ;;  %v1400_v24 = vld [vmem:[#allocation2 + $0xd0] sm:$0xff] }
  0x14   : > { %369 = vmatpush.bf16.msra.mxu1 %v1380_v7  ;;  %v1564_v20 = vld [vmem:[%s1561_s27] sm:$0xff]   ;;  %v1376_v25 = vld [vmem:[#allocation2 + $0x10] sm:$0xff]  ;;  %v1383_v30 = vld [vmem:[#allocation2 + $0x48] sm:$0xff] }
  0x15   : > { %309 = vmatpush.bf16.msra.mxu0 %v1387_v8  ;;  %v249_v23 = vunpack.c.l.b16 %v1564_v20  ;;  %v381_v26 = vld [vmem:[%s1561_s27] sm:$0xe]  ;;  %v467_v29 = vld [vmem:[%s1561_s27 + $0x4] sm:$0x1]  ;;  %v1391_v31 = vld [vmem:[#allocation2 + $0x88] sm:$0xff]  ;;  %v830_v6 = vunpack.c.h.b16 %v1564_v20 }
  0x16   : > { %454 = vmatpush.bf16.msra.mxu2 %v1395_v9  ;;  %v1569_v28 = vld [vmem:[%s1561_s27] sm:$0xc]  ;;  %v400_v32 = vunpack.c.l.b16 %v381_v26  ;;  %v1399_v34 = vld [vmem:[#allocation2 + $0xc8] sm:$0xff]  ;;  %v488_v37 = vunpack.c.l.b16 %v467_v29  ;;  %v1382_v38 = vld [vmem:[#allocation2 + $0x40] sm:$0xff] }
  0x17   : > { %542 = vmatpush.bf16.msra.mxu3 %v1403_v10  ;;  %v250_v27 = vpack.c.b16 %v249_v23, %v249_v23  ;;  %v1375_v35 = vld [vmem:[#allocation2 + $0x8] sm:$0xff]  ;;  %v487_v36 = vunpack.c.l.b16 %v1569_v28  ;;  %v1390_v39 = vld [vmem:[#allocation2 + $0x80] sm:$0xff]  ;;  %v1413_v43 = vld [vmem:[#allocation2 + $0x138] sm:$0xff] }
  0x18   : > { %370 = vmatpush.bf16.msra.mxu1 %v1379_v11  ;;  %v401_v40 = vpack.c.b16 %v400_v32, %v400_v32  ;;  %v1429_v44 = vld [vmem:[#allocation2 + $0x1b8] sm:$0xff]  ;;  %v1398_v45 = vld [vmem:[#allocation2 + $0xc0] sm:$0xff]  ;;  %v1412_v52 = vld [vmem:[#allocation2 + $0x130] sm:$0xff] }
  0x19   : > { %310 = vmatpush.bf16.msra.mxu0 %v1386_v12  ;;  %v254_v33 = vshll.u32 %v250_v27, 16  ;;  %v252_v41 = vshrl.u32 %v250_v27, 16  ;;  %v1374_v46 = vld [vmem:[#allocation2] sm:$0xff]  ;;  %v489_v47 = vpack.c.b16 %v488_v37, %v487_v36  ;;  %v1437_v48 = vld [vmem:[#allocation2 + $0x1f8] sm:$0xff]  ;;  %v1428_v53 = vld [vmem:[#allocation2 + $0x1b0] sm:$0xff]  ;;  %v831_v12 = vpack.c.b16 %v830_v6, %v830_v6 }
  0x1a   : > { %455 = vmatpush.bf16.msra.mxu2 %v1394_v13  ;;  %v1421_v49 = vld [vmem:[#allocation2 + $0x178] sm:$0xff]  ;;  %v402_v50 = vrot.slane %v401_v40, 1  ;;  %v1436_v55 = vld [vmem:[#allocation2 + $0x1f0] sm:$0xff]  ;;  %v1411_v58 = vld [vmem:[#allocation2 + $0x128] sm:$0xff] }
  0x1b   : > { %543 = vmatpush.bf16.msra.mxu3 %v1402_v14  ;;  %v256_v42 = vrot.slane %v254_v33, 1  ;;  %v490_v54 = vrot.slane %v489_v47, 2  ;;  %v1420_v56 = vld [vmem:[#allocation2 + $0x170] sm:$0xff]  ;;  %v213_v57 = vld [vmem:[%s1561_s27] sm:$0x7]  ;;  %v1427_v59 = vld [vmem:[#allocation2 + $0x1a8] sm:$0xff] }
  0x1c   : > { %371 = vmatpush.bf16.msra.mxu1 %v1378_v15  ;;  %v1435_v60 = vld [vmem:[#allocation2 + $0x1e8] sm:$0xff]  ;;  %v1410_v62 = vld [vmem:[#allocation2 + $0x120] sm:$0xff]  ;;  %v554_v0 = vld [vmem:[%s1561_s27 + $0x4] sm:$0x3]  ;;  %v835_v20 = vshll.u32 %v831_v12, 16  ;;  %v833_v29 = vshrl.u32 %v831_v12, 16 }
  0x1d   : > { %311 = vmatpush.bf16.msra.mxu0 %v1385_v16  ;;  %v257_v51 = vor.u32 %v256_v42, %v252_v41  ;;  %v1419_v61 = vld [vmem:[#allocation2 + $0x168] sm:$0xff]  ;;  %v1426_v63 = vld [vmem:[#allocation2 + $0x1a0] sm:$0xff]  ;;  %v573_v3 = vunpack.c.l.b16 %v554_v0  ;;  %v1409_v4 = vld [vmem:[#allocation2 + $0x118] sm:$0xff] }
  0x1e   : > { %456 = vmatpush.bf16.msra.mxu2 %v1393_v17  ;;  %v1434_v1 = vld [vmem:[#allocation2 + $0x1e0] sm:$0xff]  ;;  %v1425_v5 = vld [vmem:[#allocation2 + $0x198] sm:$0xff]  ;;  %v1408_v10 = vld [vmem:[#allocation2 + $0x110] sm:$0xff] }
  0x1f   : > { %544 = vmatpush.bf16.msra.mxu3 %v1401_v18  ;;  %v1418_v2 = vld [vmem:[#allocation2 + $0x160] sm:$0xff]  ;;  %v1433_v7 = vld [vmem:[#allocation2 + $0x1d8] sm:$0xff]  ;;  %v574_v9 = vpack.c.b16 %v573_v3, %v487_v36  ;;  %v1424_v11 = vld [vmem:[#allocation2 + $0x190] sm:$0xff] }
  0x20   : > { %372 = vmatpush.bf16.msra.mxu1 %v1377_v19  ;;  %v1417_v8 = vld [vmem:[#allocation2 + $0x158] sm:$0xff]  ;;  %v1432_v13 = vld [vmem:[#allocation2 + $0x1d0] sm:$0xff]  ;;  %v1407_v18 = vld [vmem:[#allocation2 + $0x108] sm:$0xff] }
  0x21   : > { %312 = vmatpush.bf16.msra.mxu0 %v1384_v21  ;;  %v1416_v14 = vld [vmem:[#allocation2 + $0x150] sm:$0xff]  ;;  %v576_v15 = vshrl.u32 %v574_v9, 16  ;;  %v579_v16 = vshll.u32 %v574_v9, 16  ;;  %v646_v17 = vld [vmem:[%s1561_s27] sm:$0x8]  ;;  %v1423_v19 = vld [vmem:[#allocation2 + $0x188] sm:$0xff] }
  0x22   : > { %457 = vmatpush.bf16.msra.mxu2 %v1392_v22  ;;  %v1431_v21 = vld [vmem:[#allocation2 + $0x1c8] sm:$0xff]  ;;  %v665_v23 = vunpack.c.l.b16 %v646_v17  ;;  %v1406_v26 = vld [vmem:[#allocation2 + $0x100] sm:$0xff]  ;;  %v1445_v28 = vld [vmem:[#allocation2 + $0x238] sm:$0xff] }
  0x23   : > { %545 = vmatpush.bf16.msra.mxu3 %v1400_v24  ;;  %v1415_v22 = vld [vmem:[#allocation2 + $0x148] sm:$0xff]  ;;  %v578_v24 = vrot.slane %v576_v15, 2  ;;  %v1422_v27 = vld [vmem:[#allocation2 + $0x180] sm:$0xff]  ;;  %v1444_v36 = vld [vmem:[#allocation2 + $0x230] sm:$0xff] }
  0x24   : > { %373 = vmatpush.bf16.msra.mxu1 %v1376_v25  ;;  %v581_v25 = vrot.slane %v579_v16, 3  ;;  %v1414_v32 = vld [vmem:[#allocation2 + $0x140] sm:$0xff]  ;;  %v666_v33 = vpack.c.b16 %v573_v3, %v665_v23  ;;  %v1441_v41 = vld [vmem:[#allocation2 + $0x218] sm:$0xff]  ;;  %v1440_v42 = vld [vmem:[#allocation2 + $0x210] sm:$0xff] }
  0x25   : > { %313 = vmatpush.bf16.msra.mxu0 %v1383_v30  ;;  %v837_v30 = vrot.slane %v835_v20, 1  ;;  %v1442_v40 = vld [vmem:[#allocation2 + $0x220] sm:$0xff] }
  0x26   : > { %458 = vmatpush.bf16.msra.mxu2 %v1391_v31  ;;  %v1430_v31 = vld [vmem:[#allocation2 + $0x1c0] sm:$0xff] }
  0x27   : > { %546 = vmatpush.bf16.msra.mxu3 %v1399_v34  ;;  %v582_v34 = vor.u32 %v581_v25, %v578_v24  ;;  %v838_v37 = vor.u32 %v837_v30, %v833_v29  ;;  %v1438_v47 = vld [vmem:[#allocation2 + $0x200] sm:$0xff] }
  0x28   : > { %374 = vmatpush.bf16.msra.mxu1 %v1375_v35  ;;  %v731_v35 = vld [vmem:[%s1561_s27 + $0x4] sm:$0x7] }
  0x29   : > { %314 = vmatpush.bf16.msra.mxu0 %v1382_v38  ;;  %v667_v38 = vrot.slane %v666_v33, 3 }
  0x2a   : > { %459 = vmatpush.bf16.msra.mxu2 %v1390_v39  ;;  %v1443_v39 = vld [vmem:[#allocation2 + $0x228] sm:$0xff] }
  0x2b   : > { %547 = vmatpush.bf16.msra.mxu3 %v1398_v45  ;;  %v1439_v45 = vld [vmem:[#allocation2 + $0x208] sm:$0xff] }
  0x2c   : > { %375 = vmatpush.bf16.msra.mxu1 %v1374_v46  ;;  %315 = vmatmul.bf16.vlgmr.msra.gmra.mxu0 %v257_v51 }
  0x2d   : > { %632 = vmatpush.bf16.msrb.mxu0 %v1413_v43  ;;  %460 = vmatmul.bf16.vlgmr.msra.gmra.mxu2 %v402_v50  ;;  %v902_v43 = vld [vmem:[%s1561_s27 + $0x4] sm:$0xe] }
  0x2e   : > { %797 = vmatpush.bf16.msrb.mxu2 %v1429_v44  ;;  %548 = vmatmul.bf16.vlgmr.msra.gmra.mxu3 %v490_v54  ;;  %v921_v44 = vunpack.c.l.b16 %v902_v43 }
  0x2f   : > { %888 = vmatpush.bf16.msrb.mxu3 %v1437_v48  ;;  %376 = vmatmul.bf16.vlgmr.msra.gmra.mxu1 %v213_v57 }
  0x30   : > { %717 = vmatpush.bf16.msrb.mxu1 %v1421_v49  ;;  %v922_v46 = vpack.c.b16 %v921_v44, %v921_v44 }
  0x31   : > { %633 = vmatpush.bf16.msrb.mxu0 %v1412_v52 }
  0x32   : > { %798 = vmatpush.bf16.msrb.mxu2 %v1428_v53  ;;  %v923_v48 = vrot.slane %v922_v46, 1 }
  0x33   : > { %889 = vmatpush.bf16.msrb.mxu3 %v1436_v55 }
  0x34   : > { %718 = vmatpush.bf16.msrb.mxu1 %v1420_v56 }
  0x35   : > { %634 = vmatpush.bf16.msrb.mxu0 %v1411_v58 }
  0x36   : > { %799 = vmatpush.bf16.msrb.mxu2 %v1427_v59 }
  0x37   : > { %890 = vmatpush.bf16.msrb.mxu3 %v1435_v60 }
  0x38   : > { %719 = vmatpush.bf16.msrb.mxu1 %v1419_v61 }
  0x39   : > { %635 = vmatpush.bf16.msrb.mxu0 %v1410_v62 }
  0x3a   : > { %800 = vmatpush.bf16.msrb.mxu2 %v1426_v63 }
  0x3b   : > { %891 = vmatpush.bf16.msrb.mxu3 %v1434_v1 }
  0x3c   : > { %720 = vmatpush.bf16.msrb.mxu1 %v1418_v2 }
  0x3d   : > { %636 = vmatpush.bf16.msrb.mxu0 %v1409_v4 }
  0x3e   : > { %801 = vmatpush.bf16.msrb.mxu2 %v1425_v5 }
  0x3f   : > { %892 = vmatpush.bf16.msrb.mxu3 %v1433_v7 }
  0x40   : > { %721 = vmatpush.bf16.msrb.mxu1 %v1417_v8  ;;  %v1467_v8 = vld [vmem:[%s1598_s2] ss:$0 sm:$0xff] }
  0x41   : > { %637 = vmatpush.bf16.msrb.mxu0 %v1408_v10 }
  0x42   : > { %802 = vmatpush.bf16.msrb.mxu2 %v1424_v11  ;;  %v1468_v11 = vld [vmem:[%s1599_s3] ss:$0 sm:$0xff] }
  0x43   : > { %893 = vmatpush.bf16.msrb.mxu3 %v1432_v13 }
  0x44   : > { %722 = vmatpush.bf16.msrb.mxu1 %v1416_v14 }
  0x45   : > { %638 = vmatpush.bf16.msrb.mxu0 %v1407_v18 }
  0x46   : > { %803 = vmatpush.bf16.msrb.mxu2 %v1423_v19 }
  0x47   : > { %894 = vmatpush.bf16.msrb.mxu3 %v1431_v21 }
  0x48   : > { %723 = vmatpush.bf16.msrb.mxu1 %v1415_v22 }
  0x49   : > { %639 = vmatpush.bf16.msrb.mxu0 %v1406_v26 }
  0x4a   : > { %804 = vmatpush.bf16.msrb.mxu2 %v1422_v27 }
  0x4b   : > { %895 = vmatpush.bf16.msrb.mxu3 %v1430_v31 }
  0x4c   : > { %724 = vmatpush.bf16.msrb.mxu1 %v1414_v32  ;;  %640 = vmatmul.bf16.vlgmr.msrb.gmra.mxu0 %v582_v34 }
  0x4d   : > { %973 = vmatpush.bf16.msra.mxu0 %v1445_v28  ;;  %805 = vmatmul.bf16.vlgmr.msrb.gmra.mxu2 %v731_v35 }
  0x4e   : > { %896 = vmatmul.bf16.vlgmr.msrb.gmra.mxu3 %v838_v37 }
  0x4f   : > { %725 = vmatmul.bf16.vlgmr.msrb.gmra.mxu1 %v667_v38 }
  0x51   : > { %974 = vmatpush.bf16.msra.mxu0 %v1444_v36 }
  0x55   : > { %975 = vmatpush.bf16.msra.mxu0 %v1443_v39 }
  0x59   : > { %976 = vmatpush.bf16.msra.mxu0 %v1442_v40 }
  0x5d   : > { %977 = vmatpush.bf16.msra.mxu0 %v1441_v41 }
  0x61   : > { %978 = vmatpush.bf16.msra.mxu0 %v1440_v42 }
  0x65   : > { %979 = vmatpush.bf16.msra.mxu0 %v1439_v45 }
  0x69   : > { %980 = vmatpush.bf16.msra.mxu0 %v1438_v47 }
  0x6c   : > { %981 = vmatmul.bf16.vlgmr.msra.gmra.mxu0 %v923_v48 }
  0xa9   : > { %v316_v49 = vpop.f32.mrf.mxu0 }
  0xac   : > { %v377_v50 = vpop.f32.mrf.mxu1 }
  0xad   : > { %v378_v59 = vadd.f32 %v377_v50, %v316_v49 }
  0xb0   : > { %v461_v51 = vpop.f32.mrf.mxu2 }
  0xb1   : > { %v549_v52 = vpop.f32.mrf.mxu3  ;;  %v318_v53 = vpop.f32.mrf.mxu0  ;;  %v465_v61 = vadd.f32 %v461_v51, %v378_v59 }
  0xb3   : > { %v553_v1 = vadd.f32 %v549_v52, %v465_v61 }
  0xb4   : > { %v379_v54 = vpop.f32.mrf.mxu1 }
  0xb8   : > { %v463_v55 = vpop.f32.mrf.mxu2 }
  0xb9   : > { %v551_v56 = vpop.f32.mrf.mxu3 }
  0xc9   : > { %v641_v57 = vpop.f32.mrf.mxu0 }
  0xca   : > { %v645_v3 = vadd.f32 %v641_v57, %v553_v1 }
  0xcc   : > { %v726_v58 = vpop.f32.mrf.mxu1 }
  0xcd   : > { %v730_v5 = vadd.f32 %v726_v58, %v645_v3 }
  0xd0   : > { %v806_v60 = vpop.f32.mrf.mxu2 }
  0xd1   : > { %v897_v62 = vpop.f32.mrf.mxu3  ;;  %v643_v63 = vpop.f32.mrf.mxu0  ;;  %v810_v6 = vadd.f32 %v806_v60, %v730_v5 }
  0xd3   : > { %v901_v7 = vadd.f32 %v897_v62, %v810_v6 }
  0xd4   : > { %v728_v0 = vpop.f32.mrf.mxu1 }
  0xd8   : > { %v808_v2 = vpop.f32.mrf.mxu2 }
  0xd9   : > { %v899_v4 = vpop.f32.mrf.mxu3 }
  0xe9   : > { %v982_v9 = vpop.f32.mrf.mxu0 }
  0xea   : > { %v986_v10 = vadd.f32 %v982_v9, %v901_v7 }
  0xec   : > { %v991_v12 = vmul.f32 %v1467_v8, %v986_v10 }
  0xee   : > { %v996_v13 = vadd.f32 %v1468_v11, %v991_v12 }
  0xf0   : > { %v997_v14 = vmax.f32 %v996_v13, 0.0 }
  0xf1   : > { %v984_v15 = vpop.f32.mrf.mxu0 }
  0xf2   : > { %v998_v16 = vpack.c.bf16 %v997_v14, %v997_v14 }
  0xf4   : > { %999 = vst [vmem:[%s212_s9] sm:$0x1] %v998_v16 }
  0xf5   : > { %1001 = vst [vmem:[#allocation1] sm:$0xff] %v998_v16 }
  0xfc   : > { %v1003_v17 = vld [vmem:[#allocation1 + $0x2] ss:$4 sm:$0xff] }
  0xfd   : > { %1370 = vst [vmem:[%s212_s9 + $0x1] sm:$0x1] %v1003_v17 }
  0xfe PF: > { %s15_s15 = sadd.s32 1, %s1509_s15  }
  0xff   : > { %p12_p7 = scmp.ge.s32.totalorder %s15_s15, 4  }
 0x101   :  { %14 = sbr.rel (!%p12_p7) target bundleno = 1 (0x1), region = 81 }
 0x106   :  { %1026 = vsyncpa [#allocation3], 1 }
 0x107   :  { %1028 = vsyncpa [#allocation3 + $0x1], 1 }

// kernel: _lambda_.79
= control target key start
LH: loop header
LB: loop body
LE: loop exit
PB: predicated region body
PF: predicated region fallthrough
CT: control target
= control target key end

     0   :  { %s276_s1 = inlined_call_operand.vmem [shape: bf16[128,128], index: 1, kind: input, shape index: {}]   ;;  %s277_s2 = inlined_call_operand.vmem [shape: f32[1,128], index: 2, kind: input, shape index: {}]   ;;  %s278_s3 = inlined_call_operand.vmem [shape: f32[1,128], index: 3, kind: input, shape index: {}]   ;;  %s279_s0 = inlined_call_operand.vmem [shape: bf16[16,128], index: 0, kind: input, shape index: {}]   ;;  %s280_s4 = inlined_call_operand.vmem [shape: bf16[16,128], index: 4, kind: input, shape index: {}]   ;;  %s281_s5 = inlined_call_operand.vmem [shape: bf16[16,128], index: 5, kind: output, shape index: {}]  }
   0x1   :  { %v195_v0 = vld [vmem:[%s276_s1 + $0x38] sm:$0xff]  ;;  %v194_v1 = vld [vmem:[%s276_s1 + $0x30] sm:$0xff]  ;;  %v193_v2 = vld [vmem:[%s276_s1 + $0x28] sm:$0xff] }
   0x2   :  { %100 = vmatpush.bf16.msra.mxu0 %v195_v0  ;;  %v192_v3 = vld [vmem:[%s276_s1 + $0x20] sm:$0xff]  ;;  %v191_v4 = vld [vmem:[%s276_s1 + $0x18] sm:$0xff]  ;;  %v190_v5 = vld [vmem:[%s276_s1 + $0x10] sm:$0xff] }
   0x3   :  { %v189_v6 = vld [vmem:[%s276_s1 + $0x8] sm:$0xff]  ;;  %v188_v7 = vld [vmem:[%s276_s1] sm:$0xff] }
   0x4   :  { %v187_v8 = vld [vmem:[%s279_s0] sm:$0xff] }
   0x5   :  { %v205_v9 = vld [vmem:[%s277_s2] ss:$0 sm:$0xff] }
   0x6   :  { %101 = vmatpush.bf16.msra.mxu0 %v194_v1  ;;  %v206_v12 = vld [vmem:[%s278_s3] ss:$0 sm:$0xff] }
   0x7   :  { %v197_v13 = vld [vmem:[%s280_s4] sm:$0xff]  }
   0x8   :  { %v198_v15 = vunpack.c.l.bf16 %v197_v13  ;;  %v199_v18 = vunpack.c.h.bf16 %v197_v13 }
   0xa   :  { %102 = vmatpush.bf16.msra.mxu0 %v193_v2 }
   0xe   :  { %103 = vmatpush.bf16.msra.mxu0 %v192_v3 }
  0x12   :  { %104 = vmatpush.bf16.msra.mxu0 %v191_v4 }
  0x16   :  { %105 = vmatpush.bf16.msra.mxu0 %v190_v5 }
  0x1a   :  { %106 = vmatpush.bf16.msra.mxu0 %v189_v6 }
  0x1e   :  { %107 = vmatpush.bf16.msra.mxu0 %v188_v7 }
  0x21   :  { %108 = vmatmul.bf16.vlgmr.msra.gmra.mxu0 %v187_v8 }
  0x9e   :  { %v109_v10 = vpop.f32.mrf.mxu0 }
  0x9f   :  { %v127_v11 = vmul.f32 %v205_v9, %v109_v10 }
  0xa1   :  { %v133_v14 = vadd.f32 %v206_v12, %v127_v11 }
  0xa3   :  { %v139_v19 = vadd.f32 %v198_v15, %v133_v14 }
  0xa5   :  { %v141_v22 = vmax.f32 %v139_v19, 0.0 }
  0xa6   :  { %v111_v16 = vpop.f32.mrf.mxu0 }
  0xa7   :  { %v128_v17 = vmul.f32 %v205_v9, %v111_v16 }
  0xa9   :  { %v134_v20 = vadd.f32 %v206_v12, %v128_v17 }
  0xab   :  { %v140_v21 = vadd.f32 %v199_v18, %v134_v20 }
  0xad   :  { %v142_v23 = vmax.f32 %v140_v21, 0.0 }
  0xaf   :  { %v203_v24 = vpack.c.bf16 %v142_v23, %v141_v22 }
  0xb1   :  { %204 = vst [vmem:[%s281_s5] sm:$0xff] %v203_v24  }

// kernel: _lambda_.95
= control target key start
LH: loop header
LB: loop body
LE: loop exit
PB: predicated region body
PF: predicated region fallthrough
CT: control target
= control target key end

     0   :  { %s396_s9 = smov 0   ;;  %s398_s10 = smov 0   ;;  %s441_s0 = inlined_call_operand.vmem [shape: bf16[2,4,128], index: 0, kind: input, shape index: {}]   ;;  %s442_s1 = inlined_call_operand.vmem [shape: bf16[2,4,128], index: 1, kind: input, shape index: {}]   ;;  %s443_s2 = inlined_call_operand.vmem [shape: f32[2,4,128], index: 2, kind: output, shape index: {}]  }
   0x1   :  { %s400_s11 = smov 0  }
   0x2 LB: > { %s24_s12 = sadd.s32 1, %s374_s10  ;;  %p325_p0 = scmp.ge.s32.totalorder %s378_s11, 1  ;;  %s378_s11 = sphi %s400_s11, %s12_s11   ;;  %s374_s10 = sphi %s398_s10, %s445_s10   ;;  %s370_s9 = sphi %s396_s9, %s444_s9  }
   0x3   : > { %p26_p1 = scmp.ge.s32.totalorder %s24_s12, 2  ;;  %p142_p2 = scmp.lt.s32.totalorder %s378_s11, 3 }
   0x5   : > { %s447_s12 = smov (%p26_p1, %s24_s12), 0  ;;  %p143_p3 = pnand %p325_p0, %p142_p2 }
   0x6   : > { %p172_p4 = scmp.lt.s32.totalorder (!%p143_p3), %s370_s9, 1 }
   0x7   : > { %146 = sbr.rel (%p143_p3) target bundleno = 41 (0x29), region = 28 }
   0xc   : > { %s449_s9 = smov (!%p172_p4, %s370_s9), 1  ;;  %vm199_vm0 = vcmask 1043456   ;;  %v380_v2 = vmov 0.0   ;;  %vm234_vm1 = vcmask 1040384   ;;  %vm236_vm2 = vcmask 1041408  }
   0xd   : > { %s326_s13 = sshll.u32 %s449_s9, 1  ;;  %s328_s14 = sshll.u32 %s449_s9, 2  ;;  %vm238_vm3 = vcmask 1042432  }
   0xe   : > { %s178_s17 = scalar_lea.vmem %s441_s0, %s326_s13  ;;  %s185_s20 = scalar_lea.vmem %s442_s1, %s326_s13 }
   0xf   : > { %s423_s23 = scalar_lea.vmem %s443_s2, %s328_s14  ;;  %v195_v0 = vld [vmem:[%s178_s17] sm:$0x3] }
  0x10   : > { %v197_v1 = vld [vmem:[%s185_s20] sm:$0x3]  ;;  %194 = vst [vmem:[%s423_s23] sm:$0xf] %v380_v2  ;;  %v196_v3 = vunpack.c.l.bf16 %v195_v0 }
  0x11   : > { %v198_v4 = vunpack.c.l.bf16 %v197_v1 }
  0x12   : > { %v215_v7 = vmul.f32 %v196_v3, %v196_v3 }
  0x13   : > { %v200_v5 = vsel %vm199_vm0, %v198_v4, 0.0  ;;  %v207_v6 = vmul.f32 %v198_v4, %v196_v3 }
  0x14   : > { %v201_v8 = vrot.slane %v200_v5, 4  ;;  %v216_v10 = vmul.f32 %v215_v7, %v198_v4  ;;  %v224_v11 = vmul.f32 %v215_v7, %v196_v3 }
  0x15   : > { %v208_v9 = vsel %vm199_vm0, %v207_v6, 0.0 }
  0x16   : > { %v202_v12 = vadd.f32 %v201_v8, %v200_v5  ;;  %v209_v13 = vrot.slane %v208_v9, 4  ;;  %v217_v14 = vsel %vm199_vm0, %v216_v10, 0.0  ;;  %v225_v15 = vmul.f32 %v224_v11, %v198_v4 }
  0x17   : > { %v218_v17 = vrot.slane %v217_v14, 4  ;;  %v233_v39 = vld [vmem:[%s423_s23] sm:$0xf] }
  0x18   : > { %v210_v16 = vadd.f32 %v209_v13, %v208_v9  ;;  %v203_v18 = vrot.slane %v202_v12, 2  ;;  %v226_v19 = vsel %vm199_vm0, %v225_v15, 0.0 }
  0x19   : > { %v219_v22 = vadd.f32 %v218_v17, %v217_v14  ;;  %v227_v23 = vrot.slane %v226_v19, 4 }
  0x1a   : > { %v211_v20 = vrot.slane %v210_v16, 2  ;;  %v204_v21 = vadd.f32 %v203_v18, %v202_v12 }
  0x1b   : > { %v220_v26 = vrot.slane %v219_v22, 2  ;;  %v228_v27 = vadd.f32 %v227_v23, %v226_v19 }
  0x1c   : > { %v205_v24 = vrot.slane %v204_v21, 1  ;;  %v212_v25 = vadd.f32 %v211_v20, %v210_v16 }
  0x1d   : > { %v221_v30 = vadd.f32 %v220_v26, %v219_v22  ;;  %v229_v31 = vrot.slane %v228_v27, 2 }
  0x1e   : > { %v206_v28 = vadd.f32 %v205_v24, %v204_v21  ;;  %v213_v29 = vrot.slane %v212_v25, 1 }
  0x1f   : > { %v222_v33 = vrot.slane %v221_v30, 1  ;;  %v230_v34 = vadd.f32 %v229_v31, %v228_v27 }
  0x20   : > { %v214_v32 = vadd.f32 %v213_v29, %v212_v25 }
  0x21   : > { %v223_v35 = vadd.f32 %v222_v33, %v221_v30  ;;  %v231_v36 = vrot.slane %v230_v34, 1 }
  0x22   : > { %v235_v37 = vsel %vm234_vm1, %v206_v28, %v214_v32 }
  0x23   : > { %v232_v38 = vadd.f32 %v231_v36, %v230_v34  ;;  %v237_v40 = vsel %vm236_vm2, %v235_v37, %v223_v35 }
  0x25   : > { %v239_v41 = vsel %vm238_vm3, %v237_v40, %v232_v38 }
  0x26   : > { %v240_v42 = vadd.f32 %v239_v41, %v233_v39 }
  0x28   : > { %241 = vst [vmem:[%s423_s23] sm:$0xf] %v240_v42 }
  0x29 PF: > { %s12_s11 = sadd.s32 1, %s378_s11   ;;  %s444_s9 = smov %s374_s10 }
  0x2a   : > { %p9_p5 = scmp.ge.s32.totalorder %s12_s11, 4   ;;  %s445_s10 = smov %s447_s12 }
  0x2c   :  { %11 = sbr.rel (!%p9_p5) target bundleno = 2 (0x2), region = 65 }

// kernel: _lambda_.98
= control target key start
LH: loop header
LB: loop body
LE: loop exit
PB: predicated region body
PF: predicated region fallthrough
CT: control target
= control target key end

     0   :  { %s972_s15 = smov 0   ;;  %s1099_s0 = inlined_call_operand.vmem [shape: bf16[2,4,128], index: 0, kind: input, shape index: {}]   ;;  %s1100_s1 = inlined_call_operand.vmem [shape: bf16[2,4,128], index: 1, kind: input, shape index: {}]   ;;  %s1101_s2 = inlined_call_operand.vmem [shape: f32[1,128], index: 2, kind: input, shape index: {}, may-alias: {2,3}]   ;;  %s1102_s3 = inlined_call_operand.vmem [shape: f32[1,128], index: 3, kind: input, shape index: {}, may-alias: {2,3}]   ;;  %s1103_s4 = inlined_call_operand.vmem [shape: bf16[2,4,128], index: 4, kind: output, shape index: {}]  }
   0x1 LB: > { %s835_s16 = sadd.s32 4294967295, %s937_s15   ;;  %p839_p0 = scmp.ge.s32.totalorder %s937_s15, 1  ;;  %s937_s15 = sphi %s972_s15, %s14_s15  }
   0x2   : > { %p170_p1 = scmp.lt.s32.totalorder %s937_s15, 3 }
   0x4   : > { %p171_p2 = pnand %p839_p0, %p170_p1 }
   0x5   : > { %p198_p3 = scmp.lt.s32.totalorder (!%p171_p2), %s835_s16, 1  ;;  %s939_s21 = smov (!%p171_p2), 120  }
   0x6   : > { %174 = sbr.rel (%p171_p2) target bundleno = 3165 (0xc5d), region = 36  ;;  %s941_s5 = smov (!%p171_p2), 112  }
   0x7   : > { %s942_s12 = smov (!%p171_p2), 104  }
   0xb   : > { %s1105_s16 = smov (!%p198_p3, %s835_s16), 1  ;;  %vm212_vm0 = vcmask 60416   ;;  %v940_v4 = vmov 32.0   ;;  %vm739_vm8 = vcmask 64512   ;;  %vm741_vm15 = vcmask 130048  }
   0xc   : > { %s980_s17 = sshll.u32 %s1105_s16, 1  ;;  %913 = vrcp.f32 %v940_v4 }
   0xd   : > { %s201_s20 = scalar_lea.vmem %s1099_s0, %s980_s17 }
   0xe   : > { %v210_v0 = vld [vmem:[%s201_s20] sm:$0x3] }
   0xf   : > { %v986_v1 = vunpack.c.l.bf16 %v210_v0 }
  0x11   : > { %v213_v2 = vsel %vm212_vm0, %v986_v1, 0.0  ;;  %270 = vst [vmem:[#allocation1] ss:$2 sm:$0xff] %v986_v1 }
  0x12   : > { %214 = vadd.xlane.f32.xlu0 %v213_v2  ;;  %v914_v5 = vpop.eup %913 }
  0x13   : > { %v224_v6 = vmul.f32 32.0, %v914_v5  ;;  %vm228_vm1 = vweird.f32 %v914_v5 }
  0x15   : > { %v225_v7 = vsub.f32 1.0, %v224_v6 }
  0x17   : > { %v226_v11 = vmul.f32 %v914_v5, %v225_v7 }
  0x18   : > { %v271_v3 = vld.sshfl [vmem:[#allocation1] sm:$0xff pattern:$0x75316420] }
  0x19   : > { %272 = vrot.lane.b32.xlu1 %v271_v3, %s939_s21  ;;  %v227_v14 = vadd.f32 %v914_v5, %v226_v11 }
  0x1b   : > { %v229_v17 = vsel %vm228_vm1, %v914_v5, %v227_v14  ;;  %vm743_vm1 = vcmask 195584  }
  0x85   : > { %v215_v8 = vpop.xlane.xlu0 %214 }
  0x86   : > { %v216_v9 = vrot.slane %v215_v8, 4 }
  0x88   : > { %v217_v10 = vadd.f32 %v216_v9, %v215_v8 }
  0x8a   : > { %v218_v12 = vrot.slane %v217_v10, 2 }
  0x8b   : > { %v273_v22 = vpop.permute.xlu1 %272 }
  0x8c   : > { %v219_v13 = vadd.f32 %v218_v12, %v217_v10  ;;  %v275_v23 = vsel %vm212_vm0, %v273_v22, 0.0 }
  0x8d   : > { %276 = vadd.xlane.f32.xlu1 %v275_v23 }
  0x8e   : > { %v220_v15 = vrot.slane %v219_v13, 1 }
  0x90   : > { %v221_v16 = vadd.f32 %v220_v15, %v219_v13 }
  0x92   : > { %845 = vpush %v221_v16 }
  0x93   : > { %847 = vpush %v229_v17 }
  0xc3   : > { %s846_s22 = spop %845 }
  0xc4   : > { %s992_s23 = spop %847 }
  0xc5   : > { %s231_s24 = smul.f32 %s992_s23, %s846_s22 }
  0xc7   : > { %v232_v18 = vstv %s231_s24 }
  0xc8   : > { %v996_v19 = vsub.f32 %v986_v1, %v232_v18 }
  0xca   : > { %v234_v20 = vmul.f32 %v996_v19, %v996_v19 }
  0xcc   : > { %v235_v21 = vsel %vm212_vm0, %v234_v20, 0.0 }
  0xcd   : > { %236 = vadd.xlane.f32.xlu0 %v235_v21 }
 0x100   : > { %v277_v31 = vpop.xlane.xlu1 %276 }
 0x101   : > { %v278_v32 = vrot.slane %v277_v31, 4 }
 0x103   : > { %v279_v34 = vadd.f32 %v278_v32, %v277_v31 }
 0x105   : > { %v280_v35 = vrot.slane %v279_v34, 2 }
 0x107   : > { %v281_v39 = vadd.f32 %v280_v35, %v279_v34 }
 0x109   : > { %v282_v42 = vrot.slane %v281_v39, 1 }
 0x10b   : > { %v283_v45 = vadd.f32 %v282_v42, %v281_v39 }
 0x140   : > { %v237_v24 = vpop.xlane.xlu0 %236 }
 0x141   : > { %v238_v25 = vrot.slane %v237_v24, 4 }
 0x143   : > { %v239_v26 = vadd.f32 %v238_v25, %v237_v24 }
 0x145   : > { %v240_v27 = vrot.slane %v239_v26, 2 }
 0x147   : > { %v241_v28 = vadd.f32 %v240_v27, %v239_v26 }
 0x149   : > { %v242_v29 = vrot.slane %v241_v28, 1 }
 0x14b   : > { %v243_v30 = vadd.f32 %v242_v29, %v241_v28 }
 0x14d   : > { %849 = vpush %v243_v30 }
 0x17e   : > { %s850_s25 = spop %849 }
 0x17f   : > { %s253_s26 = smul.f32 %s850_s25, %s992_s23 }
 0x181   : > { %s254_s27 = sadd.f32 1e-05, %s253_s26 }
 0x183   : > { %v255_v33 = vstv %s254_s27 }
 0x184   : > { %915 = vrsqrt.f32 %v255_v33  ;;  %vm262_vm3 = vweird.f32 %v255_v33 }
 0x18a   : > { %v916_v36 = vpop.eup %915 }
 0x18b   : > { %v257_v37 = vmul.f32 %v916_v36, %v255_v33  ;;  %vm263_vm2 = vweird.f32 %v916_v36 }
 0x18c   : > { %vm264_vm4 = vmor %vm262_vm3, %vm263_vm2 }
 0x18d   : > { %v258_v38 = vmul.f32 %v916_v36, %v257_v37 }
 0x18f   : > { %v259_v40 = vmul.f32 0.5, %v258_v38 }
 0x191   : > { %v260_v41 = vsub.f32 1.5, %v259_v40 }
 0x193   : > { %v261_v43 = vmul.f32 %v916_v36, %v260_v41 }
 0x195   : > { %v265_v44 = vsel %vm264_vm4, %v916_v36, %v261_v43 }
 0x196   : > { %851 = vpush %v265_v44 }
 0x197   : > { %853 = vpush %v283_v45 }
 0x1c7   : > { %s1003_s28 = spop %851 }
 0x1c8   : > { %s854_s29 = spop %853  ;;  %v267_v14 = vstv %s1003_s28 }
 0x1c9   : > { %s293_s30 = smul.f32 %s854_s29, %s992_s23  ;;  %v268_v16 = vmul.f32 %v267_v14, %v996_v19  ;;  %s944_s29 = smov 88  }
 0x1cb   : > { %v294_v46 = vstv %s293_s30 }
 0x1cc   : > { %v295_v47 = vsub.f32 %v986_v1, %v294_v46 }
 0x1ce   : > { %v296_v48 = vmul.f32 %v295_v47, %v295_v47 }
 0x1d0   : > { %298 = vst [vmem:[#allocation1] ss:$2 sm:$0xff] %v296_v48 }
 0x1d7   : > { %v299_v49 = vld.sshfl [vmem:[#allocation1] sm:$0xff pattern:$0x75316420] }
 0x1d8   : > { %337 = vst [vmem:[#allocation1] ss:$2 sm:$0xff] %v986_v1  ;;  %300 = vrot.lane.b32.xlu2 %v299_v49, %s939_s21  ;;  %s943_s21 = smov 96  }
 0x1df   : > { %v338_v50 = vld.sshfl [vmem:[#allocation1] sm:$0xff pattern:$0x75316420] }
 0x1e0   : > { %339 = vrot.lane.b32.xlu0 %v338_v50, %s941_s5 }
 0x232   : > { %v301_v51 = vpop.permute.xlu2 %300 }
 0x233   : > { %v303_v52 = vsel %vm212_vm0, %v301_v51, 0.0 }
 0x234   : > { %304 = vadd.xlane.f32.xlu2 %v303_v52 }
 0x252   : > { %v340_v53 = vpop.permute.xlu0 %339 }
 0x253   : > { %v342_v54 = vsel %vm212_vm0, %v340_v53, 0.0 }
 0x254   : > { %343 = vadd.xlane.f32.xlu0 %v342_v54 }
 0x2a7   : > { %v305_v55 = vpop.xlane.xlu2 %304 }
 0x2a8   : > { %v306_v56 = vrot.slane %v305_v55, 4 }
 0x2aa   : > { %v307_v57 = vadd.f32 %v306_v56, %v305_v55 }
 0x2ac   : > { %v308_v58 = vrot.slane %v307_v57, 2 }
 0x2ae   : > { %v309_v59 = vadd.f32 %v308_v58, %v307_v57 }
 0x2b0   : > { %v310_v60 = vrot.slane %v309_v59, 1 }
 0x2b2   : > { %v311_v61 = vadd.f32 %v310_v60, %v309_v59 }
 0x2b4   : > { %855 = vpush %v311_v61 }
 0x2c7   : > { %v344_v62 = vpop.xlane.xlu0 %343 }
 0x2c8   : > { %v345_v63 = vrot.slane %v344_v62, 4 }
 0x2ca   : > { %v346_v2 = vadd.f32 %v345_v63, %v344_v62 }
 0x2cc   : > { %v347_v3 = vrot.slane %v346_v2, 2 }
 0x2ce   : > { %v348_v7 = vadd.f32 %v347_v3, %v346_v2 }
 0x2d0   : > { %v349_v10 = vrot.slane %v348_v7, 1 }
 0x2d2   : > { %v350_v13 = vadd.f32 %v349_v10, %v348_v7 }
 0x2e5   : > { %s856_s6 = spop %855 }
 0x2e6   : > { %s321_s7 = smul.f32 %s856_s6, %s992_s23 }
 0x2e8   : > { %s322_s8 = sadd.f32 1e-05, %s321_s7 }
 0x2ea   : > { %v323_v0 = vstv %s322_s8 }
 0x2eb   : > { %917 = vrsqrt.f32 %v323_v0  ;;  %vm330_vm6 = vweird.f32 %v323_v0 }
 0x2f1   : > { %v918_v4 = vpop.eup %917 }
 0x2f2   : > { %v325_v5 = vmul.f32 %v918_v4, %v323_v0  ;;  %vm331_vm5 = vweird.f32 %v918_v4 }
 0x2f3   : > { %vm332_vm7 = vmor %vm330_vm6, %vm331_vm5 }
 0x2f4   : > { %v326_v6 = vmul.f32 %v918_v4, %v325_v5 }
 0x2f6   : > { %v327_v8 = vmul.f32 0.5, %v326_v6 }
 0x2f8   : > { %v328_v9 = vsub.f32 1.5, %v327_v8 }
 0x2fa   : > { %v329_v11 = vmul.f32 %v918_v4, %v328_v9 }
 0x2fc   : > { %v333_v12 = vsel %vm332_vm7, %v918_v4, %v329_v11 }
 0x2fd   : > { %857 = vpush %v333_v12 }
 0x2fe   : > { %859 = vpush %v350_v13 }
 0x32e   : > { %s858_s9 = spop %857 }
 0x32f   : > { %v335_v15 = vstv %s858_s9  ;;  %s860_s10 = spop %859 }
 0x330   : > { %v336_v17 = vmul.f32 %v335_v15, %v295_v47  ;;  %s360_s11 = smul.f32 %s860_s10, %s992_s23  ;;  %s945_s10 = smov 80  }
 0x332   : > { %v1016_v18 = vsel %vm739_vm8, %v268_v16, %v336_v17  ;;  %v361_v20 = vstv %s360_s11  ;;  %vm745_vm8 = vcmask 261120  }
 0x333   : > { %v1019_v21 = vsub.f32 %v986_v1, %v361_v20 }
 0x335   : > { %v363_v22 = vmul.f32 %v1019_v21, %v1019_v21 }
 0x337   : > { %365 = vst [vmem:[#allocation1] ss:$2 sm:$0xff] %v363_v22 }
 0x33e   : > { %v366_v23 = vld.sshfl [vmem:[#allocation1] sm:$0xff pattern:$0x75316420] }
 0x33f   : > { %404 = vst [vmem:[#allocation1] ss:$2 sm:$0xff] %v986_v1  ;;  %367 = vrot.lane.b32.xlu2 %v366_v23, %s941_s5 }
 0x346   : > { %v405_v25 = vld.sshfl [vmem:[#allocation1] sm:$0xff pattern:$0x75316420] }
 0x399   : > { %v368_v24 = vpop.permute.xlu2 %367 }
 0x39a   : > { %v370_v19 = vsel %vm212_vm0, %v368_v24, 0.0 }
 0x39b   : > { %371 = vadd.xlane.f32.xlu1 %v370_v19 }
 0x3b4   : > { %406 = vrot.lane.b32.xlu1 %v405_v25, %s942_s12 }
 0x40e   : > { %v372_v26 = vpop.xlane.xlu1 %371 }
 0x40f   : > { %v373_v27 = vrot.slane %v372_v26, 4 }
 0x411   : > { %v374_v28 = vadd.f32 %v373_v27, %v372_v26 }
 0x413   : > { %v375_v29 = vrot.slane %v374_v28, 2 }
 0x415   : > { %v376_v30 = vadd.f32 %v375_v29, %v374_v28 }
 0x417   : > { %v377_v31 = vrot.slane %v376_v30, 1 }
 0x419   : > { %v378_v32 = vadd.f32 %v377_v31, %v376_v30 }
 0x41b   : > { %861 = vpush %v378_v32 }
 0x426   : > { %v407_v33 = vpop.permute.xlu1 %406 }
 0x427   : > { %v409_v34 = vsel %vm212_vm0, %v407_v33, 0.0 }
 0x428   : > { %410 = vadd.xlane.f32.xlu2 %v409_v34 }
 0x44c   : > { %s862_s13 = spop %861 }
 0x44d   : > { %s388_s14 = smul.f32 %s862_s13, %s992_s23 }
 0x44f   : > { %s389_s16 = sadd.f32 1e-05, %s388_s14 }
 0x451   : > { %v390_v35 = vstv %s389_s16 }
 0x452   : > { %919 = vrsqrt.f32 %v390_v35  ;;  %vm397_vm10 = vweird.f32 %v390_v35 }
 0x458   : > { %v920_v36 = vpop.eup %919 }
 0x459   : > { %v392_v37 = vmul.f32 %v920_v36, %v390_v35  ;;  %vm398_vm9 = vweird.f32 %v920_v36 }
 0x45a   : > { %vm399_vm11 = vmor %vm397_vm10, %vm398_vm9  ;;  %vm747_vm9 = vcmask 326656  }
 0x45b   : > { %v393_v38 = vmul.f32 %v920_v36, %v392_v37 }
 0x45d   : > { %v394_v39 = vmul.f32 0.5, %v393_v38 }
 0x45f   : > { %v395_v40 = vsub.f32 1.5, %v394_v39 }
 0x461   : > { %v396_v41 = vmul.f32 %v920_v36, %v395_v40 }
 0x463   : > { %v400_v42 = vsel %vm399_vm11, %v920_v36, %v396_v41 }
 0x464   : > { %863 = vpush %v400_v42 }
 0x495   : > { %s1029_s18 = spop %863 }
 0x496   : > { %v402_v20 = vstv %s1029_s18 }
 0x497   : > { %v403_v22 = vmul.f32 %v402_v20, %v1019_v21 }
 0x499   : > { %v742_v19 = vsel %vm741_vm15, %v1016_v18, %v403_v22 }
 0x49b   : > { %v411_v43 = vpop.xlane.xlu2 %410 }
 0x49c   : > { %v412_v44 = vrot.slane %v411_v43, 4 }
 0x49e   : > { %v413_v45 = vadd.f32 %v412_v44, %v411_v43 }
 0x4a0   : > { %v414_v46 = vrot.slane %v413_v45, 2 }
 0x4a2   : > { %v415_v47 = vadd.f32 %v414_v46, %v413_v45 }
 0x4a4   : > { %v416_v48 = vrot.slane %v415_v47, 1 }
 0x4a6   : > { %v417_v49 = vadd.f32 %v416_v48, %v415_v47 }
 0x4a8   : > { %865 = vpush %v417_v49 }
 0x4d9   : > { %s866_s19 = spop %865 }
 0x4da   : > { %s427_s20 = smul.f32 %s866_s19, %s992_s23  ;;  %s946_s19 = smov 72  }
 0x4dc   : > { %v428_v50 = vstv %s427_s20 }
 0x4dd   : > { %v429_v51 = vsub.f32 %v986_v1, %v428_v50 }
 0x4df   : > { %v430_v52 = vmul.f32 %v429_v51, %v429_v51 }
 0x4e1   : > { %432 = vst [vmem:[#allocation1] ss:$2 sm:$0xff] %v430_v52 }
 0x4e8   : > { %v433_v53 = vld.sshfl [vmem:[#allocation1] sm:$0xff pattern:$0x75316420] }
 0x4e9   : > { %434 = vrot.lane.b32.xlu0 %v433_v53, %s942_s12  ;;  %471 = vst [vmem:[#allocation1] ss:$2 sm:$0xff] %v986_v1 }
 0x4f0   : > { %v472_v54 = vld.sshfl [vmem:[#allocation1] sm:$0xff pattern:$0x75316420] }
 0x4f1   : > { %473 = vrot.lane.b32.xlu0 %v472_v54, %s943_s21 }
 0x55b   : > { %v435_v55 = vpop.permute.xlu0 %434 }
 0x55c   : > { %v437_v56 = vsel %vm212_vm0, %v435_v55, 0.0 }
 0x55d   : > { %438 = vadd.xlane.f32.xlu1 %v437_v56 }
 0x563   : > { %v474_v57 = vpop.permute.xlu0 %473 }
 0x564   : > { %v476_v58 = vsel %vm212_vm0, %v474_v57, 0.0 }
 0x565   : > { %477 = vadd.xlane.f32.xlu0 %v476_v58 }
 0x5d0   : > { %v439_v59 = vpop.xlane.xlu1 %438 }
 0x5d1   : > { %v440_v60 = vrot.slane %v439_v59, 4 }
 0x5d3   : > { %v441_v61 = vadd.f32 %v440_v60, %v439_v59 }
 0x5d5   : > { %v442_v62 = vrot.slane %v441_v61, 2 }
 0x5d7   : > { %v443_v63 = vadd.f32 %v442_v62, %v441_v61 }
 0x5d8   : > { %v478_v3 = vpop.xlane.xlu0 %477 }
 0x5d9   : > { %v444_v0 = vrot.slane %v443_v63, 1  ;;  %v479_v4 = vrot.slane %v478_v3, 4 }
 0x5db   : > { %v445_v2 = vadd.f32 %v444_v0, %v443_v63  ;;  %v480_v6 = vadd.f32 %v479_v4, %v478_v3 }
 0x5dd   : > { %867 = vpush %v445_v2  ;;  %v481_v7 = vrot.slane %v480_v6, 2 }
 0x5df   : > { %v482_v11 = vadd.f32 %v481_v7, %v480_v6 }
 0x5e1   : > { %v483_v14 = vrot.slane %v482_v11, 1 }
 0x5e3   : > { %v484_v17 = vadd.f32 %v483_v14, %v482_v11 }
 0x60e   : > { %s868_s22 = spop %867 }
 0x60f   : > { %s455_s24 = smul.f32 %s868_s22, %s992_s23 }
 0x611   : > { %s456_s25 = sadd.f32 1e-05, %s455_s24 }
 0x613   : > { %v457_v5 = vstv %s456_s25 }
 0x614   : > { %921 = vrsqrt.f32 %v457_v5  ;;  %vm464_vm13 = vweird.f32 %v457_v5 }
 0x61a   : > { %v922_v8 = vpop.eup %921 }
 0x61b   : > { %v459_v9 = vmul.f32 %v922_v8, %v457_v5  ;;  %vm465_vm12 = vweird.f32 %v922_v8 }
 0x61c   : > { %vm466_vm14 = vmor %vm464_vm13, %vm465_vm12  ;;  %vm749_vm13 = vcmask 392192  }
 0x61d   : > { %v460_v10 = vmul.f32 %v922_v8, %v459_v9 }
 0x61f   : > { %v461_v12 = vmul.f32 0.5, %v460_v10 }
 0x621   : > { %v462_v13 = vsub.f32 1.5, %v461_v12 }
 0x623   : > { %v463_v15 = vmul.f32 %v922_v8, %v462_v13 }
 0x625   : > { %v467_v16 = vsel %vm466_vm14, %v922_v8, %v463_v15 }
 0x626   : > { %869 = vpush %v467_v16 }
 0x627   : > { %871 = vpush %v484_v17 }
 0x657   : > { %s870_s26 = spop %869 }
 0x658   : > { %v469_v23 = vstv %s870_s26  ;;  %s872_s27 = spop %871 }
 0x659   : > { %v470_v24 = vmul.f32 %v469_v23, %v429_v51  ;;  %s494_s28 = smul.f32 %s872_s27, %s992_s23 }
 0x65b   : > { %v1043_v25 = vsel %vm743_vm1, %v742_v19, %v470_v24  ;;  %v495_v26 = vstv %s494_s28  ;;  %vm751_vm1 = vcmask 457728  }
 0x65c   : > { %v1046_v27 = vsub.f32 %v986_v1, %v495_v26 }
 0x65e   : > { %v497_v28 = vmul.f32 %v1046_v27, %v1046_v27 }
 0x660   : > { %499 = vst [vmem:[#allocation1] ss:$2 sm:$0xff] %v497_v28 }
 0x667   : > { %v500_v21 = vld.sshfl [vmem:[#allocation1] sm:$0xff pattern:$0x75316420] }
 0x668   : > { %501 = vrot.lane.b32.xlu2 %v500_v21, %s943_s21  ;;  %538 = vst [vmem:[#allocation1] ss:$2 sm:$0xff] %v986_v1 }
 0x66f   : > { %v539_v18 = vld.sshfl [vmem:[#allocation1] sm:$0xff pattern:$0x75316420] }
 0x6c2   : > { %v502_v29 = vpop.permute.xlu2 %501 }
 0x6c3   : > { %v504_v30 = vsel %vm212_vm0, %v502_v29, 0.0 }
 0x6c4   : > { %505 = vadd.xlane.f32.xlu1 %v504_v30 }
 0x6dd   : > { %540 = vrot.lane.b32.xlu1 %v539_v18, %s944_s29 }
 0x737   : > { %v506_v31 = vpop.xlane.xlu1 %505 }
 0x738   : > { %v507_v32 = vrot.slane %v506_v31, 4 }
 0x73a   : > { %v508_v33 = vadd.f32 %v507_v32, %v506_v31 }
 0x73c   : > { %v509_v34 = vrot.slane %v508_v33, 2 }
 0x73e   : > { %v510_v35 = vadd.f32 %v509_v34, %v508_v33 }
 0x740   : > { %v511_v36 = vrot.slane %v510_v35, 1 }
 0x742   : > { %v512_v37 = vadd.f32 %v511_v36, %v510_v35 }
 0x744   : > { %873 = vpush %v512_v37 }
 0x74f   : > { %v541_v38 = vpop.permute.xlu1 %540 }
 0x750   : > { %v543_v39 = vsel %vm212_vm0, %v541_v38, 0.0 }
 0x751   : > { %544 = vadd.xlane.f32.xlu2 %v543_v39 }
 0x775   : > { %s874_s30 = spop %873 }
 0x776   : > { %s522_s5 = smul.f32 %s874_s30, %s992_s23 }
 0x778   : > { %s523_s6 = sadd.f32 1e-05, %s522_s5 }
 0x77a   : > { %v524_v40 = vstv %s523_s6  ;;  %s205_s6 = scalar_lea.vmem %s1100_s1, %s980_s17 }
 0x77b   : > { %923 = vrsqrt.f32 %v524_v40  ;;  %vm531_vm3 = vweird.f32 %v524_v40 }
 0x781   : > { %v924_v41 = vpop.eup %923 }
 0x782   : > { %v526_v42 = vmul.f32 %v924_v41, %v524_v40  ;;  %vm532_vm2 = vweird.f32 %v924_v41 }
 0x783   : > { %vm533_vm4 = vmor %vm531_vm3, %vm532_vm2  ;;  %vm753_vm2 = vcmask 523264  }
 0x784   : > { %v527_v43 = vmul.f32 %v924_v41, %v526_v42 }
 0x786   : > { %v528_v44 = vmul.f32 0.5, %v527_v43 }
 0x788   : > { %v529_v45 = vsub.f32 1.5, %v528_v44 }
 0x78a   : > { %v530_v46 = vmul.f32 %v924_v41, %v529_v45 }
 0x78c   : > { %v534_v47 = vsel %vm533_vm4, %v924_v41, %v530_v46 }
 0x78d   : > { %875 = vpush %v534_v47 }
 0x7be   : > { %s1056_s7 = spop %875 }
 0x7bf   : > { %v536_v26 = vstv %s1056_s7 }
 0x7c0   : > { %v537_v28 = vmul.f32 %v536_v26, %v1046_v27  ;;  %v765_v26 = vld [vmem:[%s205_s6] sm:$0x3] }
 0x7c2   : > { %v746_v30 = vsel %vm745_vm8, %v1043_v25, %v537_v28 }
 0x7c4   : > { %v545_v48 = vpop.xlane.xlu2 %544 }
 0x7c5   : > { %v546_v49 = vrot.slane %v545_v48, 4 }
 0x7c7   : > { %v547_v50 = vadd.f32 %v546_v49, %v545_v48 }
 0x7c9   : > { %v548_v51 = vrot.slane %v547_v50, 2 }
 0x7cb   : > { %v549_v52 = vadd.f32 %v548_v51, %v547_v50 }
 0x7cd   : > { %v550_v53 = vrot.slane %v549_v52, 1 }
 0x7cf   : > { %v551_v54 = vadd.f32 %v550_v53, %v549_v52 }
 0x7d1   : > { %877 = vpush %v551_v54 }
 0x802   : > { %s878_s8 = spop %877 }
 0x803   : > { %s561_s9 = smul.f32 %s878_s8, %s992_s23 }
 0x805   : > { %v562_v55 = vstv %s561_s9 }
 0x806   : > { %v563_v56 = vsub.f32 %v986_v1, %v562_v55 }
 0x808   : > { %v564_v57 = vmul.f32 %v563_v56, %v563_v56 }
 0x80a   : > { %566 = vst [vmem:[#allocation1] ss:$2 sm:$0xff] %v564_v57 }
 0x811   : > { %v567_v58 = vld.sshfl [vmem:[#allocation1] sm:$0xff pattern:$0x75316420] }
 0x812   : > { %568 = vrot.lane.b32.xlu0 %v567_v58, %s944_s29  ;;  %605 = vst [vmem:[#allocation1] ss:$2 sm:$0xff] %v986_v1 }
 0x819   : > { %v606_v59 = vld.sshfl [vmem:[#allocation1] sm:$0xff pattern:$0x75316420] }
 0x81a   : > { %607 = vrot.lane.b32.xlu0 %v606_v59, %s945_s10 }
 0x884   : > { %v569_v60 = vpop.permute.xlu0 %568 }
 0x885   : > { %v571_v61 = vsel %vm212_vm0, %v569_v60, 0.0 }
 0x886   : > { %572 = vadd.xlane.f32.xlu1 %v571_v61 }
 0x88c   : > { %v608_v62 = vpop.permute.xlu0 %607 }
 0x88d   : > { %v610_v63 = vsel %vm212_vm0, %v608_v62, 0.0 }
 0x88e   : > { %611 = vadd.xlane.f32.xlu0 %v610_v63 }
 0x8f9   : > { %v573_v0 = vpop.xlane.xlu1 %572 }
 0x8fa   : > { %v574_v2 = vrot.slane %v573_v0, 4 }
 0x8fc   : > { %v575_v3 = vadd.f32 %v574_v2, %v573_v0 }
 0x8fe   : > { %v576_v4 = vrot.slane %v575_v3, 2 }
 0x900   : > { %v577_v5 = vadd.f32 %v576_v4, %v575_v3 }
 0x901   : > { %v612_v8 = vpop.xlane.xlu0 %611 }
 0x902   : > { %v578_v6 = vrot.slane %v577_v5, 1  ;;  %v613_v9 = vrot.slane %v612_v8, 4 }
 0x904   : > { %v579_v7 = vadd.f32 %v578_v6, %v577_v5  ;;  %v614_v11 = vadd.f32 %v613_v9, %v612_v8 }
 0x906   : > { %879 = vpush %v579_v7  ;;  %v615_v12 = vrot.slane %v614_v11, 2 }
 0x908   : > { %v616_v16 = vadd.f32 %v615_v12, %v614_v11 }
 0x90a   : > { %v617_v22 = vrot.slane %v616_v16, 1 }
 0x90c   : > { %v618_v19 = vadd.f32 %v617_v22, %v616_v16 }
 0x937   : > { %s880_s11 = spop %879 }
 0x938   : > { %s589_s12 = smul.f32 %s880_s11, %s992_s23 }
 0x93a   : > { %s590_s13 = sadd.f32 1e-05, %s589_s12 }
 0x93c   : > { %v591_v10 = vstv %s590_s13  ;;  %s209_s13 = scalar_lea.vmem %s1103_s4, %s980_s17 }
 0x93d   : > { %925 = vrsqrt.f32 %v591_v10  ;;  %vm598_vm6 = vweird.f32 %v591_v10 }
 0x943   : > { %v926_v13 = vpop.eup %925 }
 0x944   : > { %v593_v14 = vmul.f32 %v926_v13, %v591_v10  ;;  %vm599_vm5 = vweird.f32 %v926_v13 }
 0x945   : > { %vm600_vm7 = vmor %vm598_vm6, %vm599_vm5 }
 0x946   : > { %v594_v15 = vmul.f32 %v926_v13, %v593_v14 }
 0x948   : > { %v595_v17 = vmul.f32 0.5, %v594_v15 }
 0x94a   : > { %v596_v20 = vsub.f32 1.5, %v595_v17 }
 0x94c   : > { %v597_v23 = vmul.f32 %v926_v13, %v596_v20 }
 0x94e   : > { %v601_v24 = vsel %vm600_vm7, %v926_v13, %v597_v23 }
 0x94f   : > { %881 = vpush %v601_v24 }
 0x950   : > { %883 = vpush %v618_v19  ;;  %v911_v19 = vld [vmem:[%s1101_s2] ss:$0 sm:$0xff] }
 0x980   : > { %s882_s14 = spop %881 }
 0x981   : > { %v603_v21 = vstv %s882_s14  ;;  %s884_s16 = spop %883 }
 0x982   : > { %v604_v29 = vmul.f32 %v603_v21, %v563_v56  ;;  %s628_s18 = smul.f32 %s884_s16, %s992_s23  ;;  %v912_v21 = vld [vmem:[%s1102_s3] ss:$0 sm:$0xff] }
 0x984   : > { %v748_v18 = vsel %vm747_vm9, %v746_v30, %v604_v29  ;;  %v629_v31 = vstv %s628_s18 }
 0x985   : > { %v630_v32 = vsub.f32 %v986_v1, %v629_v31 }
 0x987   : > { %v631_v33 = vmul.f32 %v630_v32, %v630_v32 }
 0x989   : > { %633 = vst [vmem:[#allocation1] ss:$2 sm:$0xff] %v631_v33 }
 0x990   : > { %v634_v34 = vld.sshfl [vmem:[#allocation1] sm:$0xff pattern:$0x75316420] }
 0x991   : > { %635 = vrot.lane.b32.xlu2 %v634_v34, %s945_s10  ;;  %672 = vst [vmem:[#allocation1] ss:$2 sm:$0xff] %v986_v1 }
 0x998   : > { %v673_v27 = vld.sshfl [vmem:[#allocation1] sm:$0xff pattern:$0x75316420] }
 0x999   : > { %674 = vrot.lane.b32.xlu2 %v673_v27, %s946_s19 }
 0x9eb   : > { %v636_v35 = vpop.permute.xlu2 %635 }
 0x9ec   : > { %v638_v36 = vsel %vm212_vm0, %v636_v35, 0.0 }
 0x9ed   : > { %639 = vadd.xlane.f32.xlu1 %v638_v36 }
 0x9f3   : > { %v675_v25 = vpop.permute.xlu2 %674 }
 0x9f4   : > { %v677_v37 = vsel %vm212_vm0, %v675_v25, 0.0 }
 0x9f5   : > { %678 = vadd.xlane.f32.xlu1 %v677_v37 }
 0xa60   : > { %v640_v38 = vpop.xlane.xlu1 %639 }
 0xa61   : > { %v641_v39 = vrot.slane %v640_v38, 4 }
 0xa63   : > { %v642_v40 = vadd.f32 %v641_v39, %v640_v38 }
 0xa65   : > { %v643_v41 = vrot.slane %v642_v40, 2 }
 0xa67   : > { %v644_v42 = vadd.f32 %v643_v41, %v642_v40 }
 0xa68   : > { %v679_v45 = vpop.xlane.xlu1 %678 }
 0xa69   : > { %v645_v43 = vrot.slane %v644_v42, 1  ;;  %v680_v46 = vrot.slane %v679_v45, 4 }
 0xa6b   : > { %v646_v44 = vadd.f32 %v645_v43, %v644_v42  ;;  %v681_v48 = vadd.f32 %v680_v46, %v679_v45 }
 0xa6d   : > { %885 = vpush %v646_v44  ;;  %v682_v49 = vrot.slane %v681_v48, 2 }
 0xa6f   : > { %v683_v53 = vadd.f32 %v682_v49, %v681_v48 }
 0xa71   : > { %v684_v56 = vrot.slane %v683_v53, 1 }
 0xa73   : > { %v685_v59 = vadd.f32 %v684_v56, %v683_v53 }
 0xa9e   : > { %s886_s20 = spop %885 }
 0xa9f   : > { %s656_s21 = smul.f32 %s886_s20, %s992_s23 }
 0xaa1   : > { %s657_s22 = sadd.f32 1e-05, %s656_s21 }
 0xaa3   : > { %v658_v47 = vstv %s657_s22 }
 0xaa4   : > { %927 = vrsqrt.f32 %v658_v47  ;;  %vm665_vm11 = vweird.f32 %v658_v47 }
 0xaaa   : > { %v928_v50 = vpop.eup %927 }
 0xaab   : > { %v660_v51 = vmul.f32 %v928_v50, %v658_v47  ;;  %vm666_vm10 = vweird.f32 %v928_v50 }
 0xaac   : > { %vm667_vm12 = vmor %vm665_vm11, %vm666_vm10 }
 0xaad   : > { %v661_v52 = vmul.f32 %v928_v50, %v660_v51 }
 0xaaf   : > { %v662_v54 = vmul.f32 0.5, %v661_v52 }
 0xab1   : > { %v663_v55 = vsub.f32 1.5, %v662_v54 }
 0xab3   : > { %v664_v57 = vmul.f32 %v928_v50, %v663_v55 }
 0xab5   : > { %v668_v58 = vsel %vm667_vm12, %v928_v50, %v664_v57 }
 0xab6   : > { %887 = vpush %v668_v58 }
 0xab7   : > { %889 = vpush %v685_v59 }
 0xae7   : > { %s888_s24 = spop %887 }
 0xae8   : > { %v670_v60 = vstv %s888_s24  ;;  %s890_s25 = spop %889 }
 0xae9   : > { %v671_v61 = vmul.f32 %v670_v60, %v630_v32  ;;  %s695_s26 = smul.f32 %s890_s25, %s992_s23 }
 0xaeb   : > { %v750_v62 = vsel %vm749_vm13, %v748_v18, %v671_v61  ;;  %v696_v63 = vstv %s695_s26  ;;  %v766_v18 = vunpack.c.l.bf16 %v765_v26 }
 0xaec   : > { %v697_v0 = vsub.f32 %v986_v1, %v696_v63 }
 0xaee   : > { %v698_v2 = vmul.f32 %v697_v0, %v697_v0 }
 0xaf0   : > { %700 = vst [vmem:[#allocation1] ss:$2 sm:$0xff] %v698_v2 }
 0xaf7   : > { %v701_v3 = vld.sshfl [vmem:[#allocation1] sm:$0xff pattern:$0x75316420] }
 0xaf8   : > { %702 = vrot.lane.b32.xlu2 %v701_v3, %s946_s19 }
 0xb52   : > { %v703_v4 = vpop.permute.xlu2 %702 }
 0xb53   : > { %v705_v5 = vsel %vm212_vm0, %v703_v4, 0.0 }
 0xb54   : > { %706 = vadd.xlane.f32.xlu1 %v705_v5 }
 0xbc7   : > { %v707_v6 = vpop.xlane.xlu1 %706 }
 0xbc8   : > { %v708_v7 = vrot.slane %v707_v6, 4 }
 0xbca   : > { %v709_v8 = vadd.f32 %v708_v7, %v707_v6 }
 0xbcc   : > { %v710_v9 = vrot.slane %v709_v8, 2 }
 0xbce   : > { %v711_v10 = vadd.f32 %v710_v9, %v709_v8 }
 0xbd0   : > { %v712_v11 = vrot.slane %v711_v10, 1 }
 0xbd2   : > { %v713_v12 = vadd.f32 %v712_v11, %v711_v10 }
 0xbd4   : > { %891 = vpush %v713_v12 }
 0xc05   : > { %s892_s27 = spop %891 }
 0xc06   : > { %s723_s28 = smul.f32 %s892_s27, %s992_s23 }
 0xc08   : > { %s724_s29 = sadd.f32 1e-05, %s723_s28 }
 0xc0a   : > { %v725_v1 = vstv %s724_s29 }
 0xc0b   : > { %929 = vrsqrt.f32 %v725_v1  ;;  %vm732_vm14 = vweird.f32 %v725_v1 }
 0xc11   : > { %v930_v13 = vpop.eup %929 }
 0xc12   : > { %v727_v14 = vmul.f32 %v930_v13, %v725_v1  ;;  %vm733_vm0 = vweird.f32 %v930_v13 }
 0xc13   : > { %vm734_vm15 = vmor %vm732_vm14, %vm733_vm0 }
 0xc14   : > { %v728_v15 = vmul.f32 %v930_v13, %v727_v14 }
 0xc16   : > { %v729_v16 = vmul.f32 0.5, %v728_v15 }
 0xc18   : > { %v730_v17 = vsub.f32 1.5, %v729_v16 }
 0xc1a   : > { %v731_v20 = vmul.f32 %v930_v13, %v730_v17 }
 0xc1c   : > { %v735_v22 = vsel %vm734_vm15, %v930_v13, %v731_v20 }
 0xc1d   : > { %893 = vpush %v735_v22 }
 0xc4e   : > { %s894_s23 = spop %893 }
 0xc4f   : > { %v737_v23 = vstv %s894_s23 }
 0xc50   : > { %v738_v24 = vmul.f32 %v737_v23, %v697_v0 }
 0xc52   : > { %v752_v28 = vsel %vm751_vm1, %v750_v62, %v738_v24 }
 0xc53   : > { %v754_v29 = vsel %vm753_vm2, %v752_v28, 0.0 }
 0xc54   : > { %v759_v30 = vmul.f32 %v911_v19, %v754_v29 }
 0xc56   : > { %v764_v31 = vadd.f32 %v912_v21, %v759_v30 }
 0xc58   : > { %v767_v32 = vadd.f32 %v766_v18, %v764_v31 }
 0xc5a   : > { %v768_v33 = vpack.c.bf16 %v767_v32, %v767_v32 }
 0xc5c   : > { %769 = vst [vmem:[%s209_s13] sm:$0x3] %v768_v33 }
 0xc5d PF: > { %s14_s15 = sadd.s32 1, %s937_s15  }
 0xc5e   : > { %p11_p4 = scmp.ge.s32.totalorder %s14_s15, 4  }
 0xc60   :  { %13 = sbr.rel (!%p11_p4) target bundleno = 1 (0x1), region = 69 }

// kernel: _lambda_.96
= control target key start
LH: loop header
LB: loop body
LE: loop exit
PB: predicated region body
PF: predicated region fallthrough
CT: control target
= control target key end

     0   :  { %s368_s9 = smov 0   ;;  %s370_s10 = smov 0   ;;  %s404_s0 = inlined_call_operand.vmem [shape: bf16[2,4,128], index: 0, kind: input, shape index: {}]   ;;  %s405_s1 = inlined_call_operand.vmem [shape: f32[2,4,128], index: 1, kind: input, shape index: {}]   ;;  %s406_s2 = inlined_call_operand.vmem [shape: bf16[2,4,128], index: 2, kind: output, shape index: {}]  }
   0x1   :  { %s372_s11 = smov 0  }
   0x2 LB: > { %s24_s12 = sadd.s32 1, %s347_s10  ;;  %p299_p0 = scmp.ge.s32.totalorder %s351_s11, 1  ;;  %s351_s11 = sphi %s372_s11, %s12_s11   ;;  %s347_s10 = sphi %s370_s10, %s408_s10   ;;  %s343_s9 = sphi %s368_s9, %s407_s9  }
   0x3   : > { %p26_p1 = scmp.ge.s32.totalorder %s24_s12, 2  ;;  %p139_p2 = scmp.lt.s32.totalorder %s351_s11, 3 }
   0x5   : > { %s410_s12 = smov (%p26_p1, %s24_s12), 0  ;;  %p140_p3 = pnand %p299_p0, %p139_p2 }
   0x6   : > { %p169_p4 = scmp.lt.s32.totalorder (!%p140_p3), %s343_s9, 1 }
   0x7   : > { %143 = sbr.rel (%p140_p3) target bundleno = 32 (0x20), region = 28 }
   0xc   : > { %s412_s9 = smov (!%p169_p4, %s343_s9), 1 }
   0xd   : > { %s300_s13 = sshll.u32 %s412_s9, 1  ;;  %s301_s14 = sshll.u32 %s412_s9, 2 }
   0xe   : > { %s175_s17 = scalar_lea.vmem %s404_s0, %s300_s13  ;;  %s179_s20 = scalar_lea.vmem %s405_s1, %s301_s14 }
   0xf   : > { %v187_v0 = vld [vmem:[%s175_s17] sm:$0x3]  ;;  %s186_s23 = scalar_lea.vmem %s406_s2, %s300_s13 }
  0x10   : > { %v189_v1 = vld [vmem:[%s179_s20] sm:$0xf]  ;;  %v188_v2 = vunpack.c.l.bf16 %v187_v0 }
  0x11   : > { %v190_v3 = vmul.f32 0.9998, %v189_v1  ;;  %v193_v4 = vmul.f32 0.00019996, %v189_v1  ;;  %v198_v5 = vmul.f32 1.9996e-08, %v189_v1 }
  0x12   : > { %v203_v6 = vmul.f32 1.3330667e-12, %v189_v1  ;;  %v197_v9 = vmul.f32 %v188_v2, %v188_v2 }
  0x13   : > { %v191_v7 = vperm.slane %v190_v3, 0  ;;  %v194_v8 = vperm.slane %v193_v4, 1  ;;  %v199_v10 = vperm.slane %v198_v5, 2 }
  0x14   : > { %v204_v11 = vperm.slane %v203_v6, 3  ;;  %v202_v14 = vmul.f32 %v197_v9, %v188_v2 }
  0x15   : > { %v195_v12 = vmul.f32 %v194_v8, %v188_v2  ;;  %v200_v13 = vmul.f32 %v199_v10, %v197_v9 }
  0x16   : > { %v205_v16 = vmul.f32 %v204_v11, %v202_v14 }
  0x17   : > { %v196_v15 = vadd.f32 %v195_v12, %v191_v7 }
  0x19   : > { %v201_v17 = vadd.f32 %v200_v13, %v196_v15 }
  0x1b   : > { %v206_v18 = vadd.f32 %v205_v16, %v201_v17 }
  0x1d   : > { %v207_v19 = vpack.c.bf16 %v206_v18, %v206_v18 }
  0x1f   : > { %208 = vst [vmem:[%s186_s23] sm:$0x3] %v207_v19 }
  0x20 PF: > { %s12_s11 = sadd.s32 1, %s351_s11   ;;  %s407_s9 = smov %s347_s10 }
  0x21   : > { %p9_p5 = scmp.ge.s32.totalorder %s12_s11, 4   ;;  %s408_s10 = smov %s410_s12 }
  0x23   :  { %11 = sbr.rel (!%p9_p5) target bundleno = 2 (0x2), region = 61 }

</bundles_post_ra>
